<compile_context>
chip_gen: v6e
topology: v6e:2x2x1
jax: 0.10.0
libtpu: 0.0.40
codegen_flags: <defaults>
</compile_context>

<pallas_src>
import jax
import jax.numpy as jnp
from jax.experimental import pallas as pl
from jax.experimental.pallas import tpu as pltpu

EPS = 1e-5
_VMEM_LIMIT = 48 * 1024 * 1024   # stays inside v7x's 64 MiB physical VMEM with headroom


# --------------------- GroupNorm(1) statistics (tiled reduction) ---------------------

def _gn_stats_kernel(x_ref, ssum_ref, ssq_ref, sum_sc, sq_sc):
    t = pl.program_id(1)

    @pl.when(t == 0)
    def _():
        sum_sc[...] = jnp.zeros_like(sum_sc)
        sq_sc[...] = jnp.zeros_like(sq_sc)

    x = x_ref[0].astype(jnp.float32)                        # (thw, C)
    sum_sc[...] += jnp.sum(x, axis=0, keepdims=True)        # (1, C) partials
    sq_sc[...] += jnp.sum(x * x, axis=0, keepdims=True)

    @pl.when(t == pl.num_programs(1) - 1)
    def _():
        ssum_ref[...] = jnp.sum(sum_sc[...], keepdims=True).reshape(1, 1, 1)
        ssq_ref[...] = jnp.sum(sq_sc[...], keepdims=True).reshape(1, 1, 1)


def _pick_row_tile(hw, c, target_bytes=4 * 1024 * 1024):
    for cand in (8192, 4096, 2048, 1024, 512, 256, 128, 64, 32, 16, 8):
        if hw % cand == 0 and cand * c * 4 <= target_bytes:
            return cand
    return hw


def gn_stats(x_flat):
    """x_flat: (N, HW, C) -> per-sample (sum, sum_sq) over (HW, C); each (N, 1, 1) f32."""
    N, HW, C = x_flat.shape
    thw = _pick_row_tile(HW, C)
    T = HW // thw
    return pl.pallas_call(
        _gn_stats_kernel,
        out_shape=(jax.ShapeDtypeStruct((N, 1, 1), jnp.float32),
                   jax.ShapeDtypeStruct((N, 1, 1), jnp.float32)),
        grid=(N, T),
        in_specs=[pl.BlockSpec((1, thw, C), lambda n, t: (n, t, 0))],
        out_specs=(pl.BlockSpec((1, 1, 1), lambda n, t: (n, 0, 0)),
                   pl.BlockSpec((1, 1, 1), lambda n, t: (n, 0, 0))),
        scratch_shapes=[pltpu.VMEM((1, C), jnp.float32),
                        pltpu.VMEM((1, C), jnp.float32)],
        compiler_params=pltpu.CompilerParams(
            dimension_semantics=("parallel", "arbitrary"),
            vmem_limit_bytes=_VMEM_LIMIT),
    )(x_flat)


# ------------- fused GroupNorm-apply + SiLU + Conv3x3 (+ shortcut / stats) -------------

def _make_fused_conv_kernel(H, W, Cin, Cout, shortcut, emit_stats):
    HW = H * W
    front = ((W + 1 + 7) // 8) * 8            # sublane-aligned zero-pad in front (>= W+1)
    inv_count = 1.0 / float(HW * Cin)         # GN(groups=1) element count of the input

    def kernel(*refs):
        ssum_ref, ssq_ref = refs[0], refs[1]
        x_ref, gamma_ref, beta_ref, w_ref, mask_l_ref, mask_r_ref = refs[2:8]
        pos = 8
        if shortcut == "conv":
            xs_ref, wsc_ref = refs[pos], refs[pos + 1]
            pos += 2
        elif shortcut == "identity":
            xs_ref = refs[pos]
            pos += 1
        out_ref = refs[pos]
        pos += 1
        if emit_stats:
            osum_ref, osq_ref = refs[pos], refs[pos + 1]
            pos += 2
        pad_ref = refs[pos]

        n = pl.program_id(0)
        ssum = ssum_ref[n, 0, 0]               # per-sample GN sums, read from SMEM
        ssq = ssq_ref[n, 0, 0]

        # GroupNorm(num_groups=1) normalise + affine + SiLU, fused (all vector f32 ops).
        g = gamma_ref[...].astype(jnp.float32)                       # (1, Cin)
        mean_v = jnp.full_like(g, ssum) * inv_count
        var_v = jnp.full_like(g, ssq) * inv_count - mean_v * mean_v
        scale = g * jax.lax.rsqrt(var_v + EPS)
        bias = beta_ref[...].astype(jnp.float32) - mean_v * scale

        x = x_ref[0].astype(jnp.float32)                              # (HW, Cin)
        y = x * scale + bias
        a = y * jax.nn.sigmoid(y)                                     # SiLU

        # Zero-padded flattened halo buffer: rows -1 and H are zero, so every (dh, dw) tap
        # of the 3x3 conv is one contiguous (HW, Cin) slice of VMEM (no HBM im2col).
        pad_ref[...] = jnp.zeros_like(pad_ref)
        pad_ref[front:front + HW, :] = a

        mask_l = mask_l_ref[...]               # (HW, 1): zero where w == 0     (dw = -1 taps)
        mask_r = mask_r_ref[...]               # (HW, 1): zero where w == W - 1 (dw = +1 taps)
        col_masks = (mask_l, None, mask_r)

        acc = jnp.zeros((HW, Cout), jnp.float32)
        for kh in range(3):
            for kw in range(3):
                start = front + (kh - 1) * W + (kw - 1)
                tap = pad_ref[start:start + HW, :]
                m = col_masks[kw]
                if m is not None:
                    tap = tap * m
                acc = acc + jnp.dot(tap, w_ref[kh * 3 + kw],
                                    preferred_element_type=jnp.float32)

        if emit_stats:   # GN stats of THIS conv's output -> feeds the next GroupNorm for free
            osum_ref[...] = jnp.sum(acc, keepdims=True).reshape(1, 1, 1)
            osq_ref[...] = jnp.sum(acc * acc, keepdims=True).reshape(1, 1, 1)

        if shortcut == "conv":                 # fused 1x1 shortcut conv + residual add
            acc = acc + jnp.dot(xs_ref[0].astype(jnp.float32), wsc_ref[...],
                                preferred_element_type=jnp.float32)
        elif shortcut == "identity":           # fused identity residual add
            acc = acc + xs_ref[0].astype(jnp.float32)

        out_ref[0] = acc.astype(out_ref.dtype)

    return kernel


def fused_gn_silu_conv3x3(x_flat, ssum, ssq, gamma, beta, w_oihw, H, W,
                          shortcut_x=None, shortcut_w=None, emit_stats=False):
    """GroupNorm(1) -> SiLU -> Conv2d 3x3 'same' (+ optional fused shortcut add).

    x_flat: (N, H*W, Cin) channel-last activation; returns (N, H*W, Cout)
    (plus (sum, sumsq) of the conv output when emit_stats=True).
    """
    N, HW, Cin = x_flat.shape
    Cout = w_oihw.shape[0]

    # PyTorch OIHW -> 9 taps of (Cin, Cout), ordered (kh, kw).
    w = jnp.transpose(w_oihw, (2, 3, 1, 0)).reshape(9, Cin, Cout).astype(jnp.float32)
    g = gamma.reshape(1, Cin).astype(jnp.float32)
    b = beta.reshape(1, Cin).astype(jnp.float32)

    # Column-boundary masks for the dw = -1 / +1 taps of the flattened spatial layout.
    col = jnp.arange(HW, dtype=jnp.int32) % W
    mask_l = (col != 0).astype(jnp.float32).reshape(HW, 1)
    mask_r = (col != W - 1).astype(jnp.float32).reshape(HW, 1)

    if shortcut_x is not None and shortcut_w is not None:
        mode = "conv"
    elif shortcut_x is not None:
        mode = "identity"
    else:
        mode = "none"

    kernel = _make_fused_conv_kernel(H, W, Cin, Cout, mode, emit_stats)

    in_specs = [
        pl.BlockSpec(memory_space=pltpu.MemorySpace.SMEM),       # ssum (N, 1, 1)
        pl.BlockSpec(memory_space=pltpu.MemorySpace.SMEM),       # ssq  (N, 1, 1)
        pl.BlockSpec((1, HW, Cin), lambda n: (n, 0, 0)),         # activation
        pl.BlockSpec((1, Cin), lambda n: (0, 0)),                # gamma
        pl.BlockSpec((1, Cin), lambda n: (0, 0)),                # beta
        pl.BlockSpec((9, Cin, Cout), lambda n: (0, 0, 0)),       # conv weight taps (resident)
        pl.BlockSpec((HW, 1), lambda n: (0, 0)),                 # mask_l
        pl.BlockSpec((HW, 1), lambda n: (0, 0)),                 # mask_r
    ]
    args = [ssum, ssq, x_flat, g, b, w, mask_l, mask_r]

    if mode == "conv":
        Cs = shortcut_x.shape[-1]
        wsc = jnp.transpose(shortcut_w, (2, 3, 1, 0)).reshape(Cs, Cout).astype(jnp.float32)
        in_specs += [pl.BlockSpec((1, HW, Cs), lambda n: (n, 0, 0)),
                     pl.BlockSpec((Cs, Cout), lambda n: (0, 0))]
        args += [shortcut_x, wsc]
    elif mode == "identity":
        Cs = shortcut_x.shape[-1]
        in_specs += [pl.BlockSpec((1, HW, Cs), lambda n: (n, 0, 0))]
        args += [shortcut_x]

    if emit_stats:
        out_shape = (jax.ShapeDtypeStruct((N, HW, Cout), x_flat.dtype),
                     jax.ShapeDtypeStruct((N, 1, 1), jnp.float32),
                     jax.ShapeDtypeStruct((N, 1, 1), jnp.float32))
        out_specs = (pl.BlockSpec((1, HW, Cout), lambda n: (n, 0, 0)),
                     pl.BlockSpec((1, 1, 1), lambda n: (n, 0, 0)),
                     pl.BlockSpec((1, 1, 1), lambda n: (n, 0, 0)))
    else:
        out_shape = jax.ShapeDtypeStruct((N, HW, Cout), x_flat.dtype)
        out_specs = pl.BlockSpec((1, HW, Cout), lambda n: (n, 0, 0))

    front = ((W + 1 + 7) // 8) * 8
    pad_len = 2 * front + HW

    return pl.pallas_call(
        kernel,
        out_shape=out_shape,
        grid=(N,),
        in_specs=in_specs,
        out_specs=out_specs,
        scratch_shapes=[pltpu.VMEM((pad_len, Cin), jnp.float32)],
        compiler_params=pltpu.CompilerParams(
            dimension_semantics=("parallel",),
            vmem_limit_bytes=_VMEM_LIMIT),
    )(*args)


# ----------------------------------- forward glue ------------------------------------

def res_block_forward(x_nchw, params):
    x = jnp.transpose(x_nchw, (0, 2, 3, 1))          # NCHW -> NHWC
    N, H, W, Cin = x.shape
    Cout = params["conv1_w"].shape[0]
    x_flat = x.reshape(N, H * W, Cin)

    # per-sample GroupNorm sums of the block input
    xsum, xsq = gn_stats(x_flat)

    # norm1 -> SiLU -> conv1 (fused); also emits the GN stats of its own output for norm2
    h, hsum, hsq = fused_gn_silu_conv3x3(
        x_flat, xsum, xsq, params["norm1_w"], params["norm1_b"],
        params["conv1_w"], H, W, emit_stats=True)

    # norm2 -> SiLU -> conv2 (fused) with the shortcut (1x1 conv or identity) + residual add
    out = fused_gn_silu_conv3x3(
        h, hsum, hsq, params["norm2_w"], params["norm2_b"],
        params["conv2_w"], H, W,
        shortcut_x=x_flat, shortcut_w=params.get("shortcut_w"))

    out = out.reshape(N, H, W, Cout)
    # TODO(synk): keep NHWC end-to-end when the surrounding model allows it -- each boundary
    # transpose is an extra HBM pass done by XLA outside the kernels.
    return jnp.transpose(out, (0, 3, 1, 2))          # NHWC -> NCHW


# -------------------------------- pure-JAX reference ----------------------------------

def ref_forward(x, params):
    def gn(x, g, b):
        mean = jnp.mean(x, axis=(1, 2, 3), keepdims=True)
        var = jnp.var(x, axis=(1, 2, 3), keepdims=True)
        xn = (x - mean) * jax.lax.rsqrt(var + EPS)
        return xn * g[None, :, None, None] + b[None, :, None, None]

    def conv(x, w):
        return jax.lax.conv_general_dilated(
            x, w, (1, 1), "SAME", dimension_numbers=("NCHW", "OIHW", "NCHW"))

    silu = lambda v: v * jax.nn.sigmoid(v)
    r = conv(silu(gn(x, params["norm1_w"], params["norm1_b"])), params["conv1_w"])
    r = conv(silu(gn(r, params["norm2_w"], params["norm2_b"])), params["conv2_w"])
    sc = conv(x, params["shortcut_w"]) if "shortcut_w" in params else x
    return sc + r


# ---------------------------------------- main ----------------------------------------

if __name__ == "__main__":
    key = jax.random.PRNGKey(0)
    N, Cin, Cout, H, W = 2, 4, 8, 16, 16

    ks = jax.random.split(key, 8)
    x = jax.random.normal(ks[0], (N, Cin, H, W), jnp.float32)

    params = {
        "norm1_w": 1.0 + 0.1 * jax.random.normal(ks[1], (Cin,), jnp.float32),
        "norm1_b": 0.1 * jax.random.normal(ks[2], (Cin,), jnp.float32),
        "conv1_w": 0.1 * jax.random.normal(ks[3], (Cout, Cin, 3, 3), jnp.float32),
        "norm2_w": 1.0 + 0.1 * jax.random.normal(ks[4], (Cout,), jnp.float32),
        "norm2_b": 0.1 * jax.random.normal(ks[5], (Cout,), jnp.float32),
        "conv2_w": 0.1 * jax.random.normal(ks[6], (Cout, Cout, 3, 3), jnp.float32),
        # out_channels != in_channels => 1x1 shortcut conv (bias=False)
        "shortcut_w": 0.1 * jax.random.normal(ks[7], (Cout, Cin, 1, 1), jnp.float32),
    }

    out = jax.jit(res_block_forward)(x, params)
    out = jax.block_until_ready(out)

    ref = ref_forward(x, params)
    assert out.shape == (N, Cout, H, W), out.shape
    max_err = float(jnp.max(jnp.abs(out - ref)))
    assert jnp.allclose(out, ref, atol=1e-3, rtol=1e-3), max_err

    print("KERNEL_OK")
</pallas_src>

<mosaic_0001>
module attributes {stable_mosaic.version = 11 : i64} {
  func.func @_gn_stats_kernel(%arg0: i32, %arg1: i32, %arg2: memref<1x256x4xf32, #tpu.memory_space<vmem>>, %arg3: memref<1x1x1xf32, #tpu.memory_space<vmem>>, %arg4: memref<1x1x1xf32, #tpu.memory_space<vmem>>, %arg5: memref<1x4xf32, #tpu.memory_space<vmem>>, %arg6: memref<1x4xf32, #tpu.memory_space<vmem>>) attributes {dimension_semantics = [#tpu.dimension_semantics<parallel>, #tpu.dimension_semantics<arbitrary>], iteration_bounds = array<i64: 2, 1>, scalar_prefetch = 0 : i64, scratch_operands = 2 : i64, tpu.core_type = #tpu.core_type<tc>, window_params = [{transform_indices = @transform_0, window_bounds = array<i64: 1, 256, 4>}, {transform_indices = @transform_1, window_bounds = array<i64: 1, 1, 1>}, {transform_indices = @transform_2, window_bounds = array<i64: 1, 1, 1>}]} {
    %c0_i32 = arith.constant 0 : i32
    %0 = arith.cmpi eq, %arg1, %c0_i32 : i32
    %1 = arith.extui %0 : i1 to i32
    %c0_i32_0 = arith.constant 0 : i32
    %2 = arith.cmpi ne, %1, %c0_i32_0 : i32
    scf.if %2 {
      %cst_14 = arith.constant 0.000000e+00 : f32
      %19 = vector.broadcast %cst_14 : f32 to vector<1x4xf32>
      %c0_15 = arith.constant 0 : index
      %c0_16 = arith.constant 0 : index
      %20 = vector.load %arg5[%c0_15, %c0_16] : memref<1x4xf32, #tpu.memory_space<vmem>>, vector<1x4xf32>
      tpu.vector_store %arg5[%c0_15, %c0_16], %19 {strides = array<i32>} : memref<1x4xf32, #tpu.memory_space<vmem>>, vector<1x4xf32>,
      %cst_17 = arith.constant 0.000000e+00 : f32
      %21 = vector.broadcast %cst_17 : f32 to vector<1x4xf32>
      %c0_18 = arith.constant 0 : index
      %c0_19 = arith.constant 0 : index
      %22 = vector.load %arg6[%c0_18, %c0_19] : memref<1x4xf32, #tpu.memory_space<vmem>>, vector<1x4xf32>
      tpu.vector_store %arg6[%c0_18, %c0_19], %21 {strides = array<i32>} : memref<1x4xf32, #tpu.memory_space<vmem>>, vector<1x4xf32>,
    } else {
    }
    %c0 = arith.constant 0 : index
    %c0_1 = arith.constant 0 : index
    %c0_2 = arith.constant 0 : index
    %3 = vector.load %arg2[%c0, %c0_1, %c0_2] : memref<1x256x4xf32, #tpu.memory_space<vmem>>, vector<1x256x4xf32>
    %4 = vector.shape_cast %3 : vector<1x256x4xf32> to vector<256x4xf32>
    %c0_3 = arith.constant 0 : index
    %c0_4 = arith.constant 0 : index
    %5 = vector.load %arg5[%c0_3, %c0_4] : memref<1x4xf32, #tpu.memory_space<vmem>>, vector<1x4xf32>
    %cst = arith.constant dense<0.000000e+00> : vector<4xf32>
    %6 = vector.multi_reduction <add>, %4, %cst [0] : vector<256x4xf32> to vector<4xf32>
    %7 = vector.shape_cast %6 : vector<4xf32> to vector<1x4xf32>
    %8 = arith.addf %5, %7 : vector<1x4xf32>
    %c0_5 = arith.constant 0 : index
    %c0_6 = arith.constant 0 : index
    %9 = vector.load %arg5[%c0_5, %c0_6] : memref<1x4xf32, #tpu.memory_space<vmem>>, vector<1x4xf32>
    tpu.vector_store %arg5[%c0_5, %c0_6], %8 {strides = array<i32>} : memref<1x4xf32, #tpu.memory_space<vmem>>, vector<1x4xf32>,
    %c0_7 = arith.constant 0 : index
    %c0_8 = arith.constant 0 : index
    %10 = vector.load %arg6[%c0_7, %c0_8] : memref<1x4xf32, #tpu.memory_space<vmem>>, vector<1x4xf32>
    %11 = arith.mulf %4, %4 : vector<256x4xf32>
    %cst_9 = arith.constant dense<0.000000e+00> : vector<4xf32>
    %12 = vector.multi_reduction <add>, %11, %cst_9 [0] : vector<256x4xf32> to vector<4xf32>
    %13 = vector.shape_cast %12 : vector<4xf32> to vector<1x4xf32>
    %14 = arith.addf %10, %13 : vector<1x4xf32>
    %c0_10 = arith.constant 0 : index
    %c0_11 = arith.constant 0 : index
    %15 = vector.load %arg6[%c0_10, %c0_11] : memref<1x4xf32, #tpu.memory_space<vmem>>, vector<1x4xf32>
    tpu.vector_store %arg6[%c0_10, %c0_11], %14 {strides = array<i32>} : memref<1x4xf32, #tpu.memory_space<vmem>>, vector<1x4xf32>,
    %c0_i32_12 = arith.constant 0 : i32
    %16 = arith.cmpi eq, %arg1, %c0_i32_12 : i32
    %17 = arith.extui %16 : i1 to i32
    %c0_i32_13 = arith.constant 0 : i32
    %18 = arith.cmpi ne, %17, %c0_i32_13 : i32
    scf.if %18 {
      %c0_14 = arith.constant 0 : index
      %c0_15 = arith.constant 0 : index
      %19 = vector.load %arg5[%c0_14, %c0_15] : memref<1x4xf32, #tpu.memory_space<vmem>>, vector<1x4xf32>
      %20 = vector.shape_cast %19 : vector<1x4xf32> to vector<1x1x4xf32>
      %cst_16 = arith.constant dense<0.000000e+00> : vector<1xf32>
      %21 = vector.multi_reduction <add>, %20, %cst_16 [1, 2] : vector<1x1x4xf32> to vector<1xf32>
      %22 = vector.shape_cast %21 : vector<1xf32> to vector<1x1x1xf32>
      %23 = vector.extract %22[0, 0, 0] : f32 from vector<1x1x1xf32>
      %24 = vector.broadcast %23 : f32 to vector<1x1xf32>
      %25 = vector.shape_cast %24 : vector<1x1xf32> to vector<1x1x1xf32>
      %c0_17 = arith.constant 0 : index
      %c0_18 = arith.constant 0 : index
      %c0_19 = arith.constant 0 : index
      %26 = vector.load %arg3[%c0_17, %c0_18, %c0_19] : memref<1x1x1xf32, #tpu.memory_space<vmem>>, vector<1x1x1xf32>
      tpu.vector_store %arg3[%c0_17, %c0_18, %c0_19], %25 {strides = array<i32>} : memref<1x1x1xf32, #tpu.memory_space<vmem>>, vector<1x1x1xf32>,
      %c0_20 = arith.constant 0 : index
      %c0_21 = arith.constant 0 : index
      %27 = vector.load %arg6[%c0_20, %c0_21] : memref<1x4xf32, #tpu.memory_space<vmem>>, vector<1x4xf32>
      %28 = vector.shape_cast %27 : vector<1x4xf32> to vector<1x1x4xf32>
      %cst_22 = arith.constant dense<0.000000e+00> : vector<1xf32>
      %29 = vector.multi_reduction <add>, %28, %cst_22 [1, 2] : vector<1x1x4xf32> to vector<1xf32>
      %30 = vector.shape_cast %29 : vector<1xf32> to vector<1x1x1xf32>
      %31 = vector.extract %30[0, 0, 0] : f32 from vector<1x1x1xf32>
      %32 = vector.broadcast %31 : f32 to vector<1x1xf32>
      %33 = vector.shape_cast %32 : vector<1x1xf32> to vector<1x1x1xf32>
      %c0_23 = arith.constant 0 : index
      %c0_24 = arith.constant 0 : index
      %c0_25 = arith.constant 0 : index
      %34 = vector.load %arg4[%c0_23, %c0_24, %c0_25] : memref<1x1x1xf32, #tpu.memory_space<vmem>>, vector<1x1x1xf32>
      tpu.vector_store %arg4[%c0_23, %c0_24, %c0_25], %33 {strides = array<i32>} : memref<1x1x1xf32, #tpu.memory_space<vmem>>, vector<1x1x1xf32>,
    } else {
    }
    return
  }
  func.func @transform_0(%arg0: i32, %arg1: i32) -> (i32, i32, i32) {
    %c0_i32 = arith.constant 0 : i32
    %c0_i32_0 = arith.constant 0 : i32
    return %arg0, %arg1, %c0_i32 : i32, i32, i32
  }
  func.func @transform_1(%arg0: i32, %arg1: i32) -> (i32, i32, i32) {
    %c0_i32 = arith.constant 0 : i32
    %c0_i32_0 = arith.constant 0 : i32
    %c0_i32_1 = arith.constant 0 : i32
    return %arg0, %c0_i32, %c0_i32_0 : i32, i32, i32
  }
  func.func @transform_2(%arg0: i32, %arg1: i32) -> (i32, i32, i32) {
    %c0_i32 = arith.constant 0 : i32
    %c0_i32_0 = arith.constant 0 : i32
    %c0_i32_1 = arith.constant 0 : i32
    return %arg0, %c0_i32, %c0_i32_0 : i32, i32, i32
  }
}

module attributes {stable_mosaic.version = 11 : i64} {
  func.func @kernel(%arg0: i32, %arg1: memref<2x1x1xf32, #tpu.memory_space<smem>>, %arg2: memref<2x1x1xf32, #tpu.memory_space<smem>>, %arg3: memref<1x256x4xf32, #tpu.memory_space<vmem>>, %arg4: memref<1x4xf32, #tpu.memory_space<vmem>>, %arg5: memref<1x4xf32, #tpu.memory_space<vmem>>, %arg6: memref<9x4x8xf32, #tpu.memory_space<vmem>>, %arg7: memref<256x1xf32, #tpu.memory_space<vmem>>, %arg8: memref<256x1xf32, #tpu.memory_space<vmem>>, %arg9: memref<1x256x8xf32, #tpu.memory_space<vmem>>, %arg10: memref<1x1x1xf32, #tpu.memory_space<vmem>>, %arg11: memref<1x1x1xf32, #tpu.memory_space<vmem>>, %arg12: memref<304x4xf32, #tpu.memory_space<vmem>>) attributes {dimension_semantics = [#tpu.dimension_semantics<parallel>], iteration_bounds = array<i64: 2>, scalar_prefetch = 0 : i64, scratch_operands = 1 : i64, tpu.core_type = #tpu.core_type<tc>, window_params = [{transform_indices = @transform_0, window_bounds = array<i64: 2, 1, 1>}, {transform_indices = @transform_1, window_bounds = array<i64: 2, 1, 1>}, {transform_indices = @transform_2, window_bounds = array<i64: 1, 256, 4>}, {pipeline_mode = #tpu.pipeline_mode<synchronous>, transform_indices = @transform_3, window_bounds = array<i64: 1, 4>}, {pipeline_mode = #tpu.pipeline_mode<synchronous>, transform_indices = @transform_4, window_bounds = array<i64: 1, 4>}, {pipeline_mode = #tpu.pipeline_mode<synchronous>, transform_indices = @transform_5, window_bounds = array<i64: 9, 4, 8>}, {pipeline_mode = #tpu.pipeline_mode<synchronous>, transform_indices = @transform_6, window_bounds = array<i64: 256, 1>}, {pipeline_mode = #tpu.pipeline_mode<synchronous>, transform_indices = @transform_7, window_bounds = array<i64: 256, 1>}, {transform_indices = @transform_8, window_bounds = array<i64: 1, 256, 8>}, {transform_indices = @transform_9, window_bounds = array<i64: 1, 1, 1>}, {transform_indices = @transform_10, window_bounds = array<i64: 1, 1, 1>}]} {
    %0 = arith.index_cast %arg0 : i32 to index
    %c0 = arith.constant 0 : index
    %c0_0 = arith.constant 0 : index
    %1 = memref.load %arg1[%0, %c0, %c0_0] : memref<2x1x1xf32, #tpu.memory_space<smem>>
    %2 = arith.index_cast %arg0 : i32 to index
    %c0_1 = arith.constant 0 : index
    %c0_2 = arith.constant 0 : index
    %3 = memref.load %arg2[%2, %c0_1, %c0_2] : memref<2x1x1xf32, #tpu.memory_space<smem>>
    %c0_3 = arith.constant 0 : index
    %c0_4 = arith.constant 0 : index
    %4 = vector.load %arg4[%c0_3, %c0_4] : memref<1x4xf32, #tpu.memory_space<vmem>>, vector<1x4xf32>
    %5 = vector.broadcast %1 : f32 to vector<1x4xf32>
    %cst = arith.constant 9.765625E-4 : f32
    %6 = vector.broadcast %cst : f32 to vector<1x4xf32>
    %7 = arith.mulf %5, %6 : vector<1x4xf32>
    %8 = vector.broadcast %3 : f32 to vector<1x4xf32>
    %cst_5 = arith.constant 9.765625E-4 : f32
    %9 = vector.broadcast %cst_5 : f32 to vector<1x4xf32>
    %10 = arith.mulf %8, %9 : vector<1x4xf32>
    %11 = arith.mulf %7, %7 : vector<1x4xf32>
    %12 = arith.subf %10, %11 : vector<1x4xf32>
    %cst_6 = arith.constant 9.99999974E-6 : f32
    %13 = vector.broadcast %cst_6 : f32 to vector<1x4xf32>
    %14 = arith.addf %12, %13 : vector<1x4xf32>
    %15 = math.rsqrt %14 : vector<1x4xf32>
    %16 = arith.mulf %4, %15 : vector<1x4xf32>
    %c0_7 = arith.constant 0 : index
    %c0_8 = arith.constant 0 : index
    %17 = vector.load %arg5[%c0_7, %c0_8] : memref<1x4xf32, #tpu.memory_space<vmem>>, vector<1x4xf32>
    %18 = arith.mulf %7, %16 : vector<1x4xf32>
    %19 = arith.subf %17, %18 : vector<1x4xf32>
    %c0_9 = arith.constant 0 : index
    %c0_10 = arith.constant 0 : index
    %c0_11 = arith.constant 0 : index
    %20 = vector.load %arg3[%c0_9, %c0_10, %c0_11] : memref<1x256x4xf32, #tpu.memory_space<vmem>>, vector<1x256x4xf32>
    %21 = vector.shape_cast %20 : vector<1x256x4xf32> to vector<256x4xf32>
    %22 = vector.broadcast %16 : vector<1x4xf32> to vector<256x4xf32>
    %23 = arith.mulf %21, %22 : vector<256x4xf32>
    %24 = vector.broadcast %19 : vector<1x4xf32> to vector<256x4xf32>
    %25 = arith.addf %23, %24 : vector<256x4xf32>
    %26 = arith.negf %25 : vector<256x4xf32>
    %27 = math.exp %26 : vector<256x4xf32>
    %cst_12 = arith.constant 1.000000e+00 : f32
    %28 = vector.broadcast %cst_12 : f32 to vector<256x4xf32>
    %29 = arith.addf %28, %27 : vector<256x4xf32>
    %30 = arith.divf %28, %29 : vector<256x4xf32>
    %31 = arith.mulf %25, %30 : vector<256x4xf32>
    %cst_13 = arith.constant 0.000000e+00 : f32
    %32 = vector.broadcast %cst_13 : f32 to vector<304x4xf32>
    %c0_14 = arith.constant 0 : index
    %c0_15 = arith.constant 0 : index
    %33 = vector.load %arg12[%c0_14, %c0_15] : memref<304x4xf32, #tpu.memory_space<vmem>>, vector<304x4xf32>
    tpu.vector_store %arg12[%c0_14, %c0_15], %32 {strides = array<i32>} : memref<304x4xf32, #tpu.memory_space<vmem>>, vector<304x4xf32>,
    %c24 = arith.constant 24 : index
    %c0_16 = arith.constant 0 : index
    %34 = vector.load %arg12[%c24, %c0_16] : memref<304x4xf32, #tpu.memory_space<vmem>>, vector<256x4xf32>
    tpu.vector_store %arg12[%c24, %c0_16], %31 {strides = array<i32>} : memref<304x4xf32, #tpu.memory_space<vmem>>, vector<256x4xf32>,
    %c0_17 = arith.constant 0 : index
    %c0_18 = arith.constant 0 : index
    %35 = vector.load %arg7[%c0_17, %c0_18] : memref<256x1xf32, #tpu.memory_space<vmem>>, vector<256x1xf32>
    %c0_19 = arith.constant 0 : index
    %c0_20 = arith.constant 0 : index
    %36 = vector.load %arg8[%c0_19, %c0_20] : memref<256x1xf32, #tpu.memory_space<vmem>>, vector<256x1xf32>
    %cst_21 = arith.constant 0.000000e+00 : f32
    %37 = vector.broadcast %cst_21 : f32 to vector<256x8xf32>
    %c7 = arith.constant 7 : index
    %c0_22 = arith.constant 0 : index
    %38 = vector.load %arg12[%c7, %c0_22] : memref<304x4xf32, #tpu.memory_space<vmem>>, vector<256x4xf32>
    %39 = vector.broadcast %35 : vector<256x1xf32> to vector<256x4xf32>
    %40 = arith.mulf %38, %39 : vector<256x4xf32>
    %c0_23 = arith.constant 0 : index
    %c0_24 = arith.constant 0 : index
    %c0_25 = arith.constant 0 : index
    %41 = vector.load %arg6[%c0_23, %c0_24, %c0_25] : memref<9x4x8xf32, #tpu.memory_space<vmem>>, vector<1x4x8xf32>
    %42 = vector.shape_cast %41 : vector<1x4x8xf32> to vector<4x8xf32>
    %cst_26 = arith.constant dense<0.000000e+00> : vector<256x8xf32>
    %43 = tpu.matmul %40, %42, %cst_26 {dimension_numbers = #tpu.dot_dimension_numbers<[1], [0], [0], [1], [0, 0, 1, 1], [], []>} : vector<256x4xf32>, vector<4x8xf32>, vector<256x8xf32> -> vector<256x8xf32>
    %44 = arith.addf %37, %43 : vector<256x8xf32>
    %c8 = arith.constant 8 : index
    %c0_27 = arith.constant 0 : index
    %45 = vector.load %arg12[%c8, %c0_27] : memref<304x4xf32, #tpu.memory_space<vmem>>, vector<256x4xf32>
    %c1 = arith.constant 1 : index
    %c0_28 = arith.constant 0 : index
    %c0_29 = arith.constant 0 : index
    %46 = vector.load %arg6[%c1, %c0_28, %c0_29] : memref<9x4x8xf32, #tpu.memory_space<vmem>>, vector<1x4x8xf32>
    %47 = vector.shape_cast %46 : vector<1x4x8xf32> to vector<4x8xf32>
    %cst_30 = arith.constant dense<0.000000e+00> : vector<256x8xf32>
    %48 = tpu.matmul %45, %47, %cst_30 {dimension_numbers = #tpu.dot_dimension_numbers<[1], [0], [0], [1], [0, 0, 1, 1], [], []>} : vector<256x4xf32>, vector<4x8xf32>, vector<256x8xf32> -> vector<256x8xf32>
    %49 = arith.addf %44, %48 : vector<256x8xf32>
    %c9 = arith.constant 9 : index
    %c0_31 = arith.constant 0 : index
    %50 = vector.load %arg12[%c9, %c0_31] : memref<304x4xf32, #tpu.memory_space<vmem>>, vector<256x4xf32>
    %51 = vector.broadcast %36 : vector<256x1xf32> to vector<256x4xf32>
    %52 = arith.mulf %50, %51 : vector<256x4xf32>
    %c2 = arith.constant 2 : index
    %c0_32 = arith.constant 0 : index
    %c0_33 = arith.constant 0 : index
    %53 = vector.load %arg6[%c2, %c0_32, %c0_33] : memref<9x4x8xf32, #tpu.memory_space<vmem>>, vector<1x4x8xf32>
    %54 = vector.shape_cast %53 : vector<1x4x8xf32> to vector<4x8xf32>
    %cst_34 = arith.constant dense<0.000000e+00> : vector<256x8xf32>
    %55 = tpu.matmul %52, %54, %cst_34 {dimension_numbers = #tpu.dot_dimension_numbers<[1], [0], [0], [1], [0, 0, 1, 1], [], []>} : vector<256x4xf32>, vector<4x8xf32>, vector<256x8xf32> -> vector<256x8xf32>
    %56 = arith.addf %49, %55 : vector<256x8xf32>
    %c23 = arith.constant 23 : index
    %c0_35 = arith.constant 0 : index
    %57 = vector.load %arg12[%c23, %c0_35] : memref<304x4xf32, #tpu.memory_space<vmem>>, vector<256x4xf32>
    %58 = vector.broadcast %35 : vector<256x1xf32> to vector<256x4xf32>
    %59 = arith.mulf %57, %58 : vector<256x4xf32>
    %c3 = arith.constant 3 : index
    %c0_36 = arith.constant 0 : index
    %c0_37 = arith.constant 0 : index
    %60 = vector.load %arg6[%c3, %c0_36, %c0_37] : memref<9x4x8xf32, #tpu.memory_space<vmem>>, vector<1x4x8xf32>
    %61 = vector.shape_cast %60 : vector<1x4x8xf32> to vector<4x8xf32>
    %cst_38 = arith.constant dense<0.000000e+00> : vector<256x8xf32>
    %62 = tpu.matmul %59, %61, %cst_38 {dimension_numbers = #tpu.dot_dimension_numbers<[1], [0], [0], [1], [0, 0, 1, 1], [], []>} : vector<256x4xf32>, vector<4x8xf32>, vector<256x8xf32> -> vector<256x8xf32>
    %63 = arith.addf %56, %62 : vector<256x8xf32>
    %c24_39 = arith.constant 24 : index
    %c0_40 = arith.constant 0 : index
    %64 = vector.load %arg12[%c24_39, %c0_40] : memref<304x4xf32, #tpu.memory_space<vmem>>, vector<256x4xf32>
    %c4 = arith.constant 4 : index
    %c0_41 = arith.constant 0 : index
    %c0_42 = arith.constant 0 : index
    %65 = vector.load %arg6[%c4, %c0_41, %c0_42] : memref<9x4x8xf32, #tpu.memory_space<vmem>>, vector<1x4x8xf32>
    %66 = vector.shape_cast %65 : vector<1x4x8xf32> to vector<4x8xf32>
    %cst_43 = arith.constant dense<0.000000e+00> : vector<256x8xf32>
    %67 = tpu.matmul %64, %66, %cst_43 {dimension_numbers = #tpu.dot_dimension_numbers<[1], [0], [0], [1], [0, 0, 1, 1], [], []>} : vector<256x4xf32>, vector<4x8xf32>, vector<256x8xf32> -> vector<256x8xf32>
    %68 = arith.addf %63, %67 : vector<256x8xf32>
    %c25 = arith.constant 25 : index
    %c0_44 = arith.constant 0 : index
    %69 = vector.load %arg12[%c25, %c0_44] : memref<304x4xf32, #tpu.memory_space<vmem>>, vector<256x4xf32>
    %70 = vector.broadcast %36 : vector<256x1xf32> to vector<256x4xf32>
    %71 = arith.mulf %69, %70 : vector<256x4xf32>
    %c5 = arith.constant 5 : index
    %c0_45 = arith.constant 0 : index
    %c0_46 = arith.constant 0 : index
    %72 = vector.load %arg6[%c5, %c0_45, %c0_46] : memref<9x4x8xf32, #tpu.memory_space<vmem>>, vector<1x4x8xf32>
    %73 = vector.shape_cast %72 : vector<1x4x8xf32> to vector<4x8xf32>
    %cst_47 = arith.constant dense<0.000000e+00> : vector<256x8xf32>
    %74 = tpu.matmul %71, %73, %cst_47 {dimension_numbers = #tpu.dot_dimension_numbers<[1], [0], [0], [1], [0, 0, 1, 1], [], []>} : vector<256x4xf32>, vector<4x8xf32>, vector<256x8xf32> -> vector<256x8xf32>
    %75 = arith.addf %68, %74 : vector<256x8xf32>
    %c39 = arith.constant 39 : index
    %c0_48 = arith.constant 0 : index
    %76 = vector.load %arg12[%c39, %c0_48] : memref<304x4xf32, #tpu.memory_space<vmem>>, vector<256x4xf32>
    %77 = vector.broadcast %35 : vector<256x1xf32> to vector<256x4xf32>
    %78 = arith.mulf %76, %77 : vector<256x4xf32>
    %c6 = arith.constant 6 : index
    %c0_49 = arith.constant 0 : index
    %c0_50 = arith.constant 0 : index
    %79 = vector.load %arg6[%c6, %c0_49, %c0_50] : memref<9x4x8xf32, #tpu.memory_space<vmem>>, vector<1x4x8xf32>
    %80 = vector.shape_cast %79 : vector<1x4x8xf32> to vector<4x8xf32>
    %cst_51 = arith.constant dense<0.000000e+00> : vector<256x8xf32>
    %81 = tpu.matmul %78, %80, %cst_51 {dimension_numbers = #tpu.dot_dimension_numbers<[1], [0], [0], [1], [0, 0, 1, 1], [], []>} : vector<256x4xf32>, vector<4x8xf32>, vector<256x8xf32> -> vector<256x8xf32>
    %82 = arith.addf %75, %81 : vector<256x8xf32>
    %c40 = arith.constant 40 : index
    %c0_52 = arith.constant 0 : index
    %83 = vector.load %arg12[%c40, %c0_52] : memref<304x4xf32, #tpu.memory_space<vmem>>, vector<256x4xf32>
    %c7_53 = arith.constant 7 : index
    %c0_54 = arith.constant 0 : index
    %c0_55 = arith.constant 0 : index
    %84 = vector.load %arg6[%c7_53, %c0_54, %c0_55] : memref<9x4x8xf32, #tpu.memory_space<vmem>>, vector<1x4x8xf32>
    %85 = vector.shape_cast %84 : vector<1x4x8xf32> to vector<4x8xf32>
    %cst_56 = arith.constant dense<0.000000e+00> : vector<256x8xf32>
    %86 = tpu.matmul %83, %85, %cst_56 {dimension_numbers = #tpu.dot_dimension_numbers<[1], [0], [0], [1], [0, 0, 1, 1], [], []>} : vector<256x4xf32>, vector<4x8xf32>, vector<256x8xf32> -> vector<256x8xf32>
    %87 = arith.addf %82, %86 : vector<256x8xf32>
    %c41 = arith.constant 41 : index
    %c0_57 = arith.constant 0 : index
    %88 = vector.load %arg12[%c41, %c0_57] : memref<304x4xf32, #tpu.memory_space<vmem>>, vector<256x4xf32>
    %89 = vector.broadcast %36 : vector<256x1xf32> to vector<256x4xf32>
    %90 = arith.mulf %88, %89 : vector<256x4xf32>
    %c8_58 = arith.constant 8 : index
    %c0_59 = arith.constant 0 : index
    %c0_60 = arith.constant 0 : index
    %91 = vector.load %arg6[%c8_58, %c0_59, %c0_60] : memref<9x4x8xf32, #tpu.memory_space<vmem>>, vector<1x4x8xf32>
    %92 = vector.shape_cast %91 : vector<1x4x8xf32> to vector<4x8xf32>
    %cst_61 = arith.constant dense<0.000000e+00> : vector<256x8xf32>
    %93 = tpu.matmul %90, %92, %cst_61 {dimension_numbers = #tpu.dot_dimension_numbers<[1], [0], [0], [1], [0, 0, 1, 1], [], []>} : vector<256x4xf32>, vector<4x8xf32>, vector<256x8xf32> -> vector<256x8xf32>
    %94 = arith.addf %87, %93 : vector<256x8xf32>
    %95 = vector.shape_cast %94 : vector<256x8xf32> to vector<1x256x8xf32>
    %cst_62 = arith.constant dense<0.000000e+00> : vector<1xf32>
    %96 = vector.multi_reduction <add>, %95, %cst_62 [1, 2] : vector<1x256x8xf32> to vector<1xf32>
    %97 = vector.shape_cast %96 : vector<1xf32> to vector<1x1x1xf32>
    %98 = vector.extract %97[0, 0, 0] : f32 from vector<1x1x1xf32>
    %99 = vector.broadcast %98 : f32 to vector<1x1xf32>
    %100 = vector.shape_cast %99 : vector<1x1xf32> to vector<1x1x1xf32>
    %c0_63 = arith.constant 0 : index
    %c0_64 = arith.constant 0 : index
    %c0_65 = arith.constant 0 : index
    %101 = vector.load %arg10[%c0_63, %c0_64, %c0_65] : memref<1x1x1xf32, #tpu.memory_space<vmem>>, vector<1x1x1xf32>
    tpu.vector_store %arg10[%c0_63, %c0_64, %c0_65], %100 {strides = array<i32>} : memref<1x1x1xf32, #tpu.memory_space<vmem>>, vector<1x1x1xf32>,
    %102 = arith.mulf %94, %94 : vector<256x8xf32>
    %103 = vector.shape_cast %102 : vector<256x8xf32> to vector<1x256x8xf32>
    %cst_66 = arith.constant dense<0.000000e+00> : vector<1xf32>
    %104 = vector.multi_reduction <add>, %103, %cst_66 [1, 2] : vector<1x256x8xf32> to vector<1xf32>
    %105 = vector.shape_cast %104 : vector<1xf32> to vector<1x1x1xf32>
    %106 = vector.extract %105[0, 0, 0] : f32 from vector<1x1x1xf32>
    %107 = vector.broadcast %106 : f32 to vector<1x1xf32>
    %108 = vector.shape_cast %107 : vector<1x1xf32> to vector<1x1x1xf32>
    %c0_67 = arith.constant 0 : index
    %c0_68 = arith.constant 0 : index
    %c0_69 = arith.constant 0 : index
    %109 = vector.load %arg11[%c0_67, %c0_68, %c0_69] : memref<1x1x1xf32, #tpu.memory_space<vmem>>, vector<1x1x1xf32>
    tpu.vector_store %arg11[%c0_67, %c0_68, %c0_69], %108 {strides = array<i32>} : memref<1x1x1xf32, #tpu.memory_space<vmem>>, vector<1x1x1xf32>,
    %c0_70 = arith.constant 0 : index
    %c0_71 = arith.constant 0 : index
    %c0_72 = arith.constant 0 : index
    %110 = vector.load %arg9[%c0_70, %c0_71, %c0_72] : memref<1x256x8xf32, #tpu.memory_space<vmem>>, vector<1x256x8xf32>
    %111 = vector.shape_cast %110 : vector<1x256x8xf32> to vector<256x8xf32>
    %112 = vector.shape_cast %94 : vector<256x8xf32> to vector<1x256x8xf32>
    tpu.vector_store %arg9[%c0_70, %c0_71, %c0_72], %112 {strides = array<i32>} : memref<1x256x8xf32, #tpu.memory_space<vmem>>, vector<1x256x8xf32>,
    return
  }
  func.func @transform_0(%arg0: i32) -> (i32, i32, i32) {
    %c0_i32 = arith.constant 0 : i32
    %c0_i32_0 = arith.constant 0 : i32
    %c0_i32_1 = arith.constant 0 : i32
    %c0_i32_2 = arith.constant 0 : i32
    return %c0_i32, %c0_i32_0, %c0_i32_1 : i32, i32, i32
  }
  func.func @transform_1(%arg0: i32) -> (i32, i32, i32) {
    %c0_i32 = arith.constant 0 : i32
    %c0_i32_0 = arith.constant 0 : i32
    %c0_i32_1 = arith.constant 0 : i32
    %c0_i32_2 = arith.constant 0 : i32
    return %c0_i32, %c0_i32_0, %c0_i32_1 : i32, i32, i32
  }
  func.func @transform_2(%arg0: i32) -> (i32, i32, i32) {
    %c0_i32 = arith.constant 0 : i32
    %c0_i32_0 = arith.constant 0 : i32
    %c0_i32_1 = arith.constant 0 : i32
    return %arg0, %c0_i32, %c0_i32_0 : i32, i32, i32
  }
  func.func @transform_3(%arg0: i32) -> (i32, i32) {
    %c0_i32 = arith.constant 0 : i32
    %c0_i32_0 = arith.constant 0 : i32
    %c0_i32_1 = arith.constant 0 : i32
    return %c0_i32, %c0_i32_0 : i32, i32
  }
  func.func @transform_4(%arg0: i32) -> (i32, i32) {
    %c0_i32 = arith.constant 0 : i32
    %c0_i32_0 = arith.constant 0 : i32
    %c0_i32_1 = arith.constant 0 : i32
    return %c0_i32, %c0_i32_0 : i32, i32
  }
  func.func @transform_5(%arg0: i32) -> (i32, i32, i32) {
    %c0_i32 = arith.constant 0 : i32
    %c0_i32_0 = arith.constant 0 : i32
    %c0_i32_1 = arith.constant 0 : i32
    %c0_i32_2 = arith.constant 0 : i32
    return %c0_i32, %c0_i32_0, %c0_i32_1 : i32, i32, i32
  }
  func.func @transform_6(%arg0: i32) -> (i32, i32) {
    %c0_i32 = arith.constant 0 : i32
    %c0_i32_0 = arith.constant 0 : i32
    %c0_i32_1 = arith.constant 0 : i32
    return %c0_i32, %c0_i32_0 : i32, i32
  }
  func.func @transform_7(%arg0: i32) -> (i32, i32) {
    %c0_i32 = arith.constant 0 : i32
    %c0_i32_0 = arith.constant 0 : i32
    %c0_i32_1 = arith.constant 0 : i32
    return %c0_i32, %c0_i32_0 : i32, i32
  }
  func.func @transform_8(%arg0: i32) -> (i32, i32, i32) {
    %c0_i32 = arith.constant 0 : i32
    %c0_i32_0 = arith.constant 0 : i32
    %c0_i32_1 = arith.constant 0 : i32
    return %arg0, %c0_i32, %c0_i32_0 : i32, i32, i32
  }
  func.func @transform_9(%arg0: i32) -> (i32, i32, i32) {
    %c0_i32 = arith.constant 0 : i32
    %c0_i32_0 = arith.constant 0 : i32
    %c0_i32_1 = arith.constant 0 : i32
    return %arg0, %c0_i32, %c0_i32_0 : i32, i32, i32
  }
  func.func @transform_10(%arg0: i32) -> (i32, i32, i32) {
    %c0_i32 = arith.constant 0 : i32
    %c0_i32_0 = arith.constant 0 : i32
    %c0_i32_1 = arith.constant 0 : i32
    return %arg0, %c0_i32, %c0_i32_0 : i32, i32, i32
  }
}

module attributes {stable_mosaic.version = 11 : i64} {
  func.func @kernel(%arg0: i32, %arg1: memref<2x1x1xf32, #tpu.memory_space<smem>>, %arg2: memref<2x1x1xf32, #tpu.memory_space<smem>>, %arg3: memref<1x256x8xf32, #tpu.memory_space<vmem>>, %arg4: memref<1x8xf32, #tpu.memory_space<vmem>>, %arg5: memref<1x8xf32, #tpu.memory_space<vmem>>, %arg6: memref<9x8x8xf32, #tpu.memory_space<vmem>>, %arg7: memref<256x1xf32, #tpu.memory_space<vmem>>, %arg8: memref<256x1xf32, #tpu.memory_space<vmem>>, %arg9: memref<1x256x4xf32, #tpu.memory_space<vmem>>, %arg10: memref<4x8xf32, #tpu.memory_space<vmem>>, %arg11: memref<1x256x8xf32, #tpu.memory_space<vmem>>, %arg12: memref<304x8xf32, #tpu.memory_space<vmem>>) attributes {dimension_semantics = [#tpu.dimension_semantics<parallel>], iteration_bounds = array<i64: 2>, scalar_prefetch = 0 : i64, scratch_operands = 1 : i64, tpu.core_type = #tpu.core_type<tc>, window_params = [{transform_indices = @transform_0, window_bounds = array<i64: 2, 1, 1>}, {transform_indices = @transform_1, window_bounds = array<i64: 2, 1, 1>}, {transform_indices = @transform_2, window_bounds = array<i64: 1, 256, 8>}, {pipeline_mode = #tpu.pipeline_mode<synchronous>, transform_indices = @transform_3, window_bounds = array<i64: 1, 8>}, {pipeline_mode = #tpu.pipeline_mode<synchronous>, transform_indices = @transform_4, window_bounds = array<i64: 1, 8>}, {pipeline_mode = #tpu.pipeline_mode<synchronous>, transform_indices = @transform_5, window_bounds = array<i64: 9, 8, 8>}, {pipeline_mode = #tpu.pipeline_mode<synchronous>, transform_indices = @transform_6, window_bounds = array<i64: 256, 1>}, {pipeline_mode = #tpu.pipeline_mode<synchronous>, transform_indices = @transform_7, window_bounds = array<i64: 256, 1>}, {transform_indices = @transform_8, window_bounds = array<i64: 1, 256, 4>}, {pipeline_mode = #tpu.pipeline_mode<synchronous>, transform_indices = @transform_9, window_bounds = array<i64: 4, 8>}, {transform_indices = @transform_10, window_bounds = array<i64: 1, 256, 8>}]} {
    %0 = arith.index_cast %arg0 : i32 to index
    %c0 = arith.constant 0 : index
    %c0_0 = arith.constant 0 : index
    %1 = memref.load %arg1[%0, %c0, %c0_0] : memref<2x1x1xf32, #tpu.memory_space<smem>>
    %2 = arith.index_cast %arg0 : i32 to index
    %c0_1 = arith.constant 0 : index
    %c0_2 = arith.constant 0 : index
    %3 = memref.load %arg2[%2, %c0_1, %c0_2] : memref<2x1x1xf32, #tpu.memory_space<smem>>
    %c0_3 = arith.constant 0 : index
    %c0_4 = arith.constant 0 : index
    %4 = vector.load %arg4[%c0_3, %c0_4] : memref<1x8xf32, #tpu.memory_space<vmem>>, vector<1x8xf32>
    %5 = vector.broadcast %1 : f32 to vector<1x8xf32>
    %cst = arith.constant 4.8828125E-4 : f32
    %6 = vector.broadcast %cst : f32 to vector<1x8xf32>
    %7 = arith.mulf %5, %6 : vector<1x8xf32>
    %8 = vector.broadcast %3 : f32 to vector<1x8xf32>
    %cst_5 = arith.constant 4.8828125E-4 : f32
    %9 = vector.broadcast %cst_5 : f32 to vector<1x8xf32>
    %10 = arith.mulf %8, %9 : vector<1x8xf32>
    %11 = arith.mulf %7, %7 : vector<1x8xf32>
    %12 = arith.subf %10, %11 : vector<1x8xf32>
    %cst_6 = arith.constant 9.99999974E-6 : f32
    %13 = vector.broadcast %cst_6 : f32 to vector<1x8xf32>
    %14 = arith.addf %12, %13 : vector<1x8xf32>
    %15 = math.rsqrt %14 : vector<1x8xf32>
    %16 = arith.mulf %4, %15 : vector<1x8xf32>
    %c0_7 = arith.constant 0 : index
    %c0_8 = arith.constant 0 : index
    %17 = vector.load %arg5[%c0_7, %c0_8] : memref<1x8xf32, #tpu.memory_space<vmem>>, vector<1x8xf32>
    %18 = arith.mulf %7, %16 : vector<1x8xf32>
    %19 = arith.subf %17, %18 : vector<1x8xf32>
    %c0_9 = arith.constant 0 : index
    %c0_10 = arith.constant 0 : index
    %c0_11 = arith.constant 0 : index
    %20 = vector.load %arg3[%c0_9, %c0_10, %c0_11] : memref<1x256x8xf32, #tpu.memory_space<vmem>>, vector<1x256x8xf32>
    %21 = vector.shape_cast %20 : vector<1x256x8xf32> to vector<256x8xf32>
    %22 = vector.broadcast %16 : vector<1x8xf32> to vector<256x8xf32>
    %23 = arith.mulf %21, %22 : vector<256x8xf32>
    %24 = vector.broadcast %19 : vector<1x8xf32> to vector<256x8xf32>
    %25 = arith.addf %23, %24 : vector<256x8xf32>
    %26 = arith.negf %25 : vector<256x8xf32>
    %27 = math.exp %26 : vector<256x8xf32>
    %cst_12 = arith.constant 1.000000e+00 : f32
    %28 = vector.broadcast %cst_12 : f32 to vector<256x8xf32>
    %29 = arith.addf %28, %27 : vector<256x8xf32>
    %30 = arith.divf %28, %29 : vector<256x8xf32>
    %31 = arith.mulf %25, %30 : vector<256x8xf32>
    %cst_13 = arith.constant 0.000000e+00 : f32
    %32 = vector.broadcast %cst_13 : f32 to vector<304x8xf32>
    %c0_14 = arith.constant 0 : index
    %c0_15 = arith.constant 0 : index
    %33 = vector.load %arg12[%c0_14, %c0_15] : memref<304x8xf32, #tpu.memory_space<vmem>>, vector<304x8xf32>
    tpu.vector_store %arg12[%c0_14, %c0_15], %32 {strides = array<i32>} : memref<304x8xf32, #tpu.memory_space<vmem>>, vector<304x8xf32>,
    %c24 = arith.constant 24 : index
    %c0_16 = arith.constant 0 : index
    %34 = vector.load %arg12[%c24, %c0_16] : memref<304x8xf32, #tpu.memory_space<vmem>>, vector<256x8xf32>
    tpu.vector_store %arg12[%c24, %c0_16], %31 {strides = array<i32>} : memref<304x8xf32, #tpu.memory_space<vmem>>, vector<256x8xf32>,
    %c0_17 = arith.constant 0 : index
    %c0_18 = arith.constant 0 : index
    %35 = vector.load %arg7[%c0_17, %c0_18] : memref<256x1xf32, #tpu.memory_space<vmem>>, vector<256x1xf32>
    %c0_19 = arith.constant 0 : index
    %c0_20 = arith.constant 0 : index
    %36 = vector.load %arg8[%c0_19, %c0_20] : memref<256x1xf32, #tpu.memory_space<vmem>>, vector<256x1xf32>
    %cst_21 = arith.constant 0.000000e+00 : f32
    %37 = vector.broadcast %cst_21 : f32 to vector<256x8xf32>
    %c7 = arith.constant 7 : index
    %c0_22 = arith.constant 0 : index
    %38 = vector.load %arg12[%c7, %c0_22] : memref<304x8xf32, #tpu.memory_space<vmem>>, vector<256x8xf32>
    %39 = vector.broadcast %35 : vector<256x1xf32> to vector<256x8xf32>
    %40 = arith.mulf %38, %39 : vector<256x8xf32>
    %c0_23 = arith.constant 0 : index
    %c0_24 = arith.constant 0 : index
    %c0_25 = arith.constant 0 : index
    %41 = vector.load %arg6[%c0_23, %c0_24, %c0_25] : memref<9x8x8xf32, #tpu.memory_space<vmem>>, vector<1x8x8xf32>
    %42 = vector.shape_cast %41 : vector<1x8x8xf32> to vector<8x8xf32>
    %cst_26 = arith.constant dense<0.000000e+00> : vector<256x8xf32>
    %43 = tpu.matmul %40, %42, %cst_26 {dimension_numbers = #tpu.dot_dimension_numbers<[1], [0], [0], [1], [0, 0, 1, 1], [], []>} : vector<256x8xf32>, vector<8x8xf32>, vector<256x8xf32> -> vector<256x8xf32>
    %44 = arith.addf %37, %43 : vector<256x8xf32>
    %c8 = arith.constant 8 : index
    %c0_27 = arith.constant 0 : index
    %45 = vector.load %arg12[%c8, %c0_27] : memref<304x8xf32, #tpu.memory_space<vmem>>, vector<256x8xf32>
    %c1 = arith.constant 1 : index
    %c0_28 = arith.constant 0 : index
    %c0_29 = arith.constant 0 : index
    %46 = vector.load %arg6[%c1, %c0_28, %c0_29] : memref<9x8x8xf32, #tpu.memory_space<vmem>>, vector<1x8x8xf32>
    %47 = vector.shape_cast %46 : vector<1x8x8xf32> to vector<8x8xf32>
    %cst_30 = arith.constant dense<0.000000e+00> : vector<256x8xf32>
    %48 = tpu.matmul %45, %47, %cst_30 {dimension_numbers = #tpu.dot_dimension_numbers<[1], [0], [0], [1], [0, 0, 1, 1], [], []>} : vector<256x8xf32>, vector<8x8xf32>, vector<256x8xf32> -> vector<256x8xf32>
    %49 = arith.addf %44, %48 : vector<256x8xf32>
    %c9 = arith.constant 9 : index
    %c0_31 = arith.constant 0 : index
    %50 = vector.load %arg12[%c9, %c0_31] : memref<304x8xf32, #tpu.memory_space<vmem>>, vector<256x8xf32>
    %51 = vector.broadcast %36 : vector<256x1xf32> to vector<256x8xf32>
    %52 = arith.mulf %50, %51 : vector<256x8xf32>
    %c2 = arith.constant 2 : index
    %c0_32 = arith.constant 0 : index
    %c0_33 = arith.constant 0 : index
    %53 = vector.load %arg6[%c2, %c0_32, %c0_33] : memref<9x8x8xf32, #tpu.memory_space<vmem>>, vector<1x8x8xf32>
    %54 = vector.shape_cast %53 : vector<1x8x8xf32> to vector<8x8xf32>
    %cst_34 = arith.constant dense<0.000000e+00> : vector<256x8xf32>
    %55 = tpu.matmul %52, %54, %cst_34 {dimension_numbers = #tpu.dot_dimension_numbers<[1], [0], [0], [1], [0, 0, 1, 1], [], []>} : vector<256x8xf32>, vector<8x8xf32>, vector<256x8xf32> -> vector<256x8xf32>
    %56 = arith.addf %49, %55 : vector<256x8xf32>
    %c23 = arith.constant 23 : index
    %c0_35 = arith.constant 0 : index
    %57 = vector.load %arg12[%c23, %c0_35] : memref<304x8xf32, #tpu.memory_space<vmem>>, vector<256x8xf32>
    %58 = vector.broadcast %35 : vector<256x1xf32> to vector<256x8xf32>
    %59 = arith.mulf %57, %58 : vector<256x8xf32>
    %c3 = arith.constant 3 : index
    %c0_36 = arith.constant 0 : index
    %c0_37 = arith.constant 0 : index
    %60 = vector.load %arg6[%c3, %c0_36, %c0_37] : memref<9x8x8xf32, #tpu.memory_space<vmem>>, vector<1x8x8xf32>
    %61 = vector.shape_cast %60 : vector<1x8x8xf32> to vector<8x8xf32>
    %cst_38 = arith.constant dense<0.000000e+00> : vector<256x8xf32>
    %62 = tpu.matmul %59, %61, %cst_38 {dimension_numbers = #tpu.dot_dimension_numbers<[1], [0], [0], [1], [0, 0, 1, 1], [], []>} : vector<256x8xf32>, vector<8x8xf32>, vector<256x8xf32> -> vector<256x8xf32>
    %63 = arith.addf %56, %62 : vector<256x8xf32>
    %c24_39 = arith.constant 24 : index
    %c0_40 = arith.constant 0 : index
    %64 = vector.load %arg12[%c24_39, %c0_40] : memref<304x8xf32, #tpu.memory_space<vmem>>, vector<256x8xf32>
    %c4 = arith.constant 4 : index
    %c0_41 = arith.constant 0 : index
    %c0_42 = arith.constant 0 : index
    %65 = vector.load %arg6[%c4, %c0_41, %c0_42] : memref<9x8x8xf32, #tpu.memory_space<vmem>>, vector<1x8x8xf32>
    %66 = vector.shape_cast %65 : vector<1x8x8xf32> to vector<8x8xf32>
    %cst_43 = arith.constant dense<0.000000e+00> : vector<256x8xf32>
    %67 = tpu.matmul %64, %66, %cst_43 {dimension_numbers = #tpu.dot_dimension_numbers<[1], [0], [0], [1], [0, 0, 1, 1], [], []>} : vector<256x8xf32>, vector<8x8xf32>, vector<256x8xf32> -> vector<256x8xf32>
    %68 = arith.addf %63, %67 : vector<256x8xf32>
    %c25 = arith.constant 25 : index
    %c0_44 = arith.constant 0 : index
    %69 = vector.load %arg12[%c25, %c0_44] : memref<304x8xf32, #tpu.memory_space<vmem>>, vector<256x8xf32>
    %70 = vector.broadcast %36 : vector<256x1xf32> to vector<256x8xf32>
    %71 = arith.mulf %69, %70 : vector<256x8xf32>
    %c5 = arith.constant 5 : index
    %c0_45 = arith.constant 0 : index
    %c0_46 = arith.constant 0 : index
    %72 = vector.load %arg6[%c5, %c0_45, %c0_46] : memref<9x8x8xf32, #tpu.memory_space<vmem>>, vector<1x8x8xf32>
    %73 = vector.shape_cast %72 : vector<1x8x8xf32> to vector<8x8xf32>
    %cst_47 = arith.constant dense<0.000000e+00> : vector<256x8xf32>
    %74 = tpu.matmul %71, %73, %cst_47 {dimension_numbers = #tpu.dot_dimension_numbers<[1], [0], [0], [1], [0, 0, 1, 1], [], []>} : vector<256x8xf32>, vector<8x8xf32>, vector<256x8xf32> -> vector<256x8xf32>
    %75 = arith.addf %68, %74 : vector<256x8xf32>
    %c39 = arith.constant 39 : index
    %c0_48 = arith.constant 0 : index
    %76 = vector.load %arg12[%c39, %c0_48] : memref<304x8xf32, #tpu.memory_space<vmem>>, vector<256x8xf32>
    %77 = vector.broadcast %35 : vector<256x1xf32> to vector<256x8xf32>
    %78 = arith.mulf %76, %77 : vector<256x8xf32>
    %c6 = arith.constant 6 : index
    %c0_49 = arith.constant 0 : index
    %c0_50 = arith.constant 0 : index
    %79 = vector.load %arg6[%c6, %c0_49, %c0_50] : memref<9x8x8xf32, #tpu.memory_space<vmem>>, vector<1x8x8xf32>
    %80 = vector.shape_cast %79 : vector<1x8x8xf32> to vector<8x8xf32>
    %cst_51 = arith.constant dense<0.000000e+00> : vector<256x8xf32>
    %81 = tpu.matmul %78, %80, %cst_51 {dimension_numbers = #tpu.dot_dimension_numbers<[1], [0], [0], [1], [0, 0, 1, 1], [], []>} : vector<256x8xf32>, vector<8x8xf32>, vector<256x8xf32> -> vector<256x8xf32>
    %82 = arith.addf %75, %81 : vector<256x8xf32>
    %c40 = arith.constant 40 : index
    %c0_52 = arith.constant 0 : index
    %83 = vector.load %arg12[%c40, %c0_52] : memref<304x8xf32, #tpu.memory_space<vmem>>, vector<256x8xf32>
    %c7_53 = arith.constant 7 : index
    %c0_54 = arith.constant 0 : index
    %c0_55 = arith.constant 0 : index
    %84 = vector.load %arg6[%c7_53, %c0_54, %c0_55] : memref<9x8x8xf32, #tpu.memory_space<vmem>>, vector<1x8x8xf32>
    %85 = vector.shape_cast %84 : vector<1x8x8xf32> to vector<8x8xf32>
    %cst_56 = arith.constant dense<0.000000e+00> : vector<256x8xf32>
    %86 = tpu.matmul %83, %85, %cst_56 {dimension_numbers = #tpu.dot_dimension_numbers<[1], [0], [0], [1], [0, 0, 1, 1], [], []>} : vector<256x8xf32>, vector<8x8xf32>, vector<256x8xf32> -> vector<256x8xf32>
    %87 = arith.addf %82, %86 : vector<256x8xf32>
    %c41 = arith.constant 41 : index
    %c0_57 = arith.constant 0 : index
    %88 = vector.load %arg12[%c41, %c0_57] : memref<304x8xf32, #tpu.memory_space<vmem>>, vector<256x8xf32>
    %89 = vector.broadcast %36 : vector<256x1xf32> to vector<256x8xf32>
    %90 = arith.mulf %88, %89 : vector<256x8xf32>
    %c8_58 = arith.constant 8 : index
    %c0_59 = arith.constant 0 : index
    %c0_60 = arith.constant 0 : index
    %91 = vector.load %arg6[%c8_58, %c0_59, %c0_60] : memref<9x8x8xf32, #tpu.memory_space<vmem>>, vector<1x8x8xf32>
    %92 = vector.shape_cast %91 : vector<1x8x8xf32> to vector<8x8xf32>
    %cst_61 = arith.constant dense<0.000000e+00> : vector<256x8xf32>
    %93 = tpu.matmul %90, %92, %cst_61 {dimension_numbers = #tpu.dot_dimension_numbers<[1], [0], [0], [1], [0, 0, 1, 1], [], []>} : vector<256x8xf32>, vector<8x8xf32>, vector<256x8xf32> -> vector<256x8xf32>
    %94 = arith.addf %87, %93 : vector<256x8xf32>
    %c0_62 = arith.constant 0 : index
    %c0_63 = arith.constant 0 : index
    %c0_64 = arith.constant 0 : index
    %95 = vector.load %arg9[%c0_62, %c0_63, %c0_64] : memref<1x256x4xf32, #tpu.memory_space<vmem>>, vector<1x256x4xf32>
    %96 = vector.shape_cast %95 : vector<1x256x4xf32> to vector<256x4xf32>
    %c0_65 = arith.constant 0 : index
    %c0_66 = arith.constant 0 : index
    %97 = vector.load %arg10[%c0_65, %c0_66] : memref<4x8xf32, #tpu.memory_space<vmem>>, vector<4x8xf32>
    %cst_67 = arith.constant dense<0.000000e+00> : vector<256x8xf32>
    %98 = tpu.matmul %96, %97, %cst_67 {dimension_numbers = #tpu.dot_dimension_numbers<[1], [0], [0], [1], [0, 0, 1, 1], [], []>} : vector<256x4xf32>, vector<4x8xf32>, vector<256x8xf32> -> vector<256x8xf32>
    %99 = arith.addf %94, %98 : vector<256x8xf32>
    %c0_68 = arith.constant 0 : index
    %c0_69 = arith.constant 0 : index
    %c0_70 = arith.constant 0 : index
    %100 = vector.load %arg11[%c0_68, %c0_69, %c0_70] : memref<1x256x8xf32, #tpu.memory_space<vmem>>, vector<1x256x8xf32>
    %101 = vector.shape_cast %100 : vector<1x256x8xf32> to vector<256x8xf32>
    %102 = vector.shape_cast %99 : vector<256x8xf32> to vector<1x256x8xf32>
    tpu.vector_store %arg11[%c0_68, %c0_69, %c0_70], %102 {strides = array<i32>} : memref<1x256x8xf32, #tpu.memory_space<vmem>>, vector<1x256x8xf32>,
    return
  }
  func.func @transform_0(%arg0: i32) -> (i32, i32, i32) {
    %c0_i32 = arith.constant 0 : i32
    %c0_i32_0 = arith.constant 0 : i32
    %c0_i32_1 = arith.constant 0 : i32
    %c0_i32_2 = arith.constant 0 : i32
    return %c0_i32, %c0_i32_0, %c0_i32_1 : i32, i32, i32
  }
  func.func @transform_1(%arg0: i32) -> (i32, i32, i32) {
    %c0_i32 = arith.constant 0 : i32
    %c0_i32_0 = arith.constant 0 : i32
    %c0_i32_1 = arith.constant 0 : i32
    %c0_i32_2 = arith.constant 0 : i32
    return %c0_i32, %c0_i32_0, %c0_i32_1 : i32, i32, i32
  }
  func.func @transform_2(%arg0: i32) -> (i32, i32, i32) {
    %c0_i32 = arith.constant 0 : i32
    %c0_i32_0 = arith.constant 0 : i32
    %c0_i32_1 = arith.constant 0 : i32
    return %arg0, %c0_i32, %c0_i32_0 : i32, i32, i32
  }
  func.func @transform_3(%arg0: i32) -> (i32, i32) {
    %c0_i32 = arith.constant 0 : i32
    %c0_i32_0 = arith.constant 0 : i32
    %c0_i32_1 = arith.constant 0 : i32
    return %c0_i32, %c0_i32_0 : i32, i32
  }
  func.func @transform_4(%arg0: i32) -> (i32, i32) {
    %c0_i32 = arith.constant 0 : i32
    %c0_i32_0 = arith.constant 0 : i32
    %c0_i32_1 = arith.constant 0 : i32
    return %c0_i32, %c0_i32_0 : i32, i32
  }
  func.func @transform_5(%arg0: i32) -> (i32, i32, i32) {
    %c0_i32 = arith.constant 0 : i32
    %c0_i32_0 = arith.constant 0 : i32
    %c0_i32_1 = arith.constant 0 : i32
    %c0_i32_2 = arith.constant 0 : i32
    return %c0_i32, %c0_i32_0, %c0_i32_1 : i32, i32, i32
  }
  func.func @transform_6(%arg0: i32) -> (i32, i32) {
    %c0_i32 = arith.constant 0 : i32
    %c0_i32_0 = arith.constant 0 : i32
    %c0_i32_1 = arith.constant 0 : i32
    return %c0_i32, %c0_i32_0 : i32, i32
  }
  func.func @transform_7(%arg0: i32) -> (i32, i32) {
    %c0_i32 = arith.constant 0 : i32
    %c0_i32_0 = arith.constant 0 : i32
    %c0_i32_1 = arith.constant 0 : i32
    return %c0_i32, %c0_i32_0 : i32, i32
  }
  func.func @transform_8(%arg0: i32) -> (i32, i32, i32) {
    %c0_i32 = arith.constant 0 : i32
    %c0_i32_0 = arith.constant 0 : i32
    %c0_i32_1 = arith.constant 0 : i32
    return %arg0, %c0_i32, %c0_i32_0 : i32, i32, i32
  }
  func.func @transform_9(%arg0: i32) -> (i32, i32) {
    %c0_i32 = arith.constant 0 : i32
    %c0_i32_0 = arith.constant 0 : i32
    %c0_i32_1 = arith.constant 0 : i32
    return %c0_i32, %c0_i32_0 : i32, i32
  }
  func.func @transform_10(%arg0: i32) -> (i32, i32, i32) {
    %c0_i32 = arith.constant 0 : i32
    %c0_i32_0 = arith.constant 0 : i32
    %c0_i32_1 = arith.constant 0 : i32
    return %arg0, %c0_i32, %c0_i32_0 : i32, i32, i32
  }
}

</mosaic_0001>

<bundles_post_ra>
// kernel: res_block_forward.3
= control target key start
LH: loop header
LB: loop body
LE: loop exit
PB: predicated region body
PF: predicated region fallthrough
CT: control target
= control target key end

     0   :  { %s589_s9 = smov 0   ;;  %s591_s10 = smov 0   ;;  %s734_s0 = inlined_call_operand.vmem [shape: f32[2,256,4], index: 0, kind: input, shape index: {}]   ;;  %s735_s1 = inlined_call_operand.vmem [shape: f32[2,1,1], index: 1, kind: output, shape index: {0}]   ;;  %s736_s2 = inlined_call_operand.vmem [shape: f32[2,1,1], index: 2, kind: output, shape index: {1}]  }
   0x1   :  { %s593_s11 = smov 0  }
   0x2 LB: > { %s25_s12 = sadd.s32 1, %s567_s10  ;;  %p514_p0 = scmp.ge.s32.totalorder %s571_s11, 1  ;;  %s571_s11 = sphi %s593_s11, %s13_s11   ;;  %s567_s10 = sphi %s591_s10, %s738_s10   ;;  %s563_s9 = sphi %s589_s9, %s737_s9  }
   0x3   : > { %p27_p1 = scmp.ge.s32.totalorder %s25_s12, 2  ;;  %p134_p2 = scmp.lt.s32.totalorder %s571_s11, 3 }
   0x5   : > { %s740_s12 = smov (%p27_p1, %s25_s12), 0  ;;  %p135_p3 = pnand %p514_p0, %p134_p2 }
   0x6   : > { %p162_p4 = scmp.lt.s32.totalorder (!%p135_p3), %s563_s9, 1 }
   0x7   : > { %138 = sbr.rel (%p135_p3) target bundleno = 309 (0x135), region = 24 }
   0xc   : > { %vm181_vm0 = vcmask 24576   ;;  %v573_v0 = vmov 0.0   ;;  %s742_s9 = smov (!%p162_p4, %s563_s9), 1  ;;  %vm217_vm1 = vcmask 31744   ;;  %vm409_vm2 = vcmask 0  }
   0xd   : > { %182 = vst.msk [vmem:[#allocation2] sm:$0x1] %vm181_vm0, %v573_v0  ;;  %183 = vst.msk [vmem:[#allocation3] sm:$0x1] %vm181_vm0, %v573_v0  ;;  %s519_s13 = sshll.u32 %s742_s9, 8  ;;  %s173_s19 = scalar_lea.vmem %s735_s1, %s742_s9 }
   0xe   : > { %s615_s16 = scalar_lea.vmem %s734_s0, %s519_s13  ;;  %s176_s23 = scalar_lea.vmem %s736_s2, %s742_s9 }
   0xf   : > { %v184_v1 = vld [vmem:[%s615_s16] sm:$0xff]  ;;  %v185_v2 = vld [vmem:[%s615_s16 + $0x8] sm:$0xff]  ;;  %v186_v3 = vld [vmem:[%s615_s16 + $0x10] sm:$0xff] }
  0x10   : > { %v187_v4 = vld [vmem:[%s615_s16 + $0x18] sm:$0xff]  ;;  %v218_v5 = vsel %vm217_vm1, %v184_v1, 0.0  ;;  %v219_v6 = vsel %vm217_vm1, %v185_v2, 0.0  ;;  %v221_v7 = vsel %vm217_vm1, %v186_v3, 0.0  ;;  %v188_v8 = vld [vmem:[%s615_s16 + $0x20] sm:$0xff]  ;;  %v189_v11 = vld [vmem:[%s615_s16 + $0x28] sm:$0xff]  ;;  %v291_v30 = vmul.f32 %v184_v1, %v184_v1 }
  0x11   : > { %v220_v9 = vadd.f32 %v219_v6, %v218_v5  ;;  %v223_v10 = vsel %vm217_vm1, %v187_v4, 0.0  ;;  %v225_v13 = vsel %vm217_vm1, %v188_v8, 0.0  ;;  %v190_v14 = vld [vmem:[%s615_s16 + $0x30] sm:$0xff]  ;;  %v227_v16 = vsel %vm217_vm1, %v189_v11, 0.0  ;;  %v191_v17 = vld [vmem:[%s615_s16 + $0x38] sm:$0xff]  ;;  %v192_v20 = vld [vmem:[%s615_s16 + $0x40] sm:$0xff] }
  0x12   : > { %v229_v19 = vsel %vm217_vm1, %v190_v14, 0.0  ;;  %v231_v22 = vsel %vm217_vm1, %v191_v17, 0.0  ;;  %v193_v23 = vld [vmem:[%s615_s16 + $0x48] sm:$0xff]  ;;  %v233_v25 = vsel %vm217_vm1, %v192_v20, 0.0  ;;  %v194_v26 = vld [vmem:[%s615_s16 + $0x50] sm:$0xff]  ;;  %v195_v28 = vld [vmem:[%s615_s16 + $0x58] sm:$0xff]  ;;  %v292_v31 = vmul.f32 %v185_v2, %v185_v2 }
  0x13   : > { %v222_v12 = vadd.f32 %v221_v7, %v220_v9  ;;  %v235_v29 = vsel %vm217_vm1, %v193_v23, 0.0  ;;  %v293_v32 = vmul.f32 %v186_v3, %v186_v3  ;;  %v237_v34 = vsel %vm217_vm1, %v194_v26, 0.0  ;;  %v196_v36 = vld [vmem:[%s615_s16 + $0x60] sm:$0xff]  ;;  %v197_v43 = vld [vmem:[%s615_s16 + $0x68] sm:$0xff]  ;;  %v198_v49 = vld [vmem:[%s615_s16 + $0x70] sm:$0xff] }
  0x14   : > { %v294_v35 = vmul.f32 %v187_v4, %v187_v4  ;;  %v239_v38 = vsel %vm217_vm1, %v195_v28, 0.0  ;;  %v295_v39 = vmul.f32 %v188_v8, %v188_v8  ;;  %v323_v40 = vsel %vm217_vm1, %v291_v30, 0.0  ;;  %v199_v55 = vld [vmem:[%s615_s16 + $0x78] sm:$0xff]  ;;  %v200_v61 = vld [vmem:[%s615_s16 + $0x80] sm:$0xff]  ;;  %v201_v3 = vld [vmem:[%s615_s16 + $0x88] sm:$0xff] }
  0x15   : > { %v224_v15 = vadd.f32 %v223_v10, %v222_v12  ;;  %v324_v41 = vsel %vm217_vm1, %v292_v31, 0.0  ;;  %v326_v42 = vsel %vm217_vm1, %v293_v32, 0.0  ;;  %v241_v46 = vsel %vm217_vm1, %v196_v36, 0.0  ;;  %v202_v9 = vld [vmem:[%s615_s16 + $0x90] sm:$0xff] }
  0x16   : > { %v325_v45 = vadd.f32 %v324_v41, %v323_v40  ;;  %v296_v47 = vmul.f32 %v189_v11, %v189_v11  ;;  %v328_v48 = vsel %vm217_vm1, %v294_v35, 0.0  ;;  %v243_v52 = vsel %vm217_vm1, %v197_v43, 0.0 }
  0x17   : > { %v226_v18 = vadd.f32 %v225_v13, %v224_v15  ;;  %v297_v53 = vmul.f32 %v190_v14, %v190_v14  ;;  %v330_v54 = vsel %vm217_vm1, %v295_v39, 0.0  ;;  %v245_v58 = vsel %vm217_vm1, %v198_v49, 0.0  ;;  %v203_v15 = vld [vmem:[%s615_s16 + $0x98] sm:$0xff] }
  0x18   : > { %v327_v51 = vadd.f32 %v326_v42, %v325_v45  ;;  %v298_v59 = vmul.f32 %v191_v17, %v191_v17  ;;  %v332_v60 = vsel %vm217_vm1, %v296_v47, 0.0  ;;  %v247_v0 = vsel %vm217_vm1, %v199_v55, 0.0  ;;  %v207_v39 = vld [vmem:[%s615_s16 + $0xb8] sm:$0xff]  ;;  %v208_v45 = vld [vmem:[%s615_s16 + $0xc0] sm:$0xff] }
  0x19   : > { %v228_v21 = vadd.f32 %v227_v16, %v226_v18  ;;  %v299_v1 = vmul.f32 %v192_v20, %v192_v20  ;;  %v334_v2 = vsel %vm217_vm1, %v297_v53, 0.0  ;;  %v249_v6 = vsel %vm217_vm1, %v200_v61, 0.0 }
  0x1a   : > { %v329_v57 = vadd.f32 %v328_v48, %v327_v51  ;;  %v300_v7 = vmul.f32 %v193_v23, %v193_v23  ;;  %v336_v8 = vsel %vm217_vm1, %v298_v59, 0.0  ;;  %v251_v12 = vsel %vm217_vm1, %v201_v3, 0.0  ;;  %v209_v51 = vld [vmem:[%s615_s16 + $0xc8] sm:$0xff] }
  0x1b   : > { %v230_v24 = vadd.f32 %v229_v19, %v228_v21  ;;  %v301_v13 = vmul.f32 %v194_v26, %v194_v26  ;;  %v338_v14 = vsel %vm217_vm1, %v299_v1, 0.0  ;;  %v253_v18 = vsel %vm217_vm1, %v202_v9, 0.0  ;;  %v204_v21 = vld [vmem:[%s615_s16 + $0xa0] sm:$0xff] }
  0x1c   : > { %v331_v63 = vadd.f32 %v330_v54, %v329_v57  ;;  %v302_v19 = vmul.f32 %v195_v28, %v195_v28  ;;  %v340_v20 = vsel %vm217_vm1, %v300_v7, 0.0  ;;  %v257_v31 = vsel %vm217_vm1, %v204_v21, 0.0  ;;  %v210_v57 = vld [vmem:[%s615_s16 + $0xd0] sm:$0xff] }
  0x1d   : > { %v232_v27 = vadd.f32 %v231_v22, %v230_v24  ;;  %v255_v24 = vsel %vm217_vm1, %v203_v15, 0.0  ;;  %v342_v26 = vsel %vm217_vm1, %v301_v13, 0.0  ;;  %v304_v32 = vmul.f32 %v197_v43, %v197_v43 }
  0x1e   : > { %v333_v5 = vadd.f32 %v332_v60, %v331_v63  ;;  %v344_v28 = vsel %vm217_vm1, %v302_v19, 0.0  ;;  %v263_v48 = vsel %vm217_vm1, %v207_v39, 0.0  ;;  %v265_v54 = vsel %vm217_vm1, %v208_v45, 0.0  ;;  %v211_v63 = vld [vmem:[%s615_s16 + $0xd8] sm:$0xff] }
  0x1f   : > { %v234_v33 = vadd.f32 %v233_v25, %v232_v27  ;;  %v303_v25 = vmul.f32 %v196_v36, %v196_v36  ;;  %v205_v27 = vld [vmem:[%s615_s16 + $0xa8] sm:$0xff]  ;;  %v348_v43 = vsel %vm217_vm1, %v304_v32, 0.0  ;;  %v267_v60 = vsel %vm217_vm1, %v209_v51, 0.0 }
  0x20   : > { %v335_v11 = vadd.f32 %v334_v2, %v333_v5  ;;  %v269_v2 = vsel %vm217_vm1, %v210_v57, 0.0  ;;  %v212_v5 = vld [vmem:[%s615_s16 + $0xe0] sm:$0xff] }
  0x21   : > { %v236_v37 = vadd.f32 %v235_v29, %v234_v33  ;;  %v206_v33 = vld [vmem:[%s615_s16 + $0xb0] sm:$0xff]  ;;  %v346_v36 = vsel %vm217_vm1, %v303_v25, 0.0 }
  0x22   : > { %v337_v17 = vadd.f32 %v336_v8, %v335_v11  ;;  %v261_v42 = vsel %vm217_vm1, %v206_v33, 0.0  ;;  %v271_v8 = vsel %vm217_vm1, %v211_v63, 0.0  ;;  %v213_v11 = vld [vmem:[%s615_s16 + $0xe8] sm:$0xff] }
  0x23   : > { %v238_v44 = vadd.f32 %v237_v34, %v236_v37  ;;  %v259_v37 = vsel %vm217_vm1, %v205_v27, 0.0 }
  0x24   : > { %v339_v23 = vadd.f32 %v338_v14, %v337_v17  ;;  %v273_v14 = vsel %vm217_vm1, %v212_v5, 0.0 }
  0x25   : > { %v240_v50 = vadd.f32 %v239_v38, %v238_v44  ;;  %v305_v38 = vmul.f32 %v198_v49, %v198_v49  ;;  %v306_v44 = vmul.f32 %v199_v55, %v199_v55 }
  0x26   : > { %v341_v30 = vadd.f32 %v340_v20, %v339_v23  ;;  %v275_v20 = vsel %vm217_vm1, %v213_v11, 0.0 }
  0x27   : > { %v242_v56 = vadd.f32 %v241_v46, %v240_v50  ;;  %v307_v50 = vmul.f32 %v200_v61, %v200_v61  ;;  %v350_v49 = vsel %vm217_vm1, %v305_v38, 0.0  ;;  %v352_v55 = vsel %vm217_vm1, %v306_v44, 0.0 }
  0x28   : > { %v343_v35 = vadd.f32 %v342_v26, %v341_v30 }
  0x29   : > { %v244_v62 = vadd.f32 %v243_v52, %v242_v56  ;;  %v308_v56 = vmul.f32 %v201_v3, %v201_v3  ;;  %v354_v61 = vsel %vm217_vm1, %v307_v50, 0.0 }
  0x2a   : > { %v345_v41 = vadd.f32 %v344_v28, %v343_v35  ;;  %v315_v28 = vmul.f32 %v208_v45, %v208_v45  ;;  %v319_v45 = vmul.f32 %v212_v5, %v212_v5 }
  0x2b   : > { %v246_v4 = vadd.f32 %v245_v58, %v244_v62  ;;  %v309_v62 = vmul.f32 %v202_v9, %v202_v9  ;;  %v356_v3 = vsel %vm217_vm1, %v308_v56, 0.0 }
  0x2c   : > { %v347_v47 = vadd.f32 %v346_v36, %v345_v41  ;;  %v317_v41 = vmul.f32 %v210_v57, %v210_v57  ;;  %v378_v57 = vsel %vm217_vm1, %v319_v45, 0.0 }
  0x2d   : > { %v248_v10 = vadd.f32 %v247_v0, %v246_v4  ;;  %v310_v4 = vmul.f32 %v203_v15, %v203_v15  ;;  %v358_v9 = vsel %vm217_vm1, %v309_v62, 0.0  ;;  %v214_v15 = vld [vmem:[%s615_s16 + $0xf0] sm:$0xff] }
  0x2e   : > { %v349_v53 = vadd.f32 %v348_v43, %v347_v47  ;;  %v277_v26 = vsel %vm217_vm1, %v214_v15, 0.0  ;;  %v318_v43 = vmul.f32 %v211_v63, %v211_v63  ;;  %v374_v50 = vsel %vm217_vm1, %v317_v41, 0.0 }
  0x2f   : > { %v250_v16 = vadd.f32 %v249_v6, %v248_v10  ;;  %v311_v10 = vmul.f32 %v204_v21, %v204_v21  ;;  %v360_v17 = vsel %vm217_vm1, %v310_v4, 0.0 }
  0x30   : > { %v351_v59 = vadd.f32 %v350_v49, %v349_v53  ;;  %v376_v53 = vsel %vm217_vm1, %v318_v43, 0.0 }
  0x31   : > { %v252_v22 = vadd.f32 %v251_v12, %v250_v16  ;;  %v312_v16 = vmul.f32 %v205_v27, %v205_v27  ;;  %v362_v23 = vsel %vm217_vm1, %v311_v10, 0.0 }
  0x32   : > { %v353_v1 = vadd.f32 %v352_v55, %v351_v59  ;;  %v321_v55 = vmul.f32 %v214_v15, %v214_v15 }
  0x33   : > { %v254_v29 = vadd.f32 %v253_v18, %v252_v22  ;;  %v313_v22 = vmul.f32 %v206_v33, %v206_v33  ;;  %v364_v30 = vsel %vm217_vm1, %v312_v16, 0.0  ;;  %v316_v33 = vmul.f32 %v209_v51, %v209_v51 }
  0x34   : > { %v355_v7 = vadd.f32 %v354_v61, %v353_v1  ;;  %v320_v51 = vmul.f32 %v213_v11, %v213_v11  ;;  %v382_v1 = vsel %vm217_vm1, %v321_v55, 0.0 }
  0x35   : > { %v256_v34 = vadd.f32 %v255_v24, %v254_v29  ;;  %v215_v24 = vld [vmem:[%s615_s16 + $0xf8] sm:$0xff]  ;;  %v314_v29 = vmul.f32 %v207_v39, %v207_v39 }
  0x36   : > { %v357_v13 = vadd.f32 %v356_v3, %v355_v7  ;;  %v279_v32 = vsel %vm217_vm1, %v215_v24, 0.0  ;;  %v322_v62 = vmul.f32 %v215_v24, %v215_v24  ;;  %v380_v61 = vsel %vm217_vm1, %v320_v51, 0.0 }
  0x37   : > { %v258_v40 = vadd.f32 %v257_v31, %v256_v34  ;;  %v366_v34 = vsel %vm217_vm1, %v313_v22, 0.0  ;;  %v368_v38 = vsel %vm217_vm1, %v314_v29, 0.0 }
  0x38   : > { %v359_v19 = vadd.f32 %v358_v9, %v357_v13  ;;  %v384_v3 = vsel %vm217_vm1, %v322_v62, 0.0 }
  0x39   : > { %v260_v46 = vadd.f32 %v259_v37, %v258_v40 }
  0x3a   : > { %v361_v25 = vadd.f32 %v360_v17, %v359_v19 }
  0x3b   : > { %v262_v52 = vadd.f32 %v261_v42, %v260_v46  ;;  %v370_v42 = vsel %vm217_vm1, %v315_v28, 0.0  ;;  %v372_v46 = vsel %vm217_vm1, %v316_v33, 0.0 }
  0x3c   : > { %v363_v27 = vadd.f32 %v362_v23, %v361_v25 }
  0x3d   : > { %v264_v58 = vadd.f32 %v263_v48, %v262_v52 }
  0x3e   : > { %v365_v37 = vadd.f32 %v364_v30, %v363_v27 }
  0x3f   : > { %v266_v0 = vadd.f32 %v265_v54, %v264_v58 }
  0x40   : > { %v367_v40 = vadd.f32 %v366_v34, %v365_v37 }
  0x41   : > { %v268_v6 = vadd.f32 %v267_v60, %v266_v0  ;;  %v216_v60 = vld [vmem:[#allocation2] sm:$0x1] }
  0x42   : > { %v369_v44 = vadd.f32 %v368_v38, %v367_v40 }
  0x43   : > { %v270_v12 = vadd.f32 %v269_v2, %v268_v6 }
  0x44   : > { %v371_v48 = vadd.f32 %v370_v42, %v369_v44 }
  0x45   : > { %v272_v18 = vadd.f32 %v271_v8, %v270_v12 }
  0x46   : > { %v373_v52 = vadd.f32 %v372_v46, %v371_v48 }
  0x47   : > { %v274_v21 = vadd.f32 %v273_v14, %v272_v18  ;;  %v290_v14 = vld [vmem:[#allocation3] sm:$0x1] }
  0x48   : > { %v375_v56 = vadd.f32 %v374_v50, %v373_v52 }
  0x49   : > { %v276_v31 = vadd.f32 %v275_v20, %v274_v21 }
  0x4a   : > { %v377_v59 = vadd.f32 %v376_v53, %v375_v56 }
  0x4b   : > { %v278_v35 = vadd.f32 %v277_v26, %v276_v31 }
  0x4c   : > { %v379_v0 = vadd.f32 %v378_v57, %v377_v59 }
  0x4d   : > { %v280_v36 = vadd.f32 %v279_v32, %v278_v35 }
  0x4e   : > { %v381_v4 = vadd.f32 %v380_v61, %v379_v0 }
  0x4f   : > { %v281_v39 = vrot.slane %v280_v36, 4 }
  0x50   : > { %v383_v5 = vadd.f32 %v382_v1, %v381_v4 }
  0x51   : > { %v282_v47 = vadd.f32 %v281_v39, %v280_v36 }
  0x52   : > { %v385_v6 = vadd.f32 %v384_v3, %v383_v5 }
  0x53   : > { %v283_v49 = vrot.slane %v282_v47, 2 }
  0x54   : > { %v386_v7 = vrot.slane %v385_v6, 4 }
  0x55   : > { %v284_v54 = vadd.f32 %v283_v49, %v282_v47 }
  0x56   : > { %v387_v8 = vadd.f32 %v386_v7, %v385_v6 }
  0x57   : > { %v285_v58 = vrot.slane %v284_v54, 1 }
  0x58   : > { %v388_v9 = vrot.slane %v387_v8, 2 }
  0x59   : > { %v286_v63 = vadd.f32 %v285_v58, %v284_v54 }
  0x5a   : > { %v389_v12 = vadd.f32 %v388_v9, %v387_v8 }
  0x5b   : > { %v287_v2 = vadd.f32 %v286_v63, %v216_v60 }
  0x5c   : > { %v390_v13 = vrot.slane %v389_v12, 1 }
  0x5d   : > { %289 = vst.msk [vmem:[#allocation2] sm:$0x1] %vm181_vm0, %v287_v2 }
  0x5e   : > { %v391_v16 = vadd.f32 %v390_v13, %v389_v12 }
  0x60   : > { %v392_v17 = vadd.f32 %v391_v16, %v290_v14 }
  0x62   : > { %393 = vst.msk [vmem:[#allocation3] sm:$0x1] %vm181_vm0, %v392_v17 }
  0x64   : > { %v397_v10 = vld [vmem:[#allocation2] sm:$0x1] }
  0x65   : > { %v398_v11 = vsel %vm181_vm0, %v397_v10, 0.0 }
  0x66   : > { %399 = vadd.xlane.f32.xlu0 %v398_v11 }
  0x69   : > { %v411_v15 = vld [vmem:[#allocation3] sm:$0x1] }
  0x6a   : > { %v412_v18 = vsel %vm181_vm0, %v411_v15, 0.0 }
  0x6b   : > { %413 = vadd.xlane.f32.xlu0 %v412_v18 }
  0xef   : > { %v400_v19 = vpop.xlane.xlu0 %399 }
  0xf0   : > { %v401_v20 = vrot.slane %v400_v19, 4 }
  0xf2   : > { %v402_v22 = vadd.f32 %v401_v20, %v400_v19 }
  0xf4   : > { %v403_v23 = vrot.slane %v402_v22, 2  ;;  %v414_v26 = vpop.xlane.xlu0 %413 }
  0xf5   : > { %v415_v29 = vrot.slane %v414_v26, 4 }
  0xf6   : > { %v404_v24 = vadd.f32 %v403_v23, %v402_v22 }
  0xf7   : > { %v416_v30 = vadd.f32 %v415_v29, %v414_v26 }
  0xf8   : > { %v405_v21 = vrot.slane %v404_v24, 1 }
  0xf9   : > { %v417_v31 = vrot.slane %v416_v30, 2 }
  0xfa   : > { %v406_v25 = vadd.f32 %v405_v21, %v404_v24 }
  0xfb   : > { %v418_v27 = vadd.f32 %v417_v31, %v416_v30 }
  0xfc   : > { %520 = vpush %v406_v25 }
  0xfd   : > { %v419_v32 = vrot.slane %v418_v27, 1 }
  0xff   : > { %v420_v28 = vadd.f32 %v419_v32, %v418_v27 }
 0x101   : > { %522 = vpush %v420_v28 }
 0x12d   : > { %s521_s20 = spop %520 }
 0x12e   : > { %v408_v34 = vstv %s521_s20 }
 0x12f   : > { %410 = vst.msk [vmem:[%s173_s19] sm:$0x1] %vm409_vm2, %v408_v34 }
 0x132   : > { %s523_s24 = spop %522 }
 0x133   : > { %v422_v35 = vstv %s523_s24 }
 0x134   : > { %423 = vst.msk [vmem:[%s176_s23] sm:$0x1] %vm409_vm2, %v422_v35 }
 0x135 PF: > { %s13_s11 = sadd.s32 1, %s571_s11   ;;  %s737_s9 = smov %s567_s10 }
 0x136   : > { %p10_p5 = scmp.ge.s32.totalorder %s13_s11, 4   ;;  %s738_s10 = smov %s740_s12 }
 0x138   :  { %12 = sbr.rel (!%p10_p5) target bundleno = 2 (0x2), region = 74 }

// kernel: res_block_forward.4
= control target key start
LH: loop header
LB: loop body
LE: loop exit
PB: predicated region body
PF: predicated region fallthrough
CT: control target
= control target key end

     0   :  { %16 = vsyncpa [#allocation4], 0  ;;  %s8781_s0 = inlined_call_operand.vmem [shape: f32[2,1,1], index: 0, kind: input, shape index: {}]   ;;  %s8782_s1 = inlined_call_operand.vmem [shape: f32[2,1,1], index: 1, kind: input, shape index: {}]   ;;  %s8783_s2 = inlined_call_operand.vmem [shape: f32[2,256,4], index: 2, kind: input, shape index: {}]   ;;  %s8784_s3 = inlined_call_operand.vmem [shape: f32[1,4], index: 3, kind: input, shape index: {}]   ;;  %s8785_s4 = inlined_call_operand.vmem [shape: f32[1,4], index: 4, kind: input, shape index: {}]   ;;  %s8786_s5 = inlined_call_operand.vmem [shape: f32[9,4,8], index: 5, kind: input, shape index: {}]   ;;  %s8787_s6 = inlined_call_operand.vmem [shape: f32[256,1], index: 6, kind: input, shape index: {}]   ;;  %s8788_s7 = inlined_call_operand.vmem [shape: f32[256,1], index: 7, kind: input, shape index: {}]   ;;  %s8789_s8 = inlined_call_operand.vmem [shape: f32[2,256,8], index: 8, kind: output, shape index: {0}]   ;;  %s8790_s9 = inlined_call_operand.vmem [shape: f32[2,1,1], index: 9, kind: output, shape index: {1}]   ;;  %s8791_s10 = inlined_call_operand.vmem [shape: f32[2,1,1], index: 10, kind: output, shape index: {2}]  }
   0x1   :  { %17 = vsyncpa [#allocation6], 0  ;;  %s6570_s13 = smov 0  }
   0x2 LB: > { %s291_s16 = sshll.u32 %s8781_s0, 4  ;;  %s6579_s17 = sadd.s32 4294967295, %s6507_s13   ;;  %s6507_s13 = sphi %s6570_s13, %s23_s13   ;;  %s292_s16 = int_to_ptr.vmem [resolvable:$true] %s291_s16 }
   0x3   : > { %p5192_p0 = scmp.ge.s32.totalorder %s6507_s13, 1  ;;  %p279_p1 = scmp.lt.s32.totalorder %s6507_s13, 3 }
   0x4   : > { %p8792_p3 = scmp.eq.s32.totalorder %s6579_s17, 0  ;;  %s304_s21 = sshll.u32 %s8782_s1, 4  ;;  %s305_s21 = int_to_ptr.vmem [resolvable:$true] %s304_s21 }
   0x5   : > { %p6583_p2 = pnand %p5192_p0, %p279_p1  ;;  %s6463_s23 = scalar_lea.vmem %s292_s16, 32 }
   0x6   : > { %p6464_p6 = scmp.ne.s32.totalorder %s292_s16, %s6463_s23  ;;  %p6471_p10 = scmp.lt.s32.totalorder %s292_s16, %s292_s16 }
   0x7   : > { %s8802_s18 = scalar_select %p6583_p2, 1, 0 }
   0x8   : > { %p6306_p4 = pneg %p6583_p2  ;;  %p6472_p11 = scmp.lt.s32.totalorder %s6463_s23, %s6463_s23 }
   0xa   : > { %p6595_p5 = pnand %p8792_p3, %p6306_p4  ;;  %p6473_p12 = por %p6472_p11, %p6471_p10 }
   0xc   : > { %p6465_p7 = pneg %p6595_p5 }
   0xe   : > { %p6466_p8 = pnand %p6465_p7, %p6464_p6 }
  0x10   : > { %p6467_p9 = pneg %p6466_p8 }
  0x12   : > { %p6474_p13 = pnand %p6473_p12, %p6467_p9 }
  0x14   : > { %6477 = shalt.err (!%p6474_p13)
}
  0x15   : > { %s6509_s24 = smov [#allocation3]   ;;  %s6510_s25 = smov 16  }
  0x16   : > { %s6511_s26 = smov 1   ;;  %s6478_s27 = scalar_lea.vmem %s305_s21, 32 }
  0x17   : > { %6309 = dma.vmem_to_smem (!%p6595_p5), %s292_s16, 32, %s6509_s24, [#allocation4], %s6510_s25, %s6510_s25, %s6511_s26  }
  0x18   : > { %p6479_p0 = scmp.ne.s32.totalorder %s305_s21, %s6478_s27  ;;  %p6486_p6 = scmp.lt.s32.totalorder %s305_s21, %s305_s21 }
  0x19   : > { %p6487_p8 = scmp.lt.s32.totalorder %s6478_s27, %s6478_s27 }
  0x1a   : > { %p6481_p1 = pnand %p6479_p0, %p6465_p7 }
  0x1b   : > { %p6488_p3 = por %p6487_p8, %p6486_p6 }
  0x1c   : > { %p6482_p4 = pneg %p6481_p1 }
  0x1e   : > { %p6489_p2 = pnand %p6488_p3, %p6482_p4 }
  0x20   : > { %6492 = shalt.err (!%p6489_p2)
}
  0x21   : > { %s6512_s28 = smov [#allocation5]   ;;  %p8804_p9 = scmp.ne.s32.totalorder %s8802_s18, 0 }
  0x22   : > { %6312 = dma.vmem_to_smem (!%p6595_p5), %s305_s21, 32, %s6512_s28, [#allocation6], %s6510_s25, %s6510_s25, %s6511_s26  }
  0x23   : > { %343 = sbr.rel (%p8804_p9) target bundleno = 901 (0x385), region = 52 }
  0x28   : > { %p8805_p10 = scmp.eq.s32.totalorder %s6579_s17, 0 }
  0x2a   : > { %6498 = dma.done.wait (%p8805_p10), [#allocation4], 32   ;;  %p8806_p11 = pmov %p8805_p10 }
  0x2b   : > { %p8807_p7 = pmov %p8805_p10 }
  0x2c   : > { %6500 = vsyncadd (%p8806_p11), [#allocation4], 4294967264 }
  0x2d   : > { %6502 = dma.done.wait (%p8807_p7), [#allocation6], 32   ;;  %p8808_p12 = pmov %p8807_p7 }
  0x2f   : > { %6504 = vsyncadd (%p8808_p12), [#allocation6], 4294967264 }
  0x30   : > { %353 = sfence }
  0x31   : > { %v859_v0 = vld [vmem:[%s8788_s7] sm:$0xff]  ;;  %v6513_v2 = vmov 0   ;;  %s5203_s14 = sshll.u32 %s6579_s17, 7  ;;  %vm756_vm0 = vcmask 31744   ;;  %v6514_v3 = vmov 0.0   ;;  %v860_v4 = vld [vmem:[%s8788_s7 + $0x8] sm:$0xff]  ;;  %v457_v24 = vlaneseq }
  0x32   : > { %v827_v1 = vld [vmem:[%s8787_s6] sm:$0xff]  ;;  %6332 = vset.pattern.permute.xlu1 %v6513_v2  ;;  %6331 = vset.pattern.permute.xlu0 %v6513_v2  ;;  %774 = vst.msk [vmem:[#allocation2 + $0x88] sm:$0xff] %vm756_vm0, %v6514_v3  ;;  %757 = vst.msk [vmem:[#allocation2] sm:$0xff] %vm756_vm0, %v6514_v3  ;;  %v828_v5 = vld [vmem:[%s8787_s6 + $0x8] sm:$0xff]  ;;  %s409_s20 = sld [smem:[#allocation3 + %s5203_s14]]  ;;  %vm1246_vm1 = vcmask 1043456  }
  0x33   : > { %1833 = vperm.xlu1 %6332, %v859_v0   ;;  %925 = vperm.xlu0 %6331, %v827_v1   ;;  %758 = vst.msk [vmem:[#allocation2 + $0x8] sm:$0xff] %vm756_vm0, %v6514_v3  ;;  %759 = vst.msk [vmem:[#allocation2 + $0x10] sm:$0xff] %vm756_vm0, %v6514_v3  ;;  %s410_s21 = sld [smem:[#allocation5 + %s5203_s14]]  ;;  %v830_v6 = vld [vmem:[%s8787_s6 + $0x18] sm:$0xff]  ;;  %v829_v7 = vld [vmem:[%s8787_s6 + $0x10] sm:$0xff]  ;;  %p392_p2 = scmp.lt.s32.totalorder %s6579_s17, 1 }
  0x34   : > { %760 = vst.msk [vmem:[#allocation2 + $0x18] sm:$0xff] %vm756_vm0, %v6514_v3  ;;  %761 = vst.msk [vmem:[#allocation2 + $0x20] sm:$0xff] %vm756_vm0, %v6514_v3  ;;  %v862_v11 = vld [vmem:[%s8788_s7 + $0x18] sm:$0xff]  ;;  %v861_v12 = vld [vmem:[%s8788_s7 + $0x10] sm:$0xff]  ;;  %v458_v27 = vshrl.u32 %v457_v24, 7  ;;  %vm4849_vm2 = vcmask 64512  }
  0x35   : > { %762 = vst.msk [vmem:[#allocation2 + $0x28] sm:$0xff] %vm756_vm0, %v6514_v3  ;;  %763 = vst.msk [vmem:[#allocation2 + $0x30] sm:$0xff] %vm756_vm0, %v6514_v3  ;;  %v832_v16 = vld [vmem:[%s8787_s6 + $0x28] sm:$0xff]  ;;  %v831_v17 = vld [vmem:[%s8787_s6 + $0x20] sm:$0xff]  ;;  %s9094_s17 = smov (!%p392_p2, %s6579_s17), 1  ;;  %vm4923_vm3 = vcmask 0  }
  0x36   : > { %764 = vst.msk [vmem:[#allocation2 + $0x38] sm:$0xff] %vm756_vm0, %v6514_v3  ;;  %765 = vst.msk [vmem:[#allocation2 + $0x40] sm:$0xff] %vm756_vm0, %v6514_v3  ;;  %v5236_v18 = vld [vmem:[%s8786_s5 + $0x4] sm:$0xf]  ;;  %v864_v22 = vld [vmem:[%s8788_s7 + $0x28] sm:$0xff]  ;;  %s5543_s26 = sshll.u32 %s9094_s17, 8  ;;  %s407_s24 = scalar_lea.vmem %s8791_s10, %s9094_s17 }
  0x37   : > { %766 = vst.msk [vmem:[#allocation2 + $0x48] sm:$0xff] %vm756_vm0, %v6514_v3  ;;  %767 = vst.msk [vmem:[#allocation2 + $0x50] sm:$0xff] %vm756_vm0, %v6514_v3  ;;  %1838 = vperm.xlu1 %6332, %v860_v4   ;;  %930 = vperm.xlu0 %6331, %v828_v5   ;;  %v863_v23 = vld [vmem:[%s8788_s7 + $0x20] sm:$0xff]  ;;  %v834_v25 = vld [vmem:[%s8787_s6 + $0x38] sm:$0xff]  ;;  %s6731_s14 = scalar_lea.vmem %s8783_s2, %s5543_s26  ;;  %v459_v31 = vsub.s32 0, %v458_v27  ;;  %s8504_s18 = scalar_lea.vmem %s8789_s8, %s5543_s26 }
  0x38   : > { %768 = vst.msk [vmem:[#allocation2 + $0x58] sm:$0xff] %vm756_vm0, %v6514_v3  ;;  %769 = vst.msk [vmem:[#allocation2 + $0x60] sm:$0xff] %vm756_vm0, %v6514_v3  ;;  %v412_v8 = vstv %s409_s20  ;;  %6292 = vmatprep.subr.msk.mxu1 %vm1246_vm1, %v5236_v18  ;;  %5842 = vmatprep.subr.msk.mxu0 %vm1246_vm1, %v5236_v18  ;;  %v833_v26 = vld [vmem:[%s8787_s6 + $0x30] sm:$0xff]  ;;  %v866_v28 = vld [vmem:[%s8788_s7 + $0x38] sm:$0xff]  ;;  %s404_s20 = scalar_lea.vmem %s8790_s9, %s9094_s17 }
  0x39   : > { %770 = vst.msk [vmem:[#allocation2 + $0x68] sm:$0xff] %vm756_vm0, %v6514_v3  ;;  %771 = vst.msk [vmem:[#allocation2 + $0x70] sm:$0xff] %vm756_vm0, %v6514_v3  ;;  %v413_v9 = vmul.f32 0.0009765625, %v412_v8  ;;  %v414_v10 = vstv %s410_s21  ;;  %6293 = vmatpush3.msk.msra.mxu1 %vm1246_vm1, %v5236_v18  ;;  %5843 = vmatpush3.msk.msra.mxu0 %vm1246_vm1, %v5236_v18  ;;  %v865_v29 = vld [vmem:[%s8788_s7 + $0x30] sm:$0xff]  ;;  %v411_v30 = vld [vmem:[%s8784_s3] sm:$0x1] }
  0x3a   : > { %772 = vst.msk [vmem:[#allocation2 + $0x78] sm:$0xff] %vm756_vm0, %v6514_v3  ;;  %773 = vst.msk [vmem:[#allocation2 + $0x80] sm:$0xff] %vm756_vm0, %v6514_v3  ;;  %v415_v13 = vmul.f32 0.0009765625, %v414_v10  ;;  %v1116_v20 = vld [vmem:[#allocation2 + $0x8] sm:$0xff]  ;;  %v1117_v21 = vld [vmem:[#allocation2 + $0x10] sm:$0xff] }
  0x3b   : > { %775 = vst.msk [vmem:[#allocation2 + $0x90] sm:$0xff] %vm756_vm0, %v6514_v3  ;;  %776 = vst.msk [vmem:[#allocation2 + $0x98] sm:$0xff] %vm756_vm0, %v6514_v3  ;;  %940 = vperm.xlu1 %6332, %v830_v6   ;;  %935 = vperm.xlu0 %6331, %v829_v7   ;;  %v416_v14 = vmul.f32 %v413_v9, %v413_v9  ;;  %v836_v33 = vld [vmem:[%s8787_s6 + $0x48] sm:$0xff]  ;;  %v835_v34 = vld [vmem:[%s8787_s6 + $0x40] sm:$0xff] }
  0x3c   : > { %777 = vst.msk [vmem:[#allocation2 + $0xa0] sm:$0xff] %vm756_vm0, %v6514_v3  ;;  %778 = vst.msk [vmem:[#allocation2 + $0xa8] sm:$0xff] %vm756_vm0, %v6514_v3  ;;  %5844 = vmatprep.mubr.msk.f32.mxu0 %vm756_vm0, %v1116_v20  ;;  %v421_v35 = vld [vmem:[%s8785_s4] sm:$0x1]  ;;  %v438_v37 = vld [vmem:[%s6731_s14 + $0x70] sm:$0xff] }
  0x3d   : > { %779 = vst.msk [vmem:[#allocation2 + $0xb0] sm:$0xff] %vm756_vm0, %v6514_v3  ;;  %780 = vst.msk [vmem:[#allocation2 + $0xb8] sm:$0xff] %vm756_vm0, %v6514_v3  ;;  %v417_v15 = vsub.f32 %v415_v13, %v416_v14  ;;  %5845 = vmatmul.mubr.msk.f32.vlgmr.msra.gmra.mxu0 %vm756_vm0, %v1117_v21  ;;  %v439_v38 = vld [vmem:[%s6731_s14 + $0x78] sm:$0xff]  ;;  %v440_v39 = vld [vmem:[%s6731_s14 + $0x80] sm:$0xff] }
  0x3e   : > { %781 = vst.msk [vmem:[#allocation2 + $0xc0] sm:$0xff] %vm756_vm0, %v6514_v3  ;;  %782 = vst.msk [vmem:[#allocation2 + $0xc8] sm:$0xff] %vm756_vm0, %v6514_v3  ;;  %v424_v40 = vld [vmem:[%s6731_s14] sm:$0xff]  ;;  %v441_v41 = vld [vmem:[%s6731_s14 + $0x88] sm:$0xff] }
  0x3f   : > { %783 = vst.msk [vmem:[#allocation2 + $0xd0] sm:$0xff] %vm756_vm0, %v6514_v3  ;;  %784 = vst.msk [vmem:[#allocation2 + $0xd8] sm:$0xff] %vm756_vm0, %v6514_v3  ;;  %1848 = vperm.xlu1 %6332, %v862_v11   ;;  %1843 = vperm.xlu0 %6331, %v861_v12   ;;  %v418_v19 = vadd.f32 1e-05, %v417_v15  ;;  %v425_v42 = vld [vmem:[%s6731_s14 + $0x8] sm:$0xff]  ;;  %v442_v45 = vld [vmem:[%s6731_s14 + $0x90] sm:$0xff] }
  0x40   : > { %785 = vst.msk [vmem:[#allocation2 + $0xe0] sm:$0xff] %vm756_vm0, %v6514_v3  ;;  %786 = vst.msk [vmem:[#allocation2 + $0xe8] sm:$0xff] %vm756_vm0, %v6514_v3  ;;  %v6757_v46 = vld [vmem:[%s8786_s5] sm:$0xf]  ;;  %v5303_v47 = vld [vmem:[%s8786_s5 + $0x8] sm:$0xf] }
  0x41   : > { %787 = vst.msk [vmem:[#allocation2 + $0xf0] sm:$0xff] %vm756_vm0, %v6514_v3  ;;  %788 = vst.msk [vmem:[#allocation2 + $0xf8] sm:$0xff] %vm756_vm0, %v6514_v3  ;;  %6333 = vrsqrt.f32 %v418_v19  ;;  %v868_v48 = vld [vmem:[%s8788_s7 + $0x48] sm:$0xff]  ;;  %v867_v49 = vld [vmem:[%s8788_s7 + $0x40] sm:$0xff]  ;;  %5892 = vmatprep.subr.msk.mxu1 %vm1246_vm1, %v6757_v46  ;;  %5942 = vmatprep.subr.msk.mxu0 %vm1246_vm1, %v5303_v47 }
  0x42   : > { %789 = vst.msk [vmem:[#allocation2 + $0x100] sm:$0xff] %vm756_vm0, %v6514_v3  ;;  %790 = vst.msk [vmem:[#allocation2 + $0x108] sm:$0xff] %vm756_vm0, %v6514_v3  ;;  %v426_v54 = vld [vmem:[%s6731_s14 + $0x10] sm:$0xff]  ;;  %v443_v55 = vld [vmem:[%s6731_s14 + $0x98] sm:$0xff]  ;;  %5943 = vmatpush3.msk.msra.mxu0 %vm1246_vm1, %v5303_v47 }
  0x43   : > { %791 = vst.msk [vmem:[#allocation2 + $0x110] sm:$0xff] %vm756_vm0, %v6514_v3  ;;  %792 = vst.msk [vmem:[#allocation2 + $0x118] sm:$0xff] %vm756_vm0, %v6514_v3  ;;  %950 = vperm.xlu1 %6332, %v832_v16   ;;  %945 = vperm.xlu0 %6331, %v831_v17   ;;  %v427_v61 = vld [vmem:[%s6731_s14 + $0x18] sm:$0xff]  ;;  %v837_v63 = vld [vmem:[%s8787_s6 + $0x50] sm:$0xff] }
  0x44   : > { %793 = vst.msk [vmem:[#allocation2 + $0x120] sm:$0xff] %vm756_vm0, %v6514_v3  ;;  %794 = vst.msk [vmem:[#allocation2 + $0x128] sm:$0xff] %vm756_vm0, %v6514_v3  ;;  %v838_v62 = vld [vmem:[%s8787_s6 + $0x58] sm:$0xff]  ;;  %v444_v2 = vld [vmem:[%s6731_s14 + $0xa0] sm:$0xff] }
  0x45   : > { %v428_v7 = vld [vmem:[%s6731_s14 + $0x20] sm:$0xff]  ;;  %v870_v8 = vld [vmem:[%s8788_s7 + $0x58] sm:$0xff]  ;;  %v445_v13 = vld [vmem:[%s6731_s14 + $0xa8] sm:$0xff] }
  0x46   : > { %v869_v18 = vld [vmem:[%s8788_s7 + $0x50] sm:$0xff]  ;;  %v872_v47 = vld [vmem:[%s8788_s7 + $0x68] sm:$0xff] }
  0x47   : > { %1858 = vperm.xlu1 %6332, %v864_v22   ;;  %1853 = vperm.xlu0 %6331, %v863_v23   ;;  %v429_v22 = vld [vmem:[%s6731_s14 + $0x28] sm:$0xff]  ;;  %v446_v23 = vld [vmem:[%s6731_s14 + $0xb0] sm:$0xff] }
  0x48   : > { %v430_v27 = vld [vmem:[%s6731_s14 + $0x30] sm:$0xff] }
  0x4b   : > { %960 = vperm.xlu1 %6332, %v834_v25   ;;  %955 = vperm.xlu0 %6331, %v833_v26  }
  0x4e   : > { %v6334_v32 = vpop.eup %6333 }
  0x4f   : > { %1868 = vperm.xlu1 %6332, %v866_v28   ;;  %1863 = vperm.xlu0 %6331, %v865_v29   ;;  %v420_v36 = vmul.f32 %v6334_v32, %v411_v30 }
  0x51   : > { %v422_v43 = vmul.f32 %v420_v36, %v413_v9  ;;  %v6751_v44 = vrot.slane %v420_v36, %v459_v31 }
  0x53   : > { %970 = vperm.xlu1 %6332, %v836_v33   ;;  %965 = vperm.xlu0 %6331, %v835_v34   ;;  %v423_v50 = vsub.f32 %v421_v35, %v422_v43  ;;  %v476_v51 = vmul.f32 %v6751_v44, %v438_v37  ;;  %v477_v52 = vmul.f32 %v6751_v44, %v439_v38  ;;  %v840_v34 = vld [vmem:[%s8787_s6 + $0x68] sm:$0xff]  ;;  %v839_v35 = vld [vmem:[%s8787_s6 + $0x60] sm:$0xff] }
  0x54   : > { %v478_v53 = vmul.f32 %v6751_v44, %v440_v39  ;;  %v462_v56 = vmul.f32 %v6751_v44, %v424_v40  ;;  %v479_v57 = vmul.f32 %v6751_v44, %v441_v41  ;;  %v463_v58 = vmul.f32 %v6751_v44, %v425_v42 }
  0x55   : > { %v480_v59 = vmul.f32 %v6751_v44, %v442_v45  ;;  %v6781_v60 = vrot.slane %v423_v50, %v459_v31  ;;  %v464_v0 = vmul.f32 %v6751_v44, %v426_v54  ;;  %v481_v1 = vmul.f32 %v6751_v44, %v443_v55  ;;  %v842_v54 = vld [vmem:[%s8787_s6 + $0x78] sm:$0xff]  ;;  %v841_v55 = vld [vmem:[%s8787_s6 + $0x70] sm:$0xff] }
  0x56   : > { %v465_v12 = vmul.f32 %v6751_v44, %v427_v61  ;;  %v482_v17 = vmul.f32 %v6751_v44, %v444_v2  ;;  %v466_v21 = vmul.f32 %v6751_v44, %v428_v7  ;;  %v483_v26 = vmul.f32 %v6751_v44, %v445_v13  ;;  %v873_v2 = vld [vmem:[%s8788_s7 + $0x70] sm:$0xff] }
  0x57   : > { %1878 = vperm.xlu1 %6332, %v868_v48   ;;  %1873 = vperm.xlu0 %6331, %v867_v49   ;;  %v6794_v3 = vadd.f32 %v6781_v60, %v476_v51  ;;  %v6797_v4 = vadd.f32 %v6781_v60, %v477_v52  ;;  %v6800_v5 = vadd.f32 %v6781_v60, %v478_v53  ;;  %v871_v48 = vld [vmem:[%s8788_s7 + $0x60] sm:$0xff] }
  0x58   : > { %v6803_v6 = vadd.f32 %v6781_v60, %v462_v56  ;;  %v6810_v9 = vadd.f32 %v6781_v60, %v479_v57  ;;  %v6813_v10 = vadd.f32 %v6781_v60, %v463_v58  ;;  %v6816_v11 = vadd.f32 %v6781_v60, %v480_v59  ;;  %v447_v57 = vld [vmem:[%s6731_s14 + $0xb8] sm:$0xff] }
  0x59   : > { %v5218_v14 = vmul.f32 -1.442695, %v6794_v3  ;;  %v5219_v15 = vmul.f32 -1.442695, %v6797_v4  ;;  %v5220_v16 = vmul.f32 -1.442695, %v6800_v5  ;;  %v6829_v20 = vadd.f32 %v6781_v60, %v464_v0 }
  0x5a   : > { %v5204_v19 = vmul.f32 -1.442695, %v6803_v6  ;;  %v5221_v24 = vmul.f32 -1.442695, %v6810_v9  ;;  %v6836_v25 = vadd.f32 %v6781_v60, %v481_v1  ;;  %v5205_v28 = vmul.f32 -1.442695, %v6813_v10 }
  0x5b   : > { %980 = vperm.xlu1 %6332, %v838_v62   ;;  %975 = vperm.xlu0 %6331, %v837_v63   ;;  %6335 = vpow2.f32 %v5218_v14  ;;  %v5222_v29 = vmul.f32 -1.442695, %v6816_v11  ;;  %v6843_v30 = vadd.f32 %v6781_v60, %v465_v12  ;;  %v6846_v31 = vadd.f32 %v6781_v60, %v482_v17  ;;  %v431_v63 = vld [vmem:[%s6731_s14 + $0x38] sm:$0xff]  ;;  %v432_v14 = vld [vmem:[%s6731_s14 + $0x40] sm:$0xff] }
  0x5c   : > { %6337 = vpow2.f32 %v5219_v15  ;;  %v467_v32 = vmul.f32 %v6751_v44, %v429_v22  ;;  %v484_v33 = vmul.f32 %v6751_v44, %v446_v23  ;;  %v5206_v36 = vmul.f32 -1.442695, %v6829_v20  ;;  %v874_v1 = vld [vmem:[%s8788_s7 + $0x78] sm:$0xff] }
  0x5d   : > { %6339 = vpow2.f32 %v5220_v16  ;;  %v6858_v37 = vadd.f32 %v6781_v60, %v466_v21  ;;  %v468_v38 = vmul.f32 %v6751_v44, %v430_v27  ;;  %v5223_v39 = vmul.f32 -1.442695, %v6836_v25  ;;  %v844_v27 = vld [vmem:[%s8787_s6 + $0x88] sm:$0xff] }
  0x5e   : > { %6341 = vpow2.f32 %v5204_v19  ;;  %v6863_v40 = vadd.f32 %v6781_v60, %v483_v26  ;;  %v5207_v41 = vmul.f32 -1.442695, %v6843_v30  ;;  %v6867_v42 = vadd.f32 %v6781_v60, %v467_v32 }
  0x5f   : > { %1888 = vperm.xlu1 %6332, %v870_v8   ;;  %1883 = vperm.xlu0 %6331, %v869_v18   ;;  %6343 = vpow2.f32 %v5221_v24  ;;  %v5224_v43 = vmul.f32 -1.442695, %v6846_v31  ;;  %v6871_v45 = vadd.f32 %v6781_v60, %v484_v33  ;;  %v5208_v49 = vmul.f32 -1.442695, %v6858_v37  ;;  %v448_v8 = vld [vmem:[%s6731_s14 + $0xc0] sm:$0xff]  ;;  %v449_v18 = vld [vmem:[%s6731_s14 + $0xc8] sm:$0xff] }
  0x60   : > { %6345 = vpow2.f32 %v5205_v28  ;;  %v6881_v50 = vadd.f32 %v6781_v60, %v468_v38  ;;  %v5225_v51 = vmul.f32 -1.442695, %v6863_v40  ;;  %v5209_v52 = vmul.f32 -1.442695, %v6867_v42  ;;  %v433_v24 = vld [vmem:[%s6731_s14 + $0x48] sm:$0xff]  ;;  %v843_v28 = vld [vmem:[%s8787_s6 + $0x80] sm:$0xff] }
  0x61   : > { %6347 = vpow2.f32 %v5222_v29  ;;  %v5226_v53 = vmul.f32 -1.442695, %v6871_v45  ;;  %v485_v62 = vmul.f32 %v6751_v44, %v447_v57  ;;  %v469_v17 = vmul.f32 %v6751_v44, %v431_v63  ;;  %v6923_v38 = vld [vmem:[%s8786_s5 + $0x10] sm:$0xf] }
  0x62   : > { %6349 = vpow2.f32 %v5206_v36  ;;  %v5210_v56 = vmul.f32 -1.442695, %v6881_v50  ;;  %v486_v23 = vmul.f32 %v6751_v44, %v448_v8  ;;  %v470_v32 = vmul.f32 %v6751_v44, %v432_v14  ;;  %v450_v36 = vld [vmem:[%s6731_s14 + $0xd0] sm:$0xff]  ;;  %6042 = vmatprep.subr.msk.mxu0 %vm1246_vm1, %v6923_v38 }
  0x63   : > { %990 = vperm.xlu1 %6332, %v840_v34   ;;  %985 = vperm.xlu0 %6331, %v839_v35   ;;  %6351 = vpow2.f32 %v5223_v39  ;;  %v6907_v22 = vadd.f32 %v6781_v60, %v485_v62  ;;  %v487_v35 = vmul.f32 %v6751_v44, %v449_v18 }
  0x64   : > { %6353 = vpow2.f32 %v5207_v41 }
  0x65   : > { %6355 = vpow2.f32 %v5224_v43  ;;  %v6926_v43 = vadd.f32 %v6781_v60, %v469_v17  ;;  %v435_v17 = vld [vmem:[%s6731_s14 + $0x58] sm:$0xff] }
  0x66   : > { %6357 = vpow2.f32 %v5208_v49 }
  0x67   : > { %1898 = vperm.xlu1 %6332, %v872_v47   ;;  %1893 = vperm.xlu0 %6331, %v871_v48   ;;  %6359 = vpow2.f32 %v5225_v51  ;;  %v471_v47 = vmul.f32 %v6751_v44, %v433_v24  ;;  %v434_v48 = vld [vmem:[%s6731_s14 + $0x50] sm:$0xff]  ;;  %v5211_v8 = vmul.f32 -1.442695, %v6926_v43 }
  0x68   : > { %v6336_v58 = vpop.eup %6335  ;;  %6361 = vpow2.f32 %v5209_v52  ;;  %v6933_v52 = vmul.f32 -1.442695, %v6907_v22 }
  0x69   : > { %v6338_v59 = vpop.eup %6337  ;;  %v642_v61 = vadd.f32 1.0, %v6336_v58  ;;  %6363 = vpow2.f32 %v5226_v53  ;;  %v6936_v53 = vadd.f32 %v6781_v60, %v486_v23  ;;  %v6945_v58 = vadd.f32 %v6781_v60, %v470_v32 }
  0x6a   : > { %v6340_v0 = vpop.eup %6339  ;;  %v643_v7 = vadd.f32 1.0, %v6338_v59  ;;  %6365 = vpow2.f32 %v5210_v56  ;;  %v875_v56 = vld [vmem:[%s8788_s7 + $0x80] sm:$0xff]  ;;  %v488_v59 = vmul.f32 %v6751_v44, %v450_v36 }
  0x6b   : > { %1000 = vperm.xlu1 %6332, %v842_v54   ;;  %995 = vperm.xlu0 %6331, %v841_v55   ;;  %v6342_v12 = vpop.eup %6341  ;;  %6367 = vrcp.f32 %v642_v61  ;;  %v644_v13 = vadd.f32 1.0, %v6340_v0  ;;  %v876_v55 = vld [vmem:[%s8788_s7 + $0x88] sm:$0xff]  ;;  %v451_v61 = vld [vmem:[%s6731_s14 + $0xd8] sm:$0xff]  ;;  %v6950_v0 = vadd.f32 %v6781_v60, %v487_v35  ;;  %v5212_v24 = vmul.f32 -1.442695, %v6945_v58 }
  0x6c   : > { %v6344_v15 = vpop.eup %6343  ;;  %6369 = vrcp.f32 %v643_v7  ;;  %v628_v16 = vadd.f32 1.0, %v6342_v12  ;;  %v6955_v12 = vadd.f32 %v6781_v60, %v471_v47  ;;  %v453_v47 = vld [vmem:[%s6731_s14 + $0xe8] sm:$0xff] }
  0x6d   : > { %v6346_v19 = vpop.eup %6345  ;;  %6371 = vrcp.f32 %v644_v13  ;;  %v645_v21 = vadd.f32 1.0, %v6344_v15  ;;  %v5228_v15 = vmul.f32 -1.442695, %v6936_v53  ;;  %v5229_v32 = vmul.f32 -1.442695, %v6950_v0 }
  0x6e   : > { %v6348_v26 = vpop.eup %6347  ;;  %6373 = vrcp.f32 %v628_v16  ;;  %v629_v29 = vadd.f32 1.0, %v6346_v19  ;;  %v489_v16 = vmul.f32 %v6751_v44, %v451_v61  ;;  %v846_v19 = vld [vmem:[%s8787_s6 + $0x98] sm:$0xff] }
  0x6f   : > { %1908 = vperm.xlu1 %6332, %v874_v1   ;;  %1903 = vperm.xlu0 %6331, %v873_v2   ;;  %v6350_v33 = vpop.eup %6349  ;;  %6375 = vrcp.f32 %v645_v21  ;;  %v646_v34 = vadd.f32 1.0, %v6348_v26  ;;  %v472_v1 = vmul.f32 %v6751_v44, %v434_v48  ;;  %v845_v21 = vld [vmem:[%s8787_s6 + $0x90] sm:$0xff]  ;;  %v6968_v26 = vadd.f32 %v6781_v60, %v488_v59 }
  0x70   : > { %v6352_v39 = vpop.eup %6351  ;;  %6377 = vrcp.f32 %v629_v29  ;;  %v630_v41 = vadd.f32 1.0, %v6350_v33  ;;  %v877_v59 = vld [vmem:[%s8788_s7 + $0x90] sm:$0xff] }
  0x71   : > { %v6354_v49 = vpop.eup %6353  ;;  %6379 = vrcp.f32 %v646_v34  ;;  %v647_v51 = vadd.f32 1.0, %v6352_v39  ;;  %v6973_v33 = vadd.f32 %v6781_v60, %v472_v1  ;;  %v436_v34 = vld [vmem:[%s6731_s14 + $0x60] sm:$0xff]  ;;  %v5213_v39 = vmul.f32 -1.442695, %v6955_v12 }
  0x72   : > { %v6356_v54 = vpop.eup %6355  ;;  %6381 = vrcp.f32 %v630_v41  ;;  %v631_v57 = vadd.f32 1.0, %v6354_v49  ;;  %v473_v41 = vmul.f32 %v6751_v44, %v435_v17 }
  0x73   : > { %1010 = vperm.xlu1 %6332, %v844_v27   ;;  %1005 = vperm.xlu0 %6331, %v843_v28   ;;  %v6358_v62 = vpop.eup %6357  ;;  %6383 = vrcp.f32 %v647_v51  ;;  %v648_v63 = vadd.f32 1.0, %v6356_v54  ;;  %v452_v27 = vld [vmem:[%s6731_s14 + $0xe0] sm:$0xff]  ;;  %v6981_v51 = vadd.f32 %v6781_v60, %v489_v16 }
  0x74   : > { %v6360_v2 = vpop.eup %6359  ;;  %6385 = vrcp.f32 %v631_v57  ;;  %v632_v7 = vadd.f32 1.0, %v6358_v62  ;;  %v490_v54 = vmul.f32 %v6751_v44, %v452_v27  ;;  %v878_v57 = vld [vmem:[%s8788_s7 + $0x98] sm:$0xff]  ;;  %v474_v62 = vmul.f32 %v6751_v44, %v436_v34 }
  0x75   : > { %v6362_v13 = vpop.eup %6361  ;;  %6387 = vrcp.f32 %v648_v63  ;;  %v649_v14 = vadd.f32 1.0, %v6360_v2  ;;  %v454_v63 = vld [vmem:[%s6731_s14 + $0xf0] sm:$0xff]  ;;  %v7004_v17 = vadd.f32 %v6781_v60, %v473_v41  ;;  %v5231_v34 = vmul.f32 -1.442695, %v6981_v51 }
  0x76   : > { %v6364_v18 = vpop.eup %6363  ;;  %6389 = vrcp.f32 %v632_v7  ;;  %v633_v23 = vadd.f32 1.0, %v6362_v13  ;;  %v5214_v7 = vmul.f32 -1.442695, %v6973_v33  ;;  %v491_v13 = vmul.f32 %v6751_v44, %v453_v47 }
  0x77   : > { %1918 = vperm.xlu1 %6332, %v876_v55   ;;  %1913 = vperm.xlu0 %6331, %v875_v56   ;;  %v6366_v28 = vpop.eup %6365  ;;  %6391 = vrcp.f32 %v649_v14  ;;  %v650_v29 = vadd.f32 1.0, %v6364_v18  ;;  %v437_v55 = vld [vmem:[%s6731_s14 + $0x68] sm:$0xff]  ;;  %v455_v14 = vld [vmem:[%s6731_s14 + $0xf8] sm:$0xff] }
  0x78   : > { %v6368_v35 = vpop.eup %6367  ;;  %6393 = vrcp.f32 %v633_v23  ;;  %v634_v36 = vadd.f32 1.0, %v6366_v28  ;;  %v475_v18 = vmul.f32 %v6751_v44, %v437_v55  ;;  %v847_v23 = vld [vmem:[%s8787_s6 + $0xa0] sm:$0xff] }
  0x79   : > { %v6370_v48 = vpop.eup %6369  ;;  %v738_v49 = vmul.f32 %v6368_v35, %v6794_v3  ;;  %6395 = vrcp.f32 %v650_v29  ;;  %v5230_v3 = vmul.f32 -1.442695, %v6968_v26  ;;  %v7029_v35 = vadd.f32 %v6781_v60, %v491_v13  ;;  %v850_v13 = vld [vmem:[%s8787_s6 + $0xb8] sm:$0xff] }
  0x7a   : > { %v6372_v56 = vpop.eup %6371  ;;  %v739_v61 = vmul.f32 %v6370_v48, %v6797_v4  ;;  %6397 = vrcp.f32 %v634_v36  ;;  %v879_v48 = vld [vmem:[%s8788_s7 + $0xa0] sm:$0xff] }
  0x7b   : > { %1020 = vperm.xlu1 %6332, %v846_v19   ;;  %1015 = vperm.xlu0 %6331, %v845_v21   ;;  %v6374_v1 = vpop.eup %6373  ;;  %809 = vst.msk [vmem:[#allocation2 + $0x88] sm:$0xff] %vm756_vm0, %v738_v49  ;;  %v740_v2 = vmul.f32 %v6372_v56, %v6800_v5  ;;  %6399 = vpow2.f32 %v6933_v52  ;;  %v7010_v52 = vadd.f32 %v6781_v60, %v490_v54 }
  0x7c   : > { %v6376_v16 = vpop.eup %6375  ;;  %810 = vst.msk [vmem:[#allocation2 + $0x90] sm:$0xff] %vm756_vm0, %v739_v61  ;;  %v724_v4 = vmul.f32 %v6374_v1, %v6803_v6  ;;  %6401 = vpow2.f32 %v5211_v8  ;;  %v492_v21 = vmul.f32 %v6751_v44, %v454_v63  ;;  %v848_v8 = vld [vmem:[%s8787_s6 + $0xa8] sm:$0xff]  ;;  %v5233_v61 = vmul.f32 -1.442695, %v7029_v35 }
  0x7d   : > { %v6378_v19 = vpop.eup %6377  ;;  %811 = vst.msk [vmem:[#allocation2 + $0x98] sm:$0xff] %vm756_vm0, %v740_v2  ;;  %v741_v5 = vmul.f32 %v6376_v16, %v6810_v9  ;;  %6403 = vpow2.f32 %v5228_v15  ;;  %v7022_v9 = vadd.f32 %v6781_v60, %v474_v62  ;;  %v493_v15 = vmul.f32 %v6751_v44, %v455_v14 }
  0x7e   : > { %v6380_v6 = vpop.eup %6379  ;;  %795 = vst.msk [vmem:[#allocation2 + $0x18] sm:$0xff] %vm756_vm0, %v724_v4  ;;  %v725_v27 = vmul.f32 %v6378_v19, %v6813_v10  ;;  %6405 = vpow2.f32 %v5212_v24  ;;  %v5215_v24 = vmul.f32 -1.442695, %v7004_v17  ;;  %v7035_v44 = vadd.f32 %v6781_v60, %v475_v18 }
  0x7f   : > { %1928 = vperm.xlu1 %6332, %v878_v57   ;;  %1923 = vperm.xlu0 %6331, %v877_v59   ;;  %v6382_v28 = vpop.eup %6381  ;;  %812 = vst.msk [vmem:[#allocation2 + $0xa0] sm:$0xff] %vm756_vm0, %v741_v5  ;;  %v742_v29 = vmul.f32 %v6380_v6, %v6816_v11  ;;  %6407 = vpow2.f32 %v5229_v32  ;;  %v5232_v32 = vmul.f32 -1.442695, %v7010_v52  ;;  %v7041_v47 = vadd.f32 %v6781_v60, %v492_v21  ;;  %v7088_v6 = vld [vmem:[%s8786_s5 + $0xc] sm:$0xf] }
  0x80   : > { %v6384_v36 = vpop.eup %6383  ;;  %796 = vst.msk [vmem:[#allocation2 + $0x20] sm:$0xff] %vm756_vm0, %v725_v27  ;;  %v726_v10 = vmul.f32 %v6382_v28, %v6829_v20  ;;  %6409 = vpow2.f32 %v5213_v39  ;;  %v880_v39 = vld [vmem:[%s8788_s7 + $0xa8] sm:$0xff]  ;;  %v5216_v54 = vmul.f32 -1.442695, %v7022_v9  ;;  %v7053_v55 = vadd.f32 %v6781_v60, %v493_v15  ;;  %v882_v27 = vld [vmem:[%s8788_s7 + $0xb8] sm:$0xff] }
  0x81   : > { %v6386_v41 = vpop.eup %6385  ;;  %813 = vst.msk [vmem:[#allocation2 + $0xa8] sm:$0xff] %vm756_vm0, %v742_v29  ;;  %v743_v11 = vmul.f32 %v6384_v36, %v6836_v25  ;;  %6411 = vpow2.f32 %v5230_v3  ;;  %v5217_v62 = vmul.f32 -1.442695, %v7035_v44  ;;  %v5234_v2 = vmul.f32 -1.442695, %v7041_v47 }
  0x82   : > { %v6388_v20 = vpop.eup %6387  ;;  %v1132_v49 = vld [vmem:[#allocation2 + $0x88] sm:$0xff]  ;;  %797 = vst.msk [vmem:[#allocation2 + $0x28] sm:$0xff] %vm756_vm0, %v726_v10  ;;  %v727_v25 = vmul.f32 %v6386_v41, %v6843_v30  ;;  %6413 = vpow2.f32 %v5214_v7  ;;  %v5235_v16 = vmul.f32 -1.442695, %v7053_v55 }
  0x83   : > { %1030 = vperm.xlu1 %6332, %v848_v8   ;;  %1025 = vperm.xlu0 %6331, %v847_v23   ;;  %v6390_v56 = vpop.eup %6389  ;;  %v1133_v57 = vld [vmem:[#allocation2 + $0x90] sm:$0xff]  ;;  %814 = vst.msk [vmem:[#allocation2 + $0xb0] sm:$0xff] %vm756_vm0, %v743_v11  ;;  %v744_v59 = vmul.f32 %v6388_v20, %v6846_v31  ;;  %6415 = vpow2.f32 %v5231_v34 }
  0x84   : > { %5868 = vmatprep.mubr.msk.f32.mxu1 %vm756_vm0, %v1132_v49  ;;  %v6392_v3 = vpop.eup %6391  ;;  %v1134_v30 = vld [vmem:[#allocation2 + $0x98] sm:$0xff]  ;;  %798 = vst.msk [vmem:[#allocation2 + $0x30] sm:$0xff] %vm756_vm0, %v727_v25  ;;  %v728_v60 = vmul.f32 %v6390_v56, %v6858_v37  ;;  %6417 = vpow2.f32 %v5215_v24  ;;  %v849_v37 = vld [vmem:[%s8787_s6 + $0xb0] sm:$0xff]  ;;  %v851_v49 = vld [vmem:[%s8787_s6 + $0xc0] sm:$0xff] }
  0x85   : > { %5869 = vmatmul.mubr.msk.f32.vlgmr.msra.gmra.mxu1 %vm756_vm0, %v1133_v57  ;;  %v6394_v63 = vpop.eup %6393  ;;  %v1118_v1 = vld [vmem:[#allocation2 + $0x18] sm:$0xff]  ;;  %815 = vst.msk [vmem:[#allocation2 + $0xb8] sm:$0xff] %vm756_vm0, %v744_v59  ;;  %v745_v31 = vmul.f32 %v6392_v3, %v6863_v40  ;;  %6419 = vpow2.f32 %v5232_v32 }
  0x86   : > { %v6396_v7 = vpop.eup %6395  ;;  %5871 = vmatprep.mubr.msk.f32.mxu1 %vm756_vm0, %v1134_v30  ;;  %5847 = vmatprep.mubr.msk.f32.mxu0 %vm756_vm0, %v1118_v1  ;;  %v1135_v14 = vld [vmem:[#allocation2 + $0xa0] sm:$0xff]  ;;  %799 = vst.msk [vmem:[#allocation2 + $0x38] sm:$0xff] %vm756_vm0, %v728_v60  ;;  %v729_v40 = vmul.f32 %v6394_v63, %v6867_v42  ;;  %6421 = vpow2.f32 %v5216_v54 }
  0x87   : > { %1938 = vperm.xlu1 %6332, %v880_v39   ;;  %1933 = vperm.xlu0 %6331, %v879_v48   ;;  %v6398_v4 = vpop.eup %6397  ;;  %v1119_v18 = vld [vmem:[#allocation2 + $0x20] sm:$0xff]  ;;  %816 = vst.msk [vmem:[#allocation2 + $0xc0] sm:$0xff] %vm756_vm0, %v745_v31  ;;  %v746_v19 = vmul.f32 %v6396_v7, %v6871_v45  ;;  %6423 = vpow2.f32 %v5233_v61  ;;  %v852_v48 = vld [vmem:[%s8787_s6 + $0xc8] sm:$0xff] }
  0x88   : > { %5893 = vmatpush3.msk.msra.mxu1 %vm1246_vm1, %v6757_v46  ;;  %v6400_v5 = vpop.eup %6399  ;;  %5848 = vmatmul.mubr.msk.f32.gmra.mxu0 %vm756_vm0, %v1119_v18  ;;  %v1136_v21 = vld [vmem:[#allocation2 + $0xa8] sm:$0xff]  ;;  %800 = vst.msk [vmem:[#allocation2 + $0x40] sm:$0xff] %vm756_vm0, %v729_v40  ;;  %v730_v42 = vmul.f32 %v6398_v4, %v6881_v50  ;;  %6425 = vpow2.f32 %v5217_v62  ;;  %v881_v50 = vld [vmem:[%s8788_s7 + $0xb0] sm:$0xff] }
  0x89   : > { %5872 = vmatmul.mubr.msk.f32.gmra.mxu1 %vm756_vm0, %v1135_v14  ;;  %v6402_v45 = vpop.eup %6401  ;;  %v1120_v46 = vld [vmem:[#allocation2 + $0x28] sm:$0xff]  ;;  %817 = vst.msk [vmem:[#allocation2 + $0xc8] sm:$0xff] %vm756_vm0, %v746_v19  ;;  %v651_v8 = vadd.f32 1.0, %v6400_v5  ;;  %6427 = vpow2.f32 %v5234_v2  ;;  %5992 = vmatprep.subr.msk.mxu1 %vm1246_vm1, %v7088_v6  ;;  %v883_v2 = vld [vmem:[%s8788_s7 + $0xc0] sm:$0xff]  ;;  %v854_v19 = vld [vmem:[%s8787_s6 + $0xd8] sm:$0xff] }
  0x8a   : > { %v6404_v23 = vpop.eup %6403  ;;  %5874 = vmatprep.mubr.msk.f32.mxu1 %vm756_vm0, %v1136_v21  ;;  %5850 = vmatprep.mubr.msk.f32.mxu0 %vm756_vm0, %v1120_v46  ;;  %v1137_v15 = vld [vmem:[#allocation2 + $0xb0] sm:$0xff]  ;;  %801 = vst.msk [vmem:[#allocation2 + $0x48] sm:$0xff] %vm756_vm0, %v730_v42  ;;  %v635_v28 = vadd.f32 1.0, %v6402_v45  ;;  %6429 = vpow2.f32 %v5235_v16  ;;  %v884_v31 = vld [vmem:[%s8788_s7 + $0xc8] sm:$0xff] }
  0x8b   : > { %1040 = vperm.xlu1 %6332, %v850_v13   ;;  %1035 = vperm.xlu0 %6331, %v849_v37   ;;  %v6406_v29 = vpop.eup %6405  ;;  %v1121_v34 = vld [vmem:[#allocation2 + $0x30] sm:$0xff]  ;;  %6431 = vrcp.f32 %v651_v8  ;;  %v652_v36 = vadd.f32 1.0, %v6404_v23 }
  0x8c   : > { %v6408_v10 = vpop.eup %6407  ;;  %5851 = vmatmul.mubr.msk.f32.gmra.mxu0 %vm756_vm0, %v1121_v34  ;;  %v1138_v24 = vld [vmem:[#allocation2 + $0xb8] sm:$0xff]  ;;  %6433 = vrcp.f32 %v635_v28  ;;  %v636_v41 = vadd.f32 1.0, %v6406_v29  ;;  %v853_v5 = vld [vmem:[%s8787_s6 + $0xd0] sm:$0xff] }
  0x8d   : > { %5875 = vmatmul.mubr.msk.f32.gmra.mxu1 %vm756_vm0, %v1137_v15  ;;  %v6410_v11 = vpop.eup %6409  ;;  %v1122_v32 = vld [vmem:[#allocation2 + $0x38] sm:$0xff]  ;;  %6435 = vrcp.f32 %v652_v36  ;;  %v653_v20 = vadd.f32 1.0, %v6408_v10  ;;  %v885_v28 = vld [vmem:[%s8788_s7 + $0xd0] sm:$0xff] }
  0x8e   : > { %v6412_v39 = vpop.eup %6411  ;;  %5877 = vmatprep.mubr.msk.f32.mxu1 %vm756_vm0, %v1138_v24  ;;  %5853 = vmatprep.mubr.msk.f32.mxu0 %vm756_vm0, %v1122_v32  ;;  %v1139_v25 = vld [vmem:[#allocation2 + $0xc0] sm:$0xff]  ;;  %6437 = vrcp.f32 %v636_v41  ;;  %v637_v54 = vadd.f32 1.0, %v6410_v11  ;;  %v886_v15 = vld [vmem:[%s8788_s7 + $0xd8] sm:$0xff] }
  0x8f   : > { %1948 = vperm.xlu1 %6332, %v882_v27   ;;  %1943 = vperm.xlu0 %6331, %v881_v50   ;;  %v6414_v56 = vpop.eup %6413  ;;  %v1123_v57 = vld [vmem:[#allocation2 + $0x40] sm:$0xff]  ;;  %6439 = vrcp.f32 %v653_v20  ;;  %v654_v59 = vadd.f32 1.0, %v6412_v39 }
  0x90   : > { %v6416_v61 = vpop.eup %6415  ;;  %5854 = vmatmul.mubr.msk.f32.gmra.mxu0 %vm756_vm0, %v1123_v57  ;;  %v1140_v3 = vld [vmem:[#allocation2 + $0xc8] sm:$0xff]  ;;  %6441 = vrcp.f32 %v637_v54  ;;  %v638_v30 = vadd.f32 1.0, %v6414_v56 }
  0x91   : > { %5878 = vmatmul.mubr.msk.f32.gmra.mxu1 %vm756_vm0, %v1139_v25  ;;  %v6418_v60 = vpop.eup %6417  ;;  %v1124_v62 = vld [vmem:[#allocation2 + $0x48] sm:$0xff]  ;;  %6443 = vrcp.f32 %v654_v59  ;;  %v655_v63 = vadd.f32 1.0, %v6416_v61 }
  0x92   : > { %v6420_v1 = vpop.eup %6419  ;;  %5880 = vmatprep.mubr.msk.f32.mxu1 %vm756_vm0, %v1140_v3  ;;  %5856 = vmatprep.mubr.msk.f32.mxu0 %vm756_vm0, %v1124_v62  ;;  %6445 = vrcp.f32 %v638_v30  ;;  %v639_v7 = vadd.f32 1.0, %v6418_v60 }
  0x93   : > { %1050 = vperm.xlu1 %6332, %v852_v48   ;;  %1045 = vperm.xlu0 %6331, %v851_v49   ;;  %v6422_v13 = vpop.eup %6421  ;;  %6447 = vrcp.f32 %v655_v63  ;;  %v656_v37 = vadd.f32 1.0, %v6420_v1  ;;  %v858_v63 = vld [vmem:[%s8787_s6 + $0xf8] sm:$0xff] }
  0x94   : > { %v6424_v14 = vpop.eup %6423  ;;  %6449 = vrcp.f32 %v639_v7  ;;  %v640_v40 = vadd.f32 1.0, %v6422_v13  ;;  %v1799_v13 = vld [vmem:[#allocation2 + $0x9] sm:$0xff] }
  0x95   : > { %v6426_v16 = vpop.eup %6425  ;;  %6451 = vrcp.f32 %v656_v37  ;;  %v657_v4 = vadd.f32 1.0, %v6424_v14  ;;  %v891_v37 = vld [vmem:[#allocation2 + $0x7] sm:$0xff] }
  0x96   : > { %v6428_v18 = vpop.eup %6427  ;;  %6453 = vrcp.f32 %v640_v40  ;;  %v641_v21 = vadd.f32 1.0, %v6426_v16  ;;  %v890_v40 = vld [vmem:[%s8788_s7 + $0xf8] sm:$0xff] }
  0x97   : > { %1958 = vperm.xlu1 %6332, %v884_v31   ;;  %1953 = vperm.xlu0 %6331, %v883_v2   ;;  %v6430_v42 = vpop.eup %6429  ;;  %6455 = vrcp.f32 %v657_v4  ;;  %v658_v45 = vadd.f32 1.0, %v6428_v18  ;;  %v7197_v4 = vld [vmem:[#allocation2 + $0x19] sm:$0xff] }
  0x98   : > { %v6432_v46 = vpop.eup %6431  ;;  %6457 = vrcp.f32 %v641_v21  ;;  %v659_v8 = vadd.f32 1.0, %v6430_v42 }
  0x99   : > { %v6434_v23 = vpop.eup %6433  ;;  %v747_v27 = vmul.f32 %v6432_v46, %v6907_v22  ;;  %6459 = vrcp.f32 %v658_v45 }
  0x9a   : > { %v6436_v50 = vpop.eup %6435  ;;  %v731_v29 = vmul.f32 %v6434_v23, %v6926_v43  ;;  %6461 = vrcp.f32 %v659_v8  ;;  %v856_v43 = vld [vmem:[%s8787_s6 + $0xe8] sm:$0xff] }
  0x9b   : > { %1060 = vperm.xlu1 %6332, %v854_v19   ;;  %1055 = vperm.xlu0 %6331, %v853_v5   ;;  %v6438_v34 = vpop.eup %6437  ;;  %818 = vst.msk [vmem:[#allocation2 + $0xd0] sm:$0xff] %vm756_vm0, %v747_v27  ;;  %v748_v36 = vmul.f32 %v6436_v50, %v6936_v53  ;;  %v855_v53 = vld [vmem:[%s8787_s6 + $0xe0] sm:$0xff]  ;;  %v2381_v19 = vld [vmem:[#allocation2 + $0x17] sm:$0xff] }
  0x9c   : > { %v6440_v10 = vpop.eup %6439  ;;  %802 = vst.msk [vmem:[#allocation2 + $0x50] sm:$0xff] %vm756_vm0, %v731_v29  ;;  %v732_v22 = vmul.f32 %v6438_v34, %v6945_v58  ;;  %v7203_v5 = vld [vmem:[#allocation2 + $0x27] sm:$0xff] }
  0x9d   : > { %v6442_v24 = vpop.eup %6441  ;;  %819 = vst.msk [vmem:[#allocation2 + $0xd8] sm:$0xff] %vm756_vm0, %v748_v36  ;;  %v749_v41 = vmul.f32 %v6440_v10, %v6950_v0  ;;  %v3194_v10 = vld [vmem:[#allocation2 + $0x21] sm:$0xff] }
  0x9e   : > { %v6444_v11 = vpop.eup %6443  ;;  %803 = vst.msk [vmem:[#allocation2 + $0x58] sm:$0xff] %vm756_vm0, %v732_v22  ;;  %v733_v58 = vmul.f32 %v6442_v24, %v6955_v12  ;;  %v888_v12 = vld [vmem:[%s8788_s7 + $0xe8] sm:$0xff]  ;;  %v7218_v22 = vld [vmem:[#allocation2 + $0x31] sm:$0xff] }
  0x9f   : > { %1968 = vperm.xlu1 %6332, %v886_v15   ;;  %1963 = vperm.xlu0 %6331, %v885_v28   ;;  %v6446_v32 = vpop.eup %6445  ;;  %820 = vst.msk [vmem:[#allocation2 + $0xe0] sm:$0xff] %vm756_vm0, %v749_v41  ;;  %v750_v20 = vmul.f32 %v6444_v11, %v6968_v26  ;;  %v887_v26 = vld [vmem:[%s8788_s7 + $0xe0] sm:$0xff]  ;;  %v1800_v15 = vld [vmem:[#allocation2 + $0x11] sm:$0xff] }
  0xa0   : > { %v6448_v39 = vpop.eup %6447  ;;  %804 = vst.msk [vmem:[#allocation2 + $0x60] sm:$0xff] %vm756_vm0, %v733_v58  ;;  %v734_v0 = vmul.f32 %v6446_v32, %v6973_v33  ;;  %v892_v28 = vld [vmem:[#allocation2 + $0xf] sm:$0xff]  ;;  %v2382_v41 = vld [vmem:[#allocation2 + $0x1f] sm:$0xff] }
  0xa1   : > { %v6450_v48 = vpop.eup %6449  ;;  %821 = vst.msk [vmem:[#allocation2 + $0xe8] sm:$0xff] %vm756_vm0, %v750_v20  ;;  %v751_v49 = vmul.f32 %v6448_v39, %v6981_v51  ;;  %v3616_v11 = vld [vmem:[#allocation2 + $0x2f] sm:$0xff] }
  0xa2   : > { %v6452_v25 = vpop.eup %6451  ;;  %v1141_v54 = vld [vmem:[#allocation2 + $0xd0] sm:$0xff]  ;;  %805 = vst.msk [vmem:[#allocation2 + $0x68] sm:$0xff] %vm756_vm0, %v734_v0  ;;  %v735_v33 = vmul.f32 %v6450_v48, %v7004_v17 }
  0xa3   : > { %1070 = vperm.xlu1 %6332, %v856_v43   ;;  %1065 = vperm.xlu0 %6331, %v855_v53   ;;  %v6454_v56 = vpop.eup %6453  ;;  %v1125_v57 = vld [vmem:[#allocation2 + $0x50] sm:$0xff]  ;;  %822 = vst.msk [vmem:[#allocation2 + $0xf0] sm:$0xff] %vm756_vm0, %v751_v49  ;;  %v752_v51 = vmul.f32 %v6452_v25, %v7010_v52  ;;  %v3618_v49 = vld [vmem:[#allocation2 + $0x3f] sm:$0xff] }
  0xa4   : > { %5881 = vmatmul.mubr.msk.f32.gmra.mxu1 %vm756_vm0, %v1141_v54  ;;  %v6456_v59 = vpop.eup %6455  ;;  %5857 = vmatmul.mubr.msk.f32.gmra.mxu0 %vm756_vm0, %v1125_v57  ;;  %v1142_v61 = vld [vmem:[#allocation2 + $0xd8] sm:$0xff]  ;;  %806 = vst.msk [vmem:[#allocation2 + $0x70] sm:$0xff] %vm756_vm0, %v735_v33  ;;  %v736_v3 = vmul.f32 %v6454_v56, %v7022_v9  ;;  %v857_v9 = vld [vmem:[%s8787_s6 + $0xf0] sm:$0xff] }
  0xa5   : > { %v6458_v30 = vpop.eup %6457  ;;  %v1126_v17 = vld [vmem:[#allocation2 + $0x58] sm:$0xff]  ;;  %823 = vst.msk [vmem:[#allocation2 + $0xf8] sm:$0xff] %vm756_vm0, %v752_v51  ;;  %v753_v60 = vmul.f32 %v6456_v59, %v7029_v35  ;;  %5883 = vmatprep.mubr.msk.f32.mxu1 %vm756_vm0, %v1142_v61  ;;  %v7238_v54 = vld [vmem:[%s8786_s5 + $0x14] sm:$0xf] }
  0xa6   : > { %v6460_v62 = vpop.eup %6459  ;;  %5859 = vmatprep.mubr.msk.f32.mxu0 %vm756_vm0, %v1126_v17  ;;  %v1143_v52 = vld [vmem:[#allocation2 + $0xe0] sm:$0xff]  ;;  %807 = vst.msk [vmem:[#allocation2 + $0x78] sm:$0xff] %vm756_vm0, %v736_v3  ;;  %v737_v1 = vmul.f32 %v6458_v30, %v7035_v44  ;;  %v3617_v25 = vld [vmem:[#allocation2 + $0x37] sm:$0xff] }
  0xa7   : > { %1978 = vperm.xlu1 %6332, %v888_v12   ;;  %1973 = vperm.xlu0 %6331, %v887_v26   ;;  %v6462_v31 = vpop.eup %6461  ;;  %v1127_v35 = vld [vmem:[#allocation2 + $0x60] sm:$0xff]  ;;  %824 = vst.msk [vmem:[#allocation2 + $0x100] sm:$0xff] %vm756_vm0, %v753_v60  ;;  %v754_v2 = vmul.f32 %v6460_v62, %v7041_v47  ;;  %v889_v47 = vld [vmem:[%s8788_s7 + $0xf0] sm:$0xff]  ;;  %v7246_v33 = vld [vmem:[%s8786_s5 + $0x18] sm:$0xf] }
  0xa8   : > { %5884 = vmatmul.mubr.msk.f32.gmra.mxu1 %vm756_vm0, %v1143_v52  ;;  %5860 = vmatmul.mubr.msk.f32.gmra.mxu0 %vm756_vm0, %v1127_v35  ;;  %v1144_v7 = vld [vmem:[#allocation2 + $0xe8] sm:$0xff]  ;;  %808 = vst.msk [vmem:[#allocation2 + $0x80] sm:$0xff] %vm756_vm0, %v737_v1  ;;  %v755_v14 = vmul.f32 %v6462_v31, %v7053_v55  ;;  %v4429_v30 = vld [vmem:[#allocation2 + $0x39] sm:$0xff] }
  0xa9   : > { %v1128_v44 = vld [vmem:[#allocation2 + $0x68] sm:$0xff]  ;;  %825 = vst.msk [vmem:[#allocation2 + $0x108] sm:$0xff] %vm756_vm0, %v754_v2  ;;  %5886 = vmatprep.mubr.msk.f32.mxu1 %vm756_vm0, %v1144_v7 }
  0xaa   : > { %5862 = vmatprep.mubr.msk.f32.mxu0 %vm756_vm0, %v1128_v44  ;;  %v1145_v16 = vld [vmem:[#allocation2 + $0xf0] sm:$0xff]  ;;  %826 = vst.msk [vmem:[#allocation2 + $0x110] sm:$0xff] %vm756_vm0, %v755_v14  ;;  %v3619_v35 = vld [vmem:[#allocation2 + $0x47] sm:$0xff] }
  0xab   : > { %1080 = vperm.xlu1 %6332, %v858_v63   ;;  %1075 = vperm.xlu0 %6331, %v857_v9   ;;  %v7199_v55 = vld [vmem:[#allocation2 + $0x29] sm:$0xff] }
  0xac   : > { %5887 = vmatmul.mubr.msk.f32.gmra.mxu1 %vm756_vm0, %v1145_v16  ;;  %v1129_v18 = vld [vmem:[#allocation2 + $0x70] sm:$0xff]  ;;  %v1146_v45 = vld [vmem:[#allocation2 + $0xf8] sm:$0xff] }
  0xad   : > { %5863 = vmatmul.mubr.msk.f32.gmra.mxu0 %vm756_vm0, %v1129_v18  ;;  %v1130_v50 = vld [vmem:[#allocation2 + $0x78] sm:$0xff]  ;;  %5889 = vmatprep.mubr.msk.f32.mxu1 %vm756_vm0, %v1146_v45  ;;  %v3620_v31 = vld [vmem:[#allocation2 + $0x4f] sm:$0xff] }
  0xae   : > { %v1834_v21 = vpop.permute.xlu1 %1833  ;;  %v926_v42 = vpop.permute.xlu0 %925  ;;  %v1147_v36 = vld [vmem:[#allocation2 + $0x100] sm:$0xff]  ;;  %5865 = vmatprep.mubr.msk.f32.mxu0 %vm756_vm0, %v1130_v50  ;;  %v4432_v16 = vld [vmem:[#allocation2 + $0x51] sm:$0xff] }
  0xaf   : > { %v1991_v46 = vmul.f32 %v1834_v21, %v1799_v13  ;;  %v7207_v8 = vmul.f32 %v7197_v4, %v1834_v21  ;;  %v7210_v23 = vmul.f32 %v7199_v55, %v1834_v21  ;;  %v1083_v27 = vmul.f32 %v926_v42, %v891_v37  ;;  %1988 = vperm.xlu1 %6332, %v890_v40   ;;  %v1131_v24 = vld [vmem:[#allocation2 + $0x80] sm:$0xff] }
  0xb0   : > { %v7212_v29 = vmul.f32 %v2381_v19, %v926_v42  ;;  %v7215_v34 = vmul.f32 %v7203_v5, %v926_v42  ;;  %1983 = vperm.xlu0 %6331, %v889_v47   ;;  %5890 = vmatmul.mubr.msk.f32.gmra.mxu1 %vm756_vm0, %v1147_v36  ;;  %v3622_v50 = vld [vmem:[#allocation2 + $0x5f] sm:$0xff] }
  0xb1   : > { %8809 = vst [vmem:[#allocation9_spill] sm:$0xff] %v7210_v23  ;;  %5866 = vmatmul.mubr.msk.f32.gmra.mxu0 %vm756_vm0, %v1131_v24  ;;  %5894 = vmatprep.mubr.msk.f32.mxu1 %vm756_vm0, %v1083_v27  ;;  %v3629_v23 = vld [vmem:[#allocation2 + $0x97] sm:$0xff] }
  0xb2   : > { %v1839_v43 = vpop.permute.xlu1 %1838  ;;  %v931_v53 = vpop.permute.xlu0 %930  ;;  %5944 = vmatprep.mubr.msk.f32.mxu0 %vm756_vm0, %v1991_v46 }
  0xb3   : > { %v1992_v58 = vmul.f32 %v1839_v43, %v1800_v15  ;;  %v7224_v32 = vmul.f32 %v3194_v10, %v1839_v43  ;;  %v7227_v20 = vmul.f32 %v7218_v22, %v1839_v43  ;;  %v1084_v39 = vmul.f32 %v931_v53, %v892_v28  ;;  %v3621_v15 = vld [vmem:[#allocation2 + $0x57] sm:$0xff]  ;;  %v4434_v43 = vld [vmem:[#allocation2 + $0x61] sm:$0xff] }
  0xb4   : > { %v7230_v0 = vmul.f32 %v2382_v41, %v931_v53  ;;  %v7232_v48 = vmul.f32 %v3616_v11, %v931_v53  ;;  %v4433_v53 = vld [vmem:[#allocation2 + $0x59] sm:$0xff] }
  0xb5   : > { %8810 = vst [vmem:[#allocation10_spill] sm:$0xff] %v7227_v20  ;;  %5895 = vmatmul.mubr.msk.f32.vlgmr.msra.gmra.mxu1 %vm756_vm0, %v1084_v39  ;;  %5945 = vmatmul.mubr.msk.f32.vlgmr.msra.gmra.mxu0 %vm756_vm0, %v1992_v58 }
  0xb6   : > { %v941_v12 = vpop.permute.xlu1 %940  ;;  %v936_v26 = vpop.permute.xlu0 %935  ;;  %5993 = vmatpush3.msk.msra.mxu1 %vm1246_vm1, %v7088_v6  ;;  %6043 = vmatpush3.msk.msra.mxu0 %vm1246_vm1, %v6923_v38  ;;  %v4430_v6 = vld [vmem:[#allocation2 + $0x41] sm:$0xff] }
  0xb7   : > { %v1086_v56 = vmul.f32 %v2382_v41, %v941_v12  ;;  %v7248_v57 = vmul.f32 %v3616_v11, %v941_v12  ;;  %v7250_v51 = vmul.f32 %v3618_v49, %v941_v12  ;;  %v1085_v59 = vmul.f32 %v2381_v19, %v936_v26  ;;  %6092 = vmatprep.subr.msk.mxu1 %vm1246_vm1, %v7238_v54 }
  0xb8   : > { %v7255_v61 = vmul.f32 %v7203_v5, %v936_v26  ;;  %v7257_v3 = vmul.f32 %v3617_v25, %v936_v26  ;;  %6142 = vmatprep.subr.msk.mxu0 %vm1246_vm1, %v7246_v33 }
  0xb9   : > { %5897 = vmatprep.mubr.msk.f32.mxu1 %vm756_vm0, %v1085_v59 }
  0xba   : > { %v1849_v17 = vpop.permute.xlu1 %1848  ;;  %v1844_v60 = vpop.permute.xlu0 %1843  ;;  %5898 = vmatmul.mubr.msk.f32.gmra.mxu1 %vm756_vm0, %v1086_v56 }
  0xbb   : > { %v1994_v38 = vmul.f32 %v3194_v10, %v1849_v17  ;;  %v7266_v62 = vmul.f32 %v7218_v22, %v1849_v17  ;;  %v7268_v52 = vmul.f32 %v4430_v6, %v1849_v17  ;;  %v1993_v63 = vmul.f32 %v7197_v4, %v1844_v60  ;;  %v4431_v4 = vld [vmem:[#allocation2 + $0x49] sm:$0xff] }
  0xbc   : > { %v7272_v9 = vmul.f32 %v7199_v55, %v1844_v60  ;;  %v7274_v1 = vmul.f32 %v4429_v30, %v1844_v60  ;;  %v3624_v17 = vld [vmem:[#allocation2 + $0x6f] sm:$0xff]  ;;  %v3623_v60 = vld [vmem:[#allocation2 + $0x67] sm:$0xff] }
  0xbd   : > { %8811 = vst [vmem:[#allocation11_spill] sm:$0xff] %v7268_v52  ;;  %5947 = vmatprep.mubr.msk.f32.mxu0 %vm756_vm0, %v1993_v63 }
  0xbe   : > { %8812 = vst [vmem:[#allocation12_spill] sm:$0xff] %v7274_v1  ;;  %v951_v2 = vpop.permute.xlu1 %950  ;;  %v946_v7 = vpop.permute.xlu0 %945  ;;  %5948 = vmatmul.mubr.msk.f32.gmra.mxu0 %vm756_vm0, %v1994_v38 }
  0xbf   : > { %v1088_v13 = vmul.f32 %v3616_v11, %v951_v2  ;;  %v7278_v37 = vmul.f32 %v3618_v49, %v951_v2  ;;  %v7280_v14 = vmul.f32 %v3620_v31, %v951_v2  ;;  %v1087_v44 = vmul.f32 %v7203_v5, %v946_v7 }
  0xc0   : > { %v7283_v40 = vmul.f32 %v3617_v25, %v946_v7  ;;  %v7285_v47 = vmul.f32 %v3619_v35, %v946_v7 }
  0xc1   : > { %8813 = vst [vmem:[#allocation13_spill] sm:$0xff] %v7280_v14  ;;  %5900 = vmatprep.mubr.msk.f32.mxu1 %vm756_vm0, %v1087_v44 }
  0xc2   : > { %8814 = vst [vmem:[#allocation14_spill] sm:$0xff] %v7285_v47  ;;  %v1859_v18 = vpop.permute.xlu1 %1858  ;;  %v1854_v19 = vpop.permute.xlu0 %1853  ;;  %5901 = vmatmul.mubr.msk.f32.gmra.mxu1 %vm756_vm0, %v1088_v13 }
  0xc3   : > { %v1996_v21 = vmul.f32 %v7218_v22, %v1859_v18  ;;  %v7290_v42 = vmul.f32 %v4430_v6, %v1859_v18  ;;  %v7292_v45 = vmul.f32 %v4432_v16, %v1859_v18  ;;  %v1995_v5 = vmul.f32 %v7199_v55, %v1854_v19  ;;  %v4436_v18 = vld [vmem:[#allocation2 + $0x71] sm:$0xff] }
  0xc4   : > { %v7295_v46 = vmul.f32 %v4429_v30, %v1854_v19  ;;  %v7297_v27 = vmul.f32 %v4431_v4, %v1854_v19  ;;  %v4435_v19 = vld [vmem:[#allocation2 + $0x69] sm:$0xff] }
  0xc5   : > { %8815 = vst [vmem:[#allocation15_spill] sm:$0xff] %v7292_v45  ;;  %5950 = vmatprep.mubr.msk.f32.mxu0 %vm756_vm0, %v1995_v5 }
  0xc6   : > { %8816 = vst [vmem:[#allocation16_spill] sm:$0xff] %v7297_v27  ;;  %v961_v28 = vpop.permute.xlu1 %960  ;;  %v956_v36 = vpop.permute.xlu0 %955  ;;  %5951 = vmatmul.mubr.msk.f32.gmra.mxu0 %vm756_vm0, %v1996_v21 }
  0xc7   : > { %v1090_v10 = vmul.f32 %v3618_v49, %v961_v28  ;;  %v7301_v22 = vmul.f32 %v3620_v31, %v961_v28  ;;  %v7303_v24 = vmul.f32 %v3622_v50, %v961_v28  ;;  %v1089_v41 = vmul.f32 %v3617_v25, %v956_v36 }
  0xc8   : > { %v7305_v11 = vmul.f32 %v3619_v35, %v956_v36  ;;  %v7307_v55 = vmul.f32 %v3621_v15, %v956_v36 }
  0xc9   : > { %8817 = vst [vmem:[#allocation17_spill] sm:$0xff] %v7303_v24  ;;  %5903 = vmatprep.mubr.msk.f32.mxu1 %vm756_vm0, %v1089_v41 }
  0xca   : > { %8818 = vst [vmem:[#allocation18_spill] sm:$0xff] %v7307_v55  ;;  %v1869_v58 = vpop.permute.xlu1 %1868  ;;  %v1864_v39 = vpop.permute.xlu0 %1863  ;;  %5904 = vmatmul.mubr.msk.f32.gmra.mxu1 %vm756_vm0, %v1090_v10 }
  0xcb   : > { %v1998_v12 = vmul.f32 %v4430_v6, %v1869_v58  ;;  %v7311_v26 = vmul.f32 %v4432_v16, %v1869_v58  ;;  %v7313_v49 = vmul.f32 %v4434_v43, %v1869_v58  ;;  %v1997_v56 = vmul.f32 %v4429_v30, %v1864_v39  ;;  %v3626_v58 = vld [vmem:[#allocation2 + $0x7f] sm:$0xff] }
  0xcc   : > { %v7315_v59 = vmul.f32 %v4431_v4, %v1864_v39  ;;  %v7317_v25 = vmul.f32 %v4433_v53, %v1864_v39  ;;  %v3625_v39 = vld [vmem:[#allocation2 + $0x77] sm:$0xff] }
  0xcd   : > { %8819 = vst [vmem:[#allocation19_spill] sm:$0xff] %v7311_v26  ;;  %8820 = vst [vmem:[#allocation20_spill] sm:$0xff] %v7313_v49  ;;  %5953 = vmatprep.mubr.msk.f32.mxu0 %vm756_vm0, %v1997_v56  ;;  %v7530_v26 = vld [vmem:[#allocation2 + $0x10f] sm:$0xff] }
  0xce   : > { %8821 = vst [vmem:[#allocation21_spill] sm:$0xff] %v7315_v59  ;;  %8822 = vst [vmem:[#allocation22_spill] sm:$0xff] %v7317_v25  ;;  %v971_v38 = vpop.permute.xlu1 %970  ;;  %v966_v63 = vpop.permute.xlu0 %965  ;;  %5954 = vmatmul.mubr.msk.f32.gmra.mxu0 %vm756_vm0, %v1998_v12  ;;  %v3627_v25 = vld [vmem:[#allocation2 + $0x87] sm:$0xff] }
  0xcf   : > { %v1092_v2 = vmul.f32 %v3620_v31, %v971_v38  ;;  %v7321_v7 = vmul.f32 %v3622_v50, %v971_v38  ;;  %v7323_v6 = vmul.f32 %v3624_v17, %v971_v38  ;;  %v1091_v13 = vmul.f32 %v3619_v35, %v966_v63 }
  0xd0   : > { %v7325_v44 = vmul.f32 %v3621_v15, %v966_v63  ;;  %v7327_v30 = vmul.f32 %v3623_v60, %v966_v63 }
  0xd1   : > { %8823 = vst [vmem:[#allocation23_spill] sm:$0xff] %v7323_v6  ;;  %5906 = vmatprep.mubr.msk.f32.mxu1 %vm756_vm0, %v1091_v13 }
  0xd2   : > { %8824 = vst [vmem:[#allocation24_spill] sm:$0xff] %v7327_v30  ;;  %v1879_v21 = vpop.permute.xlu1 %1878  ;;  %v1874_v5 = vpop.permute.xlu0 %1873  ;;  %5907 = vmatmul.mubr.msk.f32.gmra.mxu1 %vm756_vm0, %v1092_v2 }
  0xd3   : > { %v2000_v28 = vmul.f32 %v4432_v16, %v1879_v21  ;;  %v7331_v36 = vmul.f32 %v4434_v43, %v1879_v21  ;;  %v7333_v31 = vmul.f32 %v4436_v18, %v1879_v21  ;;  %v1999_v10 = vmul.f32 %v4431_v4, %v1874_v5  ;;  %v4438_v21 = vld [vmem:[#allocation2 + $0x81] sm:$0xff] }
  0xd4   : > { %v7335_v41 = vmul.f32 %v4433_v53, %v1874_v5  ;;  %v7337_v35 = vmul.f32 %v4435_v19, %v1874_v5  ;;  %v4437_v5 = vld [vmem:[#allocation2 + $0x79] sm:$0xff] }
  0xd5   : > { %8825 = vst [vmem:[#allocation25_spill] sm:$0xff] %v7331_v36  ;;  %8826 = vst [vmem:[#allocation26_spill] sm:$0xff] %v7333_v31  ;;  %5956 = vmatprep.mubr.msk.f32.mxu0 %vm756_vm0, %v1999_v10 }
  0xd6   : > { %8827 = vst [vmem:[#allocation27_spill] sm:$0xff] %v7335_v41  ;;  %8828 = vst [vmem:[#allocation28_spill] sm:$0xff] %v7337_v35  ;;  %v981_v12 = vpop.permute.xlu1 %980  ;;  %v976_v56 = vpop.permute.xlu0 %975  ;;  %5957 = vmatmul.mubr.msk.f32.gmra.mxu0 %vm756_vm0, %v2000_v28 }
  0xd7   : > { %v1094_v38 = vmul.f32 %v3622_v50, %v981_v12  ;;  %v7341_v63 = vmul.f32 %v3624_v17, %v981_v12  ;;  %v7343_v16 = vmul.f32 %v3626_v58, %v981_v12  ;;  %v1093_v2 = vmul.f32 %v3621_v15, %v976_v56 }
  0xd8   : > { %v7345_v13 = vmul.f32 %v3623_v60, %v976_v56  ;;  %v7347_v4 = vmul.f32 %v3625_v39, %v976_v56  ;;  %v3628_v56 = vld [vmem:[#allocation2 + $0x8f] sm:$0xff] }
  0xd9   : > { %8829 = vst [vmem:[#allocation29_spill] sm:$0xff] %v7343_v16  ;;  %5909 = vmatprep.mubr.msk.f32.mxu1 %vm756_vm0, %v1093_v2 }
  0xda   : > { %8830 = vst [vmem:[#allocation30_spill] sm:$0xff] %v7347_v4  ;;  %v1889_v10 = vpop.permute.xlu1 %1888  ;;  %v1884_v31 = vpop.permute.xlu0 %1883  ;;  %5910 = vmatmul.mubr.msk.f32.gmra.mxu1 %vm756_vm0, %v1094_v38 }
  0xdb   : > { %v2002_v35 = vmul.f32 %v4434_v43, %v1889_v10  ;;  %v7351_v28 = vmul.f32 %v4436_v18, %v1889_v10  ;;  %v7353_v50 = vmul.f32 %v4438_v21, %v1889_v10  ;;  %v2001_v12 = vmul.f32 %v4433_v53, %v1884_v31 }
  0xdc   : > { %v7355_v49 = vmul.f32 %v4435_v19, %v1884_v31  ;;  %v7357_v15 = vmul.f32 %v4437_v5, %v1884_v31  ;;  %v4440_v31 = vld [vmem:[#allocation2 + $0x91] sm:$0xff] }
  0xdd   : > { %8831 = vst [vmem:[#allocation31_spill] sm:$0xff] %v7351_v28  ;;  %8832 = vst [vmem:[#allocation32_spill] sm:$0xff] %v7353_v50  ;;  %5959 = vmatprep.mubr.msk.f32.mxu0 %vm756_vm0, %v2001_v12 }
  0xde   : > { %8833 = vst [vmem:[#allocation33_spill] sm:$0xff] %v7355_v49  ;;  %8834 = vst [vmem:[#allocation34_spill] sm:$0xff] %v7357_v15  ;;  %v991_v2 = vpop.permute.xlu1 %990  ;;  %v986_v45 = vpop.permute.xlu0 %985  ;;  %5960 = vmatmul.mubr.msk.f32.gmra.mxu0 %vm756_vm0, %v2002_v35  ;;  %v4439_v15 = vld [vmem:[#allocation2 + $0x89] sm:$0xff] }
  0xdf   : > { %v1096_v27 = vmul.f32 %v3624_v17, %v991_v2  ;;  %v7361_v38 = vmul.f32 %v3626_v58, %v991_v2  ;;  %v7363_v43 = vmul.f32 %v3628_v56, %v991_v2  ;;  %v1095_v10 = vmul.f32 %v3623_v60, %v986_v45 }
  0xe0   : > { %v7365_v50 = vmul.f32 %v3625_v39, %v986_v45  ;;  %v7367_v53 = vmul.f32 %v3627_v25, %v986_v45  ;;  %v3630_v45 = vld [vmem:[#allocation2 + $0x9f] sm:$0xff] }
  0xe1   : > { %8835 = vst [vmem:[#allocation35_spill] sm:$0xff] %v7363_v43  ;;  %5912 = vmatprep.mubr.msk.f32.mxu1 %vm756_vm0, %v1095_v10 }
  0xe2   : > { %8836 = vst [vmem:[#allocation36_spill] sm:$0xff] %v7367_v53  ;;  %v1899_v12 = vpop.permute.xlu1 %1898  ;;  %v1894_v52 = vpop.permute.xlu0 %1893  ;;  %5913 = vmatmul.mubr.msk.f32.gmra.mxu1 %vm756_vm0, %v1096_v27 }
  0xe3   : > { %v2004_v1 = vmul.f32 %v4436_v18, %v1899_v12  ;;  %v7371_v35 = vmul.f32 %v4438_v21, %v1899_v12  ;;  %v7373_v17 = vmul.f32 %v4440_v31, %v1899_v12  ;;  %v2003_v2 = vmul.f32 %v4435_v19, %v1894_v52 }
  0xe4   : > { %v7375_v20 = vmul.f32 %v4437_v5, %v1894_v52  ;;  %v7377_v60 = vmul.f32 %v4439_v15, %v1894_v52  ;;  %v4442_v52 = vld [vmem:[#allocation2 + $0xa1] sm:$0xff] }
  0xe5   : > { %8837 = vst [vmem:[#allocation37_spill] sm:$0xff] %v7371_v35  ;;  %8838 = vst [vmem:[#allocation38_spill] sm:$0xff] %v7373_v17  ;;  %5962 = vmatprep.mubr.msk.f32.mxu0 %vm756_vm0, %v2003_v2 }
  0xe6   : > { %8839 = vst [vmem:[#allocation39_spill] sm:$0xff] %v7375_v20  ;;  %8840 = vst [vmem:[#allocation40_spill] sm:$0xff] %v7377_v60  ;;  %v1001_v10 = vpop.permute.xlu1 %1000  ;;  %v996_v43 = vpop.permute.xlu0 %995  ;;  %5963 = vmatmul.mubr.msk.f32.gmra.mxu0 %vm756_vm0, %v2004_v1  ;;  %v4441_v60 = vld [vmem:[#allocation2 + $0x99] sm:$0xff] }
  0xe7   : > { %v1098_v53 = vmul.f32 %v3626_v58, %v1001_v10  ;;  %v7381_v27 = vmul.f32 %v3628_v56, %v1001_v10  ;;  %v7383_v18 = vmul.f32 %v3630_v45, %v1001_v10  ;;  %v1097_v12 = vmul.f32 %v3625_v39, %v996_v43 }
  0xe8   : > { %v7385_v17 = vmul.f32 %v3627_v25, %v996_v43  ;;  %v7387_v19 = vmul.f32 %v3629_v23, %v996_v43  ;;  %v3632_v43 = vld [vmem:[#allocation2 + $0xaf] sm:$0xff] }
  0xe9   : > { %8841 = vst [vmem:[#allocation41_spill] sm:$0xff] %v7383_v18  ;;  %5915 = vmatprep.mubr.msk.f32.mxu1 %vm756_vm0, %v1097_v12 }
  0xea   : > { %8842 = vst [vmem:[#allocation42_spill] sm:$0xff] %v7387_v19  ;;  %v1909_v2 = vpop.permute.xlu1 %1908  ;;  %v1904_v16 = vpop.permute.xlu0 %1903  ;;  %5916 = vmatmul.mubr.msk.f32.gmra.mxu1 %vm756_vm0, %v1098_v53  ;;  %v3631_v19 = vld [vmem:[#allocation2 + $0xa7] sm:$0xff] }
  0xeb   : > { %v2006_v35 = vmul.f32 %v4438_v21, %v1909_v2  ;;  %v7391_v1 = vmul.f32 %v4440_v31, %v1909_v2  ;;  %v7393_v58 = vmul.f32 %v4442_v52, %v1909_v2  ;;  %v2005_v10 = vmul.f32 %v4437_v5, %v1904_v16 }
  0xec   : > { %v7395_v18 = vmul.f32 %v4439_v15, %v1904_v16  ;;  %v7397_v39 = vmul.f32 %v4441_v60, %v1904_v16  ;;  %v4444_v16 = vld [vmem:[#allocation2 + $0xb1] sm:$0xff] }
  0xed   : > { %8843 = vst [vmem:[#allocation43_spill] sm:$0xff] %v7391_v1  ;;  %8844 = vst [vmem:[#allocation44_spill] sm:$0xff] %v7393_v58  ;;  %5965 = vmatprep.mubr.msk.f32.mxu0 %vm756_vm0, %v2005_v10 }
  0xee   : > { %8845 = vst [vmem:[#allocation45_spill] sm:$0xff] %v7395_v18  ;;  %8846 = vst [vmem:[#allocation46_spill] sm:$0xff] %v7397_v39  ;;  %v1011_v12 = vpop.permute.xlu1 %1010  ;;  %v1006_v4 = vpop.permute.xlu0 %1005  ;;  %5966 = vmatmul.mubr.msk.f32.gmra.mxu0 %vm756_vm0, %v2006_v35  ;;  %v4443_v39 = vld [vmem:[#allocation2 + $0xa9] sm:$0xff] }
  0xef   : > { %v1100_v20 = vmul.f32 %v3628_v56, %v1011_v12  ;;  %v7401_v53 = vmul.f32 %v3630_v45, %v1011_v12  ;;  %v7403_v21 = vmul.f32 %v3632_v43, %v1011_v12  ;;  %v1099_v2 = vmul.f32 %v3627_v25, %v1006_v4 }
  0xf0   : > { %v7405_v58 = vmul.f32 %v3629_v23, %v1006_v4  ;;  %v7407_v5 = vmul.f32 %v3631_v19, %v1006_v4  ;;  %v3634_v4 = vld [vmem:[#allocation2 + $0xbf] sm:$0xff] }
  0xf1   : > { %8847 = vst [vmem:[#allocation47_spill] sm:$0xff] %v7403_v21  ;;  %5918 = vmatprep.mubr.msk.f32.mxu1 %vm756_vm0, %v1099_v2 }
  0xf2   : > { %8848 = vst [vmem:[#allocation48_spill] sm:$0xff] %v7407_v5  ;;  %v1919_v10 = vpop.permute.xlu1 %1918  ;;  %v1914_v1 = vpop.permute.xlu0 %1913  ;;  %5919 = vmatmul.mubr.msk.f32.gmra.mxu1 %vm756_vm0, %v1100_v20  ;;  %v3633_v5 = vld [vmem:[#allocation2 + $0xb7] sm:$0xff] }
  0xf3   : > { %v2008_v18 = vmul.f32 %v4440_v31, %v1919_v10  ;;  %v7411_v35 = vmul.f32 %v4442_v52, %v1919_v10  ;;  %v7413_v56 = vmul.f32 %v4444_v16, %v1919_v10  ;;  %v2007_v12 = vmul.f32 %v4439_v15, %v1914_v1 }
  0xf4   : > { %v7415_v21 = vmul.f32 %v4441_v60, %v1914_v1  ;;  %v7417_v25 = vmul.f32 %v4443_v39, %v1914_v1  ;;  %v4446_v1 = vld [vmem:[#allocation2 + $0xc1] sm:$0xff] }
  0xf5   : > { %8849 = vst [vmem:[#allocation49_spill] sm:$0xff] %v7411_v35  ;;  %8850 = vst [vmem:[#allocation50_spill] sm:$0xff] %v7413_v56  ;;  %5968 = vmatprep.mubr.msk.f32.mxu0 %vm756_vm0, %v2007_v12 }
  0xf6   : > { %8851 = vst [vmem:[#allocation51_spill] sm:$0xff] %v7415_v21  ;;  %8852 = vst [vmem:[#allocation52_spill] sm:$0xff] %v7417_v25  ;;  %v1021_v2 = vpop.permute.xlu1 %1020  ;;  %v1016_v6 = vpop.permute.xlu0 %1015  ;;  %5969 = vmatmul.mubr.msk.f32.gmra.mxu0 %vm756_vm0, %v2008_v18  ;;  %v4445_v25 = vld [vmem:[#allocation2 + $0xb9] sm:$0xff] }
  0xf7   : > { %v1102_v28 = vmul.f32 %v3630_v45, %v1021_v2  ;;  %v7421_v20 = vmul.f32 %v3632_v43, %v1021_v2  ;;  %v7423_v31 = vmul.f32 %v3634_v4, %v1021_v2  ;;  %v1101_v10 = vmul.f32 %v3629_v23, %v1016_v6 }
  0xf8   : > { %v7425_v56 = vmul.f32 %v3631_v19, %v1016_v6  ;;  %v7427_v15 = vmul.f32 %v3633_v5, %v1016_v6  ;;  %v3636_v6 = vld [vmem:[#allocation2 + $0xcf] sm:$0xff] }
  0xf9   : > { %8853 = vst [vmem:[#allocation53_spill] sm:$0xff] %v7423_v31  ;;  %5921 = vmatprep.mubr.msk.f32.mxu1 %vm756_vm0, %v1101_v10 }
  0xfa   : > { %8854 = vst [vmem:[#allocation54_spill] sm:$0xff] %v7427_v15  ;;  %v1929_v12 = vpop.permute.xlu1 %1928  ;;  %v1924_v35 = vpop.permute.xlu0 %1923  ;;  %5922 = vmatmul.mubr.msk.f32.gmra.mxu1 %vm756_vm0, %v1102_v28  ;;  %v3635_v15 = vld [vmem:[#allocation2 + $0xc7] sm:$0xff] }
  0xfb   : > { %v2010_v21 = vmul.f32 %v4442_v52, %v1929_v12  ;;  %v7431_v18 = vmul.f32 %v4444_v16, %v1929_v12  ;;  %v7433_v45 = vmul.f32 %v4446_v1, %v1929_v12  ;;  %v2009_v2 = vmul.f32 %v4441_v60, %v1924_v35 }
  0xfc   : > { %v7435_v31 = vmul.f32 %v4443_v39, %v1924_v35  ;;  %v7437_v23 = vmul.f32 %v4445_v25, %v1924_v35  ;;  %v4448_v35 = vld [vmem:[#allocation2 + $0xd1] sm:$0xff] }
  0xfd   : > { %8855 = vst [vmem:[#allocation55_spill] sm:$0xff] %v7431_v18  ;;  %8856 = vst [vmem:[#allocation56_spill] sm:$0xff] %v7433_v45  ;;  %5971 = vmatprep.mubr.msk.f32.mxu0 %vm756_vm0, %v2009_v2 }
  0xfe   : > { %8857 = vst [vmem:[#allocation57_spill] sm:$0xff] %v7435_v31  ;;  %8858 = vst [vmem:[#allocation58_spill] sm:$0xff] %v7437_v23  ;;  %v1031_v10 = vpop.permute.xlu1 %1030  ;;  %v1026_v30 = vpop.permute.xlu0 %1025  ;;  %5972 = vmatmul.mubr.msk.f32.gmra.mxu0 %vm756_vm0, %v2010_v21  ;;  %v4447_v23 = vld [vmem:[#allocation2 + $0xc9] sm:$0xff] }
  0xff   : > { %v1104_v49 = vmul.f32 %v3632_v43, %v1031_v10  ;;  %v7441_v28 = vmul.f32 %v3634_v4, %v1031_v10  ;;  %v7443_v52 = vmul.f32 %v3636_v6, %v1031_v10  ;;  %v1103_v12 = vmul.f32 %v3631_v19, %v1026_v30 }
 0x100   : > { %v7445_v45 = vmul.f32 %v3633_v5, %v1026_v30  ;;  %v7447_v60 = vmul.f32 %v3635_v15, %v1026_v30  ;;  %v3638_v30 = vld [vmem:[#allocation2 + $0xdf] sm:$0xff] }
 0x101   : > { %8859 = vst [vmem:[#allocation59_spill] sm:$0xff] %v7443_v52  ;;  %5924 = vmatprep.mubr.msk.f32.mxu1 %vm756_vm0, %v1103_v12 }
 0x102   : > { %8860 = vst [vmem:[#allocation60_spill] sm:$0xff] %v7447_v60  ;;  %v1939_v2 = vpop.permute.xlu1 %1938  ;;  %v1934_v18 = vpop.permute.xlu0 %1933  ;;  %5925 = vmatmul.mubr.msk.f32.gmra.mxu1 %vm756_vm0, %v1104_v49  ;;  %v3637_v60 = vld [vmem:[#allocation2 + $0xd7] sm:$0xff] }
 0x103   : > { %v2012_v31 = vmul.f32 %v4444_v16, %v1939_v2  ;;  %v7451_v21 = vmul.f32 %v4446_v1, %v1939_v2  ;;  %v7453_v43 = vmul.f32 %v4448_v35, %v1939_v2  ;;  %v2011_v10 = vmul.f32 %v4443_v39, %v1934_v18 }
 0x104   : > { %v7455_v52 = vmul.f32 %v4445_v25, %v1934_v18  ;;  %v7457_v19 = vmul.f32 %v4447_v23, %v1934_v18  ;;  %v4450_v18 = vld [vmem:[#allocation2 + $0xe1] sm:$0xff] }
 0x105   : > { %8861 = vst [vmem:[#allocation61_spill] sm:$0xff] %v7451_v21  ;;  %8862 = vst [vmem:[#allocation62_spill] sm:$0xff] %v7453_v43  ;;  %5974 = vmatprep.mubr.msk.f32.mxu0 %vm756_vm0, %v2011_v10 }
 0x106   : > { %8863 = vst [vmem:[#allocation63_spill] sm:$0xff] %v7455_v52  ;;  %8864 = vst [vmem:[#allocation64_spill] sm:$0xff] %v7457_v19  ;;  %v1041_v12 = vpop.permute.xlu1 %1040  ;;  %v1036_v24 = vpop.permute.xlu0 %1035  ;;  %5975 = vmatmul.mubr.msk.f32.gmra.mxu0 %vm756_vm0, %v2012_v31  ;;  %v4449_v19 = vld [vmem:[#allocation2 + $0xd9] sm:$0xff] }
 0x107   : > { %v1106_v36 = vmul.f32 %v3634_v4, %v1041_v12  ;;  %v7461_v49 = vmul.f32 %v3636_v6, %v1041_v12  ;;  %v7463_v16 = vmul.f32 %v3638_v30, %v1041_v12  ;;  %v1105_v2 = vmul.f32 %v3633_v5, %v1036_v24 }
 0x108   : > { %v7465_v43 = vmul.f32 %v3635_v15, %v1036_v24  ;;  %v7467_v39 = vmul.f32 %v3637_v60, %v1036_v24  ;;  %v3640_v24 = vld [vmem:[#allocation2 + $0xef] sm:$0xff] }
 0x109   : > { %8865 = vst [vmem:[#allocation65_spill] sm:$0xff] %v7463_v16  ;;  %5927 = vmatprep.mubr.msk.f32.mxu1 %vm756_vm0, %v1105_v2 }
 0x10a   : > { %8866 = vst [vmem:[#allocation66_spill] sm:$0xff] %v7467_v39  ;;  %v1949_v10 = vpop.permute.xlu1 %1948  ;;  %v1944_v21 = vpop.permute.xlu0 %1943  ;;  %5928 = vmatmul.mubr.msk.f32.gmra.mxu1 %vm756_vm0, %v1106_v36  ;;  %v7480_v39 = vld [vmem:[#allocation2 + $0xe7] sm:$0xff] }
 0x10b   : > { %v2014_v52 = vmul.f32 %v4446_v1, %v1949_v10  ;;  %v7471_v31 = vmul.f32 %v4448_v35, %v1949_v10  ;;  %v7473_v4 = vmul.f32 %v4450_v18, %v1949_v10  ;;  %v2013_v12 = vmul.f32 %v4445_v25, %v1944_v21 }
 0x10c   : > { %v7475_v16 = vmul.f32 %v4447_v23, %v1944_v21  ;;  %v7477_v5 = vmul.f32 %v4449_v19, %v1944_v21 }
 0x10d   : > { %8867 = vst [vmem:[#allocation67_spill] sm:$0xff] %v7471_v31  ;;  %8868 = vst [vmem:[#allocation68_spill] sm:$0xff] %v7473_v4  ;;  %5977 = vmatprep.mubr.msk.f32.mxu0 %vm756_vm0, %v2013_v12  ;;  %v4452_v4 = vld [vmem:[#allocation2 + $0xf1] sm:$0xff]  ;;  %v4451_v12 = vld [vmem:[#allocation2 + $0xe9] sm:$0xff] }
 0x10e   : > { %8869 = vst [vmem:[#allocation69_spill] sm:$0xff] %v7475_v16  ;;  %8870 = vst [vmem:[#allocation70_spill] sm:$0xff] %v7477_v5  ;;  %v1051_v2 = vpop.permute.xlu1 %1050  ;;  %v1046_v55 = vpop.permute.xlu0 %1045  ;;  %5978 = vmatmul.mubr.msk.f32.gmra.mxu0 %vm756_vm0, %v2014_v52 }
 0x10f   : > { %v1108_v36 = vmul.f32 %v3636_v6, %v1051_v2  ;;  %v7483_v1 = vmul.f32 %v3638_v30, %v1051_v2  ;;  %v7485_v31 = vmul.f32 %v3640_v24, %v1051_v2  ;;  %v1107_v10 = vmul.f32 %v3635_v15, %v1046_v55 }
 0x110   : > { %v7487_v25 = vmul.f32 %v3637_v60, %v1046_v55  ;;  %v7490_v21 = vmul.f32 %v7480_v39, %v1046_v55  ;;  %v7502_v55 = vld [vmem:[#allocation2 + $0xff] sm:$0xff] }
 0x111   : > { %8871 = vst [vmem:[#allocation71_spill] sm:$0xff] %v7485_v31  ;;  %5930 = vmatprep.mubr.msk.f32.mxu1 %vm756_vm0, %v1107_v10  ;;  %v7505_v10 = vld [vmem:[#allocation2 + $0xf7] sm:$0xff] }
 0x112   : > { %8872 = vst [vmem:[#allocation72_spill] sm:$0xff] %v7490_v21  ;;  %v1959_v5 = vpop.permute.xlu1 %1958  ;;  %v1954_v16 = vpop.permute.xlu0 %1953  ;;  %5931 = vmatmul.mubr.msk.f32.gmra.mxu1 %vm756_vm0, %v1108_v36 }
 0x113   : > { %v2016_v52 = vmul.f32 %v4448_v35, %v1959_v5  ;;  %v7494_v6 = vmul.f32 %v4450_v18, %v1959_v5  ;;  %v7496_v41 = vmul.f32 %v4452_v4, %v1959_v5  ;;  %v2015_v2 = vmul.f32 %v4447_v23, %v1954_v16 }
 0x114   : > { %v7498_v15 = vmul.f32 %v4449_v19, %v1954_v16  ;;  %v7500_v31 = vmul.f32 %v4451_v12, %v1954_v16 }
 0x115   : > { %8873 = vst [vmem:[#allocation73_spill] sm:$0xff] %v7494_v6  ;;  %8874 = vst [vmem:[#allocation74_spill] sm:$0xff] %v7496_v41  ;;  %5980 = vmatprep.mubr.msk.f32.mxu0 %vm756_vm0, %v2015_v2  ;;  %v4454_v2 = vld [vmem:[#allocation2 + $0x101] sm:$0xff]  ;;  %v4453_v41 = vld [vmem:[#allocation2 + $0xf9] sm:$0xff] }
 0x116   : > { %8875 = vst [vmem:[#allocation75_spill] sm:$0xff] %v7498_v15  ;;  %8876 = vst [vmem:[#allocation76_spill] sm:$0xff] %v7500_v31  ;;  %v1061_v21 = vpop.permute.xlu1 %1060  ;;  %v7507_v14 = vpop.permute.xlu0 %1055  ;;  %5981 = vmatmul.mubr.msk.f32.gmra.mxu0 %vm756_vm0, %v2016_v52 }
 0x117   : > { %v1110_v35 = vmul.f32 %v3638_v30, %v1061_v21  ;;  %v7510_v36 = vmul.f32 %v3640_v24, %v1061_v21  ;;  %v7513_v23 = vmul.f32 %v7502_v55, %v1061_v21  ;;  %v1109_v16 = vmul.f32 %v3637_v60, %v7507_v14 }
 0x118   : > { %v7518_v5 = vmul.f32 %v7505_v10, %v7507_v14 }
 0x119   : > { %8877 = vst [vmem:[#allocation77_spill] sm:$0xff] %v7513_v23  ;;  %5933 = vmatprep.mubr.msk.f32.mxu1 %vm756_vm0, %v1109_v16  ;;  %v7533_v16 = vld [vmem:[#allocation2 + $0x107] sm:$0xff] }
 0x11a   : > { %8878 = vst [vmem:[#allocation78_spill] sm:$0xff] %v7518_v5  ;;  %v1969_v31 = vpop.permute.xlu1 %1968  ;;  %v1964_v6 = vpop.permute.xlu0 %1963  ;;  %5934 = vmatmul.mubr.msk.f32.gmra.mxu1 %vm756_vm0, %v1110_v35  ;;  %v7551_v35 = vld [vmem:[#allocation2 + $0x111] sm:$0xff] }
 0x11b   : > { %v2018_v30 = vmul.f32 %v4450_v18, %v1969_v31  ;;  %v7522_v52 = vmul.f32 %v4452_v4, %v1969_v31  ;;  %v7524_v15 = vmul.f32 %v4454_v2, %v1969_v31  ;;  %v2017_v21 = vmul.f32 %v4449_v19, %v1964_v6 }
 0x11c   : > { %v7526_v23 = vmul.f32 %v4451_v12, %v1964_v6  ;;  %v7528_v60 = vmul.f32 %v4453_v41, %v1964_v6 }
 0x11d   : > { %8879 = vst [vmem:[#allocation79_spill] sm:$0xff] %v7522_v52  ;;  %8880 = vst [vmem:[#allocation80_spill] sm:$0xff] %v7524_v15  ;;  %5983 = vmatprep.mubr.msk.f32.mxu0 %vm756_vm0, %v2017_v21  ;;  %v7554_v21 = vld [vmem:[#allocation2 + $0x109] sm:$0xff] }
 0x11e   : > { %8881 = vst [vmem:[#allocation81_spill] sm:$0xff] %v7526_v23  ;;  %8882 = vst [vmem:[#allocation82_spill] sm:$0xff] %v7528_v60  ;;  %v7535_v5 = vpop.permute.xlu1 %1070  ;;  %v7537_v47 = vpop.permute.xlu0 %1065  ;;  %5984 = vmatmul.mubr.msk.f32.gmra.mxu0 %vm756_vm0, %v2018_v30 }
 0x11f   : > { %v1112_v18 = vmul.f32 %v3640_v24, %v7535_v5  ;;  %v7543_v19 = vmul.f32 %v7530_v26, %v7535_v5  ;;  %v1111_v31 = vmul.f32 %v7480_v39, %v7537_v47  ;;  %v7549_v6 = vmul.f32 %v7533_v16, %v7537_v47 }
 0x121   : > { %8883 = vst [vmem:[#allocation83_spill] sm:$0xff] %v7543_v19  ;;  %8884 = vst [vmem:[#allocation84_spill] sm:$0xff] %v7549_v6  ;;  %5936 = vmatprep.mubr.msk.f32.mxu1 %vm756_vm0, %v1111_v31 }
 0x122   : > { %v1979_v30 = vpop.permute.xlu1 %1978  ;;  %v1974_v15 = vpop.permute.xlu0 %1973  ;;  %5937 = vmatmul.mubr.msk.f32.gmra.mxu1 %vm756_vm0, %v1112_v18 }
 0x123   : > { %v2020_v24 = vmul.f32 %v4452_v4, %v1979_v30  ;;  %v7557_v60 = vmul.f32 %v4454_v2, %v1979_v30  ;;  %v7560_v19 = vmul.f32 %v7551_v35, %v1979_v30  ;;  %v2019_v52 = vmul.f32 %v4451_v12, %v1974_v15 }
 0x124   : > { %v7562_v23 = vmul.f32 %v4453_v41, %v1974_v15  ;;  %v7565_v6 = vmul.f32 %v7554_v21, %v1974_v15 }
 0x125   : > { %8885 = vst [vmem:[#allocation85_spill] sm:$0xff] %v7560_v19  ;;  %5986 = vmatprep.mubr.msk.f32.mxu0 %vm756_vm0, %v2019_v52 }
 0x126   : > { %8886 = vst [vmem:[#allocation86_spill] sm:$0xff] %v7565_v6  ;;  %v7568_v31 = vpop.permute.xlu1 %1080  ;;  %v7570_v59 = vpop.permute.xlu0 %1075  ;;  %5987 = vmatmul.mubr.msk.f32.gmra.mxu0 %vm756_vm0, %v2020_v24  ;;  %v2803_v24 = vld [vmem:[#allocation2 + $0x18] sm:$0xff] }
 0x127   : > { %v1114_v4 = vmul.f32 %v7502_v55, %v7568_v31  ;;  %v1113_v18 = vmul.f32 %v7505_v10, %v7570_v59 }
 0x129   : > { %5939 = vmatprep.mubr.msk.f32.mxu1 %vm756_vm0, %v1113_v18  ;;  %v7593_v18 = vld [vmem:[%s8786_s5 + $0x1c] sm:$0xf] }
 0x12a   : > { %v7578_v12 = vpop.permute.xlu1 %1988  ;;  %5940 = vmatmul.mubr.msk.f32.gmra.mxu1 %vm756_vm0, %v1114_v4 }
 0x12b   : > { %v2022_v15 = vmul.f32 %v4454_v2, %v7578_v12  ;;  %v7582_v52 = vpop.permute.xlu0 %1983  ;;  %5994 = vmatprep.mubr.msk.f32.mxu1 %vm756_vm0, %v7212_v29  ;;  %v2804_v29 = vld [vmem:[#allocation2 + $0x20] sm:$0xff] }
 0x12c   : > { %v2021_v30 = vmul.f32 %v4453_v41, %v7582_v52  ;;  %v7601_v41 = vld [vmem:[#allocation2 + $0x28] sm:$0xff] }
 0x12e   : > { %5989 = vmatprep.mubr.msk.f32.mxu0 %vm756_vm0, %v2021_v30  ;;  %5995 = vmatmul.mubr.msk.f32.vlgmr.msra.gmra.mxu1 %vm756_vm0, %v7230_v0  ;;  %v7610_v0 = vld [vmem:[%s8786_s5 + $0x20] sm:$0xf] }
 0x12f   : > { %5990 = vmatmul.mubr.msk.f32.gmra.mxu0 %vm756_vm0, %v2022_v15  ;;  %5997 = vmatprep.mubr.msk.f32.mxu1 %vm756_vm0, %v7255_v61  ;;  %v7621_v61 = vld [vmem:[#allocation2 + $0x38] sm:$0xff] }
 0x130   : > { %6093 = vmatpush3.msk.msra.mxu1 %vm1246_vm1, %v7238_v54  ;;  %6044 = vmatprep.mubr.msk.f32.mxu0 %vm756_vm0, %v2803_v24  ;;  %v7619_v54 = vld [vmem:[#allocation2 + $0x30] sm:$0xff]  ;;  %v7703_v15 = vld [vmem:[#allocation2 + $0x98] sm:$0xff]  ;;  %v7719_v24 = vld [vmem:[#allocation2 + $0xa8] sm:$0xff] }
 0x131   : > { %6192 = vmatprep.subr.msk.mxu1 %vm1246_vm1, %v7593_v18  ;;  %8888 = vst [vmem:[#allocation88_spill] sm:$0xff] %v7719_v24 }
 0x132   : > { %5998 = vmatmul.mubr.msk.f32.gmra.mxu1 %vm756_vm0, %v7248_v57  ;;  %v7635_v57 = vld [vmem:[#allocation2 + $0x48] sm:$0xff] }
 0x133   : > { %6045 = vmatmul.mubr.msk.f32.vlgmr.msra.gmra.mxu0 %vm756_vm0, %v2804_v29  ;;  %6000 = vmatprep.mubr.msk.f32.mxu1 %vm756_vm0, %v7283_v40  ;;  %v7647_v40 = vld [vmem:[#allocation2 + $0x58] sm:$0xff] }
 0x134   : > { %6143 = vmatpush3.msk.msra.mxu0 %vm1246_vm1, %v7246_v33  ;;  %6047 = vmatprep.mubr.msk.f32.mxu0 %vm756_vm0, %v7601_v41  ;;  %v7633_v33 = vld [vmem:[#allocation2 + $0x40] sm:$0xff] }
 0x135   : > { %6242 = vmatprep.subr.msk.mxu0 %vm1246_vm1, %v7610_v0 }
 0x136   : > { %6001 = vmatmul.mubr.msk.f32.gmra.mxu1 %vm756_vm0, %v7278_v37  ;;  %v7645_v37 = vld [vmem:[#allocation2 + $0x50] sm:$0xff] }
 0x137   : > { %6048 = vmatmul.mubr.msk.f32.gmra.mxu0 %vm756_vm0, %v7619_v54  ;;  %6003 = vmatprep.mubr.msk.f32.mxu1 %vm756_vm0, %v7305_v11  ;;  %v7659_v11 = vld [vmem:[#allocation2 + $0x68] sm:$0xff] }
 0x138   : > { %6050 = vmatprep.mubr.msk.f32.mxu0 %vm756_vm0, %v7621_v61 }
 0x13a   : > { %6004 = vmatmul.mubr.msk.f32.gmra.mxu1 %vm756_vm0, %v7301_v22  ;;  %v7657_v22 = vld [vmem:[#allocation2 + $0x60] sm:$0xff] }
 0x13b   : > { %6051 = vmatmul.mubr.msk.f32.gmra.mxu0 %vm756_vm0, %v7633_v33  ;;  %6006 = vmatprep.mubr.msk.f32.mxu1 %vm756_vm0, %v7325_v44  ;;  %v7671_v44 = vld [vmem:[#allocation2 + $0x78] sm:$0xff] }
 0x13c   : > { %6053 = vmatprep.mubr.msk.f32.mxu0 %vm756_vm0, %v7635_v57 }
 0x13e   : > { %6007 = vmatmul.mubr.msk.f32.gmra.mxu1 %vm756_vm0, %v7321_v7  ;;  %v7669_v7 = vld [vmem:[#allocation2 + $0x70] sm:$0xff] }
 0x13f   : > { %6054 = vmatmul.mubr.msk.f32.gmra.mxu0 %vm756_vm0, %v7645_v37  ;;  %6009 = vmatprep.mubr.msk.f32.mxu1 %vm756_vm0, %v7345_v13  ;;  %v7675_v13 = vpop.f32.mrf.mxu0 }
 0x140   : > { %6056 = vmatprep.mubr.msk.f32.mxu0 %vm756_vm0, %v7647_v40 }
 0x142   : > { %6010 = vmatmul.mubr.msk.f32.gmra.mxu1 %vm756_vm0, %v7341_v63  ;;  %v7685_v63 = vld [vmem:[#allocation2 + $0x80] sm:$0xff] }
 0x143   : > { %6057 = vmatmul.mubr.msk.f32.gmra.mxu0 %vm756_vm0, %v7657_v22  ;;  %6012 = vmatprep.mubr.msk.f32.mxu1 %vm756_vm0, %v7365_v50  ;;  %v7687_v50 = vld [vmem:[#allocation2 + $0x88] sm:$0xff] }
 0x144   : > { %6059 = vmatprep.mubr.msk.f32.mxu0 %vm756_vm0, %v7659_v11 }
 0x145   : > { %v7677_v2 = vpop.f32.mrf.mxu1 }
 0x146   : > { %6013 = vmatmul.mubr.msk.f32.gmra.mxu1 %vm756_vm0, %v7361_v38  ;;  %v7693_v38 = vpop.f32.mrf.mxu0 }
 0x147   : > { %6060 = vmatmul.mubr.msk.f32.gmra.mxu0 %vm756_vm0, %v7669_v7  ;;  %6015 = vmatprep.mubr.msk.f32.mxu1 %vm756_vm0, %v7385_v17  ;;  %v7689_v4 = vpop.f32.mrf.mxu1  ;;  %8887 = vst [vmem:[#allocation87_spill] sm:$0xff] %v7693_v38  ;;  %v7701_v17 = vld [vmem:[#allocation2 + $0x90] sm:$0xff]  ;;  %v7735_v38 = vld [vmem:[#allocation2 + $0xb8] sm:$0xff] }
 0x148   : > { %6062 = vmatprep.mubr.msk.f32.mxu0 %vm756_vm0, %v7671_v44  ;;  %8891 = vst [vmem:[#allocation91_spill] sm:$0xff] %v7735_v38 }
 0x149   : > { %v7705_v30 = vpop.f32.mrf.mxu1 }
 0x14a   : > { %6016 = vmatmul.mubr.msk.f32.gmra.mxu1 %vm756_vm0, %v7381_v27  ;;  %v7709_v27 = vpop.f32.mrf.mxu0 }
 0x14b   : > { %6063 = vmatmul.mubr.msk.f32.gmra.mxu0 %vm756_vm0, %v7685_v63  ;;  %6018 = vmatprep.mubr.msk.f32.mxu1 %vm756_vm0, %v7405_v58  ;;  %v7717_v58 = vld [vmem:[#allocation2 + $0xa0] sm:$0xff]  ;;  %v7721_v29 = vpop.f32.mrf.mxu1 }
 0x14c   : > { %6065 = vmatprep.mubr.msk.f32.mxu0 %vm756_vm0, %v7687_v50 }
 0x14d   : > { %v7737_v19 = vpop.f32.mrf.mxu1 }
 0x14e   : > { %6019 = vmatmul.mubr.msk.f32.gmra.mxu1 %vm756_vm0, %v7401_v53  ;;  %v7725_v53 = vpop.f32.mrf.mxu0 }
 0x14f   : > { %6066 = vmatmul.mubr.msk.f32.gmra.mxu0 %vm756_vm0, %v7701_v17  ;;  %6021 = vmatprep.mubr.msk.f32.mxu1 %vm756_vm0, %v7425_v56  ;;  %8889 = vst [vmem:[#allocation89_spill] sm:$0xff] %v7725_v53  ;;  %v7733_v56 = vld [vmem:[#allocation2 + $0xb0] sm:$0xff]  ;;  %v7751_v53 = vld [vmem:[#allocation2 + $0xc8] sm:$0xff]  ;;  %v7753_v6 = vpop.f32.mrf.mxu1 }
 0x150   : > { %6068 = vmatprep.mubr.msk.f32.mxu0 %vm756_vm0, %v7703_v15  ;;  %8890 = vst [vmem:[#allocation90_spill] sm:$0xff] %v7733_v56 }
 0x152   : > { %6022 = vmatmul.mubr.msk.f32.gmra.mxu1 %vm756_vm0, %v7421_v20  ;;  %v7741_v20 = vpop.f32.mrf.mxu0 }
 0x153   : > { %6069 = vmatmul.mubr.msk.f32.gmra.mxu0 %vm756_vm0, %v7717_v58  ;;  %6024 = vmatprep.mubr.msk.f32.mxu1 %vm756_vm0, %v7445_v45  ;;  %v7749_v45 = vld [vmem:[#allocation2 + $0xc0] sm:$0xff] }
 0x154   : > { %6071 = vmatprep.mubr.msk.f32.mxu0 %vm756_vm0, %v7719_v24  ;;  %v7771_v24 = vld [vmem:[#allocation2 + $0xd8] sm:$0xff] }
 0x155   : > { %8893 = vst [vmem:[#allocation93_spill] sm:$0xff] %v7771_v24 }
 0x156   : > { %6025 = vmatmul.mubr.msk.f32.gmra.mxu1 %vm756_vm0, %v7441_v28  ;;  %v7757_v28 = vpop.f32.mrf.mxu0 }
 0x157   : > { %6072 = vmatmul.mubr.msk.f32.gmra.mxu0 %vm756_vm0, %v7733_v56  ;;  %6027 = vmatprep.mubr.msk.f32.mxu1 %vm756_vm0, %v7465_v43  ;;  %8892 = vst [vmem:[#allocation92_spill] sm:$0xff] %v7757_v28  ;;  %v7765_v43 = vld [vmem:[#allocation2 + $0xd0] sm:$0xff]  ;;  %v7769_v56 = vpop.f32.mrf.mxu1  ;;  %v7788_v28 = vld [vmem:[#allocation2 + $0xe8] sm:$0xff] }
 0x158   : > { %6074 = vmatprep.mubr.msk.f32.mxu0 %vm756_vm0, %v7735_v38  ;;  %v2439_v38 = vmul.f32 %v7480_v39, %v7507_v14  ;;  %v2441_v14 = vmul.f32 %v7505_v10, %v7537_v47  ;;  %8895 = vst [vmem:[#allocation95_spill] sm:$0xff] %v7788_v28  ;;  %v7801_v47 = vld [vmem:[#allocation2 + $0xf0] sm:$0xff]  ;;  %v2443_v10 = vmul.f32 %v7533_v16, %v7570_v59  ;;  %v7823_v16 = vld [vmem:[#allocation2 + $0x100] sm:$0xff] }
 0x159   : > { %v7786_v39 = vpop.f32.mrf.mxu1  ;;  %8897 = vst [vmem:[#allocation97_spill] sm:$0xff] %v7801_v47 }
 0x15a   : > { %6028 = vmatmul.mubr.msk.f32.gmra.mxu1 %vm756_vm0, %v7461_v49  ;;  %v7775_v49 = vpop.f32.mrf.mxu0 }
 0x15b   : > { %6075 = vmatmul.mubr.msk.f32.gmra.mxu0 %vm756_vm0, %v7749_v45  ;;  %6030 = vmatprep.mubr.msk.f32.mxu1 %vm756_vm0, %v7487_v25  ;;  %v7782_v25 = vld [vmem:[#allocation2 + $0xe0] sm:$0xff] }
 0x15c   : > { %6077 = vmatprep.mubr.msk.f32.mxu0 %vm756_vm0, %v7751_v53  ;;  %8894 = vst [vmem:[#allocation94_spill] sm:$0xff] %v7782_v25 }
 0x15e   : > { %6031 = vmatmul.mubr.msk.f32.gmra.mxu1 %vm756_vm0, %v7483_v1  ;;  %v7792_v1 = vpop.f32.mrf.mxu0 }
 0x15f   : > { %6078 = vmatmul.mubr.msk.f32.gmra.mxu0 %vm756_vm0, %v7765_v43  ;;  %6033 = vmatprep.mubr.msk.f32.mxu1 %vm756_vm0, %v2439_v38  ;;  %8896 = vst [vmem:[#allocation96_spill] sm:$0xff] %v7792_v1  ;;  %v2442_v38 = vmul.f32 %v7502_v55, %v7535_v5  ;;  %v2444_v5 = vmul.f32 %v7530_v26, %v7568_v31 }
 0x160   : > { %6080 = vmatprep.mubr.msk.f32.mxu0 %vm756_vm0, %v7771_v24 }
 0x162   : > { %6034 = vmatmul.mubr.msk.f32.gmra.mxu1 %vm756_vm0, %v7510_v36  ;;  %v7807_v36 = vld [vmem:[#allocation2 + $0xf8] sm:$0xff] }
 0x163   : > { %6081 = vmatmul.mubr.msk.f32.gmra.mxu0 %vm756_vm0, %v7782_v25  ;;  %6036 = vmatprep.mubr.msk.f32.mxu1 %vm756_vm0, %v2441_v14  ;;  %8898 = vst [vmem:[#allocation98_spill] sm:$0xff] %v7807_v36 }
 0x164   : > { %6083 = vmatprep.mubr.msk.f32.mxu0 %vm756_vm0, %v7788_v28  ;;  %v7805_v24 = vpop.f32.mrf.mxu1  ;;  %v7809_v1 = vpop.f32.mrf.mxu0 }
 0x166   : > { %6037 = vmatmul.mubr.msk.f32.gmra.mxu1 %vm756_vm0, %v2442_v38  ;;  %v7814_v55 = vpop.f32.mrf.mxu1  ;;  %v7819_v14 = vpop.f32.mrf.mxu0  ;;  %v7827_v38 = vld [vmem:[#allocation2 + $0x108] sm:$0xff] }
 0x167   : > { %6084 = vmatmul.mubr.msk.f32.gmra.mxu0 %vm756_vm0, %v7801_v47  ;;  %6039 = vmatprep.mubr.msk.f32.mxu1 %vm756_vm0, %v2443_v10  ;;  %8899 = vst [vmem:[#allocation99_spill] sm:$0xff] %v7819_v14  ;;  %v7842_v14 = vld [vmem:[#allocation2 + $0x110] sm:$0xff] }
 0x168   : > { %6086 = vmatprep.mubr.msk.f32.mxu0 %vm756_vm0, %v7807_v36  ;;  %v7825_v28 = vpop.f32.mrf.mxu1  ;;  %v7829_v25 = vpop.f32.mrf.mxu0 }
 0x16a   : > { %6040 = vmatmul.mubr.msk.f32.gmra.mxu1 %vm756_vm0, %v2444_v5  ;;  %v7834_v10 = vpop.f32.mrf.mxu1  ;;  %v7838_v26 = vpop.f32.mrf.mxu0 }
 0x16b   : > { %6087 = vmatmul.mubr.msk.f32.gmra.mxu0 %vm756_vm0, %v7823_v16  ;;  %6094 = vmatprep.mubr.msk.f32.mxu1 %vm756_vm0, %v7207_v8  ;;  %8900 = vst [vmem:[#allocation100_spill] sm:$0xff] %v7838_v26 }
 0x16c   : > { %6089 = vmatprep.mubr.msk.f32.mxu0 %vm756_vm0, %v7827_v38  ;;  %v7844_v36 = vpop.f32.mrf.mxu1 }
 0x16d   : > { %8901 = vst [vmem:[#allocation101_spill] sm:$0xff] %v7844_v36  ;;  %v7846_v47 = vpop.f32.mrf.mxu0 }
 0x16e   : > { %6095 = vmatmul.mubr.msk.f32.vlgmr.msra.gmra.mxu1 %vm756_vm0, %v7224_v32  ;;  %v7852_v5 = vpop.f32.mrf.mxu1 }
 0x16f   : > { %6090 = vmatmul.mubr.msk.f32.gmra.mxu0 %vm756_vm0, %v7842_v14  ;;  %6097 = vmatprep.mubr.msk.f32.mxu1 %vm756_vm0, %v7272_v9  ;;  %v7856_v8 = vpop.f32.mrf.mxu0 }
 0x170   : > { %8902 = vst [vmem:[#allocation102_spill] sm:$0xff] %v7856_v8  ;;  %6144 = vmatprep.mubr.msk.f32.mxu0 %vm756_vm0, %v7215_v34  ;;  %6193 = vmatpush3.msk.msra.mxu1 %vm1246_vm1, %v7593_v18  ;;  %v7862_v26 = vpop.f32.mrf.mxu1  ;;  %v8905_v8 = vld [vmem:[#allocation14_spill] sm:$0xff] }
 0x171   : > { %v7864_v36 = vpop.f32.mrf.mxu0 }
 0x172   : > { %6098 = vmatmul.mubr.msk.f32.gmra.mxu1 %vm756_vm0, %v7266_v62  ;;  %v7870_v32 = vpop.f32.mrf.mxu1 }
 0x173   : > { %6145 = vmatmul.mubr.msk.f32.vlgmr.msra.gmra.mxu0 %vm756_vm0, %v7232_v48  ;;  %8903 = vst [vmem:[#allocation103_spill] sm:$0xff] %v7870_v32  ;;  %6100 = vmatprep.mubr.msk.f32.mxu1 %vm756_vm0, %v7295_v46  ;;  %v7876_v34 = vpop.f32.mrf.mxu0  ;;  %v8904_v46 = vld [vmem:[#allocation21_spill] sm:$0xff]  ;;  %v8906_v32 = vld [vmem:[#allocation19_spill] sm:$0xff] }
 0x174   : > { %6243 = vmatpush3.msk.msra.mxu0 %vm1246_vm1, %v7610_v0  ;;  %6147 = vmatprep.mubr.msk.f32.mxu0 %vm756_vm0, %v7257_v3 }
 0x175   : > { %v5896_v9 = vpop.f32.mrf.mxu1  ;;  %v5946_v48 = vpop.f32.mrf.mxu0 }
 0x176   : > { %v1646_v18 = vadd.f32 %v5896_v9, %v7675_v13  ;;  %6101 = vmatmul.mubr.msk.f32.gmra.mxu1 %vm756_vm0, %v7290_v42  ;;  %v8907_v13 = vld [vmem:[#allocation13_spill] sm:$0xff] }
 0x177   : > { %6148 = vmatmul.mubr.msk.f32.gmra.mxu0 %vm756_vm0, %v7250_v51  ;;  %v7885_v62 = vpop.f32.mrf.mxu1  ;;  %6103 = vmatprep.mubr.msk.f32.mxu1 %vm756_vm0, %v8904_v46  ;;  %v8908_v51 = vld [vmem:[#allocation27_spill] sm:$0xff]  ;;  %v7900_v9 = vpop.f32.mrf.mxu0  ;;  %v8910_v46 = vld [vmem:[#allocation18_spill] sm:$0xff] }
 0x178   : > { %v7889_v0 = vadd.f32 %v5946_v48, %v1646_v18  ;;  %6150 = vmatprep.mubr.msk.f32.mxu0 %vm756_vm0, %v8905_v8  ;;  %8909 = vst [vmem:[#allocation21_spill] sm:$0xff] %v7900_v9  ;;  %v8911_v48 = vld [vmem:[#allocation25_spill] sm:$0xff]  ;;  %v8916_v9 = vld [vmem:[#allocation31_spill] sm:$0xff] }
 0x17a   : > { %v5899_v3 = vpop.f32.mrf.mxu1  ;;  %6104 = vmatmul.mubr.msk.f32.gmra.mxu1 %vm756_vm0, %v8906_v32  ;;  %v8912_v32 = vld [vmem:[#allocation17_spill] sm:$0xff] }
 0x17b   : > { %v1656_v42 = vadd.f32 %v5899_v3, %v7709_v27  ;;  %6151 = vmatmul.mubr.msk.f32.gmra.mxu0 %vm756_vm0, %v8907_v13  ;;  %6106 = vmatprep.mubr.msk.f32.mxu1 %vm756_vm0, %v8908_v51  ;;  %v8913_v27 = vld [vmem:[#allocation33_spill] sm:$0xff]  ;;  %v8915_v13 = vld [vmem:[#allocation24_spill] sm:$0xff] }
 0x17c   : > { %6153 = vmatprep.mubr.msk.f32.mxu0 %vm756_vm0, %v8910_v46  ;;  %v7912_v3 = vpop.f32.mrf.mxu1 }
 0x17d   : > { %8914 = vst [vmem:[#allocation14_spill] sm:$0xff] %v7912_v3  ;;  %v8921_v3 = vld [vmem:[#allocation37_spill] sm:$0xff] }
 0x17e   : > { %v5949_v18 = vpop.f32.mrf.mxu0  ;;  %6107 = vmatmul.mubr.msk.f32.gmra.mxu1 %vm756_vm0, %v8911_v48  ;;  %v8917_v48 = vld [vmem:[#allocation23_spill] sm:$0xff] }
 0x17f   : > { %v7906_v8 = vadd.f32 %v5949_v18, %v1656_v42  ;;  %6154 = vmatmul.mubr.msk.f32.gmra.mxu0 %vm756_vm0, %v8912_v32  ;;  %6109 = vmatprep.mubr.msk.f32.mxu1 %vm756_vm0, %v8913_v27  ;;  %v8918_v42 = vld [vmem:[#allocation39_spill] sm:$0xff]  ;;  %v8920_v32 = vld [vmem:[#allocation30_spill] sm:$0xff] }
 0x180   : > { %6156 = vmatprep.mubr.msk.f32.mxu0 %vm756_vm0, %v8915_v13  ;;  %v7923_v18 = vpop.f32.mrf.mxu0 }
 0x181   : > { %8919 = vst [vmem:[#allocation19_spill] sm:$0xff] %v7923_v18  ;;  %v8926_v18 = vld [vmem:[#allocation43_spill] sm:$0xff] }
 0x182   : > { %v5902_v51 = vpop.f32.mrf.mxu1  ;;  %6110 = vmatmul.mubr.msk.f32.gmra.mxu1 %vm756_vm0, %v8916_v9  ;;  %v8922_v9 = vld [vmem:[#allocation29_spill] sm:$0xff] }
 0x183   : > { %v1666_v46 = vadd.f32 %v5902_v51, %v7741_v20  ;;  %6157 = vmatmul.mubr.msk.f32.gmra.mxu0 %vm756_vm0, %v8917_v48  ;;  %6112 = vmatprep.mubr.msk.f32.mxu1 %vm756_vm0, %v8918_v42  ;;  %v8923_v20 = vld [vmem:[#allocation45_spill] sm:$0xff]  ;;  %v8925_v48 = vld [vmem:[#allocation36_spill] sm:$0xff] }
 0x184   : > { %6159 = vmatprep.mubr.msk.f32.mxu0 %vm756_vm0, %v8920_v32  ;;  %v7935_v51 = vpop.f32.mrf.mxu1 }
 0x185   : > { %8924 = vst [vmem:[#allocation13_spill] sm:$0xff] %v7935_v51  ;;  %v8931_v51 = vld [vmem:[#allocation49_spill] sm:$0xff] }
 0x186   : > { %v5952_v27 = vpop.f32.mrf.mxu0  ;;  %6113 = vmatmul.mubr.msk.f32.gmra.mxu1 %vm756_vm0, %v8921_v3  ;;  %v8927_v3 = vld [vmem:[#allocation35_spill] sm:$0xff] }
 0x187   : > { %v7929_v13 = vadd.f32 %v5952_v27, %v1666_v46  ;;  %6160 = vmatmul.mubr.msk.f32.gmra.mxu0 %vm756_vm0, %v8922_v9  ;;  %6115 = vmatprep.mubr.msk.f32.mxu1 %vm756_vm0, %v8923_v20  ;;  %v8928_v46 = vld [vmem:[#allocation51_spill] sm:$0xff]  ;;  %v8930_v9 = vld [vmem:[#allocation42_spill] sm:$0xff] }
 0x188   : > { %6162 = vmatprep.mubr.msk.f32.mxu0 %vm756_vm0, %v8925_v48  ;;  %v7946_v27 = vpop.f32.mrf.mxu0 }
 0x189   : > { %8929 = vst [vmem:[#allocation27_spill] sm:$0xff] %v7946_v27  ;;  %v8936_v27 = vld [vmem:[#allocation55_spill] sm:$0xff] }
 0x18a   : > { %v5905_v42 = vpop.f32.mrf.mxu1  ;;  %6116 = vmatmul.mubr.msk.f32.gmra.mxu1 %vm756_vm0, %v8926_v18  ;;  %v8932_v18 = vld [vmem:[#allocation41_spill] sm:$0xff] }
 0x18b   : > { %v1676_v32 = vadd.f32 %v5905_v42, %v7775_v49  ;;  %6163 = vmatmul.mubr.msk.f32.gmra.mxu0 %vm756_vm0, %v8927_v3  ;;  %6118 = vmatprep.mubr.msk.f32.mxu1 %vm756_vm0, %v8928_v46  ;;  %v8933_v49 = vld [vmem:[#allocation57_spill] sm:$0xff]  ;;  %v8935_v3 = vld [vmem:[#allocation48_spill] sm:$0xff] }
 0x18c   : > { %6165 = vmatprep.mubr.msk.f32.mxu0 %vm756_vm0, %v8930_v9  ;;  %v7958_v42 = vpop.f32.mrf.mxu1 }
 0x18d   : > { %8934 = vst [vmem:[#allocation18_spill] sm:$0xff] %v7958_v42  ;;  %v8941_v42 = vld [vmem:[#allocation61_spill] sm:$0xff] }
 0x18e   : > { %v5955_v20 = vpop.f32.mrf.mxu0  ;;  %6119 = vmatmul.mubr.msk.f32.gmra.mxu1 %vm756_vm0, %v8931_v51  ;;  %v8937_v51 = vld [vmem:[#allocation47_spill] sm:$0xff] }
 0x18f   : > { %v7952_v48 = vadd.f32 %v5955_v20, %v1676_v32  ;;  %6166 = vmatmul.mubr.msk.f32.gmra.mxu0 %vm756_vm0, %v8932_v18  ;;  %6121 = vmatprep.mubr.msk.f32.mxu1 %vm756_vm0, %v8933_v49  ;;  %v8938_v32 = vld [vmem:[#allocation63_spill] sm:$0xff]  ;;  %v8940_v18 = vld [vmem:[#allocation54_spill] sm:$0xff] }
 0x190   : > { %6168 = vmatprep.mubr.msk.f32.mxu0 %vm756_vm0, %v8935_v3  ;;  %v7969_v20 = vpop.f32.mrf.mxu0 }
 0x191   : > { %8939 = vst [vmem:[#allocation25_spill] sm:$0xff] %v7969_v20  ;;  %v8946_v20 = vld [vmem:[#allocation67_spill] sm:$0xff] }
 0x192   : > { %v5908_v46 = vpop.f32.mrf.mxu1  ;;  %6122 = vmatmul.mubr.msk.f32.gmra.mxu1 %vm756_vm0, %v8936_v27  ;;  %v8942_v27 = vld [vmem:[#allocation53_spill] sm:$0xff] }
 0x193   : > { %v1686_v9 = vadd.f32 %v5908_v46, %v7809_v1  ;;  %6169 = vmatmul.mubr.msk.f32.gmra.mxu0 %vm756_vm0, %v8937_v51  ;;  %6124 = vmatprep.mubr.msk.f32.mxu1 %vm756_vm0, %v8938_v32  ;;  %v8943_v1 = vld [vmem:[#allocation69_spill] sm:$0xff]  ;;  %v8945_v51 = vld [vmem:[#allocation60_spill] sm:$0xff] }
 0x194   : > { %6171 = vmatprep.mubr.msk.f32.mxu0 %vm756_vm0, %v8940_v18  ;;  %v7981_v46 = vpop.f32.mrf.mxu1 }
 0x195   : > { %8944 = vst [vmem:[#allocation17_spill] sm:$0xff] %v7981_v46  ;;  %v8951_v46 = vld [vmem:[#allocation73_spill] sm:$0xff] }
 0x196   : > { %v5958_v49 = vpop.f32.mrf.mxu0  ;;  %6125 = vmatmul.mubr.msk.f32.gmra.mxu1 %vm756_vm0, %v8941_v42  ;;  %v8947_v42 = vld [vmem:[#allocation59_spill] sm:$0xff] }
 0x197   : > { %v7975_v3 = vadd.f32 %v5958_v49, %v1686_v9  ;;  %6172 = vmatmul.mubr.msk.f32.gmra.mxu0 %vm756_vm0, %v8942_v27  ;;  %6127 = vmatprep.mubr.msk.f32.mxu1 %vm756_vm0, %v8943_v1  ;;  %v8948_v9 = vld [vmem:[#allocation75_spill] sm:$0xff]  ;;  %v8950_v27 = vld [vmem:[#allocation66_spill] sm:$0xff] }
 0x198   : > { %6174 = vmatprep.mubr.msk.f32.mxu0 %vm756_vm0, %v8945_v51  ;;  %v7992_v49 = vpop.f32.mrf.mxu0 }
 0x199   : > { %8949 = vst [vmem:[#allocation33_spill] sm:$0xff] %v7992_v49  ;;  %v8955_v49 = vld [vmem:[#allocation79_spill] sm:$0xff] }
 0x19a   : > { %v5911_v32 = vpop.f32.mrf.mxu1  ;;  %6128 = vmatmul.mubr.msk.f32.gmra.mxu1 %vm756_vm0, %v8946_v20  ;;  %v8952_v20 = vld [vmem:[#allocation65_spill] sm:$0xff] }
 0x19b   : > { %v1696_v18 = vadd.f32 %v5911_v32, %v7829_v25  ;;  %6175 = vmatmul.mubr.msk.f32.gmra.mxu0 %vm756_vm0, %v8947_v42  ;;  %6130 = vmatprep.mubr.msk.f32.mxu1 %vm756_vm0, %v8948_v9  ;;  %v8953_v25 = vld [vmem:[#allocation81_spill] sm:$0xff]  ;;  %v8954_v42 = vld [vmem:[#allocation72_spill] sm:$0xff] }
 0x19c   : > { %6177 = vmatprep.mubr.msk.f32.mxu0 %vm756_vm0, %v8950_v27  ;;  %v8004_v32 = vpop.f32.mrf.mxu1 }
 0x19e   : > { %v5961_v1 = vpop.f32.mrf.mxu0  ;;  %6131 = vmatmul.mubr.msk.f32.gmra.mxu1 %vm756_vm0, %v8951_v46  ;;  %v8956_v46 = vld [vmem:[#allocation71_spill] sm:$0xff] }
 0x19f   : > { %v7998_v51 = vadd.f32 %v5961_v1, %v1696_v18  ;;  %6178 = vmatmul.mubr.msk.f32.gmra.mxu0 %vm756_vm0, %v8952_v20  ;;  %6133 = vmatprep.mubr.msk.f32.mxu1 %vm756_vm0, %v8953_v25  ;;  %v8957_v1 = vld [vmem:[#allocation78_spill] sm:$0xff]  ;;  %v3255_v20 = vmul.f32 %v7554_v21, %v7582_v52 }
 0x1a0   : > { %6180 = vmatprep.mubr.msk.f32.mxu0 %vm756_vm0, %v8954_v42  ;;  %v8015_v18 = vpop.f32.mrf.mxu0  ;;  %v8958_v42 = vld [vmem:[#allocation77_spill] sm:$0xff]  ;;  %v3646_v21 = vld [vmem:[#allocation2 + $0x11f] sm:$0xff] }
 0x1a2   : > { %v5914_v9 = vpop.f32.mrf.mxu1  ;;  %6134 = vmatmul.mubr.msk.f32.gmra.mxu1 %vm756_vm0, %v8955_v49  ;;  %v3645_v49 = vld [vmem:[#allocation2 + $0x117] sm:$0xff] }
 0x1a3   : > { %v1706_v27 = vadd.f32 %v5914_v9, %v7846_v47  ;;  %6181 = vmatmul.mubr.msk.f32.gmra.mxu0 %vm756_vm0, %v8956_v46  ;;  %6136 = vmatprep.mubr.msk.f32.mxu1 %vm756_vm0, %v7562_v23  ;;  %v3256_v23 = vmul.f32 %v7551_v35, %v7578_v12  ;;  %v8959_v46 = vld [vmem:[#allocation84_spill] sm:$0xff] }
 0x1a4   : > { %6183 = vmatprep.mubr.msk.f32.mxu0 %vm756_vm0, %v8957_v1  ;;  %v8030_v9 = vpop.f32.mrf.mxu1  ;;  %v3677_v1 = vmul.f32 %v3645_v49, %v7570_v59 }
 0x1a6   : > { %v5964_v25 = vpop.f32.mrf.mxu0  ;;  %6137 = vmatmul.mubr.msk.f32.gmra.mxu1 %vm756_vm0, %v7557_v60 }
 0x1a7   : > { %v8023_v47 = vadd.f32 %v5964_v25, %v1706_v27  ;;  %6184 = vmatmul.mubr.msk.f32.gmra.mxu0 %vm756_vm0, %v8958_v42  ;;  %6139 = vmatprep.mubr.msk.f32.mxu1 %vm756_vm0, %v3255_v20  ;;  %v8960_v25 = vld [vmem:[#allocation83_spill] sm:$0xff]  ;;  %v3678_v42 = vmul.f32 %v3646_v21, %v7568_v31 }
 0x1a8   : > { %6186 = vmatprep.mubr.msk.f32.mxu0 %vm756_vm0, %v8959_v46  ;;  %v8041_v35 = vpop.f32.mrf.mxu0 }
 0x1aa   : > { %v5917_v60 = vpop.f32.mrf.mxu1  ;;  %6140 = vmatmul.mubr.msk.f32.gmra.mxu1 %vm756_vm0, %v3256_v23 }
 0x1ab   : > { %v1716_v27 = vadd.f32 %v5917_v60, %v7864_v36  ;;  %6187 = vmatmul.mubr.msk.f32.gmra.mxu0 %vm756_vm0, %v8960_v25  ;;  %6194 = vmatprep.mubr.msk.f32.mxu1 %vm756_vm0, %v7601_v41  ;;  %v8961_v41 = vld [vmem:[#allocation9_spill] sm:$0xff] }
 0x1ac   : > { %6189 = vmatprep.mubr.msk.f32.mxu0 %vm756_vm0, %v3677_v1  ;;  %v1710_v20 = vpop.f32.mrf.mxu1 }
 0x1ad   : > { %v1711_v59 = vadd.f32 %v1710_v20, %v7876_v34  ;;  %v8963_v34 = vld [vmem:[#allocation12_spill] sm:$0xff] }
 0x1ae   : > { %v5967_v46 = vpop.f32.mrf.mxu0  ;;  %6195 = vmatmul.mubr.msk.f32.vlgmr.msra.gmra.mxu1 %vm756_vm0, %v7619_v54  ;;  %v8962_v54 = vld [vmem:[#allocation10_spill] sm:$0xff] }
 0x1af   : > { %v8048_v36 = vadd.f32 %v5967_v46, %v1716_v27  ;;  %6190 = vmatmul.mubr.msk.f32.gmra.mxu0 %vm756_vm0, %v3678_v42  ;;  %6197 = vmatprep.mubr.msk.f32.mxu1 %vm756_vm0, %v7621_v61 }
 0x1b0   : > { %6244 = vmatprep.mubr.msk.f32.mxu0 %vm756_vm0, %v8961_v41  ;;  %v2260_v49 = vpop.f32.mrf.mxu0 }
 0x1b1   : > { %v8055_v23 = vadd.f32 %v2260_v49, %v1711_v59 }
 0x1b2   : > { %v5920_v31 = vpop.f32.mrf.mxu1  ;;  %6198 = vmatmul.mubr.msk.f32.gmra.mxu1 %vm756_vm0, %v7633_v33  ;;  %v8964_v33 = vld [vmem:[#allocation11_spill] sm:$0xff] }
 0x1b3   : > { %6245 = vmatmul.mubr.msk.f32.vlgmr.msra.gmra.mxu0 %vm756_vm0, %v8962_v54  ;;  %6200 = vmatprep.mubr.msk.f32.mxu1 %vm756_vm0, %v7635_v57  ;;  %v1726_v21 = vadd.f32 %v5920_v31, %v7677_v2  ;;  %v8965_v57 = vld [vmem:[#allocation16_spill] sm:$0xff] }
 0x1b4   : > { %6247 = vmatprep.mubr.msk.f32.mxu0 %vm756_vm0, %v8963_v34  ;;  %v1720_v61 = vpop.f32.mrf.mxu1 }
 0x1b5   : > { %v1721_v60 = vadd.f32 %v1720_v61, %v7689_v4  ;;  %v8967_v4 = vld [vmem:[#allocation22_spill] sm:$0xff] }
 0x1b6   : > { %v5970_v1 = vpop.f32.mrf.mxu0  ;;  %6201 = vmatmul.mubr.msk.f32.gmra.mxu1 %vm756_vm0, %v7645_v37  ;;  %v8966_v37 = vld [vmem:[#allocation15_spill] sm:$0xff] }
 0x1b7   : > { %v8069_v27 = vadd.f32 %v5970_v1, %v1726_v21  ;;  %6248 = vmatmul.mubr.msk.f32.gmra.mxu0 %vm756_vm0, %v8964_v33  ;;  %6203 = vmatprep.mubr.msk.f32.mxu1 %vm756_vm0, %v7647_v40  ;;  %v8976_v33 = vld [vmem:[#allocation46_spill] sm:$0xff] }
 0x1b8   : > { %6250 = vmatprep.mubr.msk.f32.mxu0 %vm756_vm0, %v8965_v57  ;;  %v2270_v25 = vpop.f32.mrf.mxu0 }
 0x1b9   : > { %v8077_v20 = vadd.f32 %v2270_v25, %v1721_v60 }
 0x1ba   : > { %v5923_v2 = vpop.f32.mrf.mxu1  ;;  %6204 = vmatmul.mubr.msk.f32.gmra.mxu1 %vm756_vm0, %v7657_v22  ;;  %v8968_v22 = vld [vmem:[#allocation20_spill] sm:$0xff] }
 0x1bb   : > { %6251 = vmatmul.mubr.msk.f32.gmra.mxu0 %vm756_vm0, %v8966_v37  ;;  %6206 = vmatprep.mubr.msk.f32.mxu1 %vm756_vm0, %v7659_v11  ;;  %v1736_v42 = vadd.f32 %v5923_v2, %v7705_v30  ;;  %v8969_v11 = vld [vmem:[#allocation28_spill] sm:$0xff]  ;;  %v8977_v2 = vld [vmem:[#allocation90_spill] sm:$0xff] }
 0x1bc   : > { %6253 = vmatprep.mubr.msk.f32.mxu0 %vm756_vm0, %v8967_v4  ;;  %v1730_v40 = vpop.f32.mrf.mxu1 }
 0x1bd   : > { %v1731_v59 = vadd.f32 %v1730_v40, %v7721_v29  ;;  %v8971_v29 = vld [vmem:[#allocation34_spill] sm:$0xff]  ;;  %v8979_v40 = vld [vmem:[#allocation91_spill] sm:$0xff] }
 0x1be   : > { %v5973_v46 = vpop.f32.mrf.mxu0  ;;  %6207 = vmatmul.mubr.msk.f32.gmra.mxu1 %vm756_vm0, %v7669_v7  ;;  %v8970_v7 = vld [vmem:[#allocation26_spill] sm:$0xff] }
 0x1bf   : > { %v8091_v41 = vadd.f32 %v5973_v46, %v1736_v42  ;;  %6254 = vmatmul.mubr.msk.f32.gmra.mxu0 %vm756_vm0, %v8968_v22  ;;  %6209 = vmatprep.mubr.msk.f32.mxu1 %vm756_vm0, %v7671_v44  ;;  %v8980_v42 = vld [vmem:[#allocation52_spill] sm:$0xff]  ;;  %v8981_v22 = vld [vmem:[#allocation50_spill] sm:$0xff] }
 0x1c0   : > { %6256 = vmatprep.mubr.msk.f32.mxu0 %vm756_vm0, %v8969_v11  ;;  %v2280_v49 = vpop.f32.mrf.mxu0 }
 0x1c1   : > { %v8099_v31 = vadd.f32 %v2280_v49, %v1731_v59 }
 0x1c2   : > { %v5926_v30 = vpop.f32.mrf.mxu1  ;;  %6210 = vmatmul.mubr.msk.f32.gmra.mxu1 %vm756_vm0, %v7685_v63  ;;  %v8972_v63 = vld [vmem:[#allocation32_spill] sm:$0xff] }
 0x1c3   : > { %6257 = vmatmul.mubr.msk.f32.gmra.mxu0 %vm756_vm0, %v8970_v7  ;;  %6212 = vmatprep.mubr.msk.f32.mxu1 %vm756_vm0, %v7687_v50  ;;  %v1746_v54 = vadd.f32 %v5926_v30, %v7737_v19  ;;  %v8973_v50 = vld [vmem:[#allocation40_spill] sm:$0xff] }
 0x1c4   : > { %6259 = vmatprep.mubr.msk.f32.mxu0 %vm756_vm0, %v8971_v29  ;;  %v1740_v44 = vpop.f32.mrf.mxu1 }
 0x1c5   : > { %v1741_v61 = vadd.f32 %v1740_v44, %v7753_v6  ;;  %v8975_v6 = vld [vmem:[#allocation88_spill] sm:$0xff]  ;;  %v8984_v44 = vld [vmem:[#allocation93_spill] sm:$0xff] }
 0x1c6   : > { %v5976_v34 = vpop.f32.mrf.mxu0  ;;  %6213 = vmatmul.mubr.msk.f32.gmra.mxu1 %vm756_vm0, %v7701_v17  ;;  %v8974_v17 = vld [vmem:[#allocation38_spill] sm:$0xff] }
 0x1c7   : > { %v8113_v21 = vadd.f32 %v5976_v34, %v1746_v54  ;;  %6260 = vmatmul.mubr.msk.f32.gmra.mxu0 %vm756_vm0, %v8972_v63  ;;  %6215 = vmatprep.mubr.msk.f32.mxu1 %vm756_vm0, %v7703_v15  ;;  %v8989_v63 = vld [vmem:[#allocation70_spill] sm:$0xff] }
 0x1c8   : > { %6262 = vmatprep.mubr.msk.f32.mxu0 %vm756_vm0, %v8973_v50  ;;  %v2290_v1 = vpop.f32.mrf.mxu0 }
 0x1c9   : > { %v8121_v60 = vadd.f32 %v2290_v1, %v1741_v61  ;;  %v8986_v61 = vld [vmem:[#allocation94_spill] sm:$0xff] }
 0x1ca   : > { %v5929_v19 = vpop.f32.mrf.mxu1  ;;  %6216 = vmatmul.mubr.msk.f32.gmra.mxu1 %vm756_vm0, %v7717_v58  ;;  %v8978_v58 = vld [vmem:[#allocation44_spill] sm:$0xff] }
 0x1cb   : > { %6263 = vmatmul.mubr.msk.f32.gmra.mxu0 %vm756_vm0, %v8974_v17  ;;  %6218 = vmatprep.mubr.msk.f32.mxu1 %vm756_vm0, %v8975_v6  ;;  %v1756_v57 = vadd.f32 %v5929_v19, %v7769_v56  ;;  %v8990_v17 = vld [vmem:[#allocation97_spill] sm:$0xff] }
 0x1cc   : > { %6265 = vmatprep.mubr.msk.f32.mxu0 %vm756_vm0, %v8976_v33  ;;  %v1750_v15 = vpop.f32.mrf.mxu1 }
 0x1cd   : > { %v1751_v37 = vadd.f32 %v1750_v15, %v7786_v39  ;;  %v8982_v39 = vld [vmem:[#allocation58_spill] sm:$0xff]  ;;  %v8991_v15 = vld [vmem:[#allocation68_spill] sm:$0xff] }
 0x1ce   : > { %v5979_v25 = vpop.f32.mrf.mxu0  ;;  %6219 = vmatmul.mubr.msk.f32.gmra.mxu1 %vm756_vm0, %v8977_v2 }
 0x1cf   : > { %v8135_v4 = vadd.f32 %v5979_v25, %v1756_v57  ;;  %6266 = vmatmul.mubr.msk.f32.gmra.mxu0 %vm756_vm0, %v8978_v58  ;;  %6221 = vmatprep.mubr.msk.f32.mxu1 %vm756_vm0, %v8979_v40  ;;  %v8992_v57 = vld [vmem:[#allocation98_spill] sm:$0xff]  ;;  %v8993_v25 = vld [vmem:[#allocation76_spill] sm:$0xff] }
 0x1d0   : > { %6268 = vmatprep.mubr.msk.f32.mxu0 %vm756_vm0, %v8980_v42  ;;  %v2300_v46 = vpop.f32.mrf.mxu0  ;;  %v8994_v58 = vld [vmem:[#allocation74_spill] sm:$0xff] }
 0x1d1   : > { %v8143_v59 = vadd.f32 %v2300_v46, %v1751_v37  ;;  %v4067_v42 = vld [vmem:[#allocation2 + $0x118] sm:$0xff]  ;;  %v8996_v46 = vld [vmem:[#allocation101_spill] sm:$0xff] }
 0x1d2   : > { %v5932_v56 = vpop.f32.mrf.mxu1  ;;  %6222 = vmatmul.mubr.msk.f32.gmra.mxu1 %vm756_vm0, %v7749_v45  ;;  %v8983_v45 = vld [vmem:[#allocation56_spill] sm:$0xff] }
 0x1d3   : > { %6269 = vmatmul.mubr.msk.f32.gmra.mxu0 %vm756_vm0, %v8981_v22  ;;  %6224 = vmatprep.mubr.msk.f32.mxu1 %vm756_vm0, %v7751_v53  ;;  %v1766_v49 = vadd.f32 %v5932_v56, %v7805_v24  ;;  %v8985_v53 = vld [vmem:[#allocation64_spill] sm:$0xff] }
 0x1d4   : > { %6271 = vmatprep.mubr.msk.f32.mxu0 %vm756_vm0, %v8982_v39  ;;  %v1760_v11 = vpop.f32.mrf.mxu1  ;;  %v4457_v39 = vld [vmem:[#allocation2 + $0x119] sm:$0xff] }
 0x1d5   : > { %v1761_v7 = vadd.f32 %v1760_v11, %v7814_v55  ;;  %v8988_v55 = vld [vmem:[#allocation95_spill] sm:$0xff] }
 0x1d6   : > { %v5982_v30 = vpop.f32.mrf.mxu0  ;;  %6225 = vmatmul.mubr.msk.f32.gmra.mxu1 %vm756_vm0, %v7765_v43  ;;  %v8987_v43 = vld [vmem:[#allocation62_spill] sm:$0xff] }
 0x1d7   : > { %v8157_v29 = vadd.f32 %v5982_v30, %v1766_v49  ;;  %6272 = vmatmul.mubr.msk.f32.gmra.mxu0 %vm756_vm0, %v8983_v45  ;;  %6227 = vmatprep.mubr.msk.f32.mxu1 %vm756_vm0, %v8984_v44  ;;  %v8997_v49 = vld [vmem:[#allocation80_spill] sm:$0xff]  ;;  %v8998_v30 = vld [vmem:[#allocation86_spill] sm:$0xff] }
 0x1d8   : > { %6274 = vmatprep.mubr.msk.f32.mxu0 %vm756_vm0, %v8985_v53  ;;  %v2310_v54 = vpop.f32.mrf.mxu0  ;;  %v4458_v44 = vld [vmem:[#allocation2 + $0x121] sm:$0xff] }
 0x1d9   : > { %v8165_v34 = vadd.f32 %v2310_v54, %v1761_v7 }
 0x1da   : > { %v5935_v24 = vpop.f32.mrf.mxu1  ;;  %6228 = vmatmul.mubr.msk.f32.gmra.mxu1 %vm756_vm0, %v8986_v61  ;;  %v9000_v61 = vld [vmem:[#allocation87_spill] sm:$0xff] }
 0x1db   : > { %6275 = vmatmul.mubr.msk.f32.gmra.mxu0 %vm756_vm0, %v8987_v43  ;;  %6230 = vmatprep.mubr.msk.f32.mxu1 %vm756_vm0, %v8988_v55  ;;  %v1776_v1 = vadd.f32 %v5935_v24, %v7825_v28  ;;  %v4490_v24 = vmul.f32 %v4458_v44, %v7578_v12  ;;  %v1641_v43 = vadd.f32 %v7885_v62, %v9000_v61 }
 0x1dc   : > { %6277 = vmatprep.mubr.msk.f32.mxu0 %vm756_vm0, %v8989_v63  ;;  %v1770_v50 = vpop.f32.mrf.mxu1 }
 0x1dd   : > { %v1771_v6 = vadd.f32 %v1770_v50, %v7834_v10  ;;  %v8995_v10 = vld [vmem:[#allocation82_spill] sm:$0xff] }
 0x1de   : > { %v5985_v19 = vpop.f32.mrf.mxu0  ;;  %6231 = vmatmul.mubr.msk.f32.gmra.mxu1 %vm756_vm0, %v8990_v17 }
 0x1df   : > { %v8179_v33 = vadd.f32 %v5985_v19, %v1776_v1  ;;  %6278 = vmatmul.mubr.msk.f32.gmra.mxu0 %vm756_vm0, %v8991_v15  ;;  %6233 = vmatprep.mubr.msk.f32.mxu1 %vm756_vm0, %v8992_v57  ;;  %v9001_v1 = vld [vmem:[#allocation103_spill] sm:$0xff]  ;;  %v9002_v57 = vld [vmem:[#allocation21_spill] sm:$0xff] }
 0x1e0   : > { %6280 = vmatprep.mubr.msk.f32.mxu0 %vm756_vm0, %v8993_v25  ;;  %v2320_v2 = vpop.f32.mrf.mxu0  ;;  %v2349_v25 = vadd.f32 %v9002_v57, %v1641_v43  ;;  %v9011_v57 = vld [vmem:[#allocation25_spill] sm:$0xff] }
 0x1e1   : > { %v8187_v37 = vadd.f32 %v2320_v2, %v1771_v6 }
 0x1e2   : > { %v5938_v28 = vpop.f32.mrf.mxu1  ;;  %6234 = vmatmul.mubr.msk.f32.gmra.mxu1 %vm756_vm0, %v7823_v16 }
 0x1e3   : > { %6281 = vmatmul.mubr.msk.f32.gmra.mxu0 %vm756_vm0, %v8994_v58  ;;  %6236 = vmatprep.mubr.msk.f32.mxu1 %vm756_vm0, %v7827_v38  ;;  %v1786_v56 = vadd.f32 %v5938_v28, %v8996_v46  ;;  %v4068_v38 = vld [vmem:[#allocation2 + $0x120] sm:$0xff]  ;;  %v9003_v28 = vld [vmem:[#allocation89_spill] sm:$0xff]  ;;  %v9004_v58 = vld [vmem:[#allocation14_spill] sm:$0xff] }
 0x1e4   : > { %6283 = vmatprep.mubr.msk.f32.mxu0 %vm756_vm0, %v8995_v10  ;;  %v1780_v40 = vpop.f32.mrf.mxu1  ;;  %v1651_v10 = vadd.f32 %v9004_v58, %v9003_v28  ;;  %v9012_v58 = vld [vmem:[#allocation99_spill] sm:$0xff] }
 0x1e5   : > { %v1781_v16 = vadd.f32 %v1780_v40, %v7852_v5  ;;  %v8999_v5 = vld [vmem:[#allocation85_spill] sm:$0xff] }
 0x1e6   : > { %v5988_v22 = vpop.f32.mrf.mxu0  ;;  %6237 = vmatmul.mubr.msk.f32.gmra.mxu1 %vm756_vm0, %v7842_v14  ;;  %v4489_v14 = vmul.f32 %v4457_v39, %v7582_v52 }
 0x1e7   : > { %v8201_v11 = vadd.f32 %v5988_v22, %v1786_v56  ;;  %6284 = vmatmul.mubr.msk.f32.gmra.mxu0 %vm756_vm0, %v8997_v49  ;;  %6239 = vmatprep.mubr.msk.f32.mxu1 %vm756_vm0, %v4067_v42  ;;  %v9005_v56 = vld [vmem:[#allocation19_spill] sm:$0xff] }
 0x1e8   : > { %6286 = vmatprep.mubr.msk.f32.mxu0 %vm756_vm0, %v8998_v30  ;;  %v2330_v7 = vpop.f32.mrf.mxu0  ;;  %v2351_v22 = vadd.f32 %v9005_v56, %v1651_v10  ;;  %v9006_v30 = vld [vmem:[#allocation92_spill] sm:$0xff]  ;;  %v9013_v10 = vld [vmem:[#allocation17_spill] sm:$0xff] }
 0x1e9   : > { %v8208_v45 = vadd.f32 %v2330_v7, %v1781_v16  ;;  %v9007_v7 = vld [vmem:[#allocation13_spill] sm:$0xff] }
 0x1ea   : > { %v5941_v53 = vpop.f32.mrf.mxu1  ;;  %6240 = vmatmul.mubr.msk.f32.gmra.mxu1 %vm756_vm0, %v4068_v38 }
 0x1eb   : > { %6287 = vmatmul.mubr.msk.f32.gmra.mxu0 %vm756_vm0, %v8999_v5  ;;  %v1796_v55 = vadd.f32 %v5941_v53, %v7862_v26 }
 0x1ec   : > { %6289 = vmatprep.mubr.msk.f32.mxu0 %vm756_vm0, %v4489_v14  ;;  %v1790_v54 = vpop.f32.mrf.mxu1 }
 0x1ed   : > { %v1791_v19 = vadd.f32 %v1790_v54, %v9001_v1  ;;  %v9008_v54 = vld [vmem:[#allocation27_spill] sm:$0xff] }
 0x1ee   : > { %v5996_v63 = vpop.f32.mrf.mxu1 }
 0x1ef   : > { %v5991_v50 = vpop.f32.mrf.mxu0  ;;  %v2772_v52 = vadd.f32 %v5996_v63, %v7889_v0  ;;  %6290 = vmatmul.mubr.msk.f32.gmra.mxu0 %vm756_vm0, %v4490_v24 }
 0x1f0   : > { %v8222_v17 = vadd.f32 %v5991_v50, %v1796_v55  ;;  %v2612_v6 = vpop.f32.mrf.mxu1  ;;  %v9009_v50 = vld [vmem:[#allocation96_spill] sm:$0xff] }
 0x1f1   : > { %v2340_v15 = vpop.f32.mrf.mxu0  ;;  %v2771_v0 = vadd.f32 %v2612_v6, %v2349_v25 }
 0x1f2   : > { %v8225_v12 = vadd.f32 %v2340_v15, %v1791_v19  ;;  %v5999_v2 = vpop.f32.mrf.mxu1 }
 0x1f3   : > { %v2774_v62 = vadd.f32 %v5999_v2, %v7906_v8  ;;  %v6046_v26 = vpop.f32.mrf.mxu0  ;;  %v1661_v8 = vadd.f32 %v9007_v7, %v9006_v30 }
 0x1f4   : > { %v8230_v40 = vadd.f32 %v6046_v26, %v2772_v52  ;;  %v2622_v42 = vpop.f32.mrf.mxu1  ;;  %v9010_v52 = vld [vmem:[#allocation18_spill] sm:$0xff] }
 0x1f5   : > { %v3002_v46 = vpop.f32.mrf.mxu0  ;;  %v2773_v44 = vadd.f32 %v2622_v42, %v2351_v22  ;;  %v2353_v24 = vadd.f32 %v9008_v54, %v1661_v8  ;;  %v9014_v22 = vld [vmem:[#allocation33_spill] sm:$0xff]  ;;  %v9015_v8 = vld [vmem:[#allocation100_spill] sm:$0xff] }
 0x1f6   : > { %v8233_v39 = vadd.f32 %v3002_v46, %v2771_v0  ;;  %v6002_v16 = vpop.f32.mrf.mxu1 }
 0x1f7   : > { %v2776_v49 = vadd.f32 %v6002_v16, %v7929_v13  ;;  %v6049_v38 = vpop.f32.mrf.mxu0  ;;  %v1671_v13 = vadd.f32 %v9010_v52, %v9009_v50  ;;  %v9016_v52 = vld [vmem:[#allocation102_spill] sm:$0xff] }
 0x1f8   : > { %v8238_v14 = vadd.f32 %v6049_v38, %v2774_v62  ;;  %v2632_v53 = vpop.f32.mrf.mxu1 }
 0x1f9   : > { %v3012_v5 = vpop.f32.mrf.mxu0  ;;  %v2775_v1 = vadd.f32 %v2632_v53, %v2353_v24  ;;  %v2355_v25 = vadd.f32 %v9011_v57, %v1671_v13 }
 0x1fa   : > { %v8241_v61 = vadd.f32 %v3012_v5, %v2773_v44  ;;  %v6005_v43 = vpop.f32.mrf.mxu1 }
 0x1fb   : > { %v2778_v55 = vadd.f32 %v6005_v43, %v7952_v48  ;;  %v6052_v63 = vpop.f32.mrf.mxu0  ;;  %v1681_v48 = vadd.f32 %v9013_v10, %v9012_v58 }
 0x1fc   : > { %v8246_v19 = vadd.f32 %v6052_v63, %v2776_v49  ;;  %v2642_v6 = vpop.f32.mrf.mxu1 }
 0x1fd   : > { %v3022_v15 = vpop.f32.mrf.mxu0  ;;  %v2777_v0 = vadd.f32 %v2642_v6, %v2355_v25  ;;  %v2357_v16 = vadd.f32 %v9014_v22, %v1681_v48 }
 0x1fe   : > { %v8249_v2 = vadd.f32 %v3022_v15, %v2775_v1  ;;  %v6008_v62 = vpop.f32.mrf.mxu1 }
 0x1ff   : > { %v2780_v26 = vadd.f32 %v6008_v62, %v7975_v3  ;;  %v6055_v28 = vpop.f32.mrf.mxu0  ;;  %v1691_v3 = vadd.f32 %v8004_v32, %v9015_v8 }
 0x200   : > { %v8254_v42 = vadd.f32 %v6055_v28, %v2778_v55  ;;  %v2652_v46 = vpop.f32.mrf.mxu1 }
 0x201   : > { %v3032_v56 = vpop.f32.mrf.mxu0  ;;  %v2779_v44 = vadd.f32 %v2652_v46, %v2357_v16  ;;  %v2359_v24 = vadd.f32 %v8015_v18, %v1691_v3 }
 0x202   : > { %v8257_v49 = vadd.f32 %v3032_v56, %v2777_v0  ;;  %v6011_v38 = vpop.f32.mrf.mxu1 }
 0x203   : > { %v2782_v30 = vadd.f32 %v6011_v38, %v7998_v51  ;;  %v6058_v7 = vpop.f32.mrf.mxu0  ;;  %v1701_v51 = vadd.f32 %v8030_v9, %v9016_v52 }
 0x204   : > { %v8262_v53 = vadd.f32 %v6058_v7, %v2780_v26  ;;  %v2662_v5 = vpop.f32.mrf.mxu1 }
 0x205   : > { %v3042_v54 = vpop.f32.mrf.mxu0  ;;  %v2781_v13 = vadd.f32 %v2662_v5, %v2359_v24  ;;  %v2361_v15 = vadd.f32 %v8041_v35, %v1701_v51 }
 0x206   : > { %v8265_v43 = vadd.f32 %v3042_v54, %v2779_v44  ;;  %v6014_v55 = vpop.f32.mrf.mxu1 }
 0x207   : > { %v2784_v63 = vadd.f32 %v6014_v55, %v8023_v47  ;;  %v6061_v50 = vpop.f32.mrf.mxu0 }
 0x208   : > { %v8270_v1 = vadd.f32 %v6061_v50, %v2782_v30  ;;  %v2672_v32 = vpop.f32.mrf.mxu1 }
 0x209   : > { %v3052_v6 = vpop.f32.mrf.mxu0  ;;  %v2783_v26 = vadd.f32 %v2672_v32, %v2361_v15 }
 0x20a   : > { %v8273_v57 = vadd.f32 %v3052_v6, %v2781_v13  ;;  %v6017_v25 = vpop.f32.mrf.mxu1 }
 0x20b   : > { %v2786_v18 = vadd.f32 %v6017_v25, %v8048_v36  ;;  %v6064_v62 = vpop.f32.mrf.mxu0 }
 0x20c   : > { %v8276_v28 = vadd.f32 %v6064_v62, %v2784_v63  ;;  %v2682_v47 = vpop.f32.mrf.mxu1 }
 0x20d   : > { %v2785_v58 = vadd.f32 %v2682_v47, %v8055_v23  ;;  %v3062_v9 = vpop.f32.mrf.mxu0 }
 0x20e   : > { %v8279_v10 = vadd.f32 %v3062_v9, %v2783_v26  ;;  %v6020_v48 = vpop.f32.mrf.mxu1 }
 0x20f   : > { %v2788_v0 = vadd.f32 %v6020_v48, %v8069_v27  ;;  %v6067_v46 = vpop.f32.mrf.mxu0 }
 0x210   : > { %v8282_v35 = vadd.f32 %v6067_v46, %v2786_v18  ;;  %v2692_v56 = vpop.f32.mrf.mxu1 }
 0x211   : > { %v2787_v22 = vadd.f32 %v2692_v56, %v8077_v20  ;;  %v3072_v36 = vpop.f32.mrf.mxu0 }
 0x212   : > { %v8285_v16 = vadd.f32 %v3072_v36, %v2785_v58  ;;  %v6023_v38 = vpop.f32.mrf.mxu1 }
 0x213   : > { %v2790_v30 = vadd.f32 %v6023_v38, %v8091_v41  ;;  %v6070_v7 = vpop.f32.mrf.mxu0 }
 0x214   : > { %v8288_v23 = vadd.f32 %v6070_v7, %v2788_v0  ;;  %v2702_v8 = vpop.f32.mrf.mxu1 }
 0x215   : > { %v2789_v3 = vadd.f32 %v2702_v8, %v8099_v31  ;;  %v3082_v44 = vpop.f32.mrf.mxu0 }
 0x216   : > { %v8291_v27 = vadd.f32 %v3082_v44, %v2787_v22  ;;  %v6026_v5 = vpop.f32.mrf.mxu1 }
 0x217   : > { %v2792_v54 = vadd.f32 %v6026_v5, %v8113_v21  ;;  %v6073_v24 = vpop.f32.mrf.mxu0 }
 0x218   : > { %v8294_v20 = vadd.f32 %v6073_v24, %v2790_v30  ;;  %v2712_v55 = vpop.f32.mrf.mxu1 }
 0x219   : > { %v2791_v63 = vadd.f32 %v2712_v55, %v8121_v60  ;;  %v3092_v50 = vpop.f32.mrf.mxu0 }
 0x21a   : > { %v8297_v41 = vadd.f32 %v3092_v50, %v2789_v3  ;;  %v6029_v52 = vpop.f32.mrf.mxu1 }
 0x21b   : > { %v2794_v51 = vadd.f32 %v6029_v52, %v8135_v4  ;;  %v6076_v13 = vpop.f32.mrf.mxu0 }
 0x21c   : > { %9017 = vst [vmem:[#allocation24_spill] sm:$0xff] %v8297_v41  ;;  %v8300_v31 = vadd.f32 %v6076_v13, %v2792_v54  ;;  %v2722_v32 = vpop.f32.mrf.mxu1 }
 0x21d   : > { %v2793_v6 = vadd.f32 %v2722_v32, %v8143_v59  ;;  %v3102_v15 = vpop.f32.mrf.mxu0 }
 0x21e   : > { %9018 = vst [vmem:[#allocation31_spill] sm:$0xff] %v8300_v31  ;;  %v8303_v21 = vadd.f32 %v3102_v15, %v2791_v63  ;;  %v6032_v25 = vpop.f32.mrf.mxu1 }
 0x21f   : > { %v2796_v18 = vadd.f32 %v6032_v25, %v8157_v29  ;;  %v6079_v62 = vpop.f32.mrf.mxu0 }
 0x220   : > { %9019 = vst [vmem:[#allocation23_spill] sm:$0xff] %v8303_v21  ;;  %v8306_v60 = vadd.f32 %v6079_v62, %v2794_v51  ;;  %v2732_v26 = vpop.f32.mrf.mxu1 }
 0x221   : > { %v2795_v47 = vadd.f32 %v2732_v26, %v8165_v34  ;;  %v3112_v58 = vpop.f32.mrf.mxu0 }
 0x222   : > { %9020 = vst [vmem:[#allocation39_spill] sm:$0xff] %v8306_v60  ;;  %v8309_v4 = vadd.f32 %v3112_v58, %v2793_v6  ;;  %v6035_v9 = vpop.f32.mrf.mxu1 }
 0x223   : > { %v2798_v48 = vadd.f32 %v6035_v9, %v8179_v33  ;;  %v6082_v0 = vpop.f32.mrf.mxu0 }
 0x224   : > { %9021 = vst [vmem:[#allocation30_spill] sm:$0xff] %v8309_v4  ;;  %v8312_v59 = vadd.f32 %v6082_v0, %v2796_v18  ;;  %v2742_v46 = vpop.f32.mrf.mxu1 }
 0x225   : > { %v2797_v56 = vadd.f32 %v2742_v46, %v8187_v37  ;;  %v3122_v22 = vpop.f32.mrf.mxu0 }
 0x226   : > { %9022 = vst [vmem:[#allocation37_spill] sm:$0xff] %v8312_v59  ;;  %v8315_v29 = vadd.f32 %v3122_v22, %v2795_v47  ;;  %v6038_v36 = vpop.f32.mrf.mxu1 }
 0x227   : > { %v2800_v38 = vadd.f32 %v6038_v36, %v8201_v11  ;;  %v6085_v30 = vpop.f32.mrf.mxu0 }
 0x228   : > { %9023 = vst [vmem:[#allocation29_spill] sm:$0xff] %v8315_v29  ;;  %v8318_v34 = vadd.f32 %v6085_v30, %v2798_v48  ;;  %v2752_v7 = vpop.f32.mrf.mxu1 }
 0x229   : > { %v2799_v8 = vadd.f32 %v2752_v7, %v8208_v45  ;;  %v3132_v3 = vpop.f32.mrf.mxu0 }
 0x22a   : > { %9024 = vst [vmem:[#allocation45_spill] sm:$0xff] %v8318_v34  ;;  %v8321_v33 = vadd.f32 %v3132_v3, %v2797_v56  ;;  %v6041_v44 = vpop.f32.mrf.mxu1 }
 0x22b   : > { %v2802_v5 = vadd.f32 %v6041_v44, %v8222_v17  ;;  %v6088_v54 = vpop.f32.mrf.mxu0 }
 0x22c   : > { %9025 = vst [vmem:[#allocation36_spill] sm:$0xff] %v8321_v33  ;;  %v8324_v37 = vadd.f32 %v6088_v54, %v2800_v38  ;;  %v2762_v24 = vpop.f32.mrf.mxu1 }
 0x22d   : > { %v2801_v55 = vadd.f32 %v2762_v24, %v8225_v12  ;;  %v3142_v63 = vpop.f32.mrf.mxu0 }
 0x22e   : > { %9026 = vst [vmem:[#allocation43_spill] sm:$0xff] %v8324_v37  ;;  %v8327_v11 = vadd.f32 %v3142_v63, %v2799_v8  ;;  %v8329_v50 = vpop.f32.mrf.mxu1 }
 0x22f   : > { %v6091_v52 = vpop.f32.mrf.mxu0 }
 0x230   : > { %9027 = vst [vmem:[#allocation35_spill] sm:$0xff] %v8327_v11  ;;  %v8331_v51 = vadd.f32 %v6091_v52, %v2802_v5  ;;  %v8333_v45 = vpop.f32.mrf.mxu1 }
 0x231   : > { %v3152_v13 = vpop.f32.mrf.mxu0 }
 0x232   : > { %9028 = vst [vmem:[#allocation51_spill] sm:$0xff] %v8331_v51  ;;  %v8335_v32 = vadd.f32 %v3152_v13, %v2801_v55  ;;  %v6099_v17 = vpop.f32.mrf.mxu1 }
 0x233   : > { %v8337_v6 = vpop.f32.mrf.mxu0 }
 0x234   : > { %9029 = vst [vmem:[#allocation42_spill] sm:$0xff] %v8335_v32  ;;  %v3434_v15 = vpop.f32.mrf.mxu1 }
 0x235   : > { %v8339_v25 = vpop.f32.mrf.mxu0 }
 0x236   : > { %v8341_v12 = vpop.f32.mrf.mxu1 }
 0x237   : > { %v8343_v18 = vpop.f32.mrf.mxu0 }
 0x238   : > { %v8345_v62 = vpop.f32.mrf.mxu1 }
 0x239   : > { %v8347_v26 = vpop.f32.mrf.mxu0 }
 0x23a   : > { %v8349_v47 = vpop.f32.mrf.mxu1 }
 0x23b   : > { %v8351_v58 = vpop.f32.mrf.mxu0 }
 0x23c   : > { %v8353_v9 = vpop.f32.mrf.mxu1 }
 0x23d   : > { %v8355_v48 = vpop.f32.mrf.mxu0 }
 0x23e   : > { %v8357_v0 = vpop.f32.mrf.mxu1 }
 0x23f   : > { %v8359_v46 = vpop.f32.mrf.mxu0 }
 0x240   : > { %v8361_v56 = vpop.f32.mrf.mxu1 }
 0x241   : > { %v8363_v22 = vpop.f32.mrf.mxu0 }
 0x242   : > { %v8365_v36 = vpop.f32.mrf.mxu1 }
 0x243   : > { %v8367_v38 = vpop.f32.mrf.mxu0 }
 0x244   : > { %v8369_v30 = vpop.f32.mrf.mxu1 }
 0x245   : > { %v8371_v7 = vpop.f32.mrf.mxu0 }
 0x246   : > { %v8373_v8 = vpop.f32.mrf.mxu1 }
 0x247   : > { %v8375_v3 = vpop.f32.mrf.mxu0 }
 0x248   : > { %v8377_v44 = vpop.f32.mrf.mxu1 }
 0x249   : > { %v8379_v5 = vpop.f32.mrf.mxu0 }
 0x24a   : > { %v8381_v54 = vpop.f32.mrf.mxu1 }
 0x24b   : > { %v8383_v24 = vpop.f32.mrf.mxu0 }
 0x24c   : > { %v8385_v55 = vpop.f32.mrf.mxu1 }
 0x24d   : > { %v8387_v63 = vpop.f32.mrf.mxu0 }
 0x24e   : > { %v8389_v52 = vpop.f32.mrf.mxu1 }
 0x24f   : > { %v8391_v13 = vpop.f32.mrf.mxu0 }
 0x250   : > { %v8393_v32 = vpop.f32.mrf.mxu1 }
 0x251   : > { %v8395_v51 = vpop.f32.mrf.mxu0 }
 0x252   : > { %v8397_v11 = vpop.f32.mrf.mxu1 }
 0x253   : > { %9030 = vst [vmem:[#allocation49_spill] sm:$0xff] %v8397_v11  ;;  %v8399_v37 = vpop.f32.mrf.mxu0 }
 0x254   : > { %9031 = vst [vmem:[#allocation41_spill] sm:$0xff] %v8399_v37  ;;  %v8401_v33 = vpop.f32.mrf.mxu1 }
 0x255   : > { %9032 = vst [vmem:[#allocation57_spill] sm:$0xff] %v8401_v33  ;;  %v8403_v34 = vpop.f32.mrf.mxu0 }
 0x256   : > { %9033 = vst [vmem:[#allocation48_spill] sm:$0xff] %v8403_v34  ;;  %v8405_v29 = vpop.f32.mrf.mxu1 }
 0x257   : > { %9034 = vst [vmem:[#allocation55_spill] sm:$0xff] %v8405_v29  ;;  %v8407_v59 = vpop.f32.mrf.mxu0 }
 0x258   : > { %9035 = vst [vmem:[#allocation47_spill] sm:$0xff] %v8407_v59  ;;  %v8409_v4 = vpop.f32.mrf.mxu1 }
 0x259   : > { %9036 = vst [vmem:[#allocation63_spill] sm:$0xff] %v8409_v4  ;;  %v8411_v60 = vpop.f32.mrf.mxu0 }
 0x25a   : > { %9037 = vst [vmem:[#allocation54_spill] sm:$0xff] %v8411_v60  ;;  %v8413_v21 = vpop.f32.mrf.mxu1 }
 0x25b   : > { %9038 = vst [vmem:[#allocation61_spill] sm:$0xff] %v8413_v21  ;;  %v8415_v31 = vpop.f32.mrf.mxu0 }
 0x25c   : > { %9039 = vst [vmem:[#allocation53_spill] sm:$0xff] %v8415_v31  ;;  %v8417_v41 = vpop.f32.mrf.mxu1 }
 0x25d   : > { %9040 = vst [vmem:[#allocation69_spill] sm:$0xff] %v8417_v41  ;;  %v8419_v11 = vpop.f32.mrf.mxu0 }
 0x25e   : > { %9041 = vst [vmem:[#allocation60_spill] sm:$0xff] %v8419_v11  ;;  %v8421_v37 = vpop.f32.mrf.mxu1 }
 0x25f   : > { %9042 = vst [vmem:[#allocation67_spill] sm:$0xff] %v8421_v37  ;;  %v8423_v33 = vpop.f32.mrf.mxu0 }
 0x260   : > { %9043 = vst [vmem:[#allocation59_spill] sm:$0xff] %v8423_v33  ;;  %v8425_v34 = vpop.f32.mrf.mxu1 }
 0x261   : > { %9044 = vst [vmem:[#allocation75_spill] sm:$0xff] %v8425_v34  ;;  %v8427_v29 = vpop.f32.mrf.mxu0 }
 0x262   : > { %9045 = vst [vmem:[#allocation66_spill] sm:$0xff] %v8427_v29  ;;  %v8429_v59 = vpop.f32.mrf.mxu1 }
 0x263   : > { %v8431_v4 = vpop.f32.mrf.mxu0 }
 0x264   : > { %9046 = vst [vmem:[#allocation73_spill] sm:$0xff] %v8431_v4  ;;  %v8433_v60 = vpop.f32.mrf.mxu1  ;;  %v3584_v4 = vadd.f32 %v8329_v50, %v8230_v40  ;;  %v3587_v40 = vadd.f32 %v8345_v62, %v8249_v2  ;;  %v3592_v2 = vadd.f32 %v8357_v0, %v8262_v53  ;;  %v3593_v53 = vadd.f32 %v8369_v30, %v8273_v57 }
 0x265   : > { %9047 = vst [vmem:[#allocation65_spill] sm:$0xff] %v8433_v60  ;;  %v8435_v21 = vpop.f32.mrf.mxu0  ;;  %v3595_v57 = vadd.f32 %v8377_v44, %v8279_v10 }
 0x266   : > { %9048 = vst [vmem:[#allocation81_spill] sm:$0xff] %v8435_v21  ;;  %v8437_v31 = vpop.f32.mrf.mxu1  ;;  %v3583_v21 = vadd.f32 %v8333_v45, %v8233_v39  ;;  %v8512_v62 = vadd.f32 %v8379_v5, %v3593_v53  ;;  %v9056_v5 = vld [vmem:[#allocation41_spill] sm:$0xff]  ;;  %v9061_v53 = vld [vmem:[#allocation55_spill] sm:$0xff] }
 0x267   : > { %9049 = vst [vmem:[#allocation72_spill] sm:$0xff] %v8437_v31  ;;  %v8439_v41 = vpop.f32.mrf.mxu0 }
 0x268   : > { %9050 = vst [vmem:[#allocation79_spill] sm:$0xff] %v8439_v41  ;;  %v8441_v11 = vpop.f32.mrf.mxu1  ;;  %v3586_v41 = vadd.f32 %v6099_v17, %v8238_v14 }
 0x269   : > { %9051 = vst [vmem:[#allocation71_spill] sm:$0xff] %v8441_v11  ;;  %v8443_v37 = vpop.f32.mrf.mxu0  ;;  %v3585_v11 = vadd.f32 %v3434_v15, %v8241_v61  ;;  %v3590_v61 = vadd.f32 %v8349_v47, %v8254_v42  ;;  %v8490_v15 = vadd.f32 %v8367_v38, %v3592_v2  ;;  %v3597_v47 = vadd.f32 %v8385_v55, %v8285_v16 }
 0x26a   : > { %v8445_v33 = vpop.f32.mrf.mxu1  ;;  %v4008_v39 = vadd.f32 %v8343_v18, %v3586_v41  ;;  %v3591_v41 = vadd.f32 %v8361_v56, %v8265_v43  ;;  %v3599_v16 = vadd.f32 %v8393_v32, %v8291_v27 }
 0x26b   : > { %9052 = vst [vmem:[#allocation78_spill] sm:$0xff] %v8445_v33  ;;  %v8447_v34 = vpop.f32.mrf.mxu0  ;;  %v4006_v33 = vadd.f32 %v8337_v6, %v3584_v4  ;;  %v4007_v14 = vadd.f32 %v8347_v26, %v3585_v11  ;;  %v3589_v4 = vadd.f32 %v8353_v9, %v8257_v49  ;;  %v8482_v11 = vadd.f32 %v8359_v46, %v3590_v61 }
 0x26c   : > { %9053 = vst [vmem:[#allocation77_spill] sm:$0xff] %v8447_v34  ;;  %v8449_v29 = vpop.f32.mrf.mxu1  ;;  %v4005_v34 = vadd.f32 %v8339_v25, %v3583_v21  ;;  %v3594_v49 = vadd.f32 %v8365_v36, %v8270_v1  ;;  %v8495_v43 = vadd.f32 %v8371_v7, %v3591_v41  ;;  %v3596_v25 = vadd.f32 %v8373_v8, %v8276_v28 }
 0x26d   : > { %9054 = vst [vmem:[#allocation84_spill] sm:$0xff] %v8449_v29  ;;  %v8455_v60 = vpop.f32.mrf.mxu0  ;;  %v3588_v29 = vadd.f32 %v8341_v12, %v8246_v19  ;;  %v4009_v19 = vadd.f32 %v8355_v48, %v3587_v40  ;;  %v8485_v42 = vadd.f32 %v8363_v22, %v3589_v4  ;;  %v3598_v28 = vadd.f32 %v8381_v54, %v8282_v35  ;;  %v9058_v40 = vld [vmem:[#allocation57_spill] sm:$0xff] }
 0x26e   : > { %v6196_v31 = vpop.f32.mrf.mxu1  ;;  %v8517_v26 = vadd.f32 %v8383_v24, %v3596_v25  ;;  %v8522_v9 = vadd.f32 %v8387_v63, %v3595_v57  ;;  %v3600_v35 = vadd.f32 %v8389_v52, %v8288_v23  ;;  %v8538_v23 = vadd.f32 %v8395_v51, %v3597_v47  ;;  %v9057_v51 = vld [vmem:[#allocation24_spill] sm:$0xff] }
 0x26f   : > { %v8465_v50 = vpop.f32.mrf.mxu0  ;;  %v4010_v45 = vadd.f32 %v8351_v58, %v3588_v29  ;;  %v4396_v29 = vadd.f32 %v6196_v31, %v4006_v33  ;;  %v8507_v31 = vadd.f32 %v8375_v3, %v3594_v49  ;;  %v8529_v46 = vadd.f32 %v8391_v13, %v3598_v28  ;;  %v9055_v3 = vld [vmem:[#allocation49_spill] sm:$0xff] }
 0x270   : > { %v4236_v21 = vpop.f32.mrf.mxu1  ;;  %v3602_v44 = vadd.f32 %v9055_v3, %v8294_v20  ;;  %v8543_v27 = vadd.f32 %v9056_v5, %v3600_v35  ;;  %v9067_v5 = vld [vmem:[#allocation61_spill] sm:$0xff] }
 0x271   : > { %v8479_v17 = vpop.f32.mrf.mxu0  ;;  %v4395_v33 = vadd.f32 %v4236_v21, %v4005_v34 }
 0x272   : > { %v6199_v6 = vpop.f32.mrf.mxu1 }
 0x273   : > { %v6246_v1 = vpop.f32.mrf.mxu0  ;;  %v4398_v10 = vadd.f32 %v6199_v6, %v4008_v39  ;;  %v3601_v39 = vadd.f32 %v9058_v40, %v9057_v51  ;;  %v9060_v6 = vld [vmem:[#allocation31_spill] sm:$0xff] }
 0x274   : > { %v4818_v12 = vadd.f32 %v6246_v1, %v4396_v29  ;;  %v4246_v18 = vpop.f32.mrf.mxu1  ;;  %v3604_v25 = vadd.f32 %v9061_v53, %v9060_v6  ;;  %v9062_v1 = vld [vmem:[#allocation47_spill] sm:$0xff]  ;;  %v9069_v6 = vld [vmem:[#allocation30_spill] sm:$0xff]  ;;  %v9070_v53 = vld [vmem:[#allocation69_spill] sm:$0xff] }
 0x275   : > { %v4658_v58 = vpop.f32.mrf.mxu0  ;;  %v4397_v56 = vadd.f32 %v4246_v18, %v4007_v14  ;;  %v9059_v14 = vld [vmem:[#allocation48_spill] sm:$0xff]  ;;  %v8560_v57 = vadd.f32 %v9062_v1, %v3602_v44  ;;  %v9066_v44 = vld [vmem:[#allocation39_spill] sm:$0xff]  ;;  %v8598_v1 = vadd.f32 %v9070_v53, %v9069_v6 }
 0x276   : > { %v4926_v34 = vmul.f32 %v4818_v12, %v4818_v12  ;;  %5032 = vst.msk [vmem:[%s8504_s18 + $0x8] sm:$0xff] %vm4849_vm2, %v4818_v12  ;;  %v4817_v48 = vadd.f32 %v4658_v58, %v4395_v33  ;;  %v6202_v0 = vpop.f32.mrf.mxu1  ;;  %v4851_v36 = vsel %vm4849_vm2, %v4818_v12, 0.0  ;;  %v8552_v20 = vadd.f32 %v9059_v14, %v3599_v16  ;;  %v9063_v33 = vld [vmem:[#allocation23_spill] sm:$0xff] }
 0x277   : > { %v6249_v22 = vpop.f32.mrf.mxu0  ;;  %v4400_v63 = vadd.f32 %v6202_v0, %v4010_v45  ;;  %v9064_v12 = vld [vmem:[#allocation63_spill] sm:$0xff] }
 0x278   : > { %v4850_v38 = vsel %vm4849_vm2, %v4817_v48, 0.0  ;;  %v4925_v30 = vmul.f32 %v4817_v48, %v4817_v48  ;;  %5031 = vst.msk [vmem:[%s8504_s18] sm:$0xff] %vm4849_vm2, %v4817_v48  ;;  %v4820_v7 = vadd.f32 %v6249_v22, %v4398_v10  ;;  %v4256_v8 = vpop.f32.mrf.mxu1  ;;  %v4958_v24 = vsel %vm4849_vm2, %v4926_v34, 0.0 }
 0x279   : > { %v4852_v32 = vadd.f32 %v4851_v36, %v4850_v38  ;;  %v4668_v54 = vpop.f32.mrf.mxu0  ;;  %v4399_v2 = vadd.f32 %v4256_v8, %v4009_v19  ;;  %v8564_v18 = vadd.f32 %v9064_v12, %v9063_v33  ;;  %v9065_v8 = vld [vmem:[#allocation54_spill] sm:$0xff] }
 0x27a   : > { %v4957_v55 = vsel %vm4849_vm2, %v4925_v30, 0.0  ;;  %5034 = vst.msk [vmem:[%s8504_s18 + $0x18] sm:$0xff] %vm4849_vm2, %v4820_v7  ;;  %v4819_v52 = vadd.f32 %v4668_v54, %v4397_v56  ;;  %v6205_v13 = vpop.f32.mrf.mxu1  ;;  %v4928_v4 = vmul.f32 %v4820_v7, %v4820_v7  ;;  %v4855_v47 = vsel %vm4849_vm2, %v4820_v7, 0.0 }
 0x27b   : > { %v4959_v61 = vadd.f32 %v4958_v24, %v4957_v55  ;;  %v6252_v21 = vpop.f32.mrf.mxu0  ;;  %v4402_v10 = vadd.f32 %v6205_v13, %v8482_v11  ;;  %v8577_v3 = vadd.f32 %v9065_v8, %v3601_v39 }
 0x27c   : > { %v4853_v41 = vsel %vm4849_vm2, %v4819_v52, 0.0  ;;  %v4927_v49 = vmul.f32 %v4819_v52, %v4819_v52  ;;  %5033 = vst.msk [vmem:[%s8504_s18 + $0x10] sm:$0xff] %vm4849_vm2, %v4819_v52  ;;  %v4822_v45 = vadd.f32 %v6252_v21, %v4400_v63  ;;  %v4266_v29 = vpop.f32.mrf.mxu1  ;;  %v4962_v0 = vsel %vm4849_vm2, %v4928_v4, 0.0 }
 0x27d   : > { %v4854_v28 = vadd.f32 %v4853_v41, %v4852_v32  ;;  %v4678_v19 = vpop.f32.mrf.mxu0  ;;  %v4401_v36 = vadd.f32 %v4266_v29, %v8485_v42  ;;  %v8581_v32 = vadd.f32 %v9067_v5, %v9066_v44 }
 0x27e   : > { %v4960_v58 = vsel %vm4849_vm2, %v4927_v49, 0.0  ;;  %5036 = vst.msk [vmem:[%s8504_s18 + $0x28] sm:$0xff] %vm4849_vm2, %v4822_v45  ;;  %v4821_v34 = vadd.f32 %v4678_v19, %v4399_v2  ;;  %v6208_v48 = vpop.f32.mrf.mxu1  ;;  %v4930_v16 = vmul.f32 %v4822_v45, %v4822_v45  ;;  %v4859_v42 = vsel %vm4849_vm2, %v4822_v45, 0.0  ;;  %v9068_v45 = vld [vmem:[#allocation53_spill] sm:$0xff] }
 0x27f   : > { %v4961_v35 = vadd.f32 %v4960_v58, %v4959_v61  ;;  %v4856_v56 = vadd.f32 %v4855_v47, %v4854_v28  ;;  %v6255_v22 = vpop.f32.mrf.mxu0  ;;  %v4404_v52 = vadd.f32 %v6208_v48, %v8490_v15  ;;  %v8594_v29 = vadd.f32 %v9068_v45, %v3604_v25 }
 0x280   : > { %v4857_v38 = vsel %vm4849_vm2, %v4821_v34, 0.0  ;;  %v4929_v30 = vmul.f32 %v4821_v34, %v4821_v34  ;;  %5035 = vst.msk [vmem:[%s8504_s18 + $0x20] sm:$0xff] %vm4849_vm2, %v4821_v34  ;;  %v4824_v7 = vadd.f32 %v6255_v22, %v4402_v10  ;;  %v4276_v11 = vpop.f32.mrf.mxu1  ;;  %v4966_v40 = vsel %vm4849_vm2, %v4930_v16, 0.0 }
 0x281   : > { %v4858_v54 = vadd.f32 %v4857_v38, %v4856_v56  ;;  %v4963_v24 = vadd.f32 %v4962_v0, %v4961_v35  ;;  %v4688_v55 = vpop.f32.mrf.mxu0  ;;  %v4403_v21 = vadd.f32 %v4276_v11, %v8495_v43  ;;  %v9071_v38 = vld [vmem:[#allocation60_spill] sm:$0xff]  ;;  %v9073_v11 = vld [vmem:[#allocation67_spill] sm:$0xff] }
 0x282   : > { %v4964_v63 = vsel %vm4849_vm2, %v4929_v30, 0.0  ;;  %5038 = vst.msk [vmem:[%s8504_s18 + $0x38] sm:$0xff] %vm4849_vm2, %v4824_v7  ;;  %v4823_v13 = vadd.f32 %v4688_v55, %v4401_v36  ;;  %v6211_v51 = vpop.f32.mrf.mxu1  ;;  %v4932_v14 = vmul.f32 %v4824_v7, %v4824_v7  ;;  %v4863_v43 = vsel %vm4849_vm2, %v4824_v7, 0.0  ;;  %v9072_v7 = vld [vmem:[#allocation37_spill] sm:$0xff] }
 0x283   : > { %v4965_v39 = vadd.f32 %v4964_v63, %v4963_v24  ;;  %v4860_v61 = vadd.f32 %v4859_v42, %v4858_v54  ;;  %v6258_v4 = vpop.f32.mrf.mxu0  ;;  %v4406_v47 = vadd.f32 %v6211_v51, %v8507_v31  ;;  %v8612_v30 = vadd.f32 %v9071_v38, %v8564_v18 }
 0x284   : > { %v4861_v2 = vsel %vm4849_vm2, %v4823_v13, 0.0  ;;  %v4931_v41 = vmul.f32 %v4823_v13, %v4823_v13  ;;  %5037 = vst.msk [vmem:[%s8504_s18 + $0x30] sm:$0xff] %vm4849_vm2, %v4823_v13  ;;  %v4826_v49 = vadd.f32 %v6258_v4, %v4404_v52  ;;  %v4286_v15 = vpop.f32.mrf.mxu1  ;;  %v4970_v25 = vsel %vm4849_vm2, %v4932_v14, 0.0 }
 0x285   : > { %v4862_v33 = vadd.f32 %v4861_v2, %v4860_v61  ;;  %v4967_v12 = vadd.f32 %v4966_v40, %v4965_v39  ;;  %v4698_v28 = vpop.f32.mrf.mxu0  ;;  %v4405_v16 = vadd.f32 %v4286_v15, %v8512_v62  ;;  %v8616_v8 = vadd.f32 %v9073_v11, %v9072_v7 }
 0x286   : > { %v4968_v19 = vsel %vm4849_vm2, %v4931_v41, 0.0  ;;  %5040 = vst.msk [vmem:[%s8504_s18 + $0x48] sm:$0xff] %vm4849_vm2, %v4826_v49  ;;  %v4825_v58 = vadd.f32 %v4698_v28, %v4403_v21  ;;  %v6214_v10 = vpop.f32.mrf.mxu1  ;;  %v4934_v48 = vmul.f32 %v4826_v49, %v4826_v49  ;;  %v4867_v62 = vsel %vm4849_vm2, %v4826_v49, 0.0  ;;  %v9074_v21 = vld [vmem:[#allocation59_spill] sm:$0xff]  ;;  %v9075_v41 = vld [vmem:[#allocation29_spill] sm:$0xff] }
 0x287   : > { %v4969_v34 = vadd.f32 %v4968_v19, %v4967_v12  ;;  %v4864_v0 = vadd.f32 %v4863_v43, %v4862_v33  ;;  %v6261_v35 = vpop.f32.mrf.mxu0  ;;  %v4408_v55 = vadd.f32 %v6214_v10, %v8517_v26  ;;  %v8630_v2 = vadd.f32 %v9074_v21, %v8581_v32  ;;  %v9076_v49 = vld [vmem:[#allocation75_spill] sm:$0xff] }
 0x288   : > { %v4865_v56 = vsel %vm4849_vm2, %v4825_v58, 0.0  ;;  %v4933_v22 = vmul.f32 %v4825_v58, %v4825_v58  ;;  %5039 = vst.msk [vmem:[%s8504_s18 + $0x40] sm:$0xff] %vm4849_vm2, %v4825_v58  ;;  %v4828_v36 = vadd.f32 %v6261_v35, %v4406_v47  ;;  %v4296_v31 = vpop.f32.mrf.mxu1  ;;  %v4974_v18 = vsel %vm4849_vm2, %v4934_v48, 0.0  ;;  %v9077_v35 = vld [vmem:[#allocation66_spill] sm:$0xff] }
 0x289   : > { %v4866_v44 = vadd.f32 %v4865_v56, %v4864_v0  ;;  %v4971_v5 = vadd.f32 %v4970_v25, %v4969_v34  ;;  %v4708_v54 = vpop.f32.mrf.mxu0  ;;  %v4407_v39 = vadd.f32 %v4296_v31, %v8522_v9  ;;  %v8634_v15 = vadd.f32 %v9076_v49, %v9075_v41  ;;  %v9078_v56 = vld [vmem:[#allocation45_spill] sm:$0xff] }
 0x28a   : > { %v4972_v24 = vsel %vm4849_vm2, %v4933_v22, 0.0  ;;  %5042 = vst.msk [vmem:[%s8504_s18 + $0x58] sm:$0xff] %vm4849_vm2, %v4828_v36  ;;  %v4827_v42 = vadd.f32 %v4708_v54, %v4405_v16  ;;  %v6217_v63 = vpop.f32.mrf.mxu1  ;;  %v4936_v13 = vmul.f32 %v4828_v36, %v4828_v36  ;;  %v4871_v9 = vsel %vm4849_vm2, %v4828_v36, 0.0 }
 0x28b   : > { %v4973_v52 = vadd.f32 %v4972_v24, %v4971_v5  ;;  %v4868_v51 = vadd.f32 %v4867_v62, %v4866_v44  ;;  %v6264_v40 = vpop.f32.mrf.mxu0  ;;  %v4410_v12 = vadd.f32 %v6217_v63, %v8529_v46  ;;  %v8648_v16 = vadd.f32 %v9077_v35, %v8598_v1 }
 0x28c   : > { %v4869_v14 = vsel %vm4849_vm2, %v4827_v42, 0.0  ;;  %v4935_v61 = vmul.f32 %v4827_v42, %v4827_v42  ;;  %5041 = vst.msk [vmem:[%s8504_s18 + $0x50] sm:$0xff] %vm4849_vm2, %v4827_v42  ;;  %v4830_v4 = vadd.f32 %v6264_v40, %v4408_v55  ;;  %v4306_v26 = vpop.f32.mrf.mxu1  ;;  %v4978_v32 = vsel %vm4849_vm2, %v4936_v13, 0.0  ;;  %v9081_v40 = vld [vmem:[#allocation65_spill] sm:$0xff] }
 0x28d   : > { %v4870_v45 = vadd.f32 %v4869_v14, %v4868_v51  ;;  %v4975_v6 = vadd.f32 %v4974_v18, %v4973_v52  ;;  %v4718_v53 = vpop.f32.mrf.mxu0  ;;  %v4409_v25 = vadd.f32 %v4306_v26, %v8538_v23  ;;  %v8652_v22 = vadd.f32 %v8429_v59, %v9078_v56  ;;  %v9079_v52 = vld [vmem:[#allocation73_spill] sm:$0xff]  ;;  %v9080_v51 = vld [vmem:[#allocation36_spill] sm:$0xff] }
 0x28e   : > { %v4976_v33 = vsel %vm4849_vm2, %v4935_v61, 0.0  ;;  %5044 = vst.msk [vmem:[%s8504_s18 + $0x68] sm:$0xff] %vm4849_vm2, %v4830_v4  ;;  %v4829_v28 = vadd.f32 %v4718_v53, %v4407_v39  ;;  %v6220_v43 = vpop.f32.mrf.mxu1  ;;  %v4938_v47 = vmul.f32 %v4830_v4, %v4830_v4  ;;  %v4875_v23 = vsel %vm4849_vm2, %v4830_v4, 0.0 }
 0x28f   : > { %v4977_v19 = vadd.f32 %v4976_v33, %v4975_v6  ;;  %v4872_v58 = vadd.f32 %v4871_v9, %v4870_v45  ;;  %v6267_v10 = vpop.f32.mrf.mxu0  ;;  %v4412_v11 = vadd.f32 %v6220_v43, %v8543_v27  ;;  %v8666_v13 = vadd.f32 %v9079_v52, %v8616_v8 }
 0x290   : > { %v4873_v34 = vsel %vm4849_vm2, %v4829_v28, 0.0  ;;  %v4937_v48 = vmul.f32 %v4829_v28, %v4829_v28  ;;  %5043 = vst.msk [vmem:[%s8504_s18 + $0x60] sm:$0xff] %vm4849_vm2, %v4829_v28  ;;  %v4832_v0 = vadd.f32 %v6267_v10, %v4410_v12  ;;  %v4316_v46 = vpop.f32.mrf.mxu1  ;;  %v4982_v1 = vsel %vm4849_vm2, %v4938_v47, 0.0  ;;  %v9083_v47 = vld [vmem:[#allocation43_spill] sm:$0xff] }
 0x291   : > { %v4874_v36 = vadd.f32 %v4873_v34, %v4872_v58  ;;  %v4979_v31 = vadd.f32 %v4978_v32, %v4977_v19  ;;  %v4728_v38 = vpop.f32.mrf.mxu0  ;;  %v4411_v55 = vadd.f32 %v4316_v46, %v8552_v20  ;;  %v8670_v39 = vadd.f32 %v9081_v40, %v9080_v51  ;;  %v9082_v32 = vld [vmem:[#allocation81_spill] sm:$0xff]  ;;  %v9084_v58 = vld [vmem:[#allocation72_spill] sm:$0xff] }
 0x292   : > { %v4980_v7 = vsel %vm4849_vm2, %v4937_v48, 0.0  ;;  %5046 = vst.msk [vmem:[%s8504_s18 + $0x78] sm:$0xff] %vm4849_vm2, %v4832_v0  ;;  %v4831_v44 = vadd.f32 %v4728_v38, %v4409_v25  ;;  %v6223_v5 = vpop.f32.mrf.mxu1  ;;  %v4940_v62 = vmul.f32 %v4832_v0, %v4832_v0  ;;  %v4879_v20 = vsel %vm4849_vm2, %v4832_v0, 0.0 }
 0x293   : > { %v4981_v54 = vadd.f32 %v4980_v7, %v4979_v31  ;;  %v4876_v59 = vadd.f32 %v4875_v23, %v4874_v36  ;;  %v6270_v24 = vpop.f32.mrf.mxu0  ;;  %v4414_v21 = vadd.f32 %v6223_v5, %v8560_v57  ;;  %v4029_v19 = vadd.f32 %v9082_v32, %v8634_v15 }
 0x294   : > { %v4877_v42 = vsel %vm4849_vm2, %v4831_v44, 0.0  ;;  %v4939_v63 = vmul.f32 %v4831_v44, %v4831_v44  ;;  %5045 = vst.msk [vmem:[%s8504_s18 + $0x70] sm:$0xff] %vm4849_vm2, %v4831_v44  ;;  %v4834_v18 = vadd.f32 %v6270_v24, %v4412_v11  ;;  %v4326_v27 = vpop.f32.mrf.mxu1  ;;  %v4986_v8 = vsel %vm4849_vm2, %v4940_v62, 0.0  ;;  %v9086_v62 = vld [vmem:[#allocation35_spill] sm:$0xff] }
 0x295   : > { %v4878_v14 = vadd.f32 %v4877_v42, %v4876_v59  ;;  %v4983_v61 = vadd.f32 %v4982_v1, %v4981_v54  ;;  %v4738_v4 = vpop.f32.mrf.mxu0  ;;  %v4413_v33 = vadd.f32 %v4326_v27, %v8577_v3  ;;  %v8686_v10 = vadd.f32 %v9084_v58, %v9083_v47  ;;  %v9085_v1 = vld [vmem:[#allocation79_spill] sm:$0xff] }
 0x296   : > { %v4984_v26 = vsel %vm4849_vm2, %v4939_v63, 0.0  ;;  %5048 = vst.msk [vmem:[%s8504_s18 + $0x88] sm:$0xff] %vm4849_vm2, %v4834_v18  ;;  %v4833_v41 = vadd.f32 %v4738_v4, %v4411_v55  ;;  %v6226_v49 = vpop.f32.mrf.mxu1  ;;  %v4942_v6 = vmul.f32 %v4834_v18, %v4834_v18  ;;  %v4883_v3 = vsel %vm4849_vm2, %v4834_v18, 0.0  ;;  %v9087_v59 = vld [vmem:[#allocation71_spill] sm:$0xff] }
 0x297   : > { %v4985_v45 = vadd.f32 %v4984_v26, %v4983_v61  ;;  %v4880_v53 = vadd.f32 %v4879_v20, %v4878_v14  ;;  %v6273_v9 = vpop.f32.mrf.mxu0  ;;  %v4416_v46 = vadd.f32 %v6226_v49, %v8594_v29  ;;  %v4032_v54 = vadd.f32 %v9085_v1, %v8652_v22 }
 0x298   : > { %v4881_v12 = vsel %vm4849_vm2, %v4833_v41, 0.0  ;;  %v4941_v28 = vmul.f32 %v4833_v41, %v4833_v41  ;;  %5047 = vst.msk [vmem:[%s8504_s18 + $0x80] sm:$0xff] %vm4849_vm2, %v4833_v41  ;;  %v4836_v43 = vadd.f32 %v6273_v9, %v4414_v21  ;;  %v4336_v57 = vpop.f32.mrf.mxu1  ;;  %v4990_v15 = vsel %vm4849_vm2, %v4942_v6, 0.0 }
 0x299   : > { %v4882_v25 = vadd.f32 %v4881_v12, %v4880_v53  ;;  %v4987_v34 = vadd.f32 %v4986_v8, %v4985_v45  ;;  %v4748_v48 = vpop.f32.mrf.mxu0  ;;  %v4415_v7 = vadd.f32 %v4336_v57, %v8612_v30  ;;  %v8702_v24 = vadd.f32 %v9087_v59, %v9086_v62  ;;  %v9088_v8 = vld [vmem:[#allocation51_spill] sm:$0xff]  ;;  %v9089_v45 = vld [vmem:[#allocation78_spill] sm:$0xff] }
 0x29a   : > { %v4988_v0 = vsel %vm4849_vm2, %v4941_v28, 0.0  ;;  %5050 = vst.msk [vmem:[%s8504_s18 + $0x98] sm:$0xff] %vm4849_vm2, %v4836_v43  ;;  %v4835_v35 = vadd.f32 %v4748_v48, %v4413_v33  ;;  %v6229_v56 = vpop.f32.mrf.mxu1  ;;  %v4944_v31 = vmul.f32 %v4836_v43, %v4836_v43  ;;  %v4887_v30 = vsel %vm4849_vm2, %v4836_v43, 0.0 }
 0x29b   : > { %v4989_v36 = vadd.f32 %v4988_v0, %v4987_v34  ;;  %v4884_v38 = vadd.f32 %v4883_v3, %v4882_v25  ;;  %v6276_v23 = vpop.f32.mrf.mxu0  ;;  %v4418_v27 = vadd.f32 %v6229_v56, %v8630_v2  ;;  %v4031_v49 = vadd.f32 %v8443_v37, %v8670_v39  ;;  %v9092_v56 = vld [vmem:[#allocation84_spill] sm:$0xff] }
 0x29c   : > { %v4885_v11 = vsel %vm4849_vm2, %v4835_v35, 0.0  ;;  %v4943_v44 = vmul.f32 %v4835_v35, %v4835_v35  ;;  %5049 = vst.msk [vmem:[%s8504_s18 + $0x90] sm:$0xff] %vm4849_vm2, %v4835_v35  ;;  %v4838_v5 = vadd.f32 %v6276_v23, %v4416_v46  ;;  %v4346_v29 = vpop.f32.mrf.mxu1  ;;  %v4994_v22 = vsel %vm4849_vm2, %v4944_v31, 0.0  ;;  %v9091_v35 = vld [vmem:[#allocation42_spill] sm:$0xff] }
 0x29d   : > { %v4886_v55 = vadd.f32 %v4885_v11, %v4884_v38  ;;  %v4991_v42 = vadd.f32 %v4990_v15, %v4989_v36  ;;  %v4758_v63 = vpop.f32.mrf.mxu0  ;;  %v4417_v20 = vadd.f32 %v4346_v29, %v8648_v16  ;;  %v3614_v6 = vadd.f32 %v9089_v45, %v9088_v8 }
 0x29e   : > { %v4992_v18 = vsel %vm4849_vm2, %v4943_v44, 0.0  ;;  %5052 = vst.msk [vmem:[%s8504_s18 + $0xa8] sm:$0xff] %vm4849_vm2, %v4838_v5  ;;  %v4837_v52 = vadd.f32 %v4758_v63, %v4415_v7  ;;  %v6232_v51 = vpop.f32.mrf.mxu1  ;;  %v4946_v14 = vmul.f32 %v4838_v5, %v4838_v5  ;;  %v4891_v12 = vsel %vm4849_vm2, %v4838_v5, 0.0 }
 0x29f   : > { %v4993_v40 = vadd.f32 %v4992_v18, %v4991_v42  ;;  %v4888_v61 = vadd.f32 %v4887_v30, %v4886_v55  ;;  %v6279_v4 = vpop.f32.mrf.mxu0  ;;  %v4420_v28 = vadd.f32 %v6232_v51, %v8666_v13  ;;  %v9090_v13 = vld [vmem:[#allocation77_spill] sm:$0xff]  ;;  %v3613_v15 = vadd.f32 %v9092_v56, %v9091_v35 }
 0x2a0   : > { %v4889_v26 = vsel %vm4849_vm2, %v4837_v52, 0.0  ;;  %v4945_v21 = vmul.f32 %v4837_v52, %v4837_v52  ;;  %5051 = vst.msk [vmem:[%s8504_s18 + $0xa0] sm:$0xff] %vm4849_vm2, %v4837_v52  ;;  %v4840_v41 = vadd.f32 %v6279_v4, %v4418_v27  ;;  %v4356_v2 = vpop.f32.mrf.mxu1  ;;  %v4998_v32 = vsel %vm4849_vm2, %v4946_v14, 0.0 }
 0x2a1   : > { %v4890_v53 = vadd.f32 %v4889_v26, %v4888_v61  ;;  %v4995_v9 = vadd.f32 %v4994_v22, %v4993_v40  ;;  %v4768_v33 = vpop.f32.mrf.mxu0  ;;  %v4419_v25 = vadd.f32 %v4356_v2, %v4029_v19  ;;  %v4034_v46 = vadd.f32 %v9090_v13, %v8686_v10 }
 0x2a2   : > { %v4996_v16 = vsel %vm4849_vm2, %v4945_v21, 0.0  ;;  %5054 = vst.msk [vmem:[%s8504_s18 + $0xb8] sm:$0xff] %vm4849_vm2, %v4840_v41  ;;  %v4839_v43 = vadd.f32 %v4768_v33, %v4417_v20  ;;  %v6235_v57 = vpop.f32.mrf.mxu1  ;;  %v4948_v39 = vmul.f32 %v4840_v41, %v4840_v41  ;;  %v4895_v23 = vsel %vm4849_vm2, %v4840_v41, 0.0 }
 0x2a3   : > { %v4997_v37 = vadd.f32 %v4996_v16, %v4995_v9  ;;  %v4892_v47 = vadd.f32 %v4891_v12, %v4890_v53  ;;  %v6282_v58 = vpop.f32.mrf.mxu0  ;;  %v4422_v7 = vadd.f32 %v6235_v57, %v4032_v54  ;;  %v4033_v54 = vadd.f32 %v8455_v60, %v8702_v24 }
 0x2a4   : > { %v4893_v34 = vsel %vm4849_vm2, %v4839_v43, 0.0  ;;  %v4947_v48 = vmul.f32 %v4839_v43, %v4839_v43  ;;  %5053 = vst.msk [vmem:[%s8504_s18 + $0xb0] sm:$0xff] %vm4849_vm2, %v4839_v43  ;;  %v4842_v3 = vadd.f32 %v6282_v58, %v4420_v28  ;;  %v4366_v0 = vpop.f32.mrf.mxu1  ;;  %v5002_v5 = vsel %vm4849_vm2, %v4948_v39, 0.0 }
 0x2a5   : > { %v4894_v36 = vadd.f32 %v4893_v34, %v4892_v47  ;;  %v4999_v31 = vadd.f32 %v4998_v32, %v4997_v37  ;;  %v4778_v38 = vpop.f32.mrf.mxu0  ;;  %v4421_v59 = vadd.f32 %v4366_v0, %v4031_v49  ;;  %v4036_v18 = vadd.f32 %v8465_v50, %v3614_v6 }
 0x2a6   : > { %v5000_v19 = vsel %vm4849_vm2, %v4947_v48, 0.0  ;;  %5056 = vst.msk [vmem:[%s8504_s18 + $0xc8] sm:$0xff] %vm4849_vm2, %v4842_v3  ;;  %v4841_v11 = vadd.f32 %v4778_v38, %v4419_v25  ;;  %v6238_v44 = vpop.f32.mrf.mxu1  ;;  %v4950_v10 = vmul.f32 %v4842_v3, %v4842_v3  ;;  %v4899_v22 = vsel %vm4849_vm2, %v4842_v3, 0.0 }
 0x2a7   : > { %v5001_v29 = vadd.f32 %v5000_v19, %v4999_v31  ;;  %v4896_v1 = vadd.f32 %v4895_v23, %v4894_v36  ;;  %v6285_v62 = vpop.f32.mrf.mxu0  ;;  %v4424_v14 = vadd.f32 %v6238_v44, %v4034_v46  ;;  %v4035_v45 = vadd.f32 %v8479_v17, %v3613_v15 }
 0x2a8   : > { %v4897_v55 = vsel %vm4849_vm2, %v4841_v11, 0.0  ;;  %v4949_v42 = vmul.f32 %v4841_v11, %v4841_v11  ;;  %5055 = vst.msk [vmem:[%s8504_s18 + $0xc0] sm:$0xff] %vm4849_vm2, %v4841_v11  ;;  %v4844_v63 = vadd.f32 %v6285_v62, %v4422_v7  ;;  %v4376_v30 = vpop.f32.mrf.mxu1  ;;  %v5006_v20 = vsel %vm4849_vm2, %v4950_v10, 0.0 }
 0x2a9   : > { %v4898_v27 = vadd.f32 %v4897_v55, %v4896_v1  ;;  %v5003_v52 = vadd.f32 %v5002_v5, %v5001_v29  ;;  %v4788_v51 = vpop.f32.mrf.mxu0  ;;  %v4423_v24 = vadd.f32 %v4376_v30, %v4033_v54 }
 0x2aa   : > { %v5004_v40 = vsel %vm4849_vm2, %v4949_v42, 0.0  ;;  %5058 = vst.msk [vmem:[%s8504_s18 + $0xd8] sm:$0xff] %vm4849_vm2, %v4844_v63  ;;  %v4843_v61 = vadd.f32 %v4788_v51, %v4421_v59  ;;  %v6241_v4 = vpop.f32.mrf.mxu1  ;;  %v4952_v21 = vmul.f32 %v4844_v63, %v4844_v63  ;;  %v4903_v33 = vsel %vm4849_vm2, %v4844_v63, 0.0 }
 0x2ab   : > { %v5005_v26 = vadd.f32 %v5004_v40, %v5003_v52  ;;  %v4900_v60 = vadd.f32 %v4899_v22, %v4898_v27  ;;  %v6288_v50 = vpop.f32.mrf.mxu0  ;;  %v4426_v16 = vadd.f32 %v6241_v4, %v4036_v18 }
 0x2ac   : > { %v4901_v41 = vsel %vm4849_vm2, %v4843_v61, 0.0  ;;  %v4951_v2 = vmul.f32 %v4843_v61, %v4843_v61  ;;  %5057 = vst.msk [vmem:[%s8504_s18 + $0xd0] sm:$0xff] %vm4849_vm2, %v4843_v61  ;;  %v4846_v49 = vadd.f32 %v6288_v50, %v4424_v14  ;;  %v4386_v8 = vpop.f32.mrf.mxu1  ;;  %v5010_v43 = vsel %vm4849_vm2, %v4952_v21, 0.0 }
 0x2ad   : > { %v4902_v6 = vadd.f32 %v4901_v41, %v4900_v60  ;;  %v5007_v53 = vadd.f32 %v5006_v20, %v5005_v26  ;;  %v4798_v9 = vpop.f32.mrf.mxu0  ;;  %v4425_v32 = vadd.f32 %v4386_v8, %v4035_v45 }
 0x2ae   : > { %v5008_v12 = vsel %vm4849_vm2, %v4951_v2, 0.0  ;;  %5060 = vst.msk [vmem:[%s8504_s18 + $0xe8] sm:$0xff] %vm4849_vm2, %v4846_v49  ;;  %v4845_v28 = vadd.f32 %v4798_v9, %v4423_v24  ;;  %v4954_v17 = vmul.f32 %v4846_v49, %v4846_v49  ;;  %v4907_v34 = vsel %vm4849_vm2, %v4846_v49, 0.0 }
 0x2af   : > { %v5009_v57 = vadd.f32 %v5008_v12, %v5007_v53  ;;  %v4904_v37 = vadd.f32 %v4903_v33, %v4902_v6  ;;  %v6291_v39 = vpop.f32.mrf.mxu0 }
 0x2b0   : > { %v4905_v47 = vsel %vm4849_vm2, %v4845_v28, 0.0  ;;  %v4953_v58 = vmul.f32 %v4845_v28, %v4845_v28  ;;  %5059 = vst.msk [vmem:[%s8504_s18 + $0xe0] sm:$0xff] %vm4849_vm2, %v4845_v28  ;;  %v4848_v25 = vadd.f32 %v6291_v39, %v4426_v16  ;;  %v5014_v23 = vsel %vm4849_vm2, %v4954_v17, 0.0 }
 0x2b1   : > { %v4906_v48 = vadd.f32 %v4905_v47, %v4904_v37  ;;  %v4808_v3 = vpop.f32.mrf.mxu0  ;;  %v5011_v0 = vadd.f32 %v5010_v43, %v5009_v57 }
 0x2b2   : > { %v5012_v13 = vsel %vm4849_vm2, %v4953_v58, 0.0  ;;  %5062 = vst.msk [vmem:[%s8504_s18 + $0xf8] sm:$0xff] %vm4849_vm2, %v4848_v25  ;;  %v4847_v46 = vadd.f32 %v4808_v3, %v4425_v32  ;;  %v4911_v35 = vsel %vm4849_vm2, %v4848_v25, 0.0  ;;  %v4956_v56 = vmul.f32 %v4848_v25, %v4848_v25 }
 0x2b3   : > { %v4908_v15 = vadd.f32 %v4907_v34, %v4906_v48  ;;  %v5013_v36 = vadd.f32 %v5012_v13, %v5011_v0 }
 0x2b4   : > { %v4955_v31 = vmul.f32 %v4847_v46, %v4847_v46  ;;  %5061 = vst.msk [vmem:[%s8504_s18 + $0xf0] sm:$0xff] %vm4849_vm2, %v4847_v46  ;;  %v4909_v38 = vsel %vm4849_vm2, %v4847_v46, 0.0  ;;  %v5018_v19 = vsel %vm4849_vm2, %v4956_v56, 0.0 }
 0x2b5   : > { %v4910_v7 = vadd.f32 %v4909_v38, %v4908_v15  ;;  %v5015_v11 = vadd.f32 %v5014_v23, %v5013_v36 }
 0x2b6   : > { %v5016_v44 = vsel %vm4849_vm2, %v4955_v31, 0.0 }
 0x2b7   : > { %v4912_v5 = vadd.f32 %v4911_v35, %v4910_v7  ;;  %v5017_v29 = vadd.f32 %v5016_v44, %v5015_v11 }
 0x2b9   : > { %4913 = vadd.xlane.f32.xlu0 %v4912_v5  ;;  %v5019_v10 = vadd.f32 %v5018_v19, %v5017_v29 }
 0x2bb   : > { %5020 = vadd.xlane.f32.xlu1 %v5019_v10 }
 0x342   : > { %v4914_v1 = vpop.xlane.xlu0 %4913 }
 0x343   : > { %v4915_v62 = vrot.slane %v4914_v1, 4 }
 0x344   : > { %v5021_v59 = vpop.xlane.xlu1 %5020 }
 0x345   : > { %v4916_v55 = vadd.f32 %v4915_v62, %v4914_v1  ;;  %v5022_v42 = vrot.slane %v5021_v59, 4 }
 0x347   : > { %v4917_v63 = vrot.slane %v4916_v55, 2  ;;  %v5023_v30 = vadd.f32 %v5022_v42, %v5021_v59 }
 0x349   : > { %v5024_v54 = vrot.slane %v5023_v30, 2  ;;  %v4918_v18 = vadd.f32 %v4917_v63, %v4916_v55 }
 0x34b   : > { %v5025_v27 = vadd.f32 %v5024_v54, %v5023_v30  ;;  %v4919_v52 = vrot.slane %v4918_v18, 1 }
 0x34d   : > { %v4920_v51 = vadd.f32 %v4919_v52, %v4918_v18  ;;  %v5026_v22 = vrot.slane %v5025_v27, 1 }
 0x34f   : > { %6294 = vpush %v4920_v51  ;;  %v5027_v40 = vadd.f32 %v5026_v22, %v5025_v27 }
 0x351   : > { %6296 = vpush %v5027_v40 }
 0x380   : > { %s6295_s21 = spop %6294 }
 0x381   : > { %v4922_v14 = vstv %s6295_s21 }
 0x382   : > { %4924 = vst.msk [vmem:[%s404_s20] sm:$0x1] %vm4923_vm3, %v4922_v14  ;;  %s6297_s25 = spop %6296 }
 0x383   : > { %v5029_v61 = vstv %s6297_s25 }
 0x384   : > { %5030 = vst.msk [vmem:[%s407_s24] sm:$0x1] %vm4923_vm3, %v5029_v61 }
 0x385 PF: > { %s23_s13 = sadd.s32 1, %s6507_s13  }
 0x386   : > { %p20_p3 = scmp.ge.s32.totalorder %s23_s13, 4  }
 0x388   :  { %22 = sbr.rel (!%p20_p3) target bundleno = 2 (0x2), region = 123 }
 0x38d   :  { %5108 = vsyncpa [#allocation4], 1 }
 0x38e   :  { %5110 = vsyncpa [#allocation4 + $0x1], 1 }
 0x38f   :  { %5111 = vsyncpa [#allocation6], 1 }

// kernel: res_block_forward.5
= control target key start
LH: loop header
LB: loop body
LE: loop exit
PB: predicated region body
PF: predicated region fallthrough
CT: control target
= control target key end

     0   :  { %15 = vsyncpa [#allocation4], 0  ;;  %s9342_s0 = inlined_call_operand.vmem [shape: f32[2,1,1], index: 0, kind: input, shape index: {}]   ;;  %s9343_s1 = inlined_call_operand.vmem [shape: f32[2,1,1], index: 1, kind: input, shape index: {}]   ;;  %s9344_s2 = inlined_call_operand.vmem [shape: f32[2,256,8], index: 2, kind: input, shape index: {}]   ;;  %s9345_s3 = inlined_call_operand.vmem [shape: f32[1,8], index: 3, kind: input, shape index: {}]   ;;  %s9346_s4 = inlined_call_operand.vmem [shape: f32[1,8], index: 4, kind: input, shape index: {}]   ;;  %s9347_s5 = inlined_call_operand.vmem [shape: f32[9,8,8], index: 5, kind: input, shape index: {}]   ;;  %s9348_s6 = inlined_call_operand.vmem [shape: f32[256,1], index: 6, kind: input, shape index: {}]   ;;  %s9349_s7 = inlined_call_operand.vmem [shape: f32[256,1], index: 7, kind: input, shape index: {}]   ;;  %s9350_s8 = inlined_call_operand.vmem [shape: f32[2,256,4], index: 8, kind: input, shape index: {}]   ;;  %s9351_s9 = inlined_call_operand.vmem [shape: f32[4,8], index: 9, kind: input, shape index: {}]   ;;  %s9352_s10 = inlined_call_operand.vmem [shape: f32[2,256,8], index: 10, kind: output, shape index: {}]  }
   0x1   :  { %16 = vsyncpa [#allocation6], 0  ;;  %s6827_s13 = smov 0  }
   0x2 LB: > { %s285_s16 = sshll.u32 %s9342_s0, 4  ;;  %s6836_s17 = sadd.s32 4294967295, %s6764_s13   ;;  %s6764_s13 = sphi %s6827_s13, %s22_s13   ;;  %s286_s16 = int_to_ptr.vmem [resolvable:$true] %s285_s16 }
   0x3   : > { %p5338_p0 = scmp.ge.s32.totalorder %s6764_s13, 1  ;;  %p273_p1 = scmp.lt.s32.totalorder %s6764_s13, 3 }
   0x4   : > { %p9353_p3 = scmp.eq.s32.totalorder %s6836_s17, 0  ;;  %s298_s21 = sshll.u32 %s9343_s1, 4  ;;  %s299_s21 = int_to_ptr.vmem [resolvable:$true] %s298_s21 }
   0x5   : > { %p6840_p2 = pnand %p5338_p0, %p273_p1  ;;  %s6720_s23 = scalar_lea.vmem %s286_s16, 32 }
   0x6   : > { %p6721_p6 = scmp.ne.s32.totalorder %s286_s16, %s6720_s23  ;;  %p6728_p10 = scmp.lt.s32.totalorder %s286_s16, %s286_s16 }
   0x7   : > { %s9390_s18 = scalar_select %p6840_p2, 1, 0 }
   0x8   : > { %p6556_p4 = pneg %p6840_p2  ;;  %p6729_p11 = scmp.lt.s32.totalorder %s6720_s23, %s6720_s23 }
   0xa   : > { %p6852_p5 = pnand %p9353_p3, %p6556_p4  ;;  %p6730_p12 = por %p6729_p11, %p6728_p10 }
   0xc   : > { %p6722_p7 = pneg %p6852_p5 }
   0xe   : > { %p6723_p8 = pnand %p6722_p7, %p6721_p6 }
  0x10   : > { %p6724_p9 = pneg %p6723_p8 }
  0x12   : > { %p6731_p13 = pnand %p6730_p12, %p6724_p9 }
  0x14   : > { %6734 = shalt.err (!%p6731_p13)
}
  0x15   : > { %s6766_s24 = smov [#allocation3]   ;;  %s6767_s25 = smov 16  }
  0x16   : > { %s6768_s26 = smov 1   ;;  %s6735_s27 = scalar_lea.vmem %s299_s21, 32 }
  0x17   : > { %6559 = dma.vmem_to_smem (!%p6852_p5), %s286_s16, 32, %s6766_s24, [#allocation4], %s6767_s25, %s6767_s25, %s6768_s26  }
  0x18   : > { %p6736_p0 = scmp.ne.s32.totalorder %s299_s21, %s6735_s27  ;;  %p6743_p6 = scmp.lt.s32.totalorder %s299_s21, %s299_s21 }
  0x19   : > { %p6744_p8 = scmp.lt.s32.totalorder %s6735_s27, %s6735_s27 }
  0x1a   : > { %p6738_p1 = pnand %p6736_p0, %p6722_p7 }
  0x1b   : > { %p6745_p3 = por %p6744_p8, %p6743_p6 }
  0x1c   : > { %p6739_p4 = pneg %p6738_p1 }
  0x1e   : > { %p6746_p2 = pnand %p6745_p3, %p6739_p4 }
  0x20   : > { %6749 = shalt.err (!%p6746_p2)
}
  0x21   : > { %s6769_s28 = smov [#allocation5]   ;;  %p9392_p9 = scmp.ne.s32.totalorder %s9390_s18, 0 }
  0x22   : > { %6562 = dma.vmem_to_smem (!%p6852_p5), %s299_s21, 32, %s6769_s28, [#allocation6], %s6767_s25, %s6767_s25, %s6768_s26  }
  0x23   : > { %348 = sbr.rel (%p9392_p9) target bundleno = 695 (0x2b7), region = 60 }
  0x28   : > { %p9393_p10 = scmp.eq.s32.totalorder %s6836_s17, 0 }
  0x2a   : > { %6755 = dma.done.wait (%p9393_p10), [#allocation4], 32   ;;  %p9394_p11 = pmov %p9393_p10 }
  0x2b   : > { %p9395_p7 = pmov %p9393_p10 }
  0x2c   : > { %6757 = vsyncadd (%p9394_p11), [#allocation4], 4294967264 }
  0x2d   : > { %6759 = dma.done.wait (%p9395_p7), [#allocation6], 32   ;;  %p9396_p12 = pmov %p9395_p7 }
  0x2f   : > { %6761 = vsyncadd (%p9396_p12), [#allocation6], 4294967264 }
  0x30   : > { %358 = sfence }
  0x31   : > { %v832_v0 = vld [vmem:[%s9348_s6 + $0x10] sm:$0xff]  ;;  %v830_v1 = vld [vmem:[%s9348_s6] sm:$0xff]  ;;  %s5351_s14 = sshll.u32 %s6836_s17, 7  ;;  %v6770_v2 = vmov 0   ;;  %vm759_vm0 = vcmask 64512   ;;  %v6771_v3 = vmov 0.0   ;;  %v460_v21 = vlaneseq }
  0x32   : > { %6582 = vset.pattern.permute.xlu1 %v6770_v2  ;;  %6581 = vset.pattern.permute.xlu0 %v6770_v2  ;;  %s6887_s15 = sld [smem:[#allocation3 + %s5351_s14]]  ;;  %762 = vst.msk [vmem:[#allocation2 + $0x10] sm:$0xff] %vm759_vm0, %v6771_v3  ;;  %763 = vst.msk [vmem:[#allocation2 + $0x18] sm:$0xff] %vm759_vm0, %v6771_v3  ;;  %v833_v4 = vld [vmem:[%s9348_s6 + $0x18] sm:$0xff]  ;;  %v831_v5 = vld [vmem:[%s9348_s6 + $0x8] sm:$0xff]  ;;  %p396_p2 = scmp.lt.s32.totalorder %s6836_s17, 1 }
  0x33   : > { %938 = vperm.xlu1 %6582, %v832_v0   ;;  %928 = vperm.xlu0 %6581, %v830_v1   ;;  %764 = vst.msk [vmem:[#allocation2 + $0x20] sm:$0xff] %vm759_vm0, %v6771_v3  ;;  %765 = vst.msk [vmem:[#allocation2 + $0x28] sm:$0xff] %vm759_vm0, %v6771_v3  ;;  %s413_s21 = sld [smem:[#allocation5 + %s5351_s14]]  ;;  %v835_v6 = vld [vmem:[%s9348_s6 + $0x28] sm:$0xff]  ;;  %v834_v7 = vld [vmem:[%s9348_s6 + $0x20] sm:$0xff]  ;;  %v461_v25 = vshrl.u32 %v460_v21, 7 }
  0x34   : > { %766 = vst.msk [vmem:[#allocation2 + $0x30] sm:$0xff] %vm759_vm0, %v6771_v3  ;;  %767 = vst.msk [vmem:[#allocation2 + $0x38] sm:$0xff] %vm759_vm0, %v6771_v3  ;;  %v837_v13 = vld [vmem:[%s9348_s6 + $0x38] sm:$0xff]  ;;  %v836_v14 = vld [vmem:[%s9348_s6 + $0x30] sm:$0xff]  ;;  %s9667_s17 = smov (!%p396_p2, %s6836_s17), 1  ;;  %vm4954_vm1 = vcmask 1043456  }
  0x35   : > { %760 = vst.msk [vmem:[#allocation2] sm:$0xff] %vm759_vm0, %v6771_v3  ;;  %761 = vst.msk [vmem:[#allocation2 + $0x8] sm:$0xff] %vm759_vm0, %v6771_v3  ;;  %v839_v17 = vld [vmem:[%s9348_s6 + $0x48] sm:$0xff]  ;;  %v838_v18 = vld [vmem:[%s9348_s6 + $0x40] sm:$0xff]  ;;  %s6971_s26 = sshll.u32 %s9667_s17, 8  ;;  %v462_v34 = vsub.s32 0, %v461_v25 }
  0x36   : > { %768 = vst.msk [vmem:[#allocation2 + $0x40] sm:$0xff] %vm759_vm0, %v6771_v3  ;;  %769 = vst.msk [vmem:[#allocation2 + $0x48] sm:$0xff] %vm759_vm0, %v6771_v3  ;;  %v841_v19 = vld [vmem:[%s9348_s6 + $0x58] sm:$0xff]  ;;  %v840_v20 = vld [vmem:[%s9348_s6 + $0x50] sm:$0xff]  ;;  %s6997_s22 = scalar_lea.vmem %s9344_s2, %s6971_s26  ;;  %s8699_s14 = scalar_lea.vmem %s9350_s8, %s6971_s26  ;;  %vm4857_vm2 = vcmask 31744  }
  0x37   : > { %770 = vst.msk [vmem:[#allocation2 + $0x50] sm:$0xff] %vm759_vm0, %v6771_v3  ;;  %771 = vst.msk [vmem:[#allocation2 + $0x58] sm:$0xff] %vm759_vm0, %v6771_v3  ;;  %943 = vperm.xlu1 %6582, %v833_v4   ;;  %933 = vperm.xlu0 %6581, %v831_v5   ;;  %v843_v22 = vld [vmem:[%s9348_s6 + $0x68] sm:$0xff]  ;;  %v842_v23 = vld [vmem:[%s9348_s6 + $0x60] sm:$0xff]  ;;  %s9187_s18 = scalar_lea.vmem %s9352_s10, %s6971_s26 }
  0x38   : > { %772 = vst.msk [vmem:[#allocation2 + $0x60] sm:$0xff] %vm759_vm0, %v6771_v3  ;;  %773 = vst.msk [vmem:[#allocation2 + $0x68] sm:$0xff] %vm759_vm0, %v6771_v3  ;;  %v415_v8 = vstv %s6887_s15  ;;  %v5384_v24 = vld [vmem:[%s9347_s5 + $0x8] sm:$0xff]  ;;  %v1118_v28 = vld [vmem:[%s9347_s5] sm:$0xff] }
  0x39   : > { %774 = vst.msk [vmem:[#allocation2 + $0x70] sm:$0xff] %vm759_vm0, %v6771_v3  ;;  %775 = vst.msk [vmem:[#allocation2 + $0x78] sm:$0xff] %vm759_vm0, %v6771_v3  ;;  %v416_v9 = vmul.f32 0.00048828125, %v415_v8  ;;  %v417_v10 = vstv %s413_s21  ;;  %6048 = vmatprep.subr.mxu0 %v5384_v24  ;;  %v1120_v27 = vld [vmem:[#allocation2 + $0x10] sm:$0xff]  ;;  %v5482_v30 = vld [vmem:[%s9347_s5 + $0x18] sm:$0xff]  ;;  %6098 = vmatprep.subr.mxu1 %v1118_v28 }
  0x3a   : > { %776 = vst.msk [vmem:[#allocation2 + $0x80] sm:$0xff] %vm759_vm0, %v6771_v3  ;;  %777 = vst.msk [vmem:[#allocation2 + $0x88] sm:$0xff] %vm759_vm0, %v6771_v3  ;;  %v418_v11 = vmul.f32 0.00048828125, %v417_v10  ;;  %6049 = vmatpush3.msra.mxu0 %v5384_v24  ;;  %v5449_v29 = vld [vmem:[%s9347_s5 + $0x10] sm:$0xff]  ;;  %v845_v31 = vld [vmem:[%s9348_s6 + $0x78] sm:$0xff]  ;;  %6099 = vmatpush3.msra.mxu1 %v1118_v28 }
  0x3b   : > { %778 = vst.msk [vmem:[#allocation2 + $0x90] sm:$0xff] %vm759_vm0, %v6771_v3  ;;  %779 = vst.msk [vmem:[#allocation2 + $0x98] sm:$0xff] %vm759_vm0, %v6771_v3  ;;  %953 = vperm.xlu1 %6582, %v835_v6   ;;  %948 = vperm.xlu0 %6581, %v834_v7   ;;  %v419_v12 = vmul.f32 %v416_v9, %v416_v9  ;;  %v844_v32 = vld [vmem:[%s9348_s6 + $0x70] sm:$0xff]  ;;  %v414_v33 = vld [vmem:[%s9345_s3] sm:$0x1] }
  0x3c   : > { %780 = vst.msk [vmem:[#allocation2 + $0xa0] sm:$0xff] %vm759_vm0, %v6771_v3  ;;  %781 = vst.msk [vmem:[#allocation2 + $0xa8] sm:$0xff] %vm759_vm0, %v6771_v3  ;;  %v1119_v26 = vld [vmem:[#allocation2 + $0x8] sm:$0xff]  ;;  %6148 = vmatprep.subr.mxu0 %v5449_v29  ;;  %6198 = vmatprep.subr.mxu1 %v5482_v30  ;;  %v846_v37 = vld [vmem:[%s9348_s6 + $0x80] sm:$0xff] }
  0x3d   : > { %782 = vst.msk [vmem:[#allocation2 + $0xb0] sm:$0xff] %vm759_vm0, %v6771_v3  ;;  %783 = vst.msk [vmem:[#allocation2 + $0xb8] sm:$0xff] %vm759_vm0, %v6771_v3  ;;  %v420_v15 = vsub.f32 %v418_v11, %v419_v12  ;;  %6050 = vmatprep.mubr.msk.f32.mxu0 %vm759_vm0, %v1119_v26  ;;  %v847_v36 = vld [vmem:[%s9348_s6 + $0x88] sm:$0xff]  ;;  %v424_v39 = vld [vmem:[%s9346_s4] sm:$0x1] }
  0x3e   : > { %784 = vst.msk [vmem:[#allocation2 + $0xc0] sm:$0xff] %vm759_vm0, %v6771_v3  ;;  %785 = vst.msk [vmem:[#allocation2 + $0xc8] sm:$0xff] %vm759_vm0, %v6771_v3  ;;  %6051 = vmatmul.mubr.msk.f32.vlgmr.msra.gmra.mxu0 %vm759_vm0, %v1120_v27  ;;  %v427_v40 = vld [vmem:[%s6997_s22] sm:$0xff]  ;;  %v428_v41 = vld [vmem:[%s6997_s22 + $0x8] sm:$0xff] }
  0x3f   : > { %786 = vst.msk [vmem:[#allocation2 + $0xd0] sm:$0xff] %vm759_vm0, %v6771_v3  ;;  %787 = vst.msk [vmem:[#allocation2 + $0xd8] sm:$0xff] %vm759_vm0, %v6771_v3  ;;  %963 = vperm.xlu1 %6582, %v837_v13   ;;  %958 = vperm.xlu0 %6581, %v836_v14   ;;  %v421_v16 = vadd.f32 1e-05, %v420_v15  ;;  %v429_v42 = vld [vmem:[%s6997_s22 + $0x10] sm:$0xff]  ;;  %v430_v44 = vld [vmem:[%s6997_s22 + $0x18] sm:$0xff] }
  0x40   : > { %788 = vst.msk [vmem:[#allocation2 + $0xe0] sm:$0xff] %vm759_vm0, %v6771_v3  ;;  %789 = vst.msk [vmem:[#allocation2 + $0xe8] sm:$0xff] %vm759_vm0, %v6771_v3  ;;  %6149 = vmatpush3.msra.mxu0 %v5449_v29  ;;  %v431_v45 = vld [vmem:[%s6997_s22 + $0x20] sm:$0xff]  ;;  %v432_v47 = vld [vmem:[%s6997_s22 + $0x28] sm:$0xff] }
  0x41   : > { %790 = vst.msk [vmem:[#allocation2 + $0xf0] sm:$0xff] %vm759_vm0, %v6771_v3  ;;  %791 = vst.msk [vmem:[#allocation2 + $0xf8] sm:$0xff] %vm759_vm0, %v6771_v3  ;;  %6583 = vrsqrt.f32 %v421_v16  ;;  %v433_v48 = vld [vmem:[%s6997_s22 + $0x30] sm:$0xff]  ;;  %v434_v52 = vld [vmem:[%s6997_s22 + $0x38] sm:$0xff] }
  0x42   : > { %792 = vst.msk [vmem:[#allocation2 + $0x100] sm:$0xff] %vm759_vm0, %v6771_v3  ;;  %793 = vst.msk [vmem:[#allocation2 + $0x108] sm:$0xff] %vm759_vm0, %v6771_v3  ;;  %v435_v53 = vld [vmem:[%s6997_s22 + $0x40] sm:$0xff]  ;;  %v436_v54 = vld [vmem:[%s6997_s22 + $0x48] sm:$0xff] }
  0x43   : > { %794 = vst.msk [vmem:[#allocation2 + $0x110] sm:$0xff] %vm759_vm0, %v6771_v3  ;;  %795 = vst.msk [vmem:[#allocation2 + $0x118] sm:$0xff] %vm759_vm0, %v6771_v3  ;;  %973 = vperm.xlu1 %6582, %v839_v17   ;;  %968 = vperm.xlu0 %6581, %v838_v18   ;;  %v849_v55 = vld [vmem:[%s9348_s6 + $0x98] sm:$0xff]  ;;  %v848_v56 = vld [vmem:[%s9348_s6 + $0x90] sm:$0xff] }
  0x44   : > { %796 = vst.msk [vmem:[#allocation2 + $0x120] sm:$0xff] %vm759_vm0, %v6771_v3  ;;  %797 = vst.msk [vmem:[#allocation2 + $0x128] sm:$0xff] %vm759_vm0, %v6771_v3  ;;  %v437_v63 = vld [vmem:[%s6997_s22 + $0x50] sm:$0xff]  ;;  %v438_v6 = vld [vmem:[%s6997_s22 + $0x58] sm:$0xff] }
  0x45   : > { %v851_v7 = vld [vmem:[%s9348_s6 + $0xa8] sm:$0xff]  ;;  %v850_v8 = vld [vmem:[%s9348_s6 + $0xa0] sm:$0xff]  ;;  %v441_v25 = vld [vmem:[%s6997_s22 + $0x70] sm:$0xff] }
  0x46   : > { %v439_v13 = vld [vmem:[%s6997_s22 + $0x60] sm:$0xff]  ;;  %v440_v21 = vld [vmem:[%s6997_s22 + $0x68] sm:$0xff]  ;;  %v853_v26 = vld [vmem:[%s9348_s6 + $0xb8] sm:$0xff] }
  0x47   : > { %983 = vperm.xlu1 %6582, %v841_v19   ;;  %978 = vperm.xlu0 %6581, %v840_v20   ;;  %v852_v27 = vld [vmem:[%s9348_s6 + $0xb0] sm:$0xff]  ;;  %v442_v30 = vld [vmem:[%s6997_s22 + $0x78] sm:$0xff] }
  0x4b   : > { %993 = vperm.xlu1 %6582, %v843_v22   ;;  %988 = vperm.xlu0 %6581, %v842_v23  }
  0x4e   : > { %v6584_v35 = vpop.eup %6583 }
  0x4f   : > { %1003 = vperm.xlu1 %6582, %v845_v31   ;;  %998 = vperm.xlu0 %6581, %v844_v32   ;;  %v423_v38 = vmul.f32 %v6584_v35, %v414_v33 }
  0x51   : > { %v425_v43 = vmul.f32 %v423_v38, %v416_v9  ;;  %v7013_v46 = vrot.slane %v423_v38, %v462_v34 }
  0x53   : > { %1013 = vperm.xlu1 %6582, %v847_v36   ;;  %1008 = vperm.xlu0 %6581, %v846_v37   ;;  %v426_v49 = vsub.f32 %v424_v39, %v425_v43  ;;  %v465_v50 = vmul.f32 %v7013_v46, %v427_v40  ;;  %v466_v51 = vmul.f32 %v7013_v46, %v428_v41  ;;  %v855_v40 = vld [vmem:[%s9348_s6 + $0xc8] sm:$0xff]  ;;  %v854_v41 = vld [vmem:[%s9348_s6 + $0xc0] sm:$0xff] }
  0x54   : > { %v467_v57 = vmul.f32 %v7013_v46, %v429_v42  ;;  %v468_v58 = vmul.f32 %v7013_v46, %v430_v44  ;;  %v469_v59 = vmul.f32 %v7013_v46, %v431_v45  ;;  %v470_v60 = vmul.f32 %v7013_v46, %v432_v47 }
  0x55   : > { %v7032_v61 = vrot.slane %v426_v49, %v462_v34  ;;  %v471_v62 = vmul.f32 %v7013_v46, %v433_v48  ;;  %v472_v0 = vmul.f32 %v7013_v46, %v434_v52  ;;  %v473_v1 = vmul.f32 %v7013_v46, %v435_v53 }
  0x56   : > { %v474_v2 = vmul.f32 %v7013_v46, %v436_v54  ;;  %v475_v12 = vmul.f32 %v7013_v46, %v437_v63  ;;  %v476_v20 = vmul.f32 %v7013_v46, %v438_v6  ;;  %v477_v24 = vmul.f32 %v7013_v46, %v439_v13  ;;  %v861_v13 = vld [vmem:[%s9348_s6 + $0xf8] sm:$0xff] }
  0x57   : > { %1023 = vperm.xlu1 %6582, %v849_v55   ;;  %1018 = vperm.xlu0 %6581, %v848_v56   ;;  %v7040_v3 = vadd.f32 %v7032_v61, %v465_v50  ;;  %v7043_v4 = vadd.f32 %v7032_v61, %v466_v51  ;;  %v7046_v5 = vadd.f32 %v7032_v61, %v467_v57  ;;  %v857_v50 = vld [vmem:[%s9348_s6 + $0xd8] sm:$0xff]  ;;  %v856_v51 = vld [vmem:[%s9348_s6 + $0xd0] sm:$0xff]  ;;  %v859_v56 = vld [vmem:[%s9348_s6 + $0xe8] sm:$0xff] }
  0x58   : > { %v7056_v9 = vadd.f32 %v7032_v61, %v468_v58  ;;  %v7059_v10 = vadd.f32 %v7032_v61, %v469_v59  ;;  %v7062_v11 = vadd.f32 %v7032_v61, %v470_v60  ;;  %v7070_v17 = vadd.f32 %v7032_v61, %v471_v62  ;;  %v858_v57 = vld [vmem:[%s9348_s6 + $0xe0] sm:$0xff]  ;;  %v444_v62 = vld [vmem:[%s6997_s22 + $0x88] sm:$0xff] }
  0x59   : > { %v5352_v14 = vmul.f32 -1.442695, %v7040_v3  ;;  %v5353_v15 = vmul.f32 -1.442695, %v7043_v4  ;;  %v5354_v16 = vmul.f32 -1.442695, %v7046_v5  ;;  %v7074_v19 = vadd.f32 %v7032_v61, %v472_v0 }
  0x5a   : > { %v5355_v18 = vmul.f32 -1.442695, %v7056_v9  ;;  %v5356_v22 = vmul.f32 -1.442695, %v7059_v10  ;;  %v7080_v23 = vadd.f32 %v7032_v61, %v473_v1  ;;  %v5357_v28 = vmul.f32 -1.442695, %v7062_v11 }
  0x5b   : > { %1033 = vperm.xlu1 %6582, %v851_v7   ;;  %1028 = vperm.xlu0 %6581, %v850_v8   ;;  %6585 = vpow2.f32 %v5352_v14  ;;  %v7092_v29 = vadd.f32 %v7032_v61, %v474_v2  ;;  %v5358_v31 = vmul.f32 -1.442695, %v7070_v17  ;;  %v7097_v32 = vadd.f32 %v7032_v61, %v475_v12  ;;  %v443_v58 = vld [vmem:[%s6997_s22 + $0x80] sm:$0xff]  ;;  %v445_v1 = vld [vmem:[%s6997_s22 + $0x90] sm:$0xff]  ;;  %v446_v8 = vld [vmem:[%s6997_s22 + $0x98] sm:$0xff] }
  0x5c   : > { %6587 = vpow2.f32 %v5353_v15  ;;  %v478_v33 = vmul.f32 %v7013_v46, %v440_v21  ;;  %v5359_v34 = vmul.f32 -1.442695, %v7074_v19  ;;  %v7102_v35 = vadd.f32 %v7032_v61, %v476_v20  ;;  %v860_v14 = vld [vmem:[%s9348_s6 + $0xf0] sm:$0xff] }
  0x5d   : > { %6589 = vpow2.f32 %v5354_v16  ;;  %v479_v36 = vmul.f32 %v7013_v46, %v441_v25  ;;  %v5360_v37 = vmul.f32 -1.442695, %v7080_v23  ;;  %v7107_v38 = vadd.f32 %v7032_v61, %v477_v24  ;;  %v448_v24 = vld [vmem:[%s6997_s22 + $0xa8] sm:$0xff] }
  0x5e   : > { %6591 = vpow2.f32 %v5355_v18  ;;  %v480_v39 = vmul.f32 %v7013_v46, %v442_v30  ;;  %v5361_v42 = vmul.f32 -1.442695, %v7092_v29  ;;  %v7118_v43 = vadd.f32 %v7032_v61, %v478_v33  ;;  %v447_v18 = vld [vmem:[%s6997_s22 + $0xa0] sm:$0xff] }
  0x5f   : > { %1043 = vperm.xlu1 %6582, %v853_v26   ;;  %1038 = vperm.xlu0 %6581, %v852_v27   ;;  %6593 = vpow2.f32 %v5356_v22  ;;  %v5362_v44 = vmul.f32 -1.442695, %v7097_v32  ;;  %v7122_v45 = vadd.f32 %v7032_v61, %v479_v36  ;;  %v5363_v47 = vmul.f32 -1.442695, %v7102_v35  ;;  %v450_v36 = vld [vmem:[%s6997_s22 + $0xb8] sm:$0xff] }
  0x60   : > { %6595 = vpow2.f32 %v5357_v28  ;;  %v7126_v48 = vadd.f32 %v7032_v61, %v480_v39  ;;  %v5364_v49 = vmul.f32 -1.442695, %v7107_v38  ;;  %v5365_v52 = vmul.f32 -1.442695, %v7118_v43  ;;  %v449_v28 = vld [vmem:[%s6997_s22 + $0xb0] sm:$0xff]  ;;  %v863_v39 = vld [vmem:[%s9349_s7 + $0x8] sm:$0xff] }
  0x61   : > { %6597 = vpow2.f32 %v5358_v31  ;;  %v5366_v53 = vmul.f32 -1.442695, %v7122_v45  ;;  %v481_v7 = vmul.f32 %v7013_v46, %v443_v58  ;;  %v482_v16 = vmul.f32 %v7013_v46, %v444_v62 }
  0x62   : > { %6599 = vpow2.f32 %v5359_v34  ;;  %v5367_v54 = vmul.f32 -1.442695, %v7126_v48  ;;  %v483_v22 = vmul.f32 %v7013_v46, %v445_v1  ;;  %v484_v27 = vmul.f32 %v7013_v46, %v446_v8 }
  0x63   : > { %1053 = vperm.xlu1 %6582, %v855_v40   ;;  %1048 = vperm.xlu0 %6581, %v854_v41   ;;  %6601 = vpow2.f32 %v5360_v37  ;;  %v7162_v33 = vadd.f32 %v7032_v61, %v481_v7  ;;  %v485_v34 = vmul.f32 %v7013_v46, %v447_v18  ;;  %v862_v40 = vld [vmem:[%s9349_s7] sm:$0xff] }
  0x64   : > { %6603 = vpow2.f32 %v5361_v42  ;;  %v7173_v42 = vadd.f32 %v7032_v61, %v482_v16  ;;  %v5515_v7 = vld [vmem:[%s9347_s5 + $0x20] sm:$0xff] }
  0x65   : > { %6605 = vpow2.f32 %v5362_v44  ;;  %v486_v44 = vmul.f32 %v7013_v46, %v448_v24  ;;  %6248 = vmatprep.subr.mxu0 %v5515_v7  ;;  %v868_v7 = vld [vmem:[%s9349_s7 + $0x30] sm:$0xff] }
  0x66   : > { %6607 = vpow2.f32 %v5363_v47  ;;  %v5369_v1 = vmul.f32 -1.442695, %v7173_v42 }
  0x67   : > { %1063 = vperm.xlu1 %6582, %v857_v50   ;;  %1058 = vperm.xlu0 %6581, %v856_v51   ;;  %6609 = vpow2.f32 %v5364_v49  ;;  %v7177_v50 = vadd.f32 %v7032_v61, %v483_v22  ;;  %v487_v51 = vmul.f32 %v7013_v46, %v449_v28  ;;  %v453_v22 = vld [vmem:[%s6997_s22 + $0xd0] sm:$0xff]  ;;  %v454_v28 = vld [vmem:[%s6997_s22 + $0xd8] sm:$0xff] }
  0x68   : > { %v6586_v55 = vpop.eup %6585  ;;  %6611 = vpow2.f32 %v5365_v52 }
  0x69   : > { %v6588_v59 = vpop.eup %6587  ;;  %v631_v60 = vadd.f32 1.0, %v6586_v55  ;;  %6613 = vpow2.f32 %v5366_v53  ;;  %v488_v55 = vmul.f32 %v7013_v46, %v450_v36 }
  0x6a   : > { %v6590_v63 = vpop.eup %6589  ;;  %v632_v0 = vadd.f32 1.0, %v6588_v59  ;;  %6615 = vpow2.f32 %v5367_v54  ;;  %v7181_v54 = vadd.f32 %v7032_v61, %v484_v27  ;;  %v5368_v59 = vmul.f32 -1.442695, %v7162_v33 }
  0x6b   : > { %v6592_v2 = vpop.eup %6591  ;;  %1073 = vperm.xlu1 %6582, %v859_v56   ;;  %1068 = vperm.xlu0 %6581, %v858_v57   ;;  %v633_v6 = vadd.f32 1.0, %v6590_v63  ;;  %6617 = vrcp.f32 %v631_v60  ;;  %v865_v57 = vld [vmem:[%s9349_s7 + $0x18] sm:$0xff]  ;;  %v7189_v60 = vadd.f32 %v7032_v61, %v485_v34  ;;  %v864_v63 = vld [vmem:[%s9349_s7 + $0x10] sm:$0xff]  ;;  %v866_v34 = vld [vmem:[%s9349_s7 + $0x20] sm:$0xff] }
  0x6c   : > { %v6594_v12 = vpop.eup %6593  ;;  %v634_v15 = vadd.f32 1.0, %v6592_v2  ;;  %6619 = vrcp.f32 %v632_v0  ;;  %v7196_v2 = vadd.f32 %v7032_v61, %v486_v44 }
  0x6d   : > { %v6596_v20 = vpop.eup %6595  ;;  %v635_v21 = vadd.f32 1.0, %v6594_v12  ;;  %6621 = vrcp.f32 %v633_v6  ;;  %v451_v6 = vld [vmem:[%s6997_s22 + $0xc0] sm:$0xff] }
  0x6e   : > { %v6598_v25 = vpop.eup %6597  ;;  %6623 = vrcp.f32 %v634_v15  ;;  %v636_v26 = vadd.f32 1.0, %v6596_v20  ;;  %v452_v15 = vld [vmem:[%s6997_s22 + $0xc8] sm:$0xff]  ;;  %v5371_v20 = vmul.f32 -1.442695, %v7181_v54  ;;  %v489_v27 = vmul.f32 %v7013_v46, %v451_v6  ;;  %v869_v6 = vld [vmem:[%s9349_s7 + $0x38] sm:$0xff] }
  0x6f   : > { %v6600_v30 = vpop.eup %6599  ;;  %1083 = vperm.xlu1 %6582, %v861_v13   ;;  %1078 = vperm.xlu0 %6581, %v860_v14   ;;  %6625 = vrcp.f32 %v635_v21  ;;  %v637_v31 = vadd.f32 1.0, %v6598_v25  ;;  %v5370_v13 = vmul.f32 -1.442695, %v7177_v50  ;;  %v7204_v14 = vadd.f32 %v7032_v61, %v487_v51  ;;  %v456_v51 = vld [vmem:[%s6997_s22 + $0xe8] sm:$0xff] }
  0x70   : > { %v6602_v37 = vpop.eup %6601  ;;  %6627 = vrcp.f32 %v636_v26  ;;  %v638_v41 = vadd.f32 1.0, %v6600_v30  ;;  %v7209_v21 = vadd.f32 %v7032_v61, %v488_v55  ;;  %v5372_v26 = vmul.f32 -1.442695, %v7189_v60 }
  0x71   : > { %v6604_v47 = vpop.eup %6603  ;;  %6629 = vrcp.f32 %v637_v31  ;;  %v639_v49 = vadd.f32 1.0, %v6602_v37  ;;  %v867_v31 = vld [vmem:[%s9349_s7 + $0x28] sm:$0xff]  ;;  %v5373_v37 = vmul.f32 -1.442695, %v7196_v2 }
  0x72   : > { %v6606_v52 = vpop.eup %6605  ;;  %6631 = vrcp.f32 %v638_v41  ;;  %v640_v53 = vadd.f32 1.0, %v6604_v47  ;;  %v5374_v47 = vmul.f32 -1.442695, %v7204_v14  ;;  %v5375_v55 = vmul.f32 -1.442695, %v7209_v21 }
  0x73   : > { %v6608_v56 = vpop.eup %6607  ;;  %1834 = vperm.xlu1 %6582, %v863_v39   ;;  %1829 = vperm.xlu0 %6581, %v862_v40   ;;  %6633 = vrcp.f32 %v639_v49  ;;  %v641_v58 = vadd.f32 1.0, %v6606_v52  ;;  %v490_v39 = vmul.f32 %v7013_v46, %v452_v15  ;;  %v455_v40 = vld [vmem:[%s6997_s22 + $0xe0] sm:$0xff]  ;;  %v491_v49 = vmul.f32 %v7013_v46, %v453_v22 }
  0x74   : > { %v6610_v62 = vpop.eup %6609  ;;  %6635 = vrcp.f32 %v640_v53  ;;  %v642_v0 = vadd.f32 1.0, %v6608_v56  ;;  %v492_v56 = vmul.f32 %v7013_v46, %v454_v28 }
  0x75   : > { %v6612_v8 = vpop.eup %6611  ;;  %6637 = vrcp.f32 %v641_v58  ;;  %v643_v12 = vadd.f32 1.0, %v6610_v62  ;;  %v7235_v62 = vadd.f32 %v7032_v61, %v489_v27 }
  0x76   : > { %v6614_v16 = vpop.eup %6613  ;;  %6639 = vrcp.f32 %v642_v0  ;;  %v644_v18 = vadd.f32 1.0, %v6612_v8  ;;  %v494_v8 = vmul.f32 %v7013_v46, %v456_v51  ;;  %v7260_v22 = vadd.f32 %v7032_v61, %v492_v56 }
  0x77   : > { %v6616_v24 = vpop.eup %6615  ;;  %1844 = vperm.xlu1 %6582, %v865_v57   ;;  %1839 = vperm.xlu0 %6581, %v864_v63   ;;  %6641 = vrcp.f32 %v643_v12  ;;  %v645_v25 = vadd.f32 1.0, %v6614_v16  ;;  %v457_v57 = vld [vmem:[%s6997_s22 + $0xf0] sm:$0xff]  ;;  %v493_v63 = vmul.f32 %v7013_v46, %v455_v40  ;;  %v7254_v16 = vadd.f32 %v7032_v61, %v491_v49 }
  0x78   : > { %v6618_v30 = vpop.eup %6617  ;;  %6643 = vrcp.f32 %v644_v18  ;;  %v646_v36 = vadd.f32 1.0, %v6616_v24  ;;  %v495_v18 = vmul.f32 %v7013_v46, %v457_v57 }
  0x79   : > { %v6620_v41 = vpop.eup %6619  ;;  %v727_v44 = vmul.f32 %v6618_v30, %v7040_v3  ;;  %6645 = vrcp.f32 %v645_v25  ;;  %v5376_v25 = vmul.f32 -1.442695, %v7235_v62  ;;  %v7267_v27 = vadd.f32 %v7032_v61, %v493_v63 }
  0x7a   : > { %v6622_v52 = vpop.eup %6621  ;;  %v728_v53 = vmul.f32 %v6620_v41, %v7043_v4  ;;  %6647 = vrcp.f32 %v646_v36  ;;  %v458_v4 = vld [vmem:[%s6997_s22 + $0xf8] sm:$0xff]  ;;  %v7285_v36 = vadd.f32 %v7032_v61, %v495_v18 }
  0x7b   : > { %v6624_v58 = vpop.eup %6623  ;;  %1854 = vperm.xlu1 %6582, %v867_v31   ;;  %1849 = vperm.xlu0 %6581, %v866_v34   ;;  %v729_v3 = vmul.f32 %v6622_v52, %v7046_v5  ;;  %798 = vst.msk [vmem:[#allocation2 + $0x18] sm:$0xff] %vm759_vm0, %v727_v44  ;;  %6649 = vpow2.f32 %v5368_v59  ;;  %v7248_v59 = vadd.f32 %v7032_v61, %v490_v39  ;;  %v5378_v34 = vmul.f32 -1.442695, %v7254_v16 }
  0x7c   : > { %v6626_v0 = vpop.eup %6625  ;;  %v730_v5 = vmul.f32 %v6624_v58, %v7056_v9  ;;  %799 = vst.msk [vmem:[#allocation2 + $0x20] sm:$0xff] %vm759_vm0, %v728_v53  ;;  %6651 = vpow2.f32 %v5369_v1  ;;  %v496_v24 = vmul.f32 %v7013_v46, %v458_v4  ;;  %v870_v46 = vld [vmem:[%s9349_s7 + $0x40] sm:$0xff]  ;;  %v5380_v49 = vmul.f32 -1.442695, %v7267_v27 }
  0x7d   : > { %v6628_v12 = vpop.eup %6627  ;;  %v731_v15 = vmul.f32 %v6626_v0, %v7059_v10  ;;  %800 = vst.msk [vmem:[#allocation2 + $0x28] sm:$0xff] %vm759_vm0, %v729_v3  ;;  %6653 = vpow2.f32 %v5370_v13  ;;  %v5382_v57 = vmul.f32 -1.442695, %v7285_v36 }
  0x7e   : > { %v6630_v9 = vpop.eup %6629  ;;  %801 = vst.msk [vmem:[#allocation2 + $0x30] sm:$0xff] %vm759_vm0, %v730_v5  ;;  %v732_v1 = vmul.f32 %v6628_v12, %v7062_v11  ;;  %6655 = vpow2.f32 %v5371_v20  ;;  %v871_v20 = vld [vmem:[%s9349_s7 + $0x48] sm:$0xff]  ;;  %v7291_v41 = vadd.f32 %v7032_v61, %v496_v24 }
  0x7f   : > { %v6632_v10 = vpop.eup %6631  ;;  %1864 = vperm.xlu1 %6582, %v869_v6   ;;  %1859 = vperm.xlu0 %6581, %v868_v7   ;;  %802 = vst.msk [vmem:[#allocation2 + $0x38] sm:$0xff] %vm759_vm0, %v731_v15  ;;  %v733_v13 = vmul.f32 %v6630_v9, %v7070_v17  ;;  %6657 = vpow2.f32 %v5372_v26  ;;  %v5377_v17 = vmul.f32 -1.442695, %v7248_v59  ;;  %v7279_v26 = vadd.f32 %v7032_v61, %v494_v8  ;;  %v872_v61 = vld [vmem:[%s9349_s7 + $0x50] sm:$0xff]  ;;  %v875_v7 = vld [vmem:[%s9349_s7 + $0x68] sm:$0xff] }
  0x80   : > { %v6634_v11 = vpop.eup %6633  ;;  %803 = vst.msk [vmem:[#allocation2 + $0x40] sm:$0xff] %vm759_vm0, %v732_v1  ;;  %v734_v28 = vmul.f32 %v6632_v10, %v7074_v19  ;;  %6659 = vpow2.f32 %v5373_v37  ;;  %v5379_v37 = vmul.f32 -1.442695, %v7260_v22  ;;  %v5383_v63 = vmul.f32 -1.442695, %v7291_v41  ;;  %v877_v10 = vld [vmem:[%s9349_s7 + $0x78] sm:$0xff] }
  0x81   : > { %v6636_v30 = vpop.eup %6635  ;;  %804 = vst.msk [vmem:[#allocation2 + $0x48] sm:$0xff] %vm759_vm0, %v733_v13  ;;  %v735_v31 = vmul.f32 %v6634_v11, %v7080_v23  ;;  %6661 = vpow2.f32 %v5374_v47  ;;  %v876_v13 = vld [vmem:[%s9349_s7 + $0x70] sm:$0xff] }
  0x82   : > { %v6638_v39 = vpop.eup %6637  ;;  %v1121_v40 = vld [vmem:[#allocation2 + $0x18] sm:$0xff]  ;;  %805 = vst.msk [vmem:[#allocation2 + $0x50] sm:$0xff] %vm759_vm0, %v734_v28  ;;  %v736_v19 = vmul.f32 %v6636_v30, %v7092_v29  ;;  %6663 = vpow2.f32 %v5375_v55 }
  0x83   : > { %v6640_v44 = vpop.eup %6639  ;;  %1874 = vperm.xlu1 %6582, %v871_v20   ;;  %1869 = vperm.xlu0 %6581, %v870_v46   ;;  %v1122_v23 = vld [vmem:[#allocation2 + $0x20] sm:$0xff]  ;;  %806 = vst.msk [vmem:[#allocation2 + $0x58] sm:$0xff] %vm759_vm0, %v735_v31  ;;  %v737_v47 = vmul.f32 %v6638_v39, %v7097_v32  ;;  %6665 = vpow2.f32 %v5376_v25  ;;  %v873_v29 = vld [vmem:[%s9349_s7 + $0x58] sm:$0xff]  ;;  %v5381_v32 = vmul.f32 -1.442695, %v7279_v26 }
  0x84   : > { %v6642_v51 = vpop.eup %6641  ;;  %6053 = vmatprep.mubr.msk.f32.mxu0 %vm759_vm0, %v1121_v40  ;;  %v1123_v52 = vld [vmem:[#allocation2 + $0x28] sm:$0xff]  ;;  %807 = vst.msk [vmem:[#allocation2 + $0x60] sm:$0xff] %vm759_vm0, %v736_v19  ;;  %v738_v53 = vmul.f32 %v6640_v44, %v7102_v35  ;;  %6667 = vpow2.f32 %v5377_v17  ;;  %v878_v19 = vld [vmem:[%s9349_s7 + $0x80] sm:$0xff] }
  0x85   : > { %v6644_v55 = vpop.eup %6643  ;;  %6054 = vmatmul.mubr.msk.f32.gmra.mxu0 %vm759_vm0, %v1122_v23  ;;  %808 = vst.msk [vmem:[#allocation2 + $0x68] sm:$0xff] %vm759_vm0, %v737_v47  ;;  %v739_v56 = vmul.f32 %v6642_v51, %v7107_v38  ;;  %6669 = vpow2.f32 %v5378_v34  ;;  %v1124_v3 = vld [vmem:[#allocation2 + $0x30] sm:$0xff]  ;;  %v879_v40 = vld [vmem:[%s9349_s7 + $0x88] sm:$0xff] }
  0x86   : > { %v6646_v58 = vpop.eup %6645  ;;  %6056 = vmatprep.mubr.msk.f32.mxu0 %vm759_vm0, %v1123_v52  ;;  %809 = vst.msk [vmem:[#allocation2 + $0x70] sm:$0xff] %vm759_vm0, %v738_v53  ;;  %v740_v35 = vmul.f32 %v6644_v55, %v7118_v43  ;;  %6671 = vpow2.f32 %v5379_v37  ;;  %v1125_v0 = vld [vmem:[#allocation2 + $0x38] sm:$0xff]  ;;  %v874_v43 = vld [vmem:[%s9349_s7 + $0x60] sm:$0xff]  ;;  %v880_v55 = vld [vmem:[%s9349_s7 + $0x90] sm:$0xff] }
  0x87   : > { %v6648_v4 = vpop.eup %6647  ;;  %1884 = vperm.xlu1 %6582, %v873_v29   ;;  %1879 = vperm.xlu0 %6581, %v872_v61   ;;  %810 = vst.msk [vmem:[#allocation2 + $0x78] sm:$0xff] %vm759_vm0, %v739_v56  ;;  %v741_v38 = vmul.f32 %v6646_v58, %v7122_v45  ;;  %6673 = vpow2.f32 %v5380_v49  ;;  %v1126_v15 = vld [vmem:[#allocation2 + $0x40] sm:$0xff] }
  0x88   : > { %v6650_v6 = vpop.eup %6649  ;;  %811 = vst.msk [vmem:[#allocation2 + $0x80] sm:$0xff] %vm759_vm0, %v740_v35  ;;  %v742_v5 = vmul.f32 %v6648_v4, %v7126_v48  ;;  %6675 = vpow2.f32 %v5381_v32  ;;  %v1127_v48 = vld [vmem:[#allocation2 + $0x48] sm:$0xff]  ;;  %v881_v32 = vld [vmem:[%s9349_s7 + $0x98] sm:$0xff] }
  0x89   : > { %v6652_v8 = vpop.eup %6651  ;;  %6057 = vmatmul.mubr.msk.f32.gmra.mxu0 %vm759_vm0, %v1124_v3  ;;  %812 = vst.msk [vmem:[#allocation2 + $0x88] sm:$0xff] %vm759_vm0, %v741_v38  ;;  %v647_v45 = vadd.f32 1.0, %v6650_v6  ;;  %6677 = vpow2.f32 %v5382_v57  ;;  %v1128_v28 = vld [vmem:[#allocation2 + $0x50] sm:$0xff] }
  0x8a   : > { %v6654_v12 = vpop.eup %6653  ;;  %6059 = vmatprep.mubr.msk.f32.mxu0 %vm759_vm0, %v1125_v0  ;;  %813 = vst.msk [vmem:[#allocation2 + $0x90] sm:$0xff] %vm759_vm0, %v742_v5  ;;  %v648_v18 = vadd.f32 1.0, %v6652_v8  ;;  %6679 = vpow2.f32 %v5383_v63  ;;  %v1129_v31 = vld [vmem:[#allocation2 + $0x58] sm:$0xff] }
  0x8b   : > { %v6656_v9 = vpop.eup %6655  ;;  %1894 = vperm.xlu1 %6582, %v875_v7   ;;  %1889 = vperm.xlu0 %6581, %v874_v43   ;;  %6681 = vrcp.f32 %v647_v45  ;;  %v649_v1 = vadd.f32 1.0, %v6654_v12  ;;  %v1130_v49 = vld [vmem:[#allocation2 + $0x60] sm:$0xff]  ;;  %v883_v7 = vld [vmem:[%s9349_s7 + $0xa8] sm:$0xff] }
  0x8c   : > { %v6658_v24 = vpop.eup %6657  ;;  %6683 = vrcp.f32 %v648_v18  ;;  %v650_v25 = vadd.f32 1.0, %v6656_v9  ;;  %v1131_v61 = vld [vmem:[#allocation2 + $0x68] sm:$0xff]  ;;  %v882_v43 = vld [vmem:[%s9349_s7 + $0xa0] sm:$0xff] }
  0x8d   : > { %v6660_v11 = vpop.eup %6659  ;;  %6060 = vmatmul.mubr.msk.f32.gmra.mxu0 %vm759_vm0, %v1126_v15  ;;  %6685 = vrcp.f32 %v649_v1  ;;  %v651_v20 = vadd.f32 1.0, %v6658_v24  ;;  %v1132_v35 = vld [vmem:[#allocation2 + $0x70] sm:$0xff] }
  0x8e   : > { %v6662_v46 = vpop.eup %6661  ;;  %6062 = vmatprep.mubr.msk.f32.mxu0 %vm759_vm0, %v1127_v48  ;;  %6687 = vrcp.f32 %v650_v25  ;;  %v652_v17 = vadd.f32 1.0, %v6660_v11  ;;  %v1133_v0 = vld [vmem:[#allocation2 + $0x78] sm:$0xff] }
  0x8f   : > { %v6664_v30 = vpop.eup %6663  ;;  %1904 = vperm.xlu1 %6582, %v877_v10   ;;  %1899 = vperm.xlu0 %6581, %v876_v13   ;;  %6689 = vrcp.f32 %v651_v20  ;;  %v653_v34 = vadd.f32 1.0, %v6662_v46  ;;  %v1134_v18 = vld [vmem:[#allocation2 + $0x80] sm:$0xff] }
  0x90   : > { %v6666_v39 = vpop.eup %6665  ;;  %6691 = vrcp.f32 %v652_v17  ;;  %v654_v37 = vadd.f32 1.0, %v6664_v30  ;;  %v1135_v1 = vld [vmem:[#allocation2 + $0x88] sm:$0xff]  ;;  %v886_v17 = vld [vmem:[%s9349_s7 + $0xc0] sm:$0xff] }
  0x91   : > { %v6668_v44 = vpop.eup %6667  ;;  %6063 = vmatmul.mubr.msk.f32.gmra.mxu0 %vm759_vm0, %v1128_v28  ;;  %6693 = vrcp.f32 %v653_v34  ;;  %v655_v23 = vadd.f32 1.0, %v6666_v39  ;;  %v1136_v11 = vld [vmem:[#allocation2 + $0x90] sm:$0xff] }
  0x92   : > { %v6670_v47 = vpop.eup %6669  ;;  %6065 = vmatprep.mubr.msk.f32.mxu0 %vm759_vm0, %v1129_v31  ;;  %6695 = vrcp.f32 %v654_v37  ;;  %v656_v51 = vadd.f32 1.0, %v6668_v44  ;;  %v889_v44 = vld [vmem:[%s9349_s7 + $0xd8] sm:$0xff] }
  0x93   : > { %v6672_v29 = vpop.eup %6671  ;;  %1914 = vperm.xlu1 %6582, %v879_v40   ;;  %1909 = vperm.xlu0 %6581, %v878_v19   ;;  %6697 = vrcp.f32 %v655_v23  ;;  %v657_v52 = vadd.f32 1.0, %v6670_v47 }
  0x94   : > { %v6674_v53 = vpop.eup %6673  ;;  %6699 = vrcp.f32 %v656_v51  ;;  %v658_v56 = vadd.f32 1.0, %v6672_v29 }
  0x95   : > { %v6676_v57 = vpop.eup %6675  ;;  %6066 = vmatmul.mubr.msk.f32.gmra.mxu0 %vm759_vm0, %v1130_v49  ;;  %6701 = vrcp.f32 %v657_v52  ;;  %v659_v58 = vadd.f32 1.0, %v6674_v53  ;;  %v890_v53 = vld [vmem:[%s9349_s7 + $0xe0] sm:$0xff] }
  0x96   : > { %v6678_v3 = vpop.eup %6677  ;;  %6068 = vmatprep.mubr.msk.f32.mxu0 %vm759_vm0, %v1131_v61  ;;  %6703 = vrcp.f32 %v658_v56  ;;  %v660_v63 = vadd.f32 1.0, %v6676_v57  ;;  %v893_v56 = vld [vmem:[%s9349_s7 + $0xf8] sm:$0xff]  ;;  %v7429_v57 = vld [vmem:[#allocation2 + $0x27] sm:$0xff] }
  0x97   : > { %v6680_v4 = vpop.eup %6679  ;;  %1924 = vperm.xlu1 %6582, %v881_v32   ;;  %1919 = vperm.xlu0 %6581, %v880_v55   ;;  %6705 = vrcp.f32 %v659_v58  ;;  %v661_v38 = vadd.f32 1.0, %v6678_v3  ;;  %v7424_v55 = vld [vmem:[#allocation2 + $0x37] sm:$0xff]  ;;  %v894_v58 = vld [vmem:[#allocation2 + $0x7] sm:$0xff] }
  0x98   : > { %v6682_v6 = vpop.eup %6681  ;;  %6707 = vrcp.f32 %v660_v63  ;;  %v662_v5 = vadd.f32 1.0, %v6680_v4 }
  0x99   : > { %v6684_v8 = vpop.eup %6683  ;;  %6069 = vmatmul.mubr.msk.f32.gmra.mxu0 %vm759_vm0, %v1132_v35  ;;  %v743_v45 = vmul.f32 %v6682_v6, %v7162_v33  ;;  %6709 = vrcp.f32 %v661_v38  ;;  %v885_v33 = vld [vmem:[%s9349_s7 + $0xb8] sm:$0xff] }
  0x9a   : > { %v6686_v12 = vpop.eup %6685  ;;  %v744_v15 = vmul.f32 %v6684_v8, %v7173_v42  ;;  %6071 = vmatprep.mubr.msk.f32.mxu0 %vm759_vm0, %v1133_v0  ;;  %6711 = vrcp.f32 %v662_v5  ;;  %v884_v42 = vld [vmem:[%s9349_s7 + $0xb0] sm:$0xff] }
  0x9b   : > { %v6688_v9 = vpop.eup %6687  ;;  %1934 = vperm.xlu1 %6582, %v883_v7   ;;  %1929 = vperm.xlu0 %6581, %v882_v43   ;;  %814 = vst.msk [vmem:[#allocation2 + $0x98] sm:$0xff] %vm759_vm0, %v743_v45  ;;  %v745_v48 = vmul.f32 %v6686_v12, %v7177_v50  ;;  %v7449_v7 = vld [vmem:[#allocation2 + $0x3f] sm:$0xff]  ;;  %v895_v43 = vld [vmem:[#allocation2 + $0xf] sm:$0xff] }
  0x9c   : > { %v6690_v24 = vpop.eup %6689  ;;  %815 = vst.msk [vmem:[#allocation2 + $0xa0] sm:$0xff] %vm759_vm0, %v744_v15  ;;  %v746_v10 = vmul.f32 %v6688_v9, %v7181_v54  ;;  %v7451_v5 = vld [vmem:[#allocation2 + $0x2f] sm:$0xff]  ;;  %v7462_v15 = vld [vmem:[#allocation2 + $0x17] sm:$0xff] }
  0x9d   : > { %v6692_v13 = vpop.eup %6691  ;;  %6072 = vmatmul.mubr.msk.f32.gmra.mxu0 %vm759_vm0, %v1134_v18  ;;  %816 = vst.msk [vmem:[#allocation2 + $0xa8] sm:$0xff] %vm759_vm0, %v745_v48  ;;  %v747_v50 = vmul.f32 %v6690_v24, %v7189_v60  ;;  %v887_v60 = vld [vmem:[%s9349_s7 + $0xc8] sm:$0xff] }
  0x9e   : > { %v6694_v25 = vpop.eup %6693  ;;  %817 = vst.msk [vmem:[#allocation2 + $0xb0] sm:$0xff] %vm759_vm0, %v746_v10  ;;  %6074 = vmatprep.mubr.msk.f32.mxu0 %vm759_vm0, %v1135_v1  ;;  %v748_v20 = vmul.f32 %v6692_v13, %v7196_v2  ;;  %v7471_v1 = vld [vmem:[#allocation2 + $0x1f] sm:$0xff]  ;;  %v7482_v10 = vld [vmem:[#allocation2 + $0x47] sm:$0xff] }
  0x9f   : > { %v6696_v46 = vpop.eup %6695  ;;  %1944 = vperm.xlu1 %6582, %v885_v33   ;;  %1939 = vperm.xlu0 %6581, %v884_v42   ;;  %818 = vst.msk [vmem:[#allocation2 + $0xb8] sm:$0xff] %vm759_vm0, %v747_v50  ;;  %v749_v54 = vmul.f32 %v6694_v25, %v7204_v14  ;;  %v7477_v33 = vld [vmem:[#allocation2 + $0x4f] sm:$0xff]  ;;  %v6713_v50 = vld [vmem:[%s9347_s5 + $0x18] sm:$0xff] }
  0xa0   : > { %v6698_v28 = vpop.eup %6697  ;;  %819 = vst.msk [vmem:[#allocation2 + $0xc0] sm:$0xff] %vm759_vm0, %v748_v20  ;;  %v750_v2 = vmul.f32 %v6696_v46, %v7209_v21  ;;  %v7489_v13 = vld [vmem:[%s9347_s5 + $0x28] sm:$0xff] }
  0xa1   : > { %v6700_v30 = vpop.eup %6699  ;;  %6075 = vmatmul.mubr.msk.f32.gmra.mxu0 %vm759_vm0, %v1136_v11  ;;  %820 = vst.msk [vmem:[#allocation2 + $0xc8] sm:$0xff] %vm759_vm0, %v749_v54  ;;  %v751_v14 = vmul.f32 %v6698_v28, %v7235_v62  ;;  %v888_v62 = vld [vmem:[%s9349_s7 + $0xd0] sm:$0xff] }
  0xa2   : > { %v6702_v31 = vpop.eup %6701  ;;  %v1137_v34 = vld [vmem:[#allocation2 + $0x98] sm:$0xff]  ;;  %821 = vst.msk [vmem:[#allocation2 + $0xd0] sm:$0xff] %vm759_vm0, %v750_v2  ;;  %v752_v39 = vmul.f32 %v6700_v30, %v7248_v59 }
  0xa3   : > { %v6704_v40 = vpop.eup %6703  ;;  %1954 = vperm.xlu1 %6582, %v887_v60   ;;  %1949 = vperm.xlu0 %6581, %v886_v17   ;;  %v1138_v19 = vld [vmem:[#allocation2 + $0xa0] sm:$0xff]  ;;  %822 = vst.msk [vmem:[#allocation2 + $0xd8] sm:$0xff] %vm759_vm0, %v751_v14  ;;  %v753_v21 = vmul.f32 %v6702_v31, %v7254_v16  ;;  %v7521_v30 = vld [vmem:[#allocation2 + $0x57] sm:$0xff] }
  0xa4   : > { %v6706_v37 = vpop.eup %6705  ;;  %6077 = vmatprep.mubr.msk.f32.mxu0 %vm759_vm0, %v1137_v34  ;;  %v1139_v59 = vld [vmem:[#allocation2 + $0xa8] sm:$0xff]  ;;  %823 = vst.msk [vmem:[#allocation2 + $0xe0] sm:$0xff] %vm759_vm0, %v752_v39  ;;  %v754_v23 = vmul.f32 %v6704_v40, %v7260_v22  ;;  %v7517_v2 = vld [vmem:[#allocation2 + $0x5f] sm:$0xff] }
  0xa5   : > { %v6708_v47 = vpop.eup %6707  ;;  %6078 = vmatmul.mubr.msk.f32.gmra.mxu0 %vm759_vm0, %v1138_v19  ;;  %824 = vst.msk [vmem:[#allocation2 + $0xe8] sm:$0xff] %vm759_vm0, %v753_v21  ;;  %v755_v16 = vmul.f32 %v6706_v37, %v7267_v27  ;;  %v1140_v51 = vld [vmem:[#allocation2 + $0xb0] sm:$0xff]  ;;  %v891_v27 = vld [vmem:[%s9349_s7 + $0xe8] sm:$0xff] }
  0xa6   : > { %v6710_v49 = vpop.eup %6709  ;;  %6080 = vmatprep.mubr.msk.f32.mxu0 %vm759_vm0, %v1139_v59  ;;  %825 = vst.msk [vmem:[#allocation2 + $0xf0] sm:$0xff] %vm759_vm0, %v754_v23  ;;  %v756_v29 = vmul.f32 %v6708_v47, %v7279_v26  ;;  %v1141_v52 = vld [vmem:[#allocation2 + $0xb8] sm:$0xff]  ;;  %v7546_v37 = vld [vmem:[#allocation2 + $0x6f] sm:$0xff] }
  0xa7   : > { %v6712_v61 = vpop.eup %6711  ;;  %1964 = vperm.xlu1 %6582, %v889_v44   ;;  %1959 = vperm.xlu0 %6581, %v888_v62   ;;  %826 = vst.msk [vmem:[#allocation2 + $0xf8] sm:$0xff] %vm759_vm0, %v755_v16  ;;  %v757_v22 = vmul.f32 %v6710_v49, %v7285_v36  ;;  %v1142_v32 = vld [vmem:[#allocation2 + $0xc0] sm:$0xff] }
  0xa8   : > { %827 = vst.msk [vmem:[#allocation2 + $0x100] sm:$0xff] %vm759_vm0, %v756_v29  ;;  %v758_v26 = vmul.f32 %v6712_v61, %v7291_v41  ;;  %v1143_v36 = vld [vmem:[#allocation2 + $0xc8] sm:$0xff]  ;;  %v892_v41 = vld [vmem:[%s9349_s7 + $0xf0] sm:$0xff] }
  0xa9   : > { %6081 = vmatmul.mubr.msk.f32.gmra.mxu0 %vm759_vm0, %v1140_v51  ;;  %828 = vst.msk [vmem:[#allocation2 + $0x108] sm:$0xff] %vm759_vm0, %v757_v22  ;;  %v1144_v63 = vld [vmem:[#allocation2 + $0xd0] sm:$0xff]  ;;  %v7549_v44 = vld [vmem:[#allocation2 + $0x67] sm:$0xff]  ;;  %v7570_v51 = vld [vmem:[#allocation2 + $0x7f] sm:$0xff] }
  0xaa   : > { %6083 = vmatprep.mubr.msk.f32.mxu0 %vm759_vm0, %v1141_v52  ;;  %829 = vst.msk [vmem:[#allocation2 + $0x110] sm:$0xff] %vm759_vm0, %v758_v26  ;;  %v1145_v0 = vld [vmem:[#allocation2 + $0xd8] sm:$0xff] }
  0xab   : > { %1974 = vperm.xlu1 %6582, %v891_v27   ;;  %1969 = vperm.xlu0 %6581, %v890_v53   ;;  %v7460_v12 = vld [vmem:[#allocation2 + $0xe0] sm:$0xff]  ;;  %v7573_v29 = vld [vmem:[#allocation2 + $0x77] sm:$0xff] }
  0xac   : > { %9399 = vst [vmem:[#allocation11_spill] sm:$0xff] %v7460_v12  ;;  %v7479_v42 = vld [vmem:[#allocation2 + $0xe8] sm:$0xff] }
  0xad   : > { %6084 = vmatmul.mubr.msk.f32.gmra.mxu0 %vm759_vm0, %v1142_v32  ;;  %9402 = vst [vmem:[#allocation14_spill] sm:$0xff] %v7479_v42  ;;  %v7499_v20 = vld [vmem:[#allocation2 + $0xf0] sm:$0xff] }
  0xae   : > { %v7435_v3 = vpop.permute.xlu1 %938  ;;  %v7437_v35 = vpop.permute.xlu0 %928  ;;  %6086 = vmatprep.mubr.msk.f32.mxu0 %vm759_vm0, %v1143_v36  ;;  %9403 = vst [vmem:[#allocation15_spill] sm:$0xff] %v7499_v20  ;;  %v7511_v60 = vld [vmem:[#allocation2 + $0xf8] sm:$0xff]  ;;  %v7592_v32 = vld [vmem:[#allocation2 + $0x8f] sm:$0xff]  ;;  %v7595_v36 = vld [vmem:[#allocation2 + $0x87] sm:$0xff] }
  0xaf   : > { %v7442_v4 = vmul.f32 %v7424_v55, %v7435_v3  ;;  %1984 = vperm.xlu1 %6582, %v893_v56   ;;  %v7446_v38 = vmul.f32 %v7429_v57, %v7437_v35  ;;  %1979 = vperm.xlu0 %6581, %v892_v41   ;;  %v1086_v6 = vmul.f32 %v7437_v35, %v894_v58  ;;  %v7532_v34 = vld [vmem:[#allocation2 + $0x100] sm:$0xff] }
  0xb0   : > { %v1088_v48 = vmul.f32 %v7435_v3, %v7462_v15  ;;  %9405 = vst [vmem:[#allocation17_spill] sm:$0xff] %v7511_v60  ;;  %9407 = vst [vmem:[#allocation19_spill] sm:$0xff] %v7532_v34 }
  0xb1   : > { %9397 = vst [vmem:[#allocation9_spill] sm:$0xff] %v7442_v4  ;;  %9398 = vst [vmem:[#allocation10_spill] sm:$0xff] %v7446_v38  ;;  %6087 = vmatmul.mubr.msk.f32.gmra.mxu0 %vm759_vm0, %v1144_v63  ;;  %6100 = vmatprep.mubr.msk.f32.mxu1 %vm759_vm0, %v1086_v6  ;;  %v7724_v4 = vld [vmem:[#allocation2 + $0xef] sm:$0xff] }
  0xb2   : > { %v7455_v8 = vpop.permute.xlu1 %943  ;;  %v7457_v45 = vpop.permute.xlu0 %933  ;;  %6089 = vmatprep.mubr.msk.f32.mxu0 %vm759_vm0, %v1145_v0  ;;  %9429 = vst [vmem:[#allocation41_spill] sm:$0xff] %v7724_v4 }
  0xb3   : > { %v7466_v18 = vmul.f32 %v7449_v7, %v7455_v8  ;;  %v1087_v9 = vmul.f32 %v7457_v45, %v895_v43  ;;  %v7475_v24 = vmul.f32 %v7451_v5, %v7457_v45  ;;  %v1089_v46 = vmul.f32 %v7455_v8, %v7471_v1  ;;  %v7614_v43 = vld [vmem:[#allocation2 + $0x9f] sm:$0xff] }
  0xb5   : > { %9400 = vst [vmem:[#allocation12_spill] sm:$0xff] %v7466_v18  ;;  %9401 = vst [vmem:[#allocation13_spill] sm:$0xff] %v7475_v24  ;;  %6101 = vmatmul.mubr.msk.f32.vlgmr.msra.gmra.mxu1 %vm759_vm0, %v1087_v9  ;;  %6090 = vmatmul.mubr.msk.f32.gmra.mxu0 %vm759_vm0, %v7460_v12  ;;  %v7617_v9 = vld [vmem:[#allocation2 + $0x97] sm:$0xff]  ;;  %v7727_v24 = vld [vmem:[#allocation2 + $0xe7] sm:$0xff] }
  0xb6   : > { %6199 = vmatpush3.msra.mxu1 %v6713_v50  ;;  %v7494_v25 = vpop.permute.xlu1 %953  ;;  %v7496_v11 = vpop.permute.xlu0 %948  ;;  %6103 = vmatprep.mubr.msk.f32.mxu1 %vm759_vm0, %v1088_v48  ;;  %9430 = vst [vmem:[#allocation42_spill] sm:$0xff] %v7727_v24 }
  0xb7   : > { %v7505_v54 = vmul.f32 %v7477_v33, %v7494_v25  ;;  %v1090_v28 = vmul.f32 %v7429_v57, %v7496_v11  ;;  %6092 = vmatprep.mubr.msk.f32.mxu0 %vm759_vm0, %v7479_v42  ;;  %v7515_v17 = vmul.f32 %v7482_v10, %v7496_v11  ;;  %6298 = vmatprep.subr.mxu1 %v7489_v13 }
  0xb8   : > { %v1091_v39 = vmul.f32 %v7451_v5, %v7494_v25 }
  0xb9   : > { %9404 = vst [vmem:[#allocation16_spill] sm:$0xff] %v7505_v54  ;;  %9406 = vst [vmem:[#allocation18_spill] sm:$0xff] %v7515_v17  ;;  %6104 = vmatmul.mubr.msk.f32.gmra.mxu1 %vm759_vm0, %v1089_v46  ;;  %6093 = vmatmul.mubr.msk.f32.gmra.mxu0 %vm759_vm0, %v7499_v20  ;;  %v7705_v54 = vld [vmem:[#allocation2 + $0xd7] sm:$0xff] }
  0xba   : > { %v7525_v14 = vpop.permute.xlu1 %963  ;;  %v7527_v31 = vpop.permute.xlu0 %958  ;;  %6106 = vmatprep.mubr.msk.f32.mxu1 %vm759_vm0, %v1090_v28  ;;  %6095 = vmatprep.mubr.msk.f32.mxu0 %vm759_vm0, %v7511_v60  ;;  %9425 = vst [vmem:[#allocation37_spill] sm:$0xff] %v7705_v54  ;;  %v7746_v60 = vld [vmem:[#allocation2 + $0xff] sm:$0xff]  ;;  %v7749_v20 = vld [vmem:[#allocation2 + $0xf7] sm:$0xff] }
  0xbb   : > { %v7538_v40 = vmul.f32 %v7517_v2, %v7525_v14  ;;  %v1092_v19 = vmul.f32 %v7424_v55, %v7527_v31  ;;  %v7544_v21 = vmul.f32 %v7521_v30, %v7527_v31  ;;  %v1093_v23 = vmul.f32 %v7449_v7, %v7525_v14  ;;  %9435 = vst [vmem:[#allocation47_spill] sm:$0xff] %v7749_v20 }
  0xbd   : > { %9408 = vst [vmem:[#allocation20_spill] sm:$0xff] %v7538_v40  ;;  %9409 = vst [vmem:[#allocation21_spill] sm:$0xff] %v7544_v21  ;;  %6107 = vmatmul.mubr.msk.f32.gmra.mxu1 %vm759_vm0, %v1091_v39  ;;  %6096 = vmatmul.mubr.msk.f32.gmra.mxu0 %vm759_vm0, %v7532_v34  ;;  %v7702_v21 = vld [vmem:[#allocation2 + $0xdf] sm:$0xff] }
  0xbe   : > { %v7553_v62 = vpop.permute.xlu1 %973  ;;  %v7555_v59 = vpop.permute.xlu0 %968  ;;  %6109 = vmatprep.mubr.msk.f32.mxu1 %vm759_vm0, %v1092_v19 }
  0xbf   : > { %v7562_v47 = vmul.f32 %v7546_v37, %v7553_v62  ;;  %v1094_v16 = vmul.f32 %v7482_v10, %v7555_v59  ;;  %v7568_v49 = vmul.f32 %v7549_v44, %v7555_v59  ;;  %v1095_v22 = vmul.f32 %v7477_v33, %v7553_v62 }
  0xc1   : > { %9410 = vst [vmem:[#allocation22_spill] sm:$0xff] %v7562_v47  ;;  %9411 = vst [vmem:[#allocation23_spill] sm:$0xff] %v7568_v49  ;;  %6110 = vmatmul.mubr.msk.f32.gmra.mxu1 %vm759_vm0, %v1093_v23  ;;  %v7636_v23 = vld [vmem:[#allocation2 + $0xaf] sm:$0xff]  ;;  %v7683_v47 = vld [vmem:[#allocation2 + $0xc7] sm:$0xff] }
  0xc2   : > { %v7575_v61 = vpop.permute.xlu1 %983  ;;  %v7577_v52 = vpop.permute.xlu0 %978  ;;  %6112 = vmatprep.mubr.msk.f32.mxu1 %vm759_vm0, %v1094_v16  ;;  %v7639_v16 = vld [vmem:[#allocation2 + $0xa7] sm:$0xff] }
  0xc3   : > { %v7584_v27 = vmul.f32 %v7570_v51, %v7575_v61  ;;  %v1096_v53 = vmul.f32 %v7521_v30, %v7577_v52  ;;  %v7590_v26 = vmul.f32 %v7573_v29, %v7577_v52  ;;  %v1097_v58 = vmul.f32 %v7517_v2, %v7575_v61 }
  0xc5   : > { %9412 = vst [vmem:[#allocation24_spill] sm:$0xff] %v7584_v27  ;;  %9413 = vst [vmem:[#allocation25_spill] sm:$0xff] %v7590_v26  ;;  %6113 = vmatmul.mubr.msk.f32.gmra.mxu1 %vm759_vm0, %v1095_v22  ;;  %v7680_v26 = vld [vmem:[#allocation2 + $0xcf] sm:$0xff] }
  0xc6   : > { %v7597_v56 = vpop.permute.xlu1 %993  ;;  %v7599_v41 = vpop.permute.xlu0 %988  ;;  %6115 = vmatprep.mubr.msk.f32.mxu1 %vm759_vm0, %v1096_v53  ;;  %9422 = vst [vmem:[#allocation34_spill] sm:$0xff] %v7680_v26 }
  0xc7   : > { %v7606_v63 = vmul.f32 %v7592_v32, %v7597_v56  ;;  %v1098_v0 = vmul.f32 %v7549_v44, %v7599_v41  ;;  %v7612_v6 = vmul.f32 %v7595_v36, %v7599_v41  ;;  %v1099_v46 = vmul.f32 %v7546_v37, %v7597_v56 }
  0xc9   : > { %9414 = vst [vmem:[#allocation26_spill] sm:$0xff] %v7606_v63  ;;  %9415 = vst [vmem:[#allocation27_spill] sm:$0xff] %v7612_v6  ;;  %6116 = vmatmul.mubr.msk.f32.gmra.mxu1 %vm759_vm0, %v1097_v58  ;;  %v7661_v63 = vld [vmem:[#allocation2 + $0xb7] sm:$0xff] }
  0xca   : > { %v7619_v48 = vpop.permute.xlu1 %1003  ;;  %v7621_v50 = vpop.permute.xlu0 %998  ;;  %6118 = vmatprep.mubr.msk.f32.mxu1 %vm759_vm0, %v1098_v0 }
  0xcb   : > { %v7628_v28 = vmul.f32 %v7614_v43, %v7619_v48  ;;  %v1100_v39 = vmul.f32 %v7573_v29, %v7621_v50  ;;  %v7634_v19 = vmul.f32 %v7617_v9, %v7621_v50  ;;  %v1101_v58 = vmul.f32 %v7570_v51, %v7619_v48 }
  0xcd   : > { %9416 = vst [vmem:[#allocation28_spill] sm:$0xff] %v7628_v28  ;;  %9417 = vst [vmem:[#allocation29_spill] sm:$0xff] %v7634_v19  ;;  %6119 = vmatmul.mubr.msk.f32.gmra.mxu1 %vm759_vm0, %v1099_v46  ;;  %v7658_v19 = vld [vmem:[#allocation2 + $0xbf] sm:$0xff] }
  0xce   : > { %v7641_v22 = vpop.permute.xlu1 %1013  ;;  %v7643_v53 = vpop.permute.xlu0 %1008  ;;  %6121 = vmatprep.mubr.msk.f32.mxu1 %vm759_vm0, %v1100_v39 }
  0xcf   : > { %v7650_v0 = vmul.f32 %v7636_v23, %v7641_v22  ;;  %v1102_v28 = vmul.f32 %v7595_v36, %v7643_v53  ;;  %v7656_v46 = vmul.f32 %v7639_v16, %v7643_v53 }
  0xd1   : > { %9418 = vst [vmem:[#allocation30_spill] sm:$0xff] %v7650_v0  ;;  %9419 = vst [vmem:[#allocation31_spill] sm:$0xff] %v7656_v46  ;;  %6122 = vmatmul.mubr.msk.f32.gmra.mxu1 %vm759_vm0, %v1101_v58  ;;  %v1103_v0 = vmul.f32 %v7592_v32, %v7641_v22 }
  0xd2   : > { %v7663_v39 = vpop.permute.xlu1 %1023  ;;  %v7665_v6 = vpop.permute.xlu0 %1018  ;;  %6124 = vmatprep.mubr.msk.f32.mxu1 %vm759_vm0, %v1102_v28 }
  0xd3   : > { %v7672_v27 = vmul.f32 %v7658_v19, %v7663_v39  ;;  %v1104_v46 = vmul.f32 %v7617_v9, %v7665_v6  ;;  %v7678_v58 = vmul.f32 %v7661_v63, %v7665_v6 }
  0xd5   : > { %9420 = vst [vmem:[#allocation32_spill] sm:$0xff] %v7672_v27  ;;  %9421 = vst [vmem:[#allocation33_spill] sm:$0xff] %v7678_v58  ;;  %6125 = vmatmul.mubr.msk.f32.gmra.mxu1 %vm759_vm0, %v1103_v0  ;;  %v1105_v27 = vmul.f32 %v7614_v43, %v7663_v39 }
  0xd6   : > { %v7685_v28 = vpop.permute.xlu1 %1033  ;;  %v7687_v49 = vpop.permute.xlu0 %1028  ;;  %6127 = vmatprep.mubr.msk.f32.mxu1 %vm759_vm0, %v1104_v46 }
  0xd7   : > { %v7694_v40 = vmul.f32 %v7680_v26, %v7685_v28  ;;  %v1106_v58 = vmul.f32 %v7639_v16, %v7687_v49  ;;  %v7700_v0 = vmul.f32 %v7683_v47, %v7687_v49 }
  0xd9   : > { %9423 = vst [vmem:[#allocation35_spill] sm:$0xff] %v7694_v40  ;;  %9424 = vst [vmem:[#allocation36_spill] sm:$0xff] %v7700_v0  ;;  %6128 = vmatmul.mubr.msk.f32.gmra.mxu1 %vm759_vm0, %v1105_v27  ;;  %v1107_v40 = vmul.f32 %v7636_v23, %v7685_v28 }
  0xda   : > { %v7707_v46 = vpop.permute.xlu1 %1043  ;;  %v7709_v17 = vpop.permute.xlu0 %1038  ;;  %6130 = vmatprep.mubr.msk.f32.mxu1 %vm759_vm0, %v1106_v58 }
  0xdb   : > { %9426 = vst [vmem:[#allocation38_spill] sm:$0xff] %v7707_v46  ;;  %v7716_v18 = vmul.f32 %v7702_v21, %v7707_v46  ;;  %v1108_v0 = vmul.f32 %v7661_v63, %v7709_v17  ;;  %v7722_v27 = vmul.f32 %v7705_v54, %v7709_v17 }
  0xdd   : > { %9427 = vst [vmem:[#allocation39_spill] sm:$0xff] %v7716_v18  ;;  %9428 = vst [vmem:[#allocation40_spill] sm:$0xff] %v7722_v27  ;;  %6131 = vmatmul.mubr.msk.f32.gmra.mxu1 %vm759_vm0, %v1107_v40  ;;  %v1109_v18 = vmul.f32 %v7658_v19, %v7707_v46  ;;  %v7771_v46 = vld [vmem:[#allocation2 + $0x107] sm:$0xff] }
  0xde   : > { %v7729_v58 = vpop.permute.xlu1 %1053  ;;  %v7731_v38 = vpop.permute.xlu0 %1048  ;;  %6133 = vmatprep.mubr.msk.f32.mxu1 %vm759_vm0, %v1108_v0  ;;  %9441 = vst [vmem:[#allocation53_spill] sm:$0xff] %v7771_v46 }
  0xdf   : > { %9431 = vst [vmem:[#allocation43_spill] sm:$0xff] %v7729_v58  ;;  %9432 = vst [vmem:[#allocation44_spill] sm:$0xff] %v7731_v38  ;;  %v7738_v34 = vmul.f32 %v7724_v4, %v7729_v58  ;;  %v1110_v27 = vmul.f32 %v7683_v47, %v7731_v38  ;;  %v7744_v40 = vmul.f32 %v7727_v24, %v7731_v38  ;;  %v7768_v38 = vld [vmem:[#allocation2 + $0x10f] sm:$0xff] }
  0xe0   : > { %9440 = vst [vmem:[#allocation52_spill] sm:$0xff] %v7768_v38 }
  0xe1   : > { %9433 = vst [vmem:[#allocation45_spill] sm:$0xff] %v7738_v34  ;;  %9434 = vst [vmem:[#allocation46_spill] sm:$0xff] %v7744_v40  ;;  %6134 = vmatmul.mubr.msk.f32.gmra.mxu1 %vm759_vm0, %v1109_v18  ;;  %v1111_v34 = vmul.f32 %v7680_v26, %v7729_v58 }
  0xe2   : > { %v7751_v0 = vpop.permute.xlu1 %1063  ;;  %v7753_v42 = vpop.permute.xlu0 %1058  ;;  %6136 = vmatprep.mubr.msk.f32.mxu1 %vm759_vm0, %v1110_v27 }
  0xe3   : > { %9436 = vst [vmem:[#allocation48_spill] sm:$0xff] %v7751_v0  ;;  %9437 = vst [vmem:[#allocation49_spill] sm:$0xff] %v7753_v42  ;;  %v7760_v12 = vmul.f32 %v7746_v60, %v7751_v0  ;;  %v1112_v40 = vmul.f32 %v7705_v54, %v7753_v42  ;;  %v7766_v18 = vmul.f32 %v7749_v20, %v7753_v42 }
  0xe5   : > { %9438 = vst [vmem:[#allocation50_spill] sm:$0xff] %v7760_v12  ;;  %9439 = vst [vmem:[#allocation51_spill] sm:$0xff] %v7766_v18  ;;  %6137 = vmatmul.mubr.msk.f32.gmra.mxu1 %vm759_vm0, %v1111_v34  ;;  %v1113_v12 = vmul.f32 %v7702_v21, %v7751_v0  ;;  %v7800_v0 = vld [vmem:[#allocation2 + $0x31] sm:$0xff] }
  0xe6   : > { %v7773_v27 = vpop.permute.xlu1 %1073  ;;  %v7775_v58 = vpop.permute.xlu0 %1068  ;;  %6139 = vmatprep.mubr.msk.f32.mxu1 %vm759_vm0, %v1112_v40 }
  0xe7   : > { %9442 = vst [vmem:[#allocation54_spill] sm:$0xff] %v7773_v27  ;;  %9443 = vst [vmem:[#allocation55_spill] sm:$0xff] %v7775_v58  ;;  %v7782_v54 = vmul.f32 %v7768_v38, %v7773_v27  ;;  %v1114_v18 = vmul.f32 %v7727_v24, %v7775_v58  ;;  %v7788_v34 = vmul.f32 %v7771_v46, %v7775_v58  ;;  %v1796_v38 = vld [vmem:[#allocation2 + $0x11] sm:$0xff]  ;;  %v1795_v24 = vld [vmem:[#allocation2 + $0x9] sm:$0xff] }
  0xe8   : > { %v1115_v40 = vmul.f32 %v7724_v4, %v7773_v27  ;;  %v7824_v4 = vld [vmem:[#allocation2 + $0x41] sm:$0xff] }
  0xe9   : > { %9444 = vst [vmem:[#allocation56_spill] sm:$0xff] %v7782_v54  ;;  %9445 = vst [vmem:[#allocation57_spill] sm:$0xff] %v7788_v34  ;;  %6140 = vmatmul.mubr.msk.f32.gmra.mxu1 %vm759_vm0, %v1113_v12  ;;  %v7803_v34 = vld [vmem:[#allocation2 + $0x29] sm:$0xff] }
  0xea   : > { %v7791_v42 = vpop.permute.xlu1 %1083  ;;  %v7793_v26 = vpop.permute.xlu0 %1078  ;;  %6142 = vmatprep.mubr.msk.f32.mxu1 %vm759_vm0, %v1114_v18 }
  0xeb   : > { %9446 = vst [vmem:[#allocation58_spill] sm:$0xff] %v7793_v26  ;;  %v1116_v54 = vmul.f32 %v7749_v20, %v7793_v26  ;;  %v1117_v18 = vmul.f32 %v7746_v60, %v7791_v42 }
  0xed   : > { %6143 = vmatmul.mubr.msk.f32.gmra.mxu1 %vm759_vm0, %v1115_v40  ;;  %v2406_v40 = vmul.f32 %v7437_v35, %v7462_v15  ;;  %v7837_v35 = vld [vmem:[#allocation2 + $0x19] sm:$0xff] }
  0xee   : > { %v7805_v12 = vpop.permute.xlu1 %1834  ;;  %v7807_v46 = vpop.permute.xlu0 %1829  ;;  %6145 = vmatprep.mubr.msk.f32.mxu1 %vm759_vm0, %v1116_v54  ;;  %v7833_v54 = vld [vmem:[%s9347_s5 + $0x30] sm:$0xff] }
  0xef   : > { %9447 = vst [vmem:[#allocation59_spill] sm:$0xff] %v7805_v12  ;;  %9448 = vst [vmem:[#allocation60_spill] sm:$0xff] %v7807_v46  ;;  %v1988_v27 = vmul.f32 %v7805_v12, %v1796_v38  ;;  %v7815_v26 = vmul.f32 %v7800_v0, %v7805_v12  ;;  %v1987_v20 = vmul.f32 %v7807_v46, %v1795_v24  ;;  %v7828_v38 = vld [vmem:[#allocation2 + $0x39] sm:$0xff]  ;;  %v7835_v24 = vld [vmem:[#allocation2 + $0x21] sm:$0xff] }
  0xf0   : > { %v7822_v58 = vmul.f32 %v7803_v34, %v7807_v46  ;;  %v6714_v46 = vld [vmem:[%s9347_s5 + $0x20] sm:$0xff] }
  0xf1   : > { %9449 = vst [vmem:[#allocation61_spill] sm:$0xff] %v7815_v26  ;;  %6146 = vmatmul.mubr.msk.f32.gmra.mxu1 %vm759_vm0, %v1117_v18  ;;  %6150 = vmatprep.mubr.msk.f32.mxu0 %vm759_vm0, %v1987_v20  ;;  %v2407_v20 = vmul.f32 %v7457_v45, %v7471_v1  ;;  %v7862_v45 = vld [vmem:[#allocation2 + $0x51] sm:$0xff]  ;;  %v2408_v1 = vmul.f32 %v7429_v57, %v7435_v3 }
  0xf2   : > { %9450 = vst [vmem:[#allocation62_spill] sm:$0xff] %v7822_v58  ;;  %v7839_v15 = vpop.permute.xlu1 %1844  ;;  %v7841_v26 = vpop.permute.xlu0 %1839  ;;  %6151 = vmatmul.mubr.msk.f32.vlgmr.msra.gmra.mxu0 %vm759_vm0, %v1988_v27  ;;  %6200 = vmatprep.mubr.msk.f32.mxu1 %vm759_vm0, %v2406_v40  ;;  %v7869_v40 = vld [vmem:[#allocation2 + $0x49] sm:$0xff]  ;;  %v2409_v57 = vmul.f32 %v7451_v5, %v7455_v8  ;;  %v7899_v5 = vld [vmem:[#allocation2 + $0x61] sm:$0xff]  ;;  %v7904_v8 = vld [vmem:[#allocation2 + $0x59] sm:$0xff] }
  0xf3   : > { %v1990_v18 = vmul.f32 %v7835_v24, %v7839_v15  ;;  %v7851_v58 = vmul.f32 %v7824_v4, %v7839_v15  ;;  %v1989_v12 = vmul.f32 %v7837_v35, %v7841_v26  ;;  %6249 = vmatpush3.msra.mxu0 %v6714_v46  ;;  %v7860_v27 = vmul.f32 %v7828_v38, %v7841_v26  ;;  %v7874_v46 = vld [vmem:[%s9347_s5 + $0x38] sm:$0xff] }
  0xf4   : > { %6348 = vmatprep.subr.mxu0 %v7833_v54 }
  0xf5   : > { %9451 = vst [vmem:[#allocation63_spill] sm:$0xff] %v7851_v58  ;;  %9452 = vst [vmem:[#allocation64_spill] sm:$0xff] %v7860_v27  ;;  %6153 = vmatprep.mubr.msk.f32.mxu0 %vm759_vm0, %v1989_v12  ;;  %6201 = vmatmul.mubr.msk.f32.vlgmr.msra.gmra.mxu1 %vm759_vm0, %v2407_v20 }
  0xf6   : > { %6299 = vmatpush3.msra.mxu1 %v7489_v13  ;;  %v7877_v58 = vpop.permute.xlu1 %1854  ;;  %v7879_v27 = vpop.permute.xlu0 %1849  ;;  %6154 = vmatmul.mubr.msk.f32.gmra.mxu0 %vm759_vm0, %v1990_v18  ;;  %v2410_v13 = vmul.f32 %v7424_v55, %v7496_v11  ;;  %v2411_v55 = vmul.f32 %v7449_v7, %v7494_v25  ;;  %v7932_v7 = vld [vmem:[#allocation2 + $0x69] sm:$0xff] }
  0xf7   : > { %v1992_v3 = vmul.f32 %v7800_v0, %v7877_v58  ;;  %v7888_v12 = vmul.f32 %v7862_v45, %v7877_v58  ;;  %v1991_v20 = vmul.f32 %v7803_v34, %v7879_v27  ;;  %6203 = vmatprep.mubr.msk.f32.mxu1 %vm759_vm0, %v2408_v1  ;;  %v7897_v18 = vmul.f32 %v7869_v40, %v7879_v27 }
  0xf8   : > { %6398 = vmatprep.subr.mxu1 %v7874_v46 }
  0xf9   : > { %9453 = vst [vmem:[#allocation65_spill] sm:$0xff] %v7888_v12  ;;  %9454 = vst [vmem:[#allocation66_spill] sm:$0xff] %v7897_v18  ;;  %6156 = vmatprep.mubr.msk.f32.mxu0 %vm759_vm0, %v1991_v20  ;;  %6204 = vmatmul.mubr.msk.f32.gmra.mxu1 %vm759_vm0, %v2409_v57  ;;  %v2412_v18 = vmul.f32 %v7482_v10, %v7527_v31  ;;  %v2413_v10 = vmul.f32 %v7477_v33, %v7525_v14  ;;  %v7960_v33 = vld [vmem:[#allocation2 + $0x79] sm:$0xff] }
  0xfa   : > { %v7906_v12 = vpop.permute.xlu1 %1864  ;;  %v7908_v1 = vpop.permute.xlu0 %1859  ;;  %6157 = vmatmul.mubr.msk.f32.gmra.mxu0 %vm759_vm0, %v1992_v3  ;;  %6206 = vmatprep.mubr.msk.f32.mxu1 %vm759_vm0, %v2410_v13  ;;  %v7928_v13 = vld [vmem:[#allocation2 + $0x71] sm:$0xff] }
  0xfb   : > { %v1994_v11 = vmul.f32 %v7824_v4, %v7906_v12  ;;  %v7918_v20 = vmul.f32 %v7899_v5, %v7906_v12  ;;  %v1993_v57 = vmul.f32 %v7828_v38, %v7908_v1  ;;  %v7926_v3 = vmul.f32 %v7904_v8, %v7908_v1 }
  0xfd   : > { %9455 = vst [vmem:[#allocation67_spill] sm:$0xff] %v7918_v20  ;;  %9456 = vst [vmem:[#allocation68_spill] sm:$0xff] %v7926_v3  ;;  %6159 = vmatprep.mubr.msk.f32.mxu0 %vm759_vm0, %v1993_v57  ;;  %6207 = vmatmul.mubr.msk.f32.gmra.mxu1 %vm759_vm0, %v2411_v55  ;;  %v2414_v3 = vmul.f32 %v7521_v30, %v7555_v59  ;;  %v2415_v30 = vmul.f32 %v7517_v2, %v7553_v62  ;;  %v7988_v2 = vld [vmem:[#allocation2 + $0x89] sm:$0xff] }
  0xfe   : > { %v7934_v25 = vpop.permute.xlu1 %1874  ;;  %v7936_v20 = vpop.permute.xlu0 %1869  ;;  %6160 = vmatmul.mubr.msk.f32.gmra.mxu0 %vm759_vm0, %v1994_v11  ;;  %6209 = vmatprep.mubr.msk.f32.mxu1 %vm759_vm0, %v2412_v18  ;;  %v7956_v18 = vld [vmem:[#allocation2 + $0x81] sm:$0xff] }
  0xff   : > { %v1996_v31 = vmul.f32 %v7862_v45, %v7934_v25  ;;  %v7946_v57 = vmul.f32 %v7928_v13, %v7934_v25  ;;  %v1995_v55 = vmul.f32 %v7869_v40, %v7936_v20  ;;  %v7954_v11 = vmul.f32 %v7932_v7, %v7936_v20 }
 0x101   : > { %9457 = vst [vmem:[#allocation69_spill] sm:$0xff] %v7946_v57  ;;  %9458 = vst [vmem:[#allocation70_spill] sm:$0xff] %v7954_v11  ;;  %6162 = vmatprep.mubr.msk.f32.mxu0 %vm759_vm0, %v1995_v55  ;;  %6210 = vmatmul.mubr.msk.f32.gmra.mxu1 %vm759_vm0, %v2413_v10  ;;  %v2416_v11 = vmul.f32 %v7549_v44, %v7577_v52  ;;  %v2417_v44 = vmul.f32 %v7546_v37, %v7575_v61  ;;  %v8016_v37 = vld [vmem:[#allocation2 + $0x99] sm:$0xff] }
 0x102   : > { %v7962_v14 = vpop.permute.xlu1 %1884  ;;  %v7964_v57 = vpop.permute.xlu0 %1879  ;;  %6163 = vmatmul.mubr.msk.f32.gmra.mxu0 %vm759_vm0, %v1996_v31  ;;  %6212 = vmatprep.mubr.msk.f32.mxu1 %vm759_vm0, %v2414_v3  ;;  %v7984_v3 = vld [vmem:[#allocation2 + $0x91] sm:$0xff] }
 0x103   : > { %v1998_v59 = vmul.f32 %v7899_v5, %v7962_v14  ;;  %v7974_v55 = vmul.f32 %v7956_v18, %v7962_v14  ;;  %v1997_v10 = vmul.f32 %v7904_v8, %v7964_v57  ;;  %v7982_v31 = vmul.f32 %v7960_v33, %v7964_v57 }
 0x105   : > { %9459 = vst [vmem:[#allocation71_spill] sm:$0xff] %v7974_v55  ;;  %9460 = vst [vmem:[#allocation72_spill] sm:$0xff] %v7982_v31  ;;  %6165 = vmatprep.mubr.msk.f32.mxu0 %vm759_vm0, %v1997_v10  ;;  %6213 = vmatmul.mubr.msk.f32.gmra.mxu1 %vm759_vm0, %v2415_v30  ;;  %v2418_v31 = vmul.f32 %v7573_v29, %v7599_v41  ;;  %v2419_v29 = vmul.f32 %v7570_v51, %v7597_v56  ;;  %v8044_v51 = vld [vmem:[#allocation2 + $0xa9] sm:$0xff] }
 0x106   : > { %v7990_v62 = vpop.permute.xlu1 %1894  ;;  %v7992_v55 = vpop.permute.xlu0 %1889  ;;  %6166 = vmatmul.mubr.msk.f32.gmra.mxu0 %vm759_vm0, %v1998_v59  ;;  %6215 = vmatprep.mubr.msk.f32.mxu1 %vm759_vm0, %v2416_v11  ;;  %v8012_v11 = vld [vmem:[#allocation2 + $0xa1] sm:$0xff] }
 0x107   : > { %v2000_v52 = vmul.f32 %v7928_v13, %v7990_v62  ;;  %v8002_v10 = vmul.f32 %v7984_v3, %v7990_v62  ;;  %v1999_v30 = vmul.f32 %v7932_v7, %v7992_v55  ;;  %v8010_v59 = vmul.f32 %v7988_v2, %v7992_v55 }
 0x109   : > { %9461 = vst [vmem:[#allocation73_spill] sm:$0xff] %v8002_v10  ;;  %9462 = vst [vmem:[#allocation74_spill] sm:$0xff] %v8010_v59  ;;  %6168 = vmatprep.mubr.msk.f32.mxu0 %vm759_vm0, %v1999_v30  ;;  %6216 = vmatmul.mubr.msk.f32.gmra.mxu1 %vm759_vm0, %v2417_v44  ;;  %v2420_v59 = vmul.f32 %v7595_v36, %v7621_v50  ;;  %v2421_v36 = vmul.f32 %v7592_v32, %v7619_v48  ;;  %v8072_v32 = vld [vmem:[#allocation2 + $0xb9] sm:$0xff] }
 0x10a   : > { %v8018_v61 = vpop.permute.xlu1 %1904  ;;  %v8020_v10 = vpop.permute.xlu0 %1899  ;;  %6169 = vmatmul.mubr.msk.f32.gmra.mxu0 %vm759_vm0, %v2000_v52  ;;  %6218 = vmatprep.mubr.msk.f32.mxu1 %vm759_vm0, %v2418_v31  ;;  %v8040_v31 = vld [vmem:[#allocation2 + $0xb1] sm:$0xff] }
 0x10b   : > { %v2002_v41 = vmul.f32 %v7956_v18, %v8018_v61  ;;  %v8030_v30 = vmul.f32 %v8012_v11, %v8018_v61  ;;  %v2001_v44 = vmul.f32 %v7960_v33, %v8020_v10  ;;  %v8038_v52 = vmul.f32 %v8016_v37, %v8020_v10 }
 0x10d   : > { %9463 = vst [vmem:[#allocation75_spill] sm:$0xff] %v8030_v30  ;;  %9464 = vst [vmem:[#allocation76_spill] sm:$0xff] %v8038_v52  ;;  %6171 = vmatprep.mubr.msk.f32.mxu0 %vm759_vm0, %v2001_v44  ;;  %6219 = vmatmul.mubr.msk.f32.gmra.mxu1 %vm759_vm0, %v2419_v29  ;;  %v2422_v52 = vmul.f32 %v7617_v9, %v7643_v53  ;;  %v2423_v9 = vmul.f32 %v7614_v43, %v7641_v22  ;;  %v8100_v43 = vld [vmem:[#allocation2 + $0xc9] sm:$0xff] }
 0x10e   : > { %v8046_v56 = vpop.permute.xlu1 %1914  ;;  %v8048_v30 = vpop.permute.xlu0 %1909  ;;  %6172 = vmatmul.mubr.msk.f32.gmra.mxu0 %vm759_vm0, %v2002_v41  ;;  %6221 = vmatprep.mubr.msk.f32.mxu1 %vm759_vm0, %v2420_v59  ;;  %v8068_v59 = vld [vmem:[#allocation2 + $0xc1] sm:$0xff] }
 0x10f   : > { %v2004_v50 = vmul.f32 %v7984_v3, %v8046_v56  ;;  %v8058_v44 = vmul.f32 %v8040_v31, %v8046_v56  ;;  %v2003_v29 = vmul.f32 %v7988_v2, %v8048_v30  ;;  %v8066_v41 = vmul.f32 %v8044_v51, %v8048_v30  ;;  %9467 = vst [vmem:[#allocation79_spill] sm:$0xff] %v8068_v59 }
 0x111   : > { %9465 = vst [vmem:[#allocation77_spill] sm:$0xff] %v8058_v44  ;;  %9466 = vst [vmem:[#allocation78_spill] sm:$0xff] %v8066_v41  ;;  %6174 = vmatprep.mubr.msk.f32.mxu0 %vm759_vm0, %v2003_v29  ;;  %6222 = vmatmul.mubr.msk.f32.gmra.mxu1 %vm759_vm0, %v2421_v36  ;;  %v2424_v41 = vmul.f32 %v7639_v16, %v7665_v6  ;;  %v2425_v6 = vmul.f32 %v7636_v23, %v7663_v39  ;;  %v8128_v23 = vld [vmem:[#allocation2 + $0xd9] sm:$0xff] }
 0x112   : > { %v8074_v48 = vpop.permute.xlu1 %1924  ;;  %v8076_v44 = vpop.permute.xlu0 %1919  ;;  %6175 = vmatmul.mubr.msk.f32.gmra.mxu0 %vm759_vm0, %v2004_v50  ;;  %6224 = vmatprep.mubr.msk.f32.mxu1 %vm759_vm0, %v2422_v52  ;;  %v8096_v52 = vld [vmem:[#allocation2 + $0xd1] sm:$0xff]  ;;  %9475 = vst [vmem:[#allocation87_spill] sm:$0xff] %v8128_v23 }
 0x113   : > { %v2006_v53 = vmul.f32 %v8012_v11, %v8074_v48  ;;  %v8086_v29 = vmul.f32 %v8068_v59, %v8074_v48  ;;  %v2005_v36 = vmul.f32 %v8016_v37, %v8076_v44  ;;  %v8094_v50 = vmul.f32 %v8072_v32, %v8076_v44  ;;  %9470 = vst [vmem:[#allocation82_spill] sm:$0xff] %v8096_v52 }
 0x115   : > { %9468 = vst [vmem:[#allocation80_spill] sm:$0xff] %v8086_v29  ;;  %9469 = vst [vmem:[#allocation81_spill] sm:$0xff] %v8094_v50  ;;  %6177 = vmatprep.mubr.msk.f32.mxu0 %vm759_vm0, %v2005_v36  ;;  %6225 = vmatmul.mubr.msk.f32.gmra.mxu1 %vm759_vm0, %v2423_v9  ;;  %v2426_v50 = vmul.f32 %v7661_v63, %v7687_v49  ;;  %v2427_v49 = vmul.f32 %v7658_v19, %v7685_v28  ;;  %v8156_v19 = vld [vmem:[#allocation2 + $0xe9] sm:$0xff] }
 0x116   : > { %v8102_v22 = vpop.permute.xlu1 %1934  ;;  %v8104_v29 = vpop.permute.xlu0 %1929  ;;  %6178 = vmatmul.mubr.msk.f32.gmra.mxu0 %vm759_vm0, %v2006_v53  ;;  %6227 = vmatprep.mubr.msk.f32.mxu1 %vm759_vm0, %v2424_v41  ;;  %v8124_v41 = vld [vmem:[#allocation2 + $0xe1] sm:$0xff] }
 0x117   : > { %9471 = vst [vmem:[#allocation83_spill] sm:$0xff] %v8102_v22  ;;  %v2008_v16 = vmul.f32 %v8040_v31, %v8102_v22  ;;  %v8114_v36 = vmul.f32 %v8096_v52, %v8102_v22  ;;  %v2007_v9 = vmul.f32 %v8044_v51, %v8104_v29  ;;  %v8122_v53 = vmul.f32 %v8100_v43, %v8104_v29 }
 0x118   : > { %9474 = vst [vmem:[#allocation86_spill] sm:$0xff] %v8124_v41 }
 0x119   : > { %9472 = vst [vmem:[#allocation84_spill] sm:$0xff] %v8114_v36  ;;  %9473 = vst [vmem:[#allocation85_spill] sm:$0xff] %v8122_v53  ;;  %6180 = vmatprep.mubr.msk.f32.mxu0 %vm759_vm0, %v2007_v9  ;;  %6228 = vmatmul.mubr.msk.f32.gmra.mxu1 %vm759_vm0, %v2425_v6  ;;  %v2428_v53 = vmul.f32 %v7683_v47, %v7709_v17  ;;  %v9482_v17 = vld [vmem:[#allocation38_spill] sm:$0xff] }
 0x11a   : > { %v8130_v39 = vpop.permute.xlu1 %1944  ;;  %v8132_v36 = vpop.permute.xlu0 %1939  ;;  %6181 = vmatmul.mubr.msk.f32.gmra.mxu0 %vm759_vm0, %v2008_v16  ;;  %6230 = vmatprep.mubr.msk.f32.mxu1 %vm759_vm0, %v2426_v50  ;;  %v8152_v50 = vld [vmem:[#allocation2 + $0xf1] sm:$0xff] }
 0x11b   : > { %9476 = vst [vmem:[#allocation88_spill] sm:$0xff] %v8130_v39  ;;  %9477 = vst [vmem:[#allocation89_spill] sm:$0xff] %v8132_v36  ;;  %v2010_v63 = vmul.f32 %v8068_v59, %v8130_v39  ;;  %v8142_v9 = vmul.f32 %v8124_v41, %v8130_v39  ;;  %v2009_v6 = vmul.f32 %v8072_v32, %v8132_v36  ;;  %v9483_v47 = vld [vmem:[#allocation34_spill] sm:$0xff]  ;;  %v9486_v59 = vld [vmem:[#allocation37_spill] sm:$0xff] }
 0x11c   : > { %v8150_v16 = vmul.f32 %v8128_v23, %v8132_v36  ;;  %v2429_v39 = vmul.f32 %v9483_v47, %v9482_v17  ;;  %v9485_v36 = vld [vmem:[#allocation44_spill] sm:$0xff]  ;;  %v8184_v17 = vld [vmem:[#allocation2 + $0xf9] sm:$0xff] }
 0x11d   : > { %9478 = vst [vmem:[#allocation90_spill] sm:$0xff] %v8142_v9  ;;  %6183 = vmatprep.mubr.msk.f32.mxu0 %vm759_vm0, %v2009_v6  ;;  %6231 = vmatmul.mubr.msk.f32.gmra.mxu1 %vm759_vm0, %v2427_v49  ;;  %v2430_v22 = vmul.f32 %v9486_v59, %v9485_v36  ;;  %v9490_v59 = vld [vmem:[#allocation43_spill] sm:$0xff] }
 0x11e   : > { %9479 = vst [vmem:[#allocation91_spill] sm:$0xff] %v8150_v16  ;;  %v8158_v28 = vpop.permute.xlu1 %1954  ;;  %v8160_v9 = vpop.permute.xlu0 %1949  ;;  %6184 = vmatmul.mubr.msk.f32.gmra.mxu0 %vm759_vm0, %v2010_v63  ;;  %6233 = vmatprep.mubr.msk.f32.mxu1 %vm759_vm0, %v2428_v53  ;;  %v8180_v53 = vld [vmem:[#allocation2 + $0x101] sm:$0xff]  ;;  %v2431_v36 = vmul.f32 %v7702_v21, %v9490_v59  ;;  %v8212_v21 = vld [vmem:[#allocation2 + $0x109] sm:$0xff] }
 0x11f   : > { %9480 = vst [vmem:[#allocation92_spill] sm:$0xff] %v8158_v28  ;;  %9481 = vst [vmem:[#allocation93_spill] sm:$0xff] %v8160_v9  ;;  %v2012_v16 = vmul.f32 %v8096_v52, %v8158_v28  ;;  %v8170_v6 = vmul.f32 %v8152_v50, %v8158_v28  ;;  %v2011_v49 = vmul.f32 %v8100_v43, %v8160_v9  ;;  %v9492_v28 = vld [vmem:[#allocation49_spill] sm:$0xff] }
 0x120   : > { %v8178_v63 = vmul.f32 %v8156_v19, %v8160_v9  ;;  %v9493_v9 = vld [vmem:[#allocation42_spill] sm:$0xff] }
 0x121   : > { %9484 = vst [vmem:[#allocation38_spill] sm:$0xff] %v8170_v6  ;;  %6186 = vmatprep.mubr.msk.f32.mxu0 %vm759_vm0, %v2011_v49  ;;  %6234 = vmatmul.mubr.msk.f32.gmra.mxu1 %vm759_vm0, %v2429_v39  ;;  %v2432_v52 = vmul.f32 %v9493_v9, %v9492_v28  ;;  %v9496_v9 = vld [vmem:[#allocation48_spill] sm:$0xff]  ;;  %v9497_v28 = vld [vmem:[#allocation41_spill] sm:$0xff] }
 0x122   : > { %9487 = vst [vmem:[#allocation34_spill] sm:$0xff] %v8178_v63  ;;  %v8186_v47 = vpop.permute.xlu1 %1964  ;;  %v8188_v6 = vpop.permute.xlu0 %1959  ;;  %6187 = vmatmul.mubr.msk.f32.gmra.mxu0 %vm759_vm0, %v2012_v16  ;;  %6236 = vmatprep.mubr.msk.f32.mxu1 %vm759_vm0, %v2430_v22  ;;  %v8208_v22 = vld [vmem:[#allocation2 + $0x111] sm:$0xff] }
 0x123   : > { %9488 = vst [vmem:[#allocation44_spill] sm:$0xff] %v8186_v47  ;;  %9489 = vst [vmem:[#allocation37_spill] sm:$0xff] %v8188_v6  ;;  %v2014_v63 = vmul.f32 %v8124_v41, %v8186_v47  ;;  %v8198_v49 = vmul.f32 %v8180_v53, %v8186_v47  ;;  %v2013_v39 = vmul.f32 %v8128_v23, %v8188_v6  ;;  %v9500_v41 = vld [vmem:[#allocation47_spill] sm:$0xff] }
 0x124   : > { %v8206_v16 = vmul.f32 %v8184_v17, %v8188_v6  ;;  %9495 = vst [vmem:[#allocation42_spill] sm:$0xff] %v8208_v22  ;;  %v2433_v47 = vmul.f32 %v9497_v28, %v9496_v9  ;;  %v9499_v6 = vld [vmem:[#allocation55_spill] sm:$0xff]  ;;  %v9502_v9 = vld [vmem:[#allocation54_spill] sm:$0xff] }
 0x125   : > { %9491 = vst [vmem:[#allocation43_spill] sm:$0xff] %v8198_v49  ;;  %6189 = vmatprep.mubr.msk.f32.mxu0 %vm759_vm0, %v2013_v39  ;;  %6237 = vmatmul.mubr.msk.f32.gmra.mxu1 %vm759_vm0, %v2431_v36  ;;  %v2434_v23 = vmul.f32 %v9500_v41, %v9499_v6  ;;  %v2435_v28 = vmul.f32 %v7746_v60, %v9502_v9  ;;  %v9505_v60 = vld [vmem:[#allocation52_spill] sm:$0xff] }
 0x126   : > { %9494 = vst [vmem:[#allocation49_spill] sm:$0xff] %v8206_v16  ;;  %v8214_v59 = vpop.permute.xlu1 %1974  ;;  %v8216_v49 = vpop.permute.xlu0 %1969  ;;  %6190 = vmatmul.mubr.msk.f32.gmra.mxu0 %vm759_vm0, %v2014_v63  ;;  %6239 = vmatprep.mubr.msk.f32.mxu1 %vm759_vm0, %v2432_v52 }
 0x127   : > { %v2016_v16 = vmul.f32 %v8152_v50, %v8214_v59  ;;  %v8226_v39 = vmul.f32 %v8208_v22, %v8214_v59  ;;  %v2015_v36 = vmul.f32 %v8156_v19, %v8216_v49  ;;  %v8234_v63 = vmul.f32 %v8212_v21, %v8216_v49 }
 0x129   : > { %9498 = vst [vmem:[#allocation48_spill] sm:$0xff] %v8226_v39  ;;  %9501 = vst [vmem:[#allocation41_spill] sm:$0xff] %v8234_v63  ;;  %6192 = vmatprep.mubr.msk.f32.mxu0 %vm759_vm0, %v2015_v36  ;;  %6240 = vmatmul.mubr.msk.f32.gmra.mxu1 %vm759_vm0, %v2433_v47  ;;  %v9503_v39 = vld [vmem:[#allocation58_spill] sm:$0xff]  ;;  %v9504_v63 = vld [vmem:[#allocation53_spill] sm:$0xff] }
 0x12a   : > { %v8238_v52 = vpop.permute.xlu1 %1984  ;;  %6193 = vmatmul.mubr.msk.f32.gmra.mxu0 %vm759_vm0, %v2016_v16  ;;  %6242 = vmatprep.mubr.msk.f32.mxu1 %vm759_vm0, %v2434_v23  ;;  %v8246_v6 = vpop.permute.xlu0 %1979  ;;  %v2436_v22 = vmul.f32 %v9504_v63, %v9503_v39  ;;  %v2793_v36 = vld [vmem:[#allocation2 + $0x18] sm:$0xff]  ;;  %v2437_v23 = vmul.f32 %v9505_v60, %v7791_v42  ;;  %v9506_v16 = vld [vmem:[#allocation60_spill] sm:$0xff]  ;;  %v2794_v63 = vld [vmem:[#allocation2 + $0x20] sm:$0xff] }
 0x12b   : > { %v2018_v41 = vmul.f32 %v8180_v53, %v8238_v52  ;;  %v2017_v47 = vmul.f32 %v8184_v17, %v8246_v6  ;;  %v3212_v9 = vmul.f32 %v7837_v35, %v9506_v16  ;;  %v8262_v39 = vld [vmem:[#allocation2 + $0x28] sm:$0xff]  ;;  %v3214_v35 = vmul.f32 %v7803_v34, %v7841_v26  ;;  %v8320_v60 = vpop.f32.mrf.mxu0 }
 0x12c   : > { %v3215_v26 = vmul.f32 %v7800_v0, %v7839_v15  ;;  %v3216_v34 = vmul.f32 %v7828_v38, %v7879_v27  ;;  %v3217_v0 = vmul.f32 %v7824_v4, %v7877_v58  ;;  %v3218_v38 = vmul.f32 %v7869_v40, %v7908_v1  ;;  %v8315_v15 = vld [vmem:[#allocation2 + $0x50] sm:$0xff]  ;;  %v8318_v27 = vld [vmem:[#allocation2 + $0x58] sm:$0xff]  ;;  %v8331_v40 = vld [vmem:[#allocation2 + $0x60] sm:$0xff] }
 0x12d   : > { %6243 = vmatmul.mubr.msk.f32.gmra.mxu1 %vm759_vm0, %v2435_v28  ;;  %6195 = vmatprep.mubr.msk.f32.mxu0 %vm759_vm0, %v2017_v47  ;;  %v9507_v28 = vld [vmem:[#allocation59_spill] sm:$0xff]  ;;  %v8278_v47 = vld [vmem:[#allocation2 + $0x30] sm:$0xff]  ;;  %v3219_v4 = vmul.f32 %v7862_v45, %v7906_v12  ;;  %v3220_v58 = vmul.f32 %v7904_v8, %v7936_v20  ;;  %v8334_v1 = vld [vmem:[#allocation2 + $0x68] sm:$0xff]  ;;  %v3221_v45 = vmul.f32 %v7899_v5, %v7934_v25 }
 0x12e   : > { %6245 = vmatprep.mubr.msk.f32.mxu1 %vm759_vm0, %v2436_v22  ;;  %6196 = vmatmul.mubr.msk.f32.gmra.mxu0 %vm759_vm0, %v2018_v41  ;;  %v8268_v22 = vld [vmem:[%s9347_s5 + $0x40] sm:$0xff]  ;;  %v3213_v41 = vmul.f32 %v7835_v24, %v9507_v28  ;;  %v8286_v24 = vld [vmem:[#allocation2 + $0x38] sm:$0xff]  ;;  %v3222_v12 = vmul.f32 %v7932_v7, %v7964_v57  ;;  %v8347_v8 = vld [vmem:[#allocation2 + $0x70] sm:$0xff]  ;;  %v3223_v5 = vmul.f32 %v7928_v13, %v7962_v14 }
 0x12f   : > { %6250 = vmatprep.mubr.msk.f32.mxu0 %vm759_vm0, %v2793_v36  ;;  %v8283_v36 = vld [vmem:[%s9351_s9] sm:$0xf]  ;;  %v8350_v20 = vld [vmem:[#allocation2 + $0x78] sm:$0xff]  ;;  %v3224_v25 = vmul.f32 %v7960_v33, %v7992_v55  ;;  %v3225_v13 = vmul.f32 %v7956_v18, %v7990_v62  ;;  %v3226_v14 = vmul.f32 %v7988_v2, %v8020_v10  ;;  %v8383_v55 = vld [vmem:[#allocation2 + $0x90] sm:$0xff]  ;;  %v3227_v18 = vmul.f32 %v7984_v3, %v8018_v61 }
 0x130   : > { %v8365_v57 = vld [vmem:[#allocation2 + $0x80] sm:$0xff]  ;;  %v8386_v28 = vld [vmem:[#allocation2 + $0x98] sm:$0xff]  ;;  %v3228_v62 = vmul.f32 %v8016_v37, %v8048_v30  ;;  %v3229_v61 = vmul.f32 %v8012_v11, %v8046_v56  ;;  %v3230_v37 = vmul.f32 %v8044_v51, %v8076_v44  ;;  %v8417_v30 = vld [vmem:[#allocation2 + $0xb0] sm:$0xff]  ;;  %v3231_v11 = vmul.f32 %v8040_v31, %v8074_v48 }
 0x131   : > { %6246 = vmatmul.mubr.msk.f32.gmra.mxu1 %vm759_vm0, %v2437_v23  ;;  %v8336_v23 = vpop.f32.mrf.mxu0  ;;  %v8401_v10 = vld [vmem:[#allocation2 + $0xa0] sm:$0xff]  ;;  %v3232_v51 = vmul.f32 %v8072_v32, %v8104_v29  ;;  %v6715_v56 = vld [vmem:[#allocation2 + $0xb8] sm:$0xff]  ;;  %v9510_v31 = vld [vmem:[#allocation89_spill] sm:$0xff] }
 0x132   : > { %6300 = vmatprep.mubr.msk.f32.mxu1 %vm759_vm0, %v3212_v9  ;;  %6251 = vmatmul.mubr.msk.f32.vlgmr.msra.gmra.mxu0 %vm759_vm0, %v2794_v63  ;;  %v8368_v9 = vld [vmem:[#allocation2 + $0x88] sm:$0xff]  ;;  %v3234_v48 = vmul.f32 %v8100_v43, %v9510_v31  ;;  %v9521_v31 = vld [vmem:[#allocation15_spill] sm:$0xff] }
 0x133   : > { %6349 = vmatpush3.msra.mxu0 %v7833_v54  ;;  %6253 = vmatprep.mubr.msk.f32.mxu0 %vm759_vm0, %v8262_v39  ;;  %v8301_v54 = vld [vmem:[#allocation2 + $0x40] sm:$0xff]  ;;  %v9511_v29 = vld [vmem:[#allocation88_spill] sm:$0xff] }
 0x134   : > { %6448 = vmatprep.subr.mxu0 %v8268_v22 }
 0x135   : > { %6301 = vmatmul.mubr.msk.f32.vlgmr.msra.gmra.mxu1 %vm759_vm0, %v3213_v41 }
 0x136   : > { %6399 = vmatpush3.msra.mxu1 %v7874_v46  ;;  %6303 = vmatprep.mubr.msk.f32.mxu1 %vm759_vm0, %v3214_v35  ;;  %v8304_v46 = vld [vmem:[#allocation2 + $0x48] sm:$0xff] }
 0x137   : > { %6254 = vmatmul.mubr.msk.f32.gmra.mxu0 %vm759_vm0, %v8278_v47  ;;  %6498 = vmatprep.subr.msk.mxu1 %vm4954_vm1, %v8283_v36  ;;  %v8404_v35 = vld [vmem:[#allocation2 + $0xa8] sm:$0xff] }
 0x138   : > { %6256 = vmatprep.mubr.msk.f32.mxu0 %vm759_vm0, %v8286_v24 }
 0x139   : > { %6304 = vmatmul.mubr.msk.f32.gmra.mxu1 %vm759_vm0, %v3215_v26 }
 0x13a   : > { %6306 = vmatprep.mubr.msk.f32.mxu1 %vm759_vm0, %v3216_v34  ;;  %v9508_v34 = vld [vmem:[#allocation83_spill] sm:$0xff] }
 0x13b   : > { %6257 = vmatmul.mubr.msk.f32.gmra.mxu0 %vm759_vm0, %v8301_v54 }
 0x13c   : > { %6259 = vmatprep.mubr.msk.f32.mxu0 %vm759_vm0, %v8304_v46 }
 0x13d   : > { %6307 = vmatmul.mubr.msk.f32.gmra.mxu1 %vm759_vm0, %v3217_v0  ;;  %v9509_v0 = vld [vmem:[#allocation79_spill] sm:$0xff] }
 0x13e   : > { %6309 = vmatprep.mubr.msk.f32.mxu1 %vm759_vm0, %v3218_v38  ;;  %v3233_v38 = vmul.f32 %v9509_v0, %v9508_v34  ;;  %v9519_v34 = vld [vmem:[#allocation14_spill] sm:$0xff] }
 0x13f   : > { %6260 = vmatmul.mubr.msk.f32.gmra.mxu0 %vm759_vm0, %v8315_v15 }
 0x140   : > { %6262 = vmatprep.mubr.msk.f32.mxu0 %vm759_vm0, %v8318_v27 }
 0x141   : > { %6310 = vmatmul.mubr.msk.f32.gmra.mxu1 %vm759_vm0, %v3219_v4  ;;  %v6716_v4 = vld [vmem:[#allocation2 + $0xc0] sm:$0xff] }
 0x142   : > { %6312 = vmatprep.mubr.msk.f32.mxu1 %vm759_vm0, %v3220_v58  ;;  %v6717_v58 = vld [vmem:[#allocation2 + $0xc8] sm:$0xff] }
 0x143   : > { %6263 = vmatmul.mubr.msk.f32.gmra.mxu0 %vm759_vm0, %v8331_v40 }
 0x144   : > { %6265 = vmatprep.mubr.msk.f32.mxu0 %vm759_vm0, %v8334_v1 }
 0x145   : > { %6313 = vmatmul.mubr.msk.f32.gmra.mxu1 %vm759_vm0, %v3221_v45  ;;  %v8352_v16 = vpop.f32.mrf.mxu0  ;;  %v9512_v45 = vld [vmem:[#allocation82_spill] sm:$0xff] }
 0x146   : > { %6315 = vmatprep.mubr.msk.f32.mxu1 %vm759_vm0, %v3222_v12  ;;  %v3235_v12 = vmul.f32 %v9512_v45, %v9511_v29  ;;  %v9523_v45 = vld [vmem:[#allocation19_spill] sm:$0xff] }
 0x147   : > { %6266 = vmatmul.mubr.msk.f32.gmra.mxu0 %vm759_vm0, %v8347_v8  ;;  %v8359_v7 = vpop.f32.mrf.mxu0 }
 0x148   : > { %6268 = vmatprep.mubr.msk.f32.mxu0 %vm759_vm0, %v8350_v20 }
 0x149   : > { %6316 = vmatmul.mubr.msk.f32.gmra.mxu1 %vm759_vm0, %v3223_v5  ;;  %v8370_v63 = vpop.f32.mrf.mxu0  ;;  %v6718_v5 = vld [vmem:[#allocation2 + $0xd0] sm:$0xff] }
 0x14a   : > { %6318 = vmatprep.mubr.msk.f32.mxu1 %vm759_vm0, %v3224_v25  ;;  %v9513_v25 = vld [vmem:[#allocation93_spill] sm:$0xff] }
 0x14b   : > { %6269 = vmatmul.mubr.msk.f32.gmra.mxu0 %vm759_vm0, %v8365_v57  ;;  %v8377_v33 = vpop.f32.mrf.mxu0 }
 0x14c   : > { %6271 = vmatprep.mubr.msk.f32.mxu0 %vm759_vm0, %v8368_v9 }
 0x14d   : > { %6319 = vmatmul.mubr.msk.f32.gmra.mxu1 %vm759_vm0, %v3225_v13  ;;  %v8388_v41 = vpop.f32.mrf.mxu0  ;;  %v9514_v13 = vld [vmem:[#allocation87_spill] sm:$0xff] }
 0x14e   : > { %6321 = vmatprep.mubr.msk.f32.mxu1 %vm759_vm0, %v3226_v14  ;;  %v3236_v14 = vmul.f32 %v9514_v13, %v9513_v25  ;;  %v9526_v25 = vld [vmem:[#allocation13_spill] sm:$0xff] }
 0x14f   : > { %6272 = vmatmul.mubr.msk.f32.gmra.mxu0 %vm759_vm0, %v8383_v55  ;;  %v8395_v2 = vpop.f32.mrf.mxu0  ;;  %v9527_v13 = vld [vmem:[#allocation9_spill] sm:$0xff] }
 0x150   : > { %6274 = vmatprep.mubr.msk.f32.mxu0 %vm759_vm0, %v8386_v28 }
 0x151   : > { %6322 = vmatmul.mubr.msk.f32.gmra.mxu1 %vm759_vm0, %v3227_v18  ;;  %v8407_v3 = vpop.f32.mrf.mxu0  ;;  %v6719_v18 = vld [vmem:[#allocation2 + $0xd8] sm:$0xff] }
 0x152   : > { %6324 = vmatprep.mubr.msk.f32.mxu1 %vm759_vm0, %v3228_v62  ;;  %v9515_v62 = vld [vmem:[#allocation92_spill] sm:$0xff] }
 0x153   : > { %6275 = vmatmul.mubr.msk.f32.gmra.mxu0 %vm759_vm0, %v8401_v10  ;;  %v8421_v26 = vpop.f32.mrf.mxu0 }
 0x154   : > { %6277 = vmatprep.mubr.msk.f32.mxu0 %vm759_vm0, %v8404_v35 }
 0x155   : > { %6325 = vmatmul.mubr.msk.f32.gmra.mxu1 %vm759_vm0, %v3229_v61  ;;  %v8432_v44 = vpop.f32.mrf.mxu0  ;;  %v9516_v61 = vld [vmem:[#allocation86_spill] sm:$0xff] }
 0x156   : > { %6327 = vmatprep.mubr.msk.f32.mxu1 %vm759_vm0, %v3230_v37  ;;  %v3237_v37 = vmul.f32 %v9516_v61, %v9515_v62  ;;  %v9529_v61 = vld [vmem:[#allocation18_spill] sm:$0xff] }
 0x157   : > { %6278 = vmatmul.mubr.msk.f32.gmra.mxu0 %vm759_vm0, %v8417_v30  ;;  %v8442_v32 = vpop.f32.mrf.mxu0 }
 0x158   : > { %6280 = vmatprep.mubr.msk.f32.mxu0 %vm759_vm0, %v6715_v56 }
 0x159   : > { %6328 = vmatmul.mubr.msk.f32.gmra.mxu1 %vm759_vm0, %v3231_v11  ;;  %v8452_v43 = vpop.f32.mrf.mxu0  ;;  %v9517_v11 = vld [vmem:[#allocation11_spill] sm:$0xff] }
 0x15a   : > { %6330 = vmatprep.mubr.msk.f32.mxu1 %vm759_vm0, %v3232_v51  ;;  %v9518_v51 = vld [vmem:[#allocation37_spill] sm:$0xff] }
 0x15b   : > { %6281 = vmatmul.mubr.msk.f32.gmra.mxu0 %vm759_vm0, %v6716_v4  ;;  %v3238_v56 = vmul.f32 %v8156_v19, %v9518_v51  ;;  %v8464_v0 = vpop.f32.mrf.mxu0  ;;  %v8475_v19 = vld [vmem:[#allocation2 + $0x108] sm:$0xff] }
 0x15c   : > { %6283 = vmatprep.mubr.msk.f32.mxu0 %vm759_vm0, %v6717_v58  ;;  %v9522_v58 = vld [vmem:[#allocation17_spill] sm:$0xff] }
 0x15d   : > { %6331 = vmatmul.mubr.msk.f32.gmra.mxu1 %vm759_vm0, %v3233_v38  ;;  %v9520_v38 = vld [vmem:[#allocation44_spill] sm:$0xff]  ;;  %v8478_v29 = vpop.f32.mrf.mxu0 }
 0x15e   : > { %6333 = vmatprep.mubr.msk.f32.mxu1 %vm759_vm0, %v3234_v48  ;;  %v3239_v4 = vmul.f32 %v8152_v50, %v9520_v38  ;;  %v3240_v48 = vmul.f32 %v8184_v17, %v8216_v49  ;;  %v3241_v50 = vmul.f32 %v8180_v53, %v8214_v59  ;;  %v3242_v17 = vmul.f32 %v8212_v21, %v8246_v6  ;;  %v8488_v49 = vld [vmem:[#allocation2 + $0x110] sm:$0xff]  ;;  %v9525_v59 = vld [vmem:[#allocation10_spill] sm:$0xff] }
 0x15f   : > { %6284 = vmatmul.mubr.msk.f32.gmra.mxu0 %vm759_vm0, %v6718_v5  ;;  %v9524_v5 = vld [vmem:[#allocation42_spill] sm:$0xff] }
 0x160   : > { %6286 = vmatprep.mubr.msk.f32.mxu0 %vm759_vm0, %v6719_v18  ;;  %v3243_v53 = vmul.f32 %v9524_v5, %v8238_v52  ;;  %v9528_v18 = vld [vmem:[#allocation12_spill] sm:$0xff]  ;;  %v9539_v5 = vld [vmem:[#allocation29_spill] sm:$0xff] }
 0x161   : > { %6334 = vmatmul.mubr.msk.f32.gmra.mxu1 %vm759_vm0, %v3235_v12  ;;  %v8492_v12 = vpop.f32.mrf.mxu0 }
 0x162   : > { %6336 = vmatprep.mubr.msk.f32.mxu1 %vm759_vm0, %v3236_v14 }
 0x163   : > { %6287 = vmatmul.mubr.msk.f32.gmra.mxu0 %vm759_vm0, %v9517_v11  ;;  %v8503_v21 = vpop.f32.mrf.mxu0  ;;  %v9531_v11 = vld [vmem:[#allocation21_spill] sm:$0xff] }
 0x164   : > { %6289 = vmatprep.mubr.msk.f32.mxu0 %vm759_vm0, %v9519_v34  ;;  %v9533_v34 = vld [vmem:[#allocation23_spill] sm:$0xff] }
 0x165   : > { %6337 = vmatmul.mubr.msk.f32.gmra.mxu1 %vm759_vm0, %v3237_v37 }
 0x166   : > { %6339 = vmatprep.mubr.msk.f32.mxu1 %vm759_vm0, %v3238_v56 }
 0x167   : > { %6290 = vmatmul.mubr.msk.f32.gmra.mxu0 %vm759_vm0, %v9521_v31  ;;  %v9535_v31 = vld [vmem:[#allocation25_spill] sm:$0xff] }
 0x168   : > { %6292 = vmatprep.mubr.msk.f32.mxu0 %vm759_vm0, %v9522_v58 }
 0x169   : > { %6340 = vmatmul.mubr.msk.f32.gmra.mxu1 %vm759_vm0, %v3239_v4 }
 0x16a   : > { %6342 = vmatprep.mubr.msk.f32.mxu1 %vm759_vm0, %v3240_v48 }
 0x16b   : > { %6293 = vmatmul.mubr.msk.f32.gmra.mxu0 %vm759_vm0, %v9523_v45 }
 0x16c   : > { %6295 = vmatprep.mubr.msk.f32.mxu0 %vm759_vm0, %v8475_v19 }
 0x16d   : > { %6343 = vmatmul.mubr.msk.f32.gmra.mxu1 %vm759_vm0, %v3241_v50  ;;  %v9537_v50 = vld [vmem:[#allocation27_spill] sm:$0xff] }
 0x16e   : > { %6345 = vmatprep.mubr.msk.f32.mxu1 %vm759_vm0, %v3242_v17 }
 0x16f   : > { %6296 = vmatmul.mubr.msk.f32.gmra.mxu0 %vm759_vm0, %v8488_v49 }
 0x170   : > { %6350 = vmatprep.mubr.msk.f32.mxu0 %vm759_vm0, %v9525_v59 }
 0x171   : > { %6346 = vmatmul.mubr.msk.f32.gmra.mxu1 %vm759_vm0, %v3243_v53 }
 0x172   : > { %6400 = vmatprep.mubr.msk.f32.mxu1 %vm759_vm0, %v8262_v39  ;;  %v8518_v39 = vpop.f32.mrf.mxu0 }
 0x173   : > { %6351 = vmatmul.mubr.msk.f32.vlgmr.msra.gmra.mxu0 %vm759_vm0, %v9526_v25  ;;  %v9541_v25 = vld [vmem:[#allocation31_spill] sm:$0xff] }
 0x174   : > { %6353 = vmatprep.mubr.msk.f32.mxu0 %vm759_vm0, %v9527_v13  ;;  %6449 = vmatpush3.msra.mxu0 %v8268_v22 }
 0x175   : > { %v8510_v14 = vpop.f32.mrf.mxu1  ;;  %6401 = vmatmul.mubr.msk.f32.vlgmr.msra.gmra.mxu1 %vm759_vm0, %v8278_v47 }
 0x176   : > { %6499 = vmatpush3.msk.msra.mxu1 %vm4954_vm1, %v8283_v36  ;;  %6403 = vmatprep.mubr.msk.f32.mxu1 %vm759_vm0, %v8286_v24  ;;  %v8533_v36 = vpop.f32.mrf.mxu0  ;;  %v9530_v24 = vld [vmem:[#allocation16_spill] sm:$0xff] }
 0x177   : > { %6354 = vmatmul.mubr.msk.f32.gmra.mxu0 %vm759_vm0, %v9528_v18  ;;  %v8522_v62 = vpop.f32.mrf.mxu1 }
 0x178   : > { %6356 = vmatprep.mubr.msk.f32.mxu0 %vm759_vm0, %v9529_v61  ;;  %v4036_v61 = vld [vmem:[#allocation2 + $0xb8] sm:$0xff] }
 0x179   : > { %v6105_v22 = vpop.f32.mrf.mxu1  ;;  %6404 = vmatmul.mubr.msk.f32.gmra.mxu1 %vm759_vm0, %v8301_v54 }
 0x17a   : > { %v8529_v47 = vadd.f32 %v6105_v22, %v8352_v16  ;;  %6406 = vmatprep.mubr.msk.f32.mxu1 %vm759_vm0, %v8304_v46  ;;  %v8548_v46 = vpop.f32.mrf.mxu0  ;;  %v9532_v16 = vld [vmem:[#allocation20_spill] sm:$0xff]  ;;  %v9543_v22 = vld [vmem:[#allocation33_spill] sm:$0xff] }
 0x17b   : > { %6357 = vmatmul.mubr.msk.f32.gmra.mxu0 %vm759_vm0, %v9530_v24  ;;  %v8537_v37 = vpop.f32.mrf.mxu1 }
 0x17c   : > { %6359 = vmatprep.mubr.msk.f32.mxu0 %vm759_vm0, %v9531_v11  ;;  %v9544_v11 = vld [vmem:[#allocation32_spill] sm:$0xff] }
 0x17d   : > { %v6108_v51 = vpop.f32.mrf.mxu1  ;;  %6407 = vmatmul.mubr.msk.f32.gmra.mxu1 %vm759_vm0, %v8315_v15 }
 0x17e   : > { %v8544_v54 = vadd.f32 %v6108_v51, %v8370_v63  ;;  %6409 = vmatprep.mubr.msk.f32.mxu1 %vm759_vm0, %v8318_v27  ;;  %v6082_v27 = vpop.f32.mrf.mxu0  ;;  %v9534_v63 = vld [vmem:[#allocation22_spill] sm:$0xff] }
 0x17f   : > { %6360 = vmatmul.mubr.msk.f32.gmra.mxu0 %vm759_vm0, %v9532_v16  ;;  %v8552_v56 = vpop.f32.mrf.mxu1  ;;  %v4038_v16 = vld [vmem:[#allocation2 + $0xc8] sm:$0xff] }
 0x180   : > { %6362 = vmatprep.mubr.msk.f32.mxu0 %vm759_vm0, %v9533_v34  ;;  %v9545_v34 = vld [vmem:[#allocation36_spill] sm:$0xff] }
 0x181   : > { %v6111_v38 = vpop.f32.mrf.mxu1  ;;  %6410 = vmatmul.mubr.msk.f32.gmra.mxu1 %vm759_vm0, %v8331_v40 }
 0x182   : > { %v8559_v15 = vadd.f32 %v6111_v38, %v8388_v41  ;;  %6412 = vmatprep.mubr.msk.f32.mxu1 %vm759_vm0, %v8334_v1  ;;  %v8576_v1 = vpop.f32.mrf.mxu0  ;;  %v9536_v41 = vld [vmem:[#allocation24_spill] sm:$0xff] }
 0x183   : > { %6363 = vmatmul.mubr.msk.f32.gmra.mxu0 %vm759_vm0, %v9534_v63  ;;  %v8565_v4 = vpop.f32.mrf.mxu1 }
 0x184   : > { %6365 = vmatprep.mubr.msk.f32.mxu0 %vm759_vm0, %v9535_v31  ;;  %v9546_v31 = vld [vmem:[#allocation35_spill] sm:$0xff] }
 0x185   : > { %v6114_v48 = vpop.f32.mrf.mxu1  ;;  %6413 = vmatmul.mubr.msk.f32.gmra.mxu1 %vm759_vm0, %v8347_v8 }
 0x186   : > { %v8572_v40 = vadd.f32 %v6114_v48, %v8407_v3  ;;  %6415 = vmatprep.mubr.msk.f32.mxu1 %vm759_vm0, %v8350_v20  ;;  %v6085_v20 = vpop.f32.mrf.mxu0  ;;  %v9538_v3 = vld [vmem:[#allocation26_spill] sm:$0xff] }
 0x187   : > { %6366 = vmatmul.mubr.msk.f32.gmra.mxu0 %vm759_vm0, %v9536_v41  ;;  %v8580_v58 = vpop.f32.mrf.mxu1  ;;  %v4040_v41 = vld [vmem:[#allocation2 + $0xd8] sm:$0xff] }
 0x188   : > { %6368 = vmatprep.mubr.msk.f32.mxu0 %vm759_vm0, %v9537_v50  ;;  %v9547_v50 = vld [vmem:[#allocation40_spill] sm:$0xff] }
 0x189   : > { %v6117_v45 = vpop.f32.mrf.mxu1  ;;  %6416 = vmatmul.mubr.msk.f32.gmra.mxu1 %vm759_vm0, %v8365_v57 }
 0x18a   : > { %v8587_v8 = vadd.f32 %v6117_v45, %v8432_v44  ;;  %6418 = vmatprep.mubr.msk.f32.mxu1 %vm759_vm0, %v8368_v9  ;;  %v8604_v9 = vpop.f32.mrf.mxu0  ;;  %v9540_v44 = vld [vmem:[#allocation28_spill] sm:$0xff] }
 0x18b   : > { %6369 = vmatmul.mubr.msk.f32.gmra.mxu0 %vm759_vm0, %v9538_v3  ;;  %v8593_v17 = vpop.f32.mrf.mxu1 }
 0x18c   : > { %6371 = vmatprep.mubr.msk.f32.mxu0 %vm759_vm0, %v9539_v5 }
 0x18d   : > { %v6120_v53 = vpop.f32.mrf.mxu1  ;;  %6419 = vmatmul.mubr.msk.f32.gmra.mxu1 %vm759_vm0, %v8383_v55 }
 0x18e   : > { %v8600_v57 = vadd.f32 %v6120_v53, %v8452_v43  ;;  %6421 = vmatprep.mubr.msk.f32.mxu1 %vm759_vm0, %v8386_v28  ;;  %v6088_v28 = vpop.f32.mrf.mxu0  ;;  %v9542_v43 = vld [vmem:[#allocation30_spill] sm:$0xff]  ;;  %v9548_v53 = vld [vmem:[#allocation39_spill] sm:$0xff] }
 0x18f   : > { %6372 = vmatmul.mubr.msk.f32.gmra.mxu0 %vm759_vm0, %v9540_v44  ;;  %v8608_v59 = vpop.f32.mrf.mxu1 }
 0x190   : > { %6374 = vmatprep.mubr.msk.f32.mxu0 %vm759_vm0, %v9541_v25  ;;  %v4042_v25 = vld [vmem:[#allocation2 + $0xe8] sm:$0xff] }
 0x191   : > { %v6123_v13 = vpop.f32.mrf.mxu1  ;;  %6422 = vmatmul.mubr.msk.f32.gmra.mxu1 %vm759_vm0, %v8401_v10 }
 0x192   : > { %v8615_v55 = vadd.f32 %v6123_v13, %v8478_v29  ;;  %6424 = vmatprep.mubr.msk.f32.mxu1 %vm759_vm0, %v8404_v35  ;;  %v4037_v35 = vld [vmem:[#allocation2 + $0xc0] sm:$0xff]  ;;  %v8631_v29 = vpop.f32.mrf.mxu0  ;;  %v9549_v13 = vld [vmem:[#allocation46_spill] sm:$0xff] }
 0x193   : > { %6375 = vmatmul.mubr.msk.f32.gmra.mxu0 %vm759_vm0, %v9542_v43  ;;  %v8621_v18 = vpop.f32.mrf.mxu1 }
 0x194   : > { %6377 = vmatprep.mubr.msk.f32.mxu0 %vm759_vm0, %v9543_v22  ;;  %v6091_v63 = vpop.f32.mrf.mxu0 }
 0x195   : > { %v6126_v24 = vpop.f32.mrf.mxu1  ;;  %6425 = vmatmul.mubr.msk.f32.gmra.mxu1 %vm759_vm0, %v8417_v30 }
 0x196   : > { %v8628_v10 = vadd.f32 %v6126_v24, %v8503_v21  ;;  %6427 = vmatprep.mubr.msk.f32.mxu1 %vm759_vm0, %v4036_v61  ;;  %v4039_v21 = vld [vmem:[#allocation2 + $0xd0] sm:$0xff]  ;;  %v8654_v5 = vpop.f32.mrf.mxu0 }
 0x197   : > { %6378 = vmatmul.mubr.msk.f32.gmra.mxu0 %vm759_vm0, %v9544_v11  ;;  %v8635_v51 = vpop.f32.mrf.mxu1  ;;  %v9550_v24 = vld [vmem:[#allocation45_spill] sm:$0xff]  ;;  %v4044_v11 = vld [vmem:[#allocation2 + $0xf8] sm:$0xff] }
 0x198   : > { %6380 = vmatprep.mubr.msk.f32.mxu0 %vm759_vm0, %v9545_v34  ;;  %v6094_v22 = vpop.f32.mrf.mxu0 }
 0x199   : > { %v6129_v38 = vpop.f32.mrf.mxu1  ;;  %6428 = vmatmul.mubr.msk.f32.gmra.mxu1 %vm759_vm0, %v4037_v35 }
 0x19a   : > { %v8641_v30 = vadd.f32 %v6129_v38, %v8533_v36  ;;  %6430 = vmatprep.mubr.msk.f32.mxu1 %vm759_vm0, %v4038_v16  ;;  %v4041_v36 = vld [vmem:[#allocation2 + $0xe0] sm:$0xff] }
 0x19b   : > { %6381 = vmatmul.mubr.msk.f32.gmra.mxu0 %vm759_vm0, %v9546_v31  ;;  %v8646_v48 = vpop.f32.mrf.mxu1  ;;  %v9551_v16 = vld [vmem:[#allocation51_spill] sm:$0xff]  ;;  %v3629_v31 = vld [vmem:[#allocation2 + $0x117] sm:$0xff] }
 0x19c   : > { %6383 = vmatprep.mubr.msk.f32.mxu0 %vm759_vm0, %v9547_v50 }
 0x19d   : > { %v6132_v45 = vpop.f32.mrf.mxu1  ;;  %6431 = vmatmul.mubr.msk.f32.gmra.mxu1 %vm759_vm0, %v4039_v21  ;;  %v8676_v21 = vpop.f32.mrf.mxu0 }
 0x19e   : > { %v8651_v3 = vadd.f32 %v6132_v45, %v6082_v27  ;;  %6433 = vmatprep.mubr.msk.f32.mxu1 %vm759_vm0, %v4040_v41  ;;  %v4043_v27 = vld [vmem:[#allocation2 + $0xf0] sm:$0xff]  ;;  %v9552_v41 = vld [vmem:[#allocation50_spill] sm:$0xff] }
 0x19f   : > { %6384 = vmatmul.mubr.msk.f32.gmra.mxu0 %vm759_vm0, %v9548_v53  ;;  %v8658_v44 = vpop.f32.mrf.mxu1  ;;  %v9553_v45 = vld [vmem:[#allocation57_spill] sm:$0xff]  ;;  %v9554_v53 = vld [vmem:[#allocation58_spill] sm:$0xff] }
 0x1a0   : > { %6386 = vmatprep.mubr.msk.f32.mxu0 %vm759_vm0, %v9549_v13 }
 0x1a1   : > { %v6135_v43 = vpop.f32.mrf.mxu1  ;;  %6434 = vmatmul.mubr.msk.f32.gmra.mxu1 %vm759_vm0, %v4041_v36 }
 0x1a2   : > { %v8663_v61 = vadd.f32 %v6135_v43, %v6085_v20  ;;  %6436 = vmatprep.mubr.msk.f32.mxu1 %vm759_vm0, %v4042_v25  ;;  %v4045_v20 = vld [vmem:[#allocation2 + $0x100] sm:$0xff]  ;;  %v3661_v25 = vmul.f32 %v3629_v31, %v9554_v53  ;;  %v6097_v43 = vpop.f32.mrf.mxu0  ;;  %v1637_v53 = vadd.f32 %v8522_v62, %v8336_v23  ;;  %v4827_v62 = vld [vmem:[%s8699_s14 + $0x18] sm:$0xff] }
 0x1a3   : > { %6387 = vmatmul.mubr.msk.f32.gmra.mxu0 %vm759_vm0, %v9550_v24  ;;  %v8668_v35 = vpop.f32.mrf.mxu1 }
 0x1a4   : > { %6389 = vmatprep.mubr.msk.f32.mxu0 %vm759_vm0, %v9551_v16 }
 0x1a5   : > { %v6138_v34 = vpop.f32.mrf.mxu1  ;;  %6437 = vmatmul.mubr.msk.f32.gmra.mxu1 %vm759_vm0, %v4043_v27  ;;  %v9555_v27 = vld [vmem:[#allocation56_spill] sm:$0xff] }
 0x1a6   : > { %v8673_v38 = vadd.f32 %v6138_v34, %v6088_v28  ;;  %6439 = vmatprep.mubr.msk.f32.mxu1 %vm759_vm0, %v4044_v11  ;;  %v3630_v28 = vld [vmem:[#allocation2 + $0x11f] sm:$0xff]  ;;  %v1465_v34 = vpop.f32.mrf.mxu0 }
 0x1a7   : > { %6390 = vmatmul.mubr.msk.f32.gmra.mxu0 %vm759_vm0, %v9552_v41  ;;  %v8680_v50 = vpop.f32.mrf.mxu1  ;;  %v4048_v11 = vld [vmem:[#allocation2 + $0x118] sm:$0xff]  ;;  %v4824_v41 = vld [vmem:[%s8699_s14] sm:$0xff] }
 0x1a8   : > { %6392 = vmatprep.mubr.msk.f32.mxu0 %vm759_vm0, %v9553_v45  ;;  %v9556_v45 = vld [vmem:[#allocation62_spill] sm:$0xff] }
 0x1a9   : > { %v6141_v36 = vpop.f32.mrf.mxu1  ;;  %6440 = vmatmul.mubr.msk.f32.gmra.mxu1 %vm759_vm0, %v4045_v20  ;;  %v4049_v20 = vld [vmem:[#allocation2 + $0x120] sm:$0xff] }
 0x1aa   : > { %v8686_v13 = vadd.f32 %v6141_v36, %v6091_v63  ;;  %6442 = vmatprep.mubr.msk.f32.mxu1 %vm759_vm0, %v8475_v19  ;;  %v3662_v63 = vmul.f32 %v3630_v28, %v7791_v42  ;;  %v1642_v42 = vadd.f32 %v8510_v14, %v8320_v60  ;;  %v4825_v28 = vld [vmem:[%s8699_s14 + $0x8] sm:$0xff]  ;;  %v4826_v60 = vld [vmem:[%s8699_s14 + $0x10] sm:$0xff] }
 0x1ab   : > { %6393 = vmatmul.mubr.msk.f32.gmra.mxu0 %vm759_vm0, %v9555_v27  ;;  %v8692_v24 = vpop.f32.mrf.mxu1  ;;  %v9557_v27 = vld [vmem:[#allocation61_spill] sm:$0xff] }
 0x1ac   : > { %6395 = vmatprep.mubr.msk.f32.mxu0 %vm759_vm0, %v3661_v25 }
 0x1ad   : > { %v6144_v16 = vpop.f32.mrf.mxu1  ;;  %6443 = vmatmul.mubr.msk.f32.gmra.mxu1 %vm759_vm0, %v8488_v49 }
 0x1ae   : > { %v8704_v19 = vadd.f32 %v6144_v16, %v6094_v22  ;;  %6445 = vmatprep.mubr.msk.f32.mxu1 %vm759_vm0, %v4048_v11 }
 0x1af   : > { %6396 = vmatmul.mubr.msk.f32.gmra.mxu0 %vm759_vm0, %v3662_v63  ;;  %v8708_v31 = vpop.f32.mrf.mxu1  ;;  %v9558_v63 = vld [vmem:[#allocation64_spill] sm:$0xff] }
 0x1b0   : > { %6450 = vmatprep.mubr.msk.f32.mxu0 %vm759_vm0, %v9556_v45  ;;  %v1647_v45 = vadd.f32 %v8537_v37, %v8359_v7  ;;  %v1657_v37 = vadd.f32 %v8552_v56, %v8377_v33  ;;  %v1667_v56 = vadd.f32 %v8565_v4, %v8395_v2  ;;  %v1677_v4 = vadd.f32 %v8580_v58, %v8421_v26 }
 0x1b1   : > { %v6147_v49 = vpop.f32.mrf.mxu1  ;;  %6446 = vmatmul.mubr.msk.f32.gmra.mxu1 %vm759_vm0, %v4049_v20  ;;  %v1687_v58 = vadd.f32 %v8593_v17, %v8442_v32  ;;  %v1697_v17 = vadd.f32 %v8608_v59, %v8464_v0  ;;  %v1707_v59 = vadd.f32 %v8621_v18, %v8492_v12  ;;  %v1717_v18 = vadd.f32 %v8635_v51, %v8518_v39 }
 0x1b2   : > { %v8716_v22 = vadd.f32 %v6147_v49, %v6097_v43  ;;  %v6152_v36 = vpop.f32.mrf.mxu0  ;;  %6500 = vmatprep.mubr.msk.f32.mxu1 %vm4857_vm2, %v4824_v41  ;;  %v1727_v51 = vadd.f32 %v8646_v48, %v8548_v46  ;;  %v1737_v48 = vadd.f32 %v8658_v44, %v8576_v1  ;;  %v1747_v44 = vadd.f32 %v8668_v35, %v8604_v9 }
 0x1b3   : > { %v2343_v25 = vadd.f32 %v6152_v36, %v1642_v42  ;;  %6451 = vmatmul.mubr.msk.f32.vlgmr.msra.gmra.mxu0 %vm759_vm0, %v9557_v27  ;;  %v1786_v11 = vpop.f32.mrf.mxu1  ;;  %v9559_v42 = vld [vmem:[#allocation63_spill] sm:$0xff]  ;;  %v1757_v35 = vadd.f32 %v8680_v50, %v8631_v29 }
 0x1b4   : > { %v8725_v14 = vadd.f32 %v1786_v11, %v1465_v34  ;;  %6453 = vmatprep.mubr.msk.f32.mxu0 %vm759_vm0, %v9558_v63  ;;  %v2183_v43 = vpop.f32.mrf.mxu0  ;;  %v4828_v36 = vld [vmem:[%s8699_s14 + $0x20] sm:$0xff] }
 0x1b5   : > { %v2342_v16 = vadd.f32 %v2183_v43, %v1637_v53  ;;  %v6202_v20 = vpop.f32.mrf.mxu1  ;;  %6501 = vmatmul.mubr.msk.f32.vlgmr.msra.gmra.mxu1 %vm4857_vm2, %v4825_v28  ;;  %v9560_v28 = vld [vmem:[#allocation66_spill] sm:$0xff]  ;;  %v9561_v43 = vld [vmem:[#allocation65_spill] sm:$0xff] }
 0x1b6   : > { %v8730_v41 = vadd.f32 %v6202_v20, %v2343_v25  ;;  %v6155_v23 = vpop.f32.mrf.mxu0  ;;  %6503 = vmatprep.mubr.msk.f32.mxu1 %vm4857_vm2, %v4826_v60  ;;  %v4830_v20 = vld [vmem:[%s8699_s14 + $0x30] sm:$0xff]  ;;  %v4435_v50 = vld [vmem:[#allocation2 + $0x119] sm:$0xff] }
 0x1b7   : > { %v2345_v34 = vadd.f32 %v6155_v23, %v8529_v47  ;;  %6454 = vmatmul.mubr.msk.f32.gmra.mxu0 %vm759_vm0, %v9559_v42  ;;  %v2602_v49 = vpop.f32.mrf.mxu1  ;;  %v4829_v47 = vld [vmem:[%s8699_s14 + $0x28] sm:$0xff] }
 0x1b8   : > { %v8740_v53 = vadd.f32 %v2602_v49, %v2342_v16  ;;  %6456 = vmatprep.mubr.msk.f32.mxu0 %vm759_vm0, %v9560_v28  ;;  %v2193_v25 = vpop.f32.mrf.mxu0  ;;  %v9563_v28 = vld [vmem:[#allocation67_spill] sm:$0xff] }
 0x1b9   : > { %v2344_v27 = vadd.f32 %v2193_v25, %v1647_v45  ;;  %v6205_v11 = vpop.f32.mrf.mxu1  ;;  %6504 = vmatmul.mubr.msk.f32.gmra.mxu1 %vm4857_vm2, %v4827_v62  ;;  %v9562_v62 = vld [vmem:[#allocation68_spill] sm:$0xff] }
 0x1ba   : > { %v8745_v60 = vadd.f32 %v6205_v11, %v2345_v34  ;;  %v6158_v7 = vpop.f32.mrf.mxu0  ;;  %6506 = vmatprep.mubr.msk.f32.mxu1 %vm4857_vm2, %v4828_v36 }
 0x1bb   : > { %v2347_v63 = vadd.f32 %v6158_v7, %v8544_v54  ;;  %6457 = vmatmul.mubr.msk.f32.gmra.mxu0 %vm759_vm0, %v9561_v43  ;;  %v2612_v16 = vpop.f32.mrf.mxu1  ;;  %v4831_v54 = vld [vmem:[%s8699_s14 + $0x38] sm:$0xff] }
 0x1bc   : > { %v8755_v23 = vadd.f32 %v2612_v16, %v2344_v27  ;;  %6459 = vmatprep.mubr.msk.f32.mxu0 %vm759_vm0, %v9562_v62  ;;  %v2203_v45 = vpop.f32.mrf.mxu0  ;;  %v4832_v27 = vld [vmem:[%s8699_s14 + $0x40] sm:$0xff]  ;;  %v9564_v7 = vld [vmem:[#allocation70_spill] sm:$0xff] }
 0x1bd   : > { %v2346_v34 = vadd.f32 %v2203_v45, %v1657_v37  ;;  %v6208_v42 = vpop.f32.mrf.mxu1  ;;  %6507 = vmatmul.mubr.msk.f32.gmra.mxu1 %vm4857_vm2, %v4829_v47  ;;  %v4834_v45 = vld [vmem:[%s8699_s14 + $0x50] sm:$0xff] }
 0x1be   : > { %v8760_v49 = vadd.f32 %v6208_v42, %v2347_v63  ;;  %v6161_v33 = vpop.f32.mrf.mxu0  ;;  %6509 = vmatprep.mubr.msk.f32.mxu1 %vm4857_vm2, %v4830_v20  ;;  %v9565_v20 = vld [vmem:[#allocation69_spill] sm:$0xff]  ;;  %v9566_v42 = vld [vmem:[#allocation72_spill] sm:$0xff] }
 0x1bf   : > { %v2349_v36 = vadd.f32 %v6161_v33, %v8559_v15  ;;  %6460 = vmatmul.mubr.msk.f32.gmra.mxu0 %vm759_vm0, %v9563_v28  ;;  %v2622_v25 = vpop.f32.mrf.mxu1  ;;  %v4833_v15 = vld [vmem:[%s8699_s14 + $0x48] sm:$0xff] }
 0x1c0   : > { %v8770_v11 = vadd.f32 %v2622_v25, %v2346_v34  ;;  %6462 = vmatprep.mubr.msk.f32.mxu0 %vm759_vm0, %v9564_v7  ;;  %v2213_v47 = vpop.f32.mrf.mxu0  ;;  %v9567_v25 = vld [vmem:[#allocation71_spill] sm:$0xff] }
 0x1c1   : > { %v2348_v37 = vadd.f32 %v2213_v47, %v1667_v56  ;;  %v6211_v63 = vpop.f32.mrf.mxu1  ;;  %6510 = vmatmul.mubr.msk.f32.gmra.mxu1 %vm4857_vm2, %v4831_v54  ;;  %v4836_v7 = vld [vmem:[%s8699_s14 + $0x60] sm:$0xff] }
 0x1c2   : > { %v8775_v43 = vadd.f32 %v6211_v63, %v2349_v36  ;;  %v6164_v2 = vpop.f32.mrf.mxu0  ;;  %6512 = vmatprep.mubr.msk.f32.mxu1 %vm4857_vm2, %v4832_v27 }
 0x1c3   : > { %v2351_v16 = vadd.f32 %v6164_v2, %v8572_v40  ;;  %6463 = vmatmul.mubr.msk.f32.gmra.mxu0 %vm759_vm0, %v9565_v20  ;;  %v2632_v62 = vpop.f32.mrf.mxu1  ;;  %v4835_v40 = vld [vmem:[%s8699_s14 + $0x58] sm:$0xff]  ;;  %v9569_v20 = vld [vmem:[#allocation73_spill] sm:$0xff] }
 0x1c4   : > { %v8785_v34 = vadd.f32 %v2632_v62, %v2348_v37  ;;  %6465 = vmatprep.mubr.msk.f32.mxu0 %vm759_vm0, %v9566_v42  ;;  %v2223_v33 = vpop.f32.mrf.mxu0  ;;  %v9568_v37 = vld [vmem:[#allocation74_spill] sm:$0xff] }
 0x1c5   : > { %v2350_v54 = vadd.f32 %v2223_v33, %v1677_v4  ;;  %v6214_v56 = vpop.f32.mrf.mxu1  ;;  %6513 = vmatmul.mubr.msk.f32.gmra.mxu1 %vm4857_vm2, %v4833_v15  ;;  %v9570_v33 = vld [vmem:[#allocation76_spill] sm:$0xff] }
 0x1c6   : > { %v8790_v36 = vadd.f32 %v6214_v56, %v2351_v16  ;;  %v6167_v26 = vpop.f32.mrf.mxu0  ;;  %6515 = vmatprep.mubr.msk.f32.mxu1 %vm4857_vm2, %v4834_v45  ;;  %v4838_v45 = vld [vmem:[%s8699_s14 + $0x70] sm:$0xff] }
 0x1c7   : > { %v2353_v28 = vadd.f32 %v6167_v26, %v8587_v8  ;;  %6466 = vmatmul.mubr.msk.f32.gmra.mxu0 %vm759_vm0, %v9567_v25  ;;  %v2642_v27 = vpop.f32.mrf.mxu1  ;;  %v4837_v8 = vld [vmem:[%s8699_s14 + $0x68] sm:$0xff] }
 0x1c8   : > { %v8800_v47 = vadd.f32 %v2642_v27, %v2350_v54  ;;  %6468 = vmatprep.mubr.msk.f32.mxu0 %vm759_vm0, %v9568_v37  ;;  %v2233_v63 = vpop.f32.mrf.mxu0  ;;  %v4840_v27 = vld [vmem:[%s8699_s14 + $0x80] sm:$0xff]  ;;  %v9572_v37 = vld [vmem:[#allocation78_spill] sm:$0xff] }
 0x1c9   : > { %v2352_v2 = vadd.f32 %v2233_v63, %v1687_v58  ;;  %v6217_v15 = vpop.f32.mrf.mxu1  ;;  %6516 = vmatmul.mubr.msk.f32.gmra.mxu1 %vm4857_vm2, %v4835_v40 }
 0x1ca   : > { %v8805_v4 = vadd.f32 %v6217_v15, %v2353_v28  ;;  %v6170_v32 = vpop.f32.mrf.mxu0  ;;  %6518 = vmatprep.mubr.msk.f32.mxu1 %vm4857_vm2, %v4836_v7  ;;  %v9571_v28 = vld [vmem:[#allocation75_spill] sm:$0xff] }
 0x1cb   : > { %v2355_v16 = vadd.f32 %v6170_v32, %v8600_v57  ;;  %6469 = vmatmul.mubr.msk.f32.gmra.mxu0 %vm759_vm0, %v9569_v20  ;;  %v2652_v62 = vpop.f32.mrf.mxu1  ;;  %v4839_v57 = vld [vmem:[%s8699_s14 + $0x78] sm:$0xff]  ;;  %v4842_v20 = vld [vmem:[%s8699_s14 + $0x90] sm:$0xff] }
 0x1cc   : > { %v8815_v42 = vadd.f32 %v2652_v62, %v2352_v2  ;;  %6471 = vmatprep.mubr.msk.f32.mxu0 %vm759_vm0, %v9570_v33  ;;  %v2243_v54 = vpop.f32.mrf.mxu0 }
 0x1cd   : > { %v2354_v56 = vadd.f32 %v2243_v54, %v1697_v17  ;;  %v6220_v26 = vpop.f32.mrf.mxu1  ;;  %6519 = vmatmul.mubr.msk.f32.gmra.mxu1 %vm4857_vm2, %v4837_v8  ;;  %v9573_v17 = vld [vmem:[#allocation77_spill] sm:$0xff] }
 0x1ce   : > { %v8820_v40 = vadd.f32 %v6220_v26, %v2355_v16  ;;  %v6173_v0 = vpop.f32.mrf.mxu0  ;;  %6521 = vmatprep.mubr.msk.f32.mxu1 %vm4857_vm2, %v4838_v45  ;;  %v9574_v45 = vld [vmem:[#allocation81_spill] sm:$0xff] }
 0x1cf   : > { %v2357_v58 = vadd.f32 %v6173_v0, %v8615_v55  ;;  %6472 = vmatmul.mubr.msk.f32.gmra.mxu0 %vm759_vm0, %v9571_v28  ;;  %v2662_v25 = vpop.f32.mrf.mxu1  ;;  %v4841_v55 = vld [vmem:[%s8699_s14 + $0x88] sm:$0xff] }
 0x1d0   : > { %v8830_v7 = vadd.f32 %v2662_v25, %v2354_v56  ;;  %6474 = vmatprep.mubr.msk.f32.mxu0 %vm759_vm0, %v9572_v37  ;;  %v2253_v63 = vpop.f32.mrf.mxu0  ;;  %v9576_v25 = vld [vmem:[#allocation85_spill] sm:$0xff] }
 0x1d1   : > { %v2356_v2 = vadd.f32 %v2253_v63, %v1707_v59  ;;  %v6223_v15 = vpop.f32.mrf.mxu1  ;;  %6522 = vmatmul.mubr.msk.f32.gmra.mxu1 %vm4857_vm2, %v4839_v57  ;;  %v9575_v57 = vld [vmem:[#allocation80_spill] sm:$0xff] }
 0x1d2   : > { %v8835_v32 = vadd.f32 %v6223_v15, %v2357_v58  ;;  %v6176_v12 = vpop.f32.mrf.mxu0  ;;  %6524 = vmatprep.mubr.msk.f32.mxu1 %vm4857_vm2, %v4840_v27  ;;  %v4844_v58 = vld [vmem:[%s8699_s14 + $0xa0] sm:$0xff] }
 0x1d3   : > { %v2359_v8 = vadd.f32 %v6176_v12, %v8628_v10  ;;  %6475 = vmatmul.mubr.msk.f32.gmra.mxu0 %vm759_vm0, %v9573_v17  ;;  %v2672_v16 = vpop.f32.mrf.mxu1  ;;  %v4843_v10 = vld [vmem:[%s8699_s14 + $0x98] sm:$0xff]  ;;  %v9577_v12 = vld [vmem:[#allocation84_spill] sm:$0xff]  ;;  %v9578_v17 = vld [vmem:[#allocation91_spill] sm:$0xff] }
 0x1d4   : > { %v8845_v62 = vadd.f32 %v2672_v16, %v2356_v2  ;;  %6477 = vmatprep.mubr.msk.f32.mxu0 %vm759_vm0, %v9574_v45  ;;  %v2263_v33 = vpop.f32.mrf.mxu0 }
 0x1d5   : > { %v2358_v54 = vadd.f32 %v2263_v33, %v1717_v18  ;;  %v6226_v56 = vpop.f32.mrf.mxu1  ;;  %6525 = vmatmul.mubr.msk.f32.gmra.mxu1 %vm4857_vm2, %v4841_v55  ;;  %v4846_v18 = vld [vmem:[%s8699_s14 + $0xb0] sm:$0xff] }
 0x1d6   : > { %v8850_v26 = vadd.f32 %v6226_v56, %v2359_v8  ;;  %v6179_v39 = vpop.f32.mrf.mxu0  ;;  %6527 = vmatprep.mubr.msk.f32.mxu1 %vm4857_vm2, %v4842_v20  ;;  %v9579_v56 = vld [vmem:[#allocation90_spill] sm:$0xff] }
 0x1d7   : > { %v2361_v0 = vadd.f32 %v6179_v39, %v8641_v30  ;;  %6478 = vmatmul.mubr.msk.f32.gmra.mxu0 %vm759_vm0, %v9575_v57  ;;  %v2682_v59 = vpop.f32.mrf.mxu1  ;;  %v4845_v30 = vld [vmem:[%s8699_s14 + $0xa8] sm:$0xff] }
 0x1d8   : > { %v8860_v28 = vadd.f32 %v2682_v59, %v2358_v54  ;;  %6480 = vmatprep.mubr.msk.f32.mxu0 %vm759_vm0, %v9576_v25  ;;  %v2273_v27 = vpop.f32.mrf.mxu0 }
 0x1d9   : > { %v2360_v37 = vadd.f32 %v2273_v27, %v1727_v51  ;;  %v6229_v63 = vpop.f32.mrf.mxu1  ;;  %6528 = vmatmul.mubr.msk.f32.gmra.mxu1 %vm4857_vm2, %v4843_v10  ;;  %v4848_v10 = vld [vmem:[%s8699_s14 + $0xc0] sm:$0xff] }
 0x1da   : > { %v8865_v2 = vadd.f32 %v6229_v63, %v2361_v0  ;;  %v6182_v46 = vpop.f32.mrf.mxu0  ;;  %6530 = vmatprep.mubr.msk.f32.mxu1 %vm4857_vm2, %v4844_v58  ;;  %v9580_v0 = vld [vmem:[#allocation34_spill] sm:$0xff] }
 0x1db   : > { %v2363_v15 = vadd.f32 %v6182_v46, %v8651_v3  ;;  %6481 = vmatmul.mubr.msk.f32.gmra.mxu0 %vm759_vm0, %v9577_v12  ;;  %v2692_v55 = vpop.f32.mrf.mxu1  ;;  %v4847_v3 = vld [vmem:[%s8699_s14 + $0xb8] sm:$0xff]  ;;  %v4850_v46 = vld [vmem:[%s8699_s14 + $0xd0] sm:$0xff] }
 0x1dc   : > { %v8875_v8 = vadd.f32 %v2692_v55, %v2360_v37  ;;  %6483 = vmatprep.mubr.msk.f32.mxu0 %vm759_vm0, %v9578_v17  ;;  %v2283_v16 = vpop.f32.mrf.mxu0  ;;  %v9581_v37 = vld [vmem:[#allocation38_spill] sm:$0xff]  ;;  %v1767_v17 = vadd.f32 %v8692_v24, %v8654_v5  ;;  %v4436_v5 = vld [vmem:[#allocation2 + $0x121] sm:$0xff]  ;;  %v4467_v24 = vmul.f32 %v4435_v50, %v8246_v6 }
 0x1dd   : > { %v2362_v20 = vadd.f32 %v2283_v16, %v1737_v48  ;;  %v6232_v45 = vpop.f32.mrf.mxu1  ;;  %6531 = vmatmul.mubr.msk.f32.gmra.mxu1 %vm4857_vm2, %v4845_v30  ;;  %v9582_v48 = vld [vmem:[#allocation49_spill] sm:$0xff] }
 0x1de   : > { %v8880_v33 = vadd.f32 %v6232_v45, %v2363_v15  ;;  %v6185_v1 = vpop.f32.mrf.mxu0  ;;  %6533 = vmatprep.mubr.msk.f32.mxu1 %vm4857_vm2, %v4846_v18 }
 0x1df   : > { %v2365_v54 = vadd.f32 %v6185_v1, %v8663_v61  ;;  %6484 = vmatmul.mubr.msk.f32.gmra.mxu0 %vm759_vm0, %v9579_v56  ;;  %v2702_v39 = vpop.f32.mrf.mxu1  ;;  %v4849_v61 = vld [vmem:[%s8699_s14 + $0xc8] sm:$0xff]  ;;  %v4852_v1 = vld [vmem:[%s8699_s14 + $0xe0] sm:$0xff] }
 0x1e0   : > { %v8890_v51 = vadd.f32 %v2702_v39, %v2362_v20  ;;  %6486 = vmatprep.mubr.msk.f32.mxu0 %vm759_vm0, %v9580_v0  ;;  %v2293_v57 = vpop.f32.mrf.mxu0  ;;  %v9583_v20 = vld [vmem:[#allocation43_spill] sm:$0xff]  ;;  %v4853_v0 = vld [vmem:[%s8699_s14 + $0xe8] sm:$0xff] }
 0x1e1   : > { %v2364_v59 = vadd.f32 %v2293_v57, %v1747_v44  ;;  %v6235_v58 = vpop.f32.mrf.mxu1  ;;  %6534 = vmatmul.mubr.msk.f32.gmra.mxu1 %vm4857_vm2, %v4847_v3  ;;  %v9584_v44 = vld [vmem:[#allocation41_spill] sm:$0xff]  ;;  %v1777_v57 = vadd.f32 %v8708_v31, %v8676_v21  ;;  %v4855_v21 = vld [vmem:[%s8699_s14 + $0xf8] sm:$0xff] }
 0x1e2   : > { %v8895_v25 = vadd.f32 %v6235_v58, %v2365_v54  ;;  %v6188_v9 = vpop.f32.mrf.mxu0  ;;  %6536 = vmatprep.mubr.msk.f32.mxu1 %vm4857_vm2, %v4848_v10  ;;  %v9585_v58 = vld [vmem:[#allocation48_spill] sm:$0xff] }
 0x1e3   : > { %v2367_v27 = vadd.f32 %v6188_v9, %v8673_v38  ;;  %6487 = vmatmul.mubr.msk.f32.gmra.mxu0 %vm759_vm0, %v9581_v37  ;;  %v2712_v63 = vpop.f32.mrf.mxu1  ;;  %v4851_v38 = vld [vmem:[%s8699_s14 + $0xd8] sm:$0xff] }
 0x1e4   : > { %v8905_v30 = vadd.f32 %v2712_v63, %v2364_v59  ;;  %6489 = vmatprep.mubr.msk.f32.mxu0 %vm759_vm0, %v9582_v48  ;;  %v2303_v15 = vpop.f32.mrf.mxu0 }
 0x1e5   : > { %v2366_v12 = vadd.f32 %v2303_v15, %v1757_v35  ;;  %v6238_v55 = vpop.f32.mrf.mxu1  ;;  %6537 = vmatmul.mubr.msk.f32.gmra.mxu1 %vm4857_vm2, %v4849_v61  ;;  %v4854_v61 = vld [vmem:[%s8699_s14 + $0xf0] sm:$0xff] }
 0x1e6   : > { %v8910_v18 = vadd.f32 %v6238_v55, %v2367_v27  ;;  %v6191_v29 = vpop.f32.mrf.mxu0  ;;  %6539 = vmatprep.mubr.msk.f32.mxu1 %vm4857_vm2, %v4850_v46  ;;  %v4468_v27 = vmul.f32 %v4436_v5, %v8238_v52 }
 0x1e7   : > { %v2369_v16 = vadd.f32 %v6191_v29, %v8686_v13  ;;  %6490 = vmatmul.mubr.msk.f32.gmra.mxu0 %vm759_vm0, %v9583_v20  ;;  %v2722_v45 = vpop.f32.mrf.mxu1 }
 0x1e8   : > { %v8920_v3 = vadd.f32 %v2722_v45, %v2366_v12  ;;  %6492 = vmatprep.mubr.msk.f32.mxu0 %vm759_vm0, %v9584_v44  ;;  %v2313_v54 = vpop.f32.mrf.mxu0 }
 0x1e9   : > { %v2368_v56 = vadd.f32 %v2313_v54, %v1767_v17  ;;  %v6241_v39 = vpop.f32.mrf.mxu1  ;;  %6540 = vmatmul.mubr.msk.f32.gmra.mxu1 %vm4857_vm2, %v4851_v38 }
 0x1ea   : > { %v8926_v13 = vadd.f32 %v6241_v39, %v2369_v16  ;;  %v6194_v10 = vpop.f32.mrf.mxu0  ;;  %6542 = vmatprep.mubr.msk.f32.mxu1 %vm4857_vm2, %v4852_v1 }
 0x1eb   : > { %v2371_v59 = vadd.f32 %v6194_v10, %v8704_v19  ;;  %6493 = vmatmul.mubr.msk.f32.gmra.mxu0 %vm759_vm0, %v9585_v58  ;;  %v2732_v9 = vpop.f32.mrf.mxu1 }
 0x1ec   : > { %v8936_v35 = vadd.f32 %v2732_v9, %v2368_v56  ;;  %6495 = vmatprep.mubr.msk.f32.mxu0 %vm759_vm0, %v4467_v24  ;;  %v2323_v6 = vpop.f32.mrf.mxu0 }
 0x1ed   : > { %v2370_v37 = vadd.f32 %v2323_v6, %v1777_v57  ;;  %v6244_v63 = vpop.f32.mrf.mxu1  ;;  %6543 = vmatmul.mubr.msk.f32.gmra.mxu1 %vm4857_vm2, %v4853_v0 }
 0x1ee   : > { %v8941_v46 = vadd.f32 %v6244_v63, %v2371_v59  ;;  %6545 = vmatprep.mubr.msk.f32.mxu1 %vm4857_vm2, %v4854_v61  ;;  %v6197_v19 = vpop.f32.mrf.mxu0 }
 0x1ef   : > { %6496 = vmatmul.mubr.msk.f32.gmra.mxu0 %vm759_vm0, %v4468_v27  ;;  %v2742_v31 = vpop.f32.mrf.mxu1  ;;  %v2373_v48 = vadd.f32 %v6197_v19, %v8716_v22 }
 0x1f0   : > { %v8947_v15 = vadd.f32 %v2742_v31, %v2370_v37  ;;  %v2333_v12 = vpop.f32.mrf.mxu0 }
 0x1f1   : > { %v6247_v55 = vpop.f32.mrf.mxu1  ;;  %6546 = vmatmul.mubr.msk.f32.gmra.mxu1 %vm4857_vm2, %v4855_v21  ;;  %v2372_v52 = vadd.f32 %v2333_v12, %v8725_v14 }
 0x1f2   : > { %v8951_v29 = vadd.f32 %v6247_v55, %v2373_v48  ;;  %v6252_v38 = vpop.f32.mrf.mxu0 }
 0x1f3   : > { %v2752_v50 = vpop.f32.mrf.mxu1  ;;  %v3149_v17 = vadd.f32 %v6252_v38, %v8730_v41 }
 0x1f4   : > { %v8954_v16 = vadd.f32 %v2752_v50, %v2372_v52  ;;  %v2989_v20 = vpop.f32.mrf.mxu0 }
 0x1f5   : > { %v6302_v45 = vpop.f32.mrf.mxu1  ;;  %v3148_v22 = vadd.f32 %v2989_v20, %v8740_v53 }
 0x1f6   : > { %v8957_v1 = vadd.f32 %v6302_v45, %v3149_v17 }
 0x1f7   : > { %v6255_v44 = vpop.f32.mrf.mxu0  ;;  %v3408_v54 = vpop.f32.mrf.mxu1 }
 0x1f8   : > { %v3151_v56 = vadd.f32 %v6255_v44, %v8745_v60  ;;  %v8960_v39 = vadd.f32 %v3408_v54, %v3148_v22 }
 0x1f9   : > { %v2999_v14 = vpop.f32.mrf.mxu0  ;;  %v6305_v5 = vpop.f32.mrf.mxu1 }
 0x1fa   : > { %v3150_v24 = vadd.f32 %v2999_v14, %v8755_v23  ;;  %v8963_v10 = vadd.f32 %v6305_v5, %v3151_v56 }
 0x1fb   : > { %v6258_v41 = vpop.f32.mrf.mxu0  ;;  %v3418_v0 = vpop.f32.mrf.mxu1 }
 0x1fc   : > { %v3153_v57 = vadd.f32 %v6258_v41, %v8760_v49  ;;  %v8966_v59 = vadd.f32 %v3418_v0, %v3150_v24 }
 0x1fd   : > { %v3009_v53 = vpop.f32.mrf.mxu0  ;;  %v6308_v58 = vpop.f32.mrf.mxu1 }
 0x1fe   : > { %v3152_v9 = vadd.f32 %v3009_v53, %v8770_v11  ;;  %v8969_v61 = vadd.f32 %v6308_v58, %v3153_v57 }
 0x1ff   : > { %v6261_v60 = vpop.f32.mrf.mxu0  ;;  %v3428_v6 = vpop.f32.mrf.mxu1 }
 0x200   : > { %v3155_v27 = vadd.f32 %v6261_v60, %v8775_v43  ;;  %v8972_v37 = vadd.f32 %v3428_v6, %v3152_v9 }
 0x201   : > { %v3019_v23 = vpop.f32.mrf.mxu0  ;;  %v6311_v63 = vpop.f32.mrf.mxu1 }
 0x202   : > { %v3154_v21 = vadd.f32 %v3019_v23, %v8785_v34  ;;  %v8975_v19 = vadd.f32 %v6311_v63, %v3155_v27 }
 0x203   : > { %v6264_v49 = vpop.f32.mrf.mxu0  ;;  %v3438_v31 = vpop.f32.mrf.mxu1 }
 0x204   : > { %v3157_v48 = vadd.f32 %v6264_v49, %v8790_v36  ;;  %v8978_v12 = vadd.f32 %v3438_v31, %v3154_v21 }
 0x205   : > { %v3029_v11 = vpop.f32.mrf.mxu0  ;;  %v6314_v55 = vpop.f32.mrf.mxu1 }
 0x206   : > { %v3156_v52 = vadd.f32 %v3029_v11, %v8800_v47  ;;  %v8981_v38 = vadd.f32 %v6314_v55, %v3157_v48 }
 0x207   : > { %v6267_v43 = vpop.f32.mrf.mxu0  ;;  %v3448_v50 = vpop.f32.mrf.mxu1 }
 0x208   : > { %v3159_v17 = vadd.f32 %v6267_v43, %v8805_v4  ;;  %v8984_v20 = vadd.f32 %v3448_v50, %v3156_v52 }
 0x209   : > { %v3039_v34 = vpop.f32.mrf.mxu0  ;;  %v6317_v45 = vpop.f32.mrf.mxu1 }
 0x20a   : > { %v3158_v22 = vadd.f32 %v3039_v34, %v8815_v42  ;;  %v8987_v44 = vadd.f32 %v6317_v45, %v3159_v17 }
 0x20b   : > { %v6270_v36 = vpop.f32.mrf.mxu0  ;;  %v3458_v54 = vpop.f32.mrf.mxu1 }
 0x20c   : > { %v3161_v56 = vadd.f32 %v6270_v36, %v8820_v40  ;;  %v8990_v14 = vadd.f32 %v3458_v54, %v3158_v22 }
 0x20d   : > { %v3049_v47 = vpop.f32.mrf.mxu0  ;;  %v6320_v5 = vpop.f32.mrf.mxu1 }
 0x20e   : > { %v3160_v24 = vadd.f32 %v3049_v47, %v8830_v7  ;;  %v8993_v41 = vadd.f32 %v6320_v5, %v3161_v56 }
 0x20f   : > { %v6273_v4 = vpop.f32.mrf.mxu0  ;;  %v3468_v0 = vpop.f32.mrf.mxu1 }
 0x210   : > { %v3163_v57 = vadd.f32 %v6273_v4, %v8835_v32  ;;  %v8996_v53 = vadd.f32 %v3468_v0, %v3160_v24 }
 0x211   : > { %v3059_v42 = vpop.f32.mrf.mxu0  ;;  %v6323_v58 = vpop.f32.mrf.mxu1 }
 0x212   : > { %v3162_v9 = vadd.f32 %v3059_v42, %v8845_v62  ;;  %v8999_v60 = vadd.f32 %v6323_v58, %v3163_v57 }
 0x213   : > { %v6276_v40 = vpop.f32.mrf.mxu0  ;;  %v3478_v6 = vpop.f32.mrf.mxu1 }
 0x214   : > { %v3165_v27 = vadd.f32 %v6276_v40, %v8850_v26  ;;  %v9002_v23 = vadd.f32 %v3478_v6, %v3162_v9 }
 0x215   : > { %v3069_v7 = vpop.f32.mrf.mxu0  ;;  %v6326_v63 = vpop.f32.mrf.mxu1 }
 0x216   : > { %v3164_v21 = vadd.f32 %v3069_v7, %v8860_v28  ;;  %v9005_v49 = vadd.f32 %v6326_v63, %v3165_v27 }
 0x217   : > { %v6279_v32 = vpop.f32.mrf.mxu0  ;;  %v3488_v31 = vpop.f32.mrf.mxu1 }
 0x218   : > { %v3167_v48 = vadd.f32 %v6279_v32, %v8865_v2  ;;  %v9008_v11 = vadd.f32 %v3488_v31, %v3164_v21 }
 0x219   : > { %v3079_v62 = vpop.f32.mrf.mxu0  ;;  %v6329_v55 = vpop.f32.mrf.mxu1 }
 0x21a   : > { %v3166_v52 = vadd.f32 %v3079_v62, %v8875_v8  ;;  %v9011_v43 = vadd.f32 %v6329_v55, %v3167_v48 }
 0x21b   : > { %v6282_v26 = vpop.f32.mrf.mxu0  ;;  %v3498_v50 = vpop.f32.mrf.mxu1 }
 0x21c   : > { %9586 = vst [vmem:[#allocation55_spill] sm:$0xff] %v9011_v43  ;;  %v3169_v17 = vadd.f32 %v6282_v26, %v8880_v33  ;;  %v9014_v34 = vadd.f32 %v3498_v50, %v3166_v52 }
 0x21d   : > { %v3089_v28 = vpop.f32.mrf.mxu0  ;;  %v6332_v45 = vpop.f32.mrf.mxu1 }
 0x21e   : > { %9587 = vst [vmem:[#allocation47_spill] sm:$0xff] %v9014_v34  ;;  %v3168_v22 = vadd.f32 %v3089_v28, %v8890_v51  ;;  %v9017_v36 = vadd.f32 %v6332_v45, %v3169_v17 }
 0x21f   : > { %v6285_v2 = vpop.f32.mrf.mxu0  ;;  %v3508_v54 = vpop.f32.mrf.mxu1 }
 0x220   : > { %9588 = vst [vmem:[#allocation54_spill] sm:$0xff] %v9017_v36  ;;  %v3171_v56 = vadd.f32 %v6285_v2, %v8895_v25  ;;  %v9020_v47 = vadd.f32 %v3508_v54, %v3168_v22 }
 0x221   : > { %v3099_v8 = vpop.f32.mrf.mxu0  ;;  %v6335_v5 = vpop.f32.mrf.mxu1 }
 0x222   : > { %9589 = vst [vmem:[#allocation53_spill] sm:$0xff] %v9020_v47  ;;  %v3170_v24 = vadd.f32 %v3099_v8, %v8905_v30  ;;  %v9023_v4 = vadd.f32 %v6335_v5, %v3171_v56 }
 0x223   : > { %v6288_v33 = vpop.f32.mrf.mxu0  ;;  %v3518_v0 = vpop.f32.mrf.mxu1 }
 0x224   : > { %9590 = vst [vmem:[#allocation52_spill] sm:$0xff] %v9023_v4  ;;  %v3173_v57 = vadd.f32 %v6288_v33, %v8910_v18  ;;  %v9026_v42 = vadd.f32 %v3518_v0, %v3170_v24 }
 0x225   : > { %v3109_v51 = vpop.f32.mrf.mxu0  ;;  %v6338_v58 = vpop.f32.mrf.mxu1 }
 0x226   : > { %9591 = vst [vmem:[#allocation60_spill] sm:$0xff] %v9026_v42  ;;  %v3172_v9 = vadd.f32 %v3109_v51, %v8920_v3  ;;  %v9029_v40 = vadd.f32 %v6338_v58, %v3173_v57 }
 0x227   : > { %v6291_v25 = vpop.f32.mrf.mxu0  ;;  %v3528_v6 = vpop.f32.mrf.mxu1 }
 0x228   : > { %9592 = vst [vmem:[#allocation59_spill] sm:$0xff] %v9029_v40  ;;  %v3175_v27 = vadd.f32 %v6291_v25, %v8926_v13  ;;  %v9032_v7 = vadd.f32 %v3528_v6, %v3172_v9 }
 0x229   : > { %v3119_v30 = vpop.f32.mrf.mxu0  ;;  %v6341_v63 = vpop.f32.mrf.mxu1 }
 0x22a   : > { %9593 = vst [vmem:[#allocation83_spill] sm:$0xff] %v9032_v7  ;;  %v3174_v21 = vadd.f32 %v3119_v30, %v8936_v35  ;;  %v9035_v32 = vadd.f32 %v6341_v63, %v3175_v27 }
 0x22b   : > { %v6294_v18 = vpop.f32.mrf.mxu0  ;;  %v3538_v31 = vpop.f32.mrf.mxu1 }
 0x22c   : > { %9594 = vst [vmem:[#allocation79_spill] sm:$0xff] %v9035_v32  ;;  %v3177_v48 = vadd.f32 %v6294_v18, %v8941_v46  ;;  %v9038_v62 = vadd.f32 %v3538_v31, %v3174_v21 }
 0x22d   : > { %v3129_v3 = vpop.f32.mrf.mxu0  ;;  %v6344_v55 = vpop.f32.mrf.mxu1 }
 0x22e   : > { %9595 = vst [vmem:[#allocation89_spill] sm:$0xff] %v9038_v62  ;;  %v3176_v52 = vadd.f32 %v3129_v3, %v8947_v15  ;;  %v9041_v26 = vadd.f32 %v6344_v55, %v3177_v48 }
 0x22f   : > { %v6297_v13 = vpop.f32.mrf.mxu0  ;;  %v3548_v50 = vpop.f32.mrf.mxu1 }
 0x230   : > { %9596 = vst [vmem:[#allocation88_spill] sm:$0xff] %v9041_v26  ;;  %v3179_v17 = vadd.f32 %v6297_v13, %v8951_v29  ;;  %v9044_v28 = vadd.f32 %v3548_v50, %v3176_v52 }
 0x231   : > { %v3139_v35 = vpop.f32.mrf.mxu0  ;;  %v6347_v45 = vpop.f32.mrf.mxu1 }
 0x232   : > { %9597 = vst [vmem:[#allocation82_spill] sm:$0xff] %v9044_v28  ;;  %v3178_v22 = vadd.f32 %v3139_v35, %v8954_v16  ;;  %v9047_v2 = vadd.f32 %v6347_v45, %v3179_v17 }
 0x233   : > { %v6352_v46 = vpop.f32.mrf.mxu0  ;;  %v3558_v54 = vpop.f32.mrf.mxu1 }
 0x234   : > { %9598 = vst [vmem:[#allocation93_spill] sm:$0xff] %v9047_v2  ;;  %v9049_v56 = vadd.f32 %v3558_v54, %v3178_v22 }
 0x235   : > { %v3827_v8 = vpop.f32.mrf.mxu0  ;;  %v9051_v15 = vpop.f32.mrf.mxu1 }
 0x236   : > { %9599 = vst [vmem:[#allocation87_spill] sm:$0xff] %v9049_v56 }
 0x237   : > { %v9053_v5 = vpop.f32.mrf.mxu0  ;;  %v9055_v24 = vpop.f32.mrf.mxu1 }
 0x239   : > { %v9057_v29 = vpop.f32.mrf.mxu0  ;;  %v9059_v33 = vpop.f32.mrf.mxu1 }
 0x23b   : > { %v9061_v0 = vpop.f32.mrf.mxu0  ;;  %v9063_v16 = vpop.f32.mrf.mxu1 }
 0x23d   : > { %v9065_v57 = vpop.f32.mrf.mxu0  ;;  %v9067_v51 = vpop.f32.mrf.mxu1 }
 0x23f   : > { %v9069_v58 = vpop.f32.mrf.mxu0  ;;  %v9071_v9 = vpop.f32.mrf.mxu1 }
 0x241   : > { %v9073_v25 = vpop.f32.mrf.mxu0  ;;  %v9075_v6 = vpop.f32.mrf.mxu1 }
 0x243   : > { %v9077_v27 = vpop.f32.mrf.mxu0  ;;  %v9079_v30 = vpop.f32.mrf.mxu1 }
 0x245   : > { %v9081_v63 = vpop.f32.mrf.mxu0  ;;  %v9083_v21 = vpop.f32.mrf.mxu1 }
 0x247   : > { %v9085_v18 = vpop.f32.mrf.mxu0  ;;  %v9087_v31 = vpop.f32.mrf.mxu1 }
 0x249   : > { %v9089_v48 = vpop.f32.mrf.mxu0  ;;  %v9091_v3 = vpop.f32.mrf.mxu1 }
 0x24b   : > { %v9093_v55 = vpop.f32.mrf.mxu0  ;;  %v9095_v52 = vpop.f32.mrf.mxu1 }
 0x24d   : > { %v9097_v13 = vpop.f32.mrf.mxu0  ;;  %v9099_v50 = vpop.f32.mrf.mxu1 }
 0x24f   : > { %v9101_v17 = vpop.f32.mrf.mxu0  ;;  %v9103_v35 = vpop.f32.mrf.mxu1 }
 0x251   : > { %v9105_v45 = vpop.f32.mrf.mxu0  ;;  %v9107_v22 = vpop.f32.mrf.mxu1 }
 0x253   : > { %v9109_v54 = vpop.f32.mrf.mxu0  ;;  %v9111_v56 = vpop.f32.mrf.mxu1 }
 0x255   : > { %v9113_v2 = vpop.f32.mrf.mxu0  ;;  %v9115_v28 = vpop.f32.mrf.mxu1 }
 0x257   : > { %v9117_v26 = vpop.f32.mrf.mxu0  ;;  %v9119_v62 = vpop.f32.mrf.mxu1 }
 0x258   : > { %9600 = vst [vmem:[#allocation92_spill] sm:$0xff] %v9117_v26  ;;  %9601 = vst [vmem:[#allocation86_spill] sm:$0xff] %v9119_v62 }
 0x259   : > { %v9121_v32 = vpop.f32.mrf.mxu0  ;;  %v9123_v7 = vpop.f32.mrf.mxu1 }
 0x25a   : > { %9602 = vst [vmem:[#allocation11_spill] sm:$0xff] %v9121_v32  ;;  %9603 = vst [vmem:[#allocation37_spill] sm:$0xff] %v9123_v7 }
 0x25b   : > { %v9125_v40 = vpop.f32.mrf.mxu0  ;;  %v9127_v42 = vpop.f32.mrf.mxu1 }
 0x25c   : > { %9604 = vst [vmem:[#allocation14_spill] sm:$0xff] %v9125_v40  ;;  %9605 = vst [vmem:[#allocation44_spill] sm:$0xff] %v9127_v42 }
 0x25d   : > { %v9129_v4 = vpop.f32.mrf.mxu0  ;;  %v9131_v47 = vpop.f32.mrf.mxu1 }
 0x25e   : > { %9606 = vst [vmem:[#allocation15_spill] sm:$0xff] %v9129_v4  ;;  %9607 = vst [vmem:[#allocation17_spill] sm:$0xff] %v9131_v47 }
 0x25f   : > { %v9133_v36 = vpop.f32.mrf.mxu0  ;;  %v9135_v34 = vpop.f32.mrf.mxu1 }
 0x260   : > { %9608 = vst [vmem:[#allocation19_spill] sm:$0xff] %v9133_v36  ;;  %9609 = vst [vmem:[#allocation42_spill] sm:$0xff] %v9135_v34 }
 0x261   : > { %v9137_v43 = vpop.f32.mrf.mxu0  ;;  %v9139_v26 = vpop.f32.mrf.mxu1 }
 0x262   : > { %9610 = vst [vmem:[#allocation10_spill] sm:$0xff] %v9137_v43  ;;  %9611 = vst [vmem:[#allocation13_spill] sm:$0xff] %v9139_v26 }
 0x263   : > { %v9141_v62 = vpop.f32.mrf.mxu0  ;;  %v9143_v32 = vpop.f32.mrf.mxu1 }
 0x264   : > { %9612 = vst [vmem:[#allocation9_spill] sm:$0xff] %v9141_v62  ;;  %9613 = vst [vmem:[#allocation12_spill] sm:$0xff] %v9143_v32 }
 0x265   : > { %v9145_v7 = vpop.f32.mrf.mxu0  ;;  %v9147_v40 = vpop.f32.mrf.mxu1 }
 0x266   : > { %9614 = vst [vmem:[#allocation18_spill] sm:$0xff] %v9145_v7  ;;  %9615 = vst [vmem:[#allocation16_spill] sm:$0xff] %v9147_v40  ;;  %v3987_v7 = vadd.f32 %v6352_v46, %v8957_v1  ;;  %v3988_v46 = vadd.f32 %v9057_v29, %v8966_v59 }
 0x267   : > { %v9149_v42 = vpop.f32.mrf.mxu0  ;;  %v9151_v4 = vpop.f32.mrf.mxu1 }
 0x268   : > { %9616 = vst [vmem:[#allocation21_spill] sm:$0xff] %v9149_v42  ;;  %9617 = vst [vmem:[#allocation20_spill] sm:$0xff] %v9151_v4  ;;  %v3986_v4 = vadd.f32 %v3827_v8, %v8960_v39  ;;  %v4375_v59 = vadd.f32 %v9063_v16, %v3988_v46  ;;  %v3992_v16 = vadd.f32 %v9073_v25, %v8978_v12 }
 0x269   : > { %v9153_v47 = vpop.f32.mrf.mxu0  ;;  %v9155_v36 = vpop.f32.mrf.mxu1  ;;  %v3994_v25 = vadd.f32 %v9081_v63, %v8984_v20  ;;  %v3996_v63 = vadd.f32 %v9089_v48, %v8990_v14  ;;  %v3998_v48 = vadd.f32 %v9097_v13, %v8996_v53  ;;  %v4000_v13 = vadd.f32 %v9105_v45, %v9002_v23 }
 0x26a   : > { %9618 = vst [vmem:[#allocation23_spill] sm:$0xff] %v9153_v47  ;;  %9619 = vst [vmem:[#allocation22_spill] sm:$0xff] %v9155_v36  ;;  %v4373_v1 = vadd.f32 %v9055_v24, %v3986_v4  ;;  %v4379_v12 = vadd.f32 %v9079_v30, %v3992_v16  ;;  %v4002_v45 = vadd.f32 %v9113_v2, %v9008_v11  ;;  %v9629_v2 = vld [vmem:[#allocation47_spill] sm:$0xff] }
 0x26b   : > { %v9157_v34 = vpop.f32.mrf.mxu0  ;;  %v9159_v43 = vpop.f32.mrf.mxu1  ;;  %v4381_v20 = vadd.f32 %v9087_v31, %v3994_v25  ;;  %v4383_v14 = vadd.f32 %v9095_v52, %v3996_v63  ;;  %v4385_v53 = vadd.f32 %v9103_v35, %v3998_v48  ;;  %v4387_v23 = vadd.f32 %v9111_v56, %v4000_v13  ;;  %v9633_v63 = vld [vmem:[#allocation14_spill] sm:$0xff] }
 0x26c   : > { %9620 = vst [vmem:[#allocation25_spill] sm:$0xff] %v9157_v34  ;;  %9621 = vst [vmem:[#allocation24_spill] sm:$0xff] %v9159_v43  ;;  %v4374_v34 = vadd.f32 %v9051_v15, %v3987_v7  ;;  %v3991_v7 = vadd.f32 %v9061_v0, %v8969_v61  ;;  %v3993_v61 = vadd.f32 %v9069_v58, %v8975_v19  ;;  %v9640_v13 = vld [vmem:[#allocation42_spill] sm:$0xff] }
 0x26d   : > { %v9161_v26 = vpop.f32.mrf.mxu0  ;;  %v9163_v32 = vpop.f32.mrf.mxu1 }
 0x26e   : > { %9622 = vst [vmem:[#allocation27_spill] sm:$0xff] %v9161_v26  ;;  %v3989_v26 = vadd.f32 %v9053_v5, %v8963_v10  ;;  %v4380_v19 = vadd.f32 %v9075_v6, %v3993_v61 }
 0x26f   : > { %v9166_v40 = vpop.f32.mrf.mxu0  ;;  %v9168_v42 = vpop.f32.mrf.mxu1 }
 0x270   : > { %9623 = vst [vmem:[#allocation26_spill] sm:$0xff] %v9166_v40  ;;  %9624 = vst [vmem:[#allocation29_spill] sm:$0xff] %v9168_v42  ;;  %v4376_v10 = vadd.f32 %v9059_v33, %v3989_v26  ;;  %v4378_v26 = vadd.f32 %v9067_v51, %v3991_v7 }
 0x271   : > { %v9171_v47 = vpop.f32.mrf.mxu0  ;;  %v9173_v36 = vpop.f32.mrf.mxu1 }
 0x273   : > { %v6452_v43 = vpop.f32.mrf.mxu0  ;;  %v9178_v62 = vpop.f32.mrf.mxu1 }
 0x274   : > { %9625 = vst [vmem:[#allocation28_spill] sm:$0xff] %v9178_v62  ;;  %v4793_v42 = vadd.f32 %v6452_v43, %v4374_v34  ;;  %v3990_v43 = vadd.f32 %v9065_v57, %v8972_v37 }
 0x275   : > { %v4633_v40 = vpop.f32.mrf.mxu0  ;;  %v6502_v39 = vpop.f32.mrf.mxu1 }
 0x276   : > { %v4792_v8 = vadd.f32 %v4633_v40, %v4373_v1  ;;  %v5184_v4 = vadd.f32 %v6502_v39, %v4793_v42  ;;  %v4377_v37 = vadd.f32 %v9071_v9, %v3990_v43 }
 0x277   : > { %v6455_v15 = vpop.f32.mrf.mxu0  ;;  %v5024_v5 = vpop.f32.mrf.mxu1 }
 0x278   : > { %5216 = vst.msk [vmem:[%s9187_s18 + $0x8] sm:$0xff] %vm759_vm0, %v5184_v4  ;;  %v4795_v34 = vadd.f32 %v6455_v15, %v4376_v10  ;;  %v5183_v24 = vadd.f32 %v5024_v5, %v4792_v8 }
 0x279   : > { %v4643_v29 = vpop.f32.mrf.mxu0  ;;  %v6505_v62 = vpop.f32.mrf.mxu1 }
 0x27a   : > { %5215 = vst.msk [vmem:[%s9187_s18] sm:$0xff] %vm759_vm0, %v5183_v24  ;;  %v4794_v42 = vadd.f32 %v4643_v29, %v4375_v59  ;;  %v5186_v40 = vadd.f32 %v6505_v62, %v4795_v34  ;;  %v3995_v62 = vadd.f32 %v9077_v27, %v8981_v38  ;;  %v3997_v27 = vadd.f32 %v9085_v18, %v8987_v44 }
 0x27b   : > { %v6458_v33 = vpop.f32.mrf.mxu0  ;;  %v5034_v0 = vpop.f32.mrf.mxu1  ;;  %v3999_v18 = vadd.f32 %v9093_v55, %v8993_v41  ;;  %v4001_v55 = vadd.f32 %v9101_v17, %v8999_v60  ;;  %v4003_v17 = vadd.f32 %v9109_v54, %v9005_v49  ;;  %v9626_v54 = vld [vmem:[#allocation55_spill] sm:$0xff] }
 0x27c   : > { %5218 = vst.msk [vmem:[%s9187_s18 + $0x18] sm:$0xff] %vm759_vm0, %v5186_v40  ;;  %v4797_v57 = vadd.f32 %v6458_v33, %v4378_v26  ;;  %v5185_v51 = vadd.f32 %v5034_v0, %v4794_v42  ;;  %v4382_v38 = vadd.f32 %v9083_v21, %v3995_v62  ;;  %v4384_v44 = vadd.f32 %v9091_v3, %v3997_v27 }
 0x27d   : > { %v4653_v1 = vpop.f32.mrf.mxu0  ;;  %v6508_v46 = vpop.f32.mrf.mxu1  ;;  %v4386_v41 = vadd.f32 %v9099_v50, %v3999_v18  ;;  %v4388_v60 = vadd.f32 %v9107_v22, %v4001_v55  ;;  %v4390_v49 = vadd.f32 %v9115_v28, %v4003_v17  ;;  %v9634_v18 = vld [vmem:[#allocation44_spill] sm:$0xff]  ;;  %v9639_v55 = vld [vmem:[#allocation19_spill] sm:$0xff] }
 0x27e   : > { %5217 = vst.msk [vmem:[%s9187_s18 + $0x10] sm:$0xff] %vm759_vm0, %v5185_v51  ;;  %v4796_v58 = vadd.f32 %v4653_v1, %v4377_v37  ;;  %v5188_v9 = vadd.f32 %v6508_v46, %v4797_v57 }
 0x27f   : > { %v6461_v39 = vpop.f32.mrf.mxu0  ;;  %v5044_v10 = vpop.f32.mrf.mxu1 }
 0x280   : > { %5220 = vst.msk [vmem:[%s9187_s18 + $0x28] sm:$0xff] %vm759_vm0, %v5188_v9  ;;  %v4799_v7 = vadd.f32 %v6461_v39, %v4380_v19  ;;  %v5187_v6 = vadd.f32 %v5044_v10, %v4796_v58  ;;  %v9627_v10 = vld [vmem:[#allocation92_spill] sm:$0xff] }
 0x281   : > { %v4663_v8 = vpop.f32.mrf.mxu0  ;;  %v6511_v4 = vpop.f32.mrf.mxu1 }
 0x282   : > { %5219 = vst.msk [vmem:[%s9187_s18 + $0x20] sm:$0xff] %vm759_vm0, %v5187_v6  ;;  %v4798_v15 = vadd.f32 %v4663_v8, %v4379_v12  ;;  %v5190_v30 = vadd.f32 %v6511_v4, %v4799_v7  ;;  %v4005_v12 = vadd.f32 %v9627_v10, %v9626_v54  ;;  %v9628_v8 = vld [vmem:[#allocation86_spill] sm:$0xff]  ;;  %v9630_v4 = vld [vmem:[#allocation11_spill] sm:$0xff]  ;;  %v9646_v54 = vld [vmem:[#allocation12_spill] sm:$0xff] }
 0x283   : > { %v6464_v5 = vpop.f32.mrf.mxu0  ;;  %v5054_v59 = vpop.f32.mrf.mxu1  ;;  %v4389_v11 = vadd.f32 %v9628_v8, %v4002_v45  ;;  %v9645_v45 = vld [vmem:[#allocation9_spill] sm:$0xff] }
 0x284   : > { %5222 = vst.msk [vmem:[%s9187_s18 + $0x38] sm:$0xff] %vm759_vm0, %v5190_v30  ;;  %v4801_v43 = vadd.f32 %v6464_v5, %v4382_v38  ;;  %v5189_v21 = vadd.f32 %v5054_v59, %v4798_v15  ;;  %v4004_v38 = vadd.f32 %v9630_v4, %v9629_v2  ;;  %v9631_v5 = vld [vmem:[#allocation37_spill] sm:$0xff]  ;;  %v9649_v2 = vld [vmem:[#allocation16_spill] sm:$0xff] }
 0x285   : > { %v4673_v34 = vpop.f32.mrf.mxu0  ;;  %v6514_v24 = vpop.f32.mrf.mxu1  ;;  %v4392_v59 = vadd.f32 %v9631_v5, %v4005_v12  ;;  %v9647_v12 = vld [vmem:[#allocation83_spill] sm:$0xff] }
 0x286   : > { %5221 = vst.msk [vmem:[%s9187_s18 + $0x30] sm:$0xff] %vm759_vm0, %v5189_v21  ;;  %v4800_v29 = vadd.f32 %v4673_v34, %v4381_v20  ;;  %v5192_v31 = vadd.f32 %v6514_v24, %v4801_v43  ;;  %v9632_v20 = vld [vmem:[#allocation54_spill] sm:$0xff] }
 0x287   : > { %v6467_v26 = vpop.f32.mrf.mxu0  ;;  %v5064_v61 = vpop.f32.mrf.mxu1  ;;  %v4007_v43 = vadd.f32 %v9633_v63, %v9632_v20  ;;  %v9652_v20 = vld [vmem:[#allocation20_spill] sm:$0xff] }
 0x288   : > { %5224 = vst.msk [vmem:[%s9187_s18 + $0x48] sm:$0xff] %vm759_vm0, %v5192_v31  ;;  %v4803_v42 = vadd.f32 %v6467_v26, %v4384_v44  ;;  %v5191_v3 = vadd.f32 %v5064_v61, %v4800_v29  ;;  %v4391_v29 = vadd.f32 %v9634_v18, %v4004_v38  ;;  %v9635_v31 = vld [vmem:[#allocation53_spill] sm:$0xff]  ;;  %v9636_v26 = vld [vmem:[#allocation15_spill] sm:$0xff] }
 0x289   : > { %v4683_v40 = vpop.f32.mrf.mxu0  ;;  %v6517_v33 = vpop.f32.mrf.mxu1  ;;  %v4006_v61 = vadd.f32 %v9636_v26, %v9635_v31  ;;  %v9650_v38 = vld [vmem:[#allocation79_spill] sm:$0xff]  ;;  %v9655_v31 = vld [vmem:[#allocation22_spill] sm:$0xff] }
 0x28a   : > { %5223 = vst.msk [vmem:[%s9187_s18 + $0x40] sm:$0xff] %vm759_vm0, %v5191_v3  ;;  %v4802_v0 = vadd.f32 %v4683_v40, %v4383_v14  ;;  %v5194_v52 = vadd.f32 %v6517_v33, %v4803_v42  ;;  %v9637_v40 = vld [vmem:[#allocation17_spill] sm:$0xff] }
 0x28b   : > { %v6470_v37 = vpop.f32.mrf.mxu0  ;;  %v5074_v16 = vpop.f32.mrf.mxu1  ;;  %v4394_v33 = vadd.f32 %v9637_v40, %v4007_v43  ;;  %v9653_v43 = vld [vmem:[#allocation89_spill] sm:$0xff] }
 0x28c   : > { %5226 = vst.msk [vmem:[%s9187_s18 + $0x58] sm:$0xff] %vm759_vm0, %v5194_v52  ;;  %v4805_v57 = vadd.f32 %v6470_v37, %v4386_v41  ;;  %v5193_v50 = vadd.f32 %v5074_v16, %v4802_v0  ;;  %v9638_v41 = vld [vmem:[#allocation52_spill] sm:$0xff] }
 0x28d   : > { %v4693_v51 = vpop.f32.mrf.mxu0  ;;  %v6520_v1 = vpop.f32.mrf.mxu1  ;;  %v4009_v0 = vadd.f32 %v9639_v55, %v9638_v41  ;;  %v9658_v41 = vld [vmem:[#allocation24_spill] sm:$0xff] }
 0x28e   : > { %5225 = vst.msk [vmem:[%s9187_s18 + $0x50] sm:$0xff] %vm759_vm0, %v5193_v50  ;;  %v4804_v46 = vadd.f32 %v4693_v51, %v4385_v53  ;;  %v5196_v35 = vadd.f32 %v6520_v1, %v4805_v57  ;;  %v4393_v57 = vadd.f32 %v9640_v13, %v4006_v61  ;;  %v9641_v50 = vld [vmem:[#allocation60_spill] sm:$0xff]  ;;  %v9642_v51 = vld [vmem:[#allocation10_spill] sm:$0xff] }
 0x28f   : > { %v6473_v19 = vpop.f32.mrf.mxu0  ;;  %v5084_v62 = vpop.f32.mrf.mxu1  ;;  %v4008_v1 = vadd.f32 %v9642_v51, %v9641_v50  ;;  %v9656_v61 = vld [vmem:[#allocation88_spill] sm:$0xff]  ;;  %v9661_v51 = vld [vmem:[#allocation93_spill] sm:$0xff] }
 0x290   : > { %5228 = vst.msk [vmem:[%s9187_s18 + $0x68] sm:$0xff] %vm759_vm0, %v5196_v35  ;;  %v4807_v58 = vadd.f32 %v6473_v19, %v4388_v60  ;;  %v5195_v22 = vadd.f32 %v5084_v62, %v4804_v46  ;;  %v9643_v19 = vld [vmem:[#allocation13_spill] sm:$0xff] }
 0x291   : > { %v4703_v9 = vpop.f32.mrf.mxu0  ;;  %v6523_v39 = vpop.f32.mrf.mxu1  ;;  %v4396_v62 = vadd.f32 %v9643_v19, %v4009_v0  ;;  %v4395_v10 = vadd.f32 %v9646_v54, %v4008_v1  ;;  %v9659_v0 = vld [vmem:[#allocation82_spill] sm:$0xff] }
 0x292   : > { %5227 = vst.msk [vmem:[%s9187_s18 + $0x60] sm:$0xff] %vm759_vm0, %v5195_v22  ;;  %v4806_v25 = vadd.f32 %v4703_v9, %v4387_v23  ;;  %v5198_v56 = vadd.f32 %v6523_v39, %v4807_v58  ;;  %v9644_v23 = vld [vmem:[#allocation59_spill] sm:$0xff]  ;;  %v9662_v1 = vld [vmem:[#allocation26_spill] sm:$0xff] }
 0x293   : > { %v6476_v7 = vpop.f32.mrf.mxu0  ;;  %v5094_v6 = vpop.f32.mrf.mxu1  ;;  %v4011_v58 = vadd.f32 %v9645_v45, %v9644_v23  ;;  %v9664_v45 = vld [vmem:[#allocation87_spill] sm:$0xff] }
 0x294   : > { %5230 = vst.msk [vmem:[%s9187_s18 + $0x78] sm:$0xff] %vm759_vm0, %v5198_v56  ;;  %v4809_v27 = vadd.f32 %v6476_v7, %v4390_v49  ;;  %v5197_v28 = vadd.f32 %v5094_v6, %v4806_v25  ;;  %v9648_v25 = vld [vmem:[#allocation18_spill] sm:$0xff] }
 0x295   : > { %v4713_v15 = vpop.f32.mrf.mxu0  ;;  %v6526_v30 = vpop.f32.mrf.mxu1  ;;  %v4010_v56 = vadd.f32 %v9648_v25, %v9647_v12  ;;  %v4398_v4 = vadd.f32 %v9649_v2, %v4011_v58  ;;  %v4016_v58 = vadd.f32 %v9171_v47, %v9664_v45 }
 0x296   : > { %5229 = vst.msk [vmem:[%s9187_s18 + $0x70] sm:$0xff] %vm759_vm0, %v5197_v28  ;;  %v4808_v21 = vadd.f32 %v4713_v15, %v4389_v11  ;;  %v5200_v34 = vadd.f32 %v6526_v30, %v4809_v27  ;;  %v9651_v27 = vld [vmem:[#allocation21_spill] sm:$0xff] }
 0x297   : > { %v6479_v24 = vpop.f32.mrf.mxu0  ;;  %v5104_v44 = vpop.f32.mrf.mxu1  ;;  %v4013_v28 = vadd.f32 %v9651_v27, %v9650_v38  ;;  %v4397_v63 = vadd.f32 %v9652_v20, %v4010_v56  ;;  %v9665_v56 = vld [vmem:[#allocation28_spill] sm:$0xff] }
 0x298   : > { %5232 = vst.msk [vmem:[%s9187_s18 + $0x88] sm:$0xff] %vm759_vm0, %v5200_v34  ;;  %v4811_v14 = vadd.f32 %v6479_v24, %v4392_v59  ;;  %v5199_v48 = vadd.f32 %v5104_v44, %v4808_v21  ;;  %v9654_v21 = vld [vmem:[#allocation23_spill] sm:$0xff] }
 0x299   : > { %v4723_v42 = vpop.f32.mrf.mxu0  ;;  %v6529_v3 = vpop.f32.mrf.mxu1  ;;  %v4012_v34 = vadd.f32 %v9654_v21, %v9653_v43  ;;  %v4400_v26 = vadd.f32 %v9655_v31, %v4013_v28 }
 0x29a   : > { %5231 = vst.msk [vmem:[%s9187_s18 + $0x80] sm:$0xff] %vm759_vm0, %v5199_v48  ;;  %v4810_v52 = vadd.f32 %v4723_v42, %v4391_v29  ;;  %v5202_v37 = vadd.f32 %v6529_v3, %v4811_v14  ;;  %v9657_v14 = vld [vmem:[#allocation25_spill] sm:$0xff] }
 0x29b   : > { %v6482_v16 = vpop.f32.mrf.mxu0  ;;  %v5114_v53 = vpop.f32.mrf.mxu1  ;;  %v4015_v48 = vadd.f32 %v9657_v14, %v9656_v61  ;;  %v4399_v55 = vadd.f32 %v9658_v41, %v4012_v34 }
 0x29c   : > { %5234 = vst.msk [vmem:[%s9187_s18 + $0x98] sm:$0xff] %vm759_vm0, %v5202_v37  ;;  %v4813_v60 = vadd.f32 %v6482_v16, %v4394_v33  ;;  %v5201_v17 = vadd.f32 %v5114_v53, %v4810_v52  ;;  %v9660_v52 = vld [vmem:[#allocation27_spill] sm:$0xff] }
 0x29d   : > { %v4733_v46 = vpop.f32.mrf.mxu0  ;;  %v6532_v35 = vpop.f32.mrf.mxu1  ;;  %v4014_v37 = vadd.f32 %v9660_v52, %v9659_v0  ;;  %v4402_v50 = vadd.f32 %v9163_v32, %v4015_v48 }
 0x29e   : > { %5233 = vst.msk [vmem:[%s9187_s18 + $0x90] sm:$0xff] %vm759_vm0, %v5201_v17  ;;  %v4812_v22 = vadd.f32 %v4733_v46, %v4393_v57  ;;  %v5204_v9 = vadd.f32 %v6532_v35, %v4813_v60  ;;  %v4017_v60 = vadd.f32 %v9662_v1, %v9661_v51 }
 0x29f   : > { %v6485_v39 = vpop.f32.mrf.mxu0  ;;  %v5124_v49 = vpop.f32.mrf.mxu1 }
 0x2a0   : > { %5236 = vst.msk [vmem:[%s9187_s18 + $0xa8] sm:$0xff] %vm759_vm0, %v5204_v9  ;;  %v4815_v7 = vadd.f32 %v6485_v39, %v4396_v62  ;;  %v5203_v6 = vadd.f32 %v5124_v49, %v4812_v22  ;;  %v9663_v62 = vld [vmem:[#allocation29_spill] sm:$0xff]  ;;  %v4404_v49 = vadd.f32 %v9173_v36, %v4017_v60 }
 0x2a1   : > { %v4743_v8 = vpop.f32.mrf.mxu0  ;;  %v6535_v11 = vpop.f32.mrf.mxu1  ;;  %v4401_v23 = vadd.f32 %v9663_v62, %v4014_v37 }
 0x2a2   : > { %5235 = vst.msk [vmem:[%s9187_s18 + $0xa0] sm:$0xff] %vm759_vm0, %v5203_v6  ;;  %v4814_v15 = vadd.f32 %v4743_v8, %v4395_v10  ;;  %v5206_v30 = vadd.f32 %v6535_v11, %v4815_v7  ;;  %v4403_v7 = vadd.f32 %v9665_v56, %v4016_v58 }
 0x2a3   : > { %v6488_v5 = vpop.f32.mrf.mxu0  ;;  %v5134_v59 = vpop.f32.mrf.mxu1 }
 0x2a4   : > { %5238 = vst.msk [vmem:[%s9187_s18 + $0xb8] sm:$0xff] %vm759_vm0, %v5206_v30  ;;  %v4817_v24 = vadd.f32 %v6488_v5, %v4398_v4  ;;  %v5205_v44 = vadd.f32 %v5134_v59, %v4814_v15 }
 0x2a5   : > { %v4753_v18 = vpop.f32.mrf.mxu0  ;;  %v6538_v29 = vpop.f32.mrf.mxu1 }
 0x2a6   : > { %5237 = vst.msk [vmem:[%s9187_s18 + $0xb0] sm:$0xff] %vm759_vm0, %v5205_v44  ;;  %v4816_v42 = vadd.f32 %v4753_v18, %v4397_v63  ;;  %v5208_v3 = vadd.f32 %v6538_v29, %v4817_v24 }
 0x2a7   : > { %v6491_v40 = vpop.f32.mrf.mxu0  ;;  %v5144_v33 = vpop.f32.mrf.mxu1 }
 0x2a8   : > { %5240 = vst.msk [vmem:[%s9187_s18 + $0xc8] sm:$0xff] %vm759_vm0, %v5208_v3  ;;  %v4819_v16 = vadd.f32 %v6491_v40, %v4400_v26  ;;  %v5207_v53 = vadd.f32 %v5144_v33, %v4816_v42 }
 0x2a9   : > { %v4763_v13 = vpop.f32.mrf.mxu0  ;;  %v6541_v57 = vpop.f32.mrf.mxu1 }
 0x2aa   : > { %5239 = vst.msk [vmem:[%s9187_s18 + $0xc0] sm:$0xff] %vm759_vm0, %v5207_v53  ;;  %v4818_v17 = vadd.f32 %v4763_v13, %v4399_v55  ;;  %v5210_v46 = vadd.f32 %v6541_v57, %v4819_v16 }
 0x2ab   : > { %v6494_v35 = vpop.f32.mrf.mxu0  ;;  %v5154_v19 = vpop.f32.mrf.mxu1 }
 0x2ac   : > { %5242 = vst.msk [vmem:[%s9187_s18 + $0xd8] sm:$0xff] %vm759_vm0, %v5210_v46  ;;  %v4821_v22 = vadd.f32 %v6494_v35, %v4402_v50  ;;  %v5209_v32 = vadd.f32 %v5154_v19, %v4818_v17 }
 0x2ad   : > { %v4773_v9 = vpop.f32.mrf.mxu0  ;;  %v6544_v39 = vpop.f32.mrf.mxu1 }
 0x2ae   : > { %5241 = vst.msk [vmem:[%s9187_s18 + $0xd0] sm:$0xff] %vm759_vm0, %v5209_v32  ;;  %v4820_v54 = vadd.f32 %v4773_v9, %v4401_v23  ;;  %v5212_v10 = vadd.f32 %v6544_v39, %v4821_v22 }
 0x2af   : > { %v6497_v12 = vpop.f32.mrf.mxu0  ;;  %v5164_v25 = vpop.f32.mrf.mxu1 }
 0x2b0   : > { %5244 = vst.msk [vmem:[%s9187_s18 + $0xe8] sm:$0xff] %vm759_vm0, %v5212_v10  ;;  %v4823_v47 = vadd.f32 %v6497_v12, %v4404_v49  ;;  %v5211_v6 = vadd.f32 %v5164_v25, %v4820_v54 }
 0x2b1   : > { %v4783_v8 = vpop.f32.mrf.mxu0  ;;  %v6547_v11 = vpop.f32.mrf.mxu1 }
 0x2b2   : > { %5243 = vst.msk [vmem:[%s9187_s18 + $0xe0] sm:$0xff] %vm759_vm0, %v5211_v6  ;;  %v4822_v2 = vadd.f32 %v4783_v8, %v4403_v7  ;;  %v5214_v36 = vadd.f32 %v6547_v11, %v4823_v47 }
 0x2b3   : > { %v5174_v4 = vpop.f32.mrf.mxu1 }
 0x2b4   : > { %5246 = vst.msk [vmem:[%s9187_s18 + $0xf8] sm:$0xff] %vm759_vm0, %v5214_v36  ;;  %v5213_v38 = vadd.f32 %v5174_v4, %v4822_v2 }
 0x2b6   : > { %5245 = vst.msk [vmem:[%s9187_s18 + $0xf0] sm:$0xff] %vm759_vm0, %v5213_v38 }
 0x2b7 PF: > { %s22_s13 = sadd.s32 1, %s6764_s13  }
 0x2b8   : > { %p19_p3 = scmp.ge.s32.totalorder %s22_s13, 4  }
 0x2ba   :  { %21 = sbr.rel (!%p19_p3) target bundleno = 2 (0x2), region = 110 }
 0x2bf   :  { %5268 = vsyncpa [#allocation4], 1 }
 0x2c0   :  { %5270 = vsyncpa [#allocation4 + $0x1], 1 }
 0x2c1   :  { %5271 = vsyncpa [#allocation6], 1 }

</bundles_post_ra>
